<compile_context>
chip_gen: v5e
topology: v5e:2x2
jax: 0.10.0
libtpu: 0.0.40
codegen_flags: <defaults>
</compile_context>

<pallas_src>
import functools

import jax
import jax.numpy as jnp
from jax.experimental import pallas as pl
from jax.experimental.pallas import tpu as pltpu


_OFFSETS = tuple((sy, sx) for sy in (-1, 0, 1) for sx in (-1, 0, 1))
_HI = jax.lax.Precision.HIGHEST


def _border_masks(H, W, lane_batch):
    """(9, 1, lane_batch*H*W) validity masks for the 9 taps of a zero-padded 3x3 stencil.

    The per-image (H, W) mask is tiled along the lane axis; any lane-roll that wraps
    across an image boundary (or around the whole batched lane axis) only lands on
    positions this mask zeroes, so batching images along lanes stays exact.
    """
    hh = jnp.arange(H * W, dtype=jnp.int32) // W
    ww = jnp.arange(H * W, dtype=jnp.int32) % W
    rows = []
    for sy, sx in _OFFSETS:
        valid = (hh + sy >= 0) & (hh + sy < H) & (ww + sx >= 0) & (ww + sx < W)
        rows.append(valid)
    bm = jnp.stack(rows, axis=0).astype(jnp.float32).reshape(9, 1, H * W)
    return jnp.tile(bm, (1, 1, lane_batch))


# ---------------------------------------------------------------------------
# Fused forward kernel (lane_batch images per grid step, everything in VMEM).
# ---------------------------------------------------------------------------
def _make_fused_kernel(H, W, lane_batch, img_ch, seg_ch, width, coff, woff):
    HW = H * W
    BHW = lane_batch * HW
    C = width

    def kernel(x_ref, m_ref, ms_ref, bm_ref, ex_ref,
               xw_ref, sw_ref, dww_ref, w1x1_ref, endw_ref, cvec_ref,
               o_ref):
        f32 = jnp.float32

        def cv(name):                      # packed per-channel column constants
            off, n = coff[name]
            return cvec_ref[off:off + n, :]

        def w1(name):                      # packed 1x1 weight matrices
            off, n = woff[name]
            return w1x1_ref[off:off + n, :]

        def stencil_matmul(src, w_ref, init):
            # init + sum_k w_ref[k] @ shift_k(src), streamed one tap at a time.
            acc = init
            for k, (sy, sx) in enumerate(_OFFSETS):
                if sy == 0 and sx == 0:
                    tap = src
                else:
                    shift = (-(sy * W + sx)) % BHW
                    tap = pltpu.roll(src, shift, 1) * bm_ref[k]
                acc = acc + jnp.dot(w_ref[k], tap, preferred_element_type=f32)
            return acc

        def stencil_depthwise(src, w_ref, bias):
            # bias + sum_k w_ref[k] * shift_k(src)  (per-channel 3x3), streamed.
            acc = w_ref[4] * src + bias                    # centre tap (no mask needed)
            for k, (sy, sx) in enumerate(_OFFSETS):
                if sy == 0 and sx == 0:
                    continue
                shift = (-(sy * W + sx)) % BHW
                acc = acc + w_ref[k] * (pltpu.roll(src, shift, 1) * bm_ref[k])
            return acc

        def layer_norm(t, g, b):
            mu = jnp.mean(t, axis=0, keepdims=True)        # normalize over channels
            tc = t - mu
            var = jnp.mean(tc * tc, axis=0, keepdims=True)
            return tc * jax.lax.rsqrt(var + 1e-6) * g + b

        x = x_ref[...].astype(f32)                         # (img_ch, BHW), lane-dense

        # ---- merged [intro_x ; pre_seg_in∘pre_seg] 3x3 conv over the input ----
        comb = stencil_matmul(x, xw_ref, cv("xbias"))      # (width + seg_ch, BHW)
        h = comb[:C, :]                                    # intro(inp; W_x) + intro_b
        seg = comb[C:, :]                                  # pre_seg_in(pre_seg(inp))

        # ---- mask_average (eval-mode), per-image via block-diagonal masks ----
        # TODO(synk): training-mode random mask dropout (torch.randperm) not reproduced.
        avg = jax.lax.dot_general(seg, ms_ref[...], (((1,), (1,)), ((), ())),
                                  preferred_element_type=f32)   # (seg_ch, Nmask) means
        seg = jnp.dot(avg, m_ref[...], preferred_element_type=f32)  # scatter-back

        # ---- intro(seg; W_s), accumulated straight onto h ----
        h = stencil_matmul(seg, sw_ref, h)                 # (width, BHW)

        # ---- NAFBlock ----
        hn = layer_norm(h, cv("ln1_w"), cv("ln1_b"))
        t = jnp.dot(w1("c1"), hn, preferred_element_type=f32) + cv("c1_b")   # (2C,BHW)
        t = stencil_depthwise(t, dww_ref, cv("dw_b"))
        g = t[:C, :] * t[C:, :]                            # SimpleGate (8-aligned split)

        # Simplified Channel Attention: per-image pooled sums via one tiny matmul
        # (1/HW folded into the SCA weight host-side), expand back with the 0/1 map.
        pooled = jax.lax.dot_general(g, ex_ref[...], (((1,), (1,)), ((), ())),
                                     preferred_element_type=f32)   # (C, lane_batch)
        att = jnp.dot(w1("sca"), pooled, preferred_element_type=f32) + cv("sca_b")
        g = g * jnp.dot(att, ex_ref[...], preferred_element_type=f32)

        g = jnp.dot(w1("c3"), g, preferred_element_type=f32) + cv("c3_b")
        y = h + g * cv("beta")

        yn = layer_norm(y, cv("ln2_w"), cv("ln2_b"))
        f = jnp.dot(w1("c4"), yn, preferred_element_type=f32) + cv("c4_b")
        f = f[:C, :] * f[C:, :]
        f = jnp.dot(w1("c5"), f, preferred_element_type=f32) + cv("c5_b")
        y = y + f * cv("gamma")

        # ---- ending 3x3 + input residual, streamed per tap ----
        out = stencil_matmul(y, endw_ref, cv("end_b") + x[:img_ch, :])
        o_ref[...] = out.astype(o_ref.dtype)

    return kernel


# ---------------------------------------------------------------------------
# Parameter repacking: PyTorch-native layouts -> channel-major kernel layouts.
# ---------------------------------------------------------------------------
def _prep_inputs(params, H, W, lane_batch, img_ch):
    naf = params["naf"]
    HW = H * W

    def taps3(w):           # (Cout, Cin, 3, 3) -> (9, Cout, Cin), tap-major
        co, ci = w.shape[0], w.shape[1]
        return jnp.transpose(w, (2, 3, 0, 1)).reshape(9, co, ci).astype(jnp.float32)

    def mat(w):             # (Cout, Cin, 1, 1) -> (Cout, Cin)
        return w.reshape(w.shape[0], w.shape[1]).astype(jnp.float32)

    def col(v):             # (...,) -> (C, 1) column for lane-broadcast
        return jnp.asarray(v, jnp.float32).reshape(-1, 1)

    seg_ch = params["pre_seg_w"].shape[0]
    width = params["intro_w"].shape[0]

    # (1) fold pre_seg_in (1x1) into pre_seg (3x3):  W'[k]=piw@psw[k],  b'=piw@psb+pib
    psw = taps3(params["pre_seg_w"])                                  # (9,seg_ch,img_ch)
    piw = mat(params["pre_seg_in_w"])                                 # (seg_ch,seg_ch)
    psw_f = jnp.einsum("oc,kci->koi", piw, psw, precision=_HI)
    psb_f = (jnp.einsum("oc,c->o", piw,
                        jnp.asarray(params["pre_seg_b"], jnp.float32), precision=_HI)
             + jnp.asarray(params["pre_seg_in_b"], jnp.float32))

    # (2) merge the two Cin=img_ch tap-convs: rows [0:width]=intro_x, [width:]=pre_seg'
    intro = taps3(params["intro_w"])                                  # (9,width,img+seg)
    xw = jnp.concatenate([intro[:, :, :img_ch], psw_f], axis=1)      # (9,width+seg_ch,img_ch)
    sw = intro[:, :, img_ch:]                                         # (9,width,seg_ch)
    xbias = jnp.concatenate([col(params["intro_b"]), col(psb_f)], axis=0)

    c2 = naf["dw_w"].shape[0]
    dww = jnp.transpose(naf["dw_w"].reshape(c2, 3, 3), (1, 2, 0)).reshape(9, c2, 1)
    dww = dww.astype(jnp.float32)
    endw = jnp.transpose(params["ending_w"], (2, 3, 0, 1))
    endw = endw.reshape(9, params["ending_w"].shape[0], width).astype(jnp.float32)

    # (3) pack the five 1x1 weight matrices into one (rows 8-aligned by construction)
    w_list = [("c1", mat(naf["conv1_w"])),
              ("sca", mat(naf["sca_w"]) * (1.0 / float(HW))),   # fold 1/HW pooling here
              ("c3", mat(naf["conv3_w"])),
              ("c4", mat(naf["conv4_w"])),
              ("c5", mat(naf["conv5_w"]))]
    woff, wrows, off = {}, [], 0
    for name, wmat in w_list:
        n = wmat.shape[0]
        woff[name] = (off, n)
        wrows.append(wmat)
        pad = (-n) % 8
        if pad:
            wrows.append(jnp.zeros((pad, wmat.shape[1]), jnp.float32))
        off += n + pad
    w1x1 = jnp.concatenate(wrows, axis=0)

    # (4) pack every per-channel column constant into one (T, 1) array, 8-aligned
    c_list = [
        ("xbias", xbias),
        ("ln1_w", col(naf["ln1_w"])), ("ln1_b", col(naf["ln1_b"])),
        ("c1_b", col(naf["conv1_b"])), ("dw_b", col(naf["dw_b"])),
        ("sca_b", col(naf["sca_b"])), ("c3_b", col(naf["conv3_b"])),
        ("ln2_w", col(naf["ln2_w"])), ("ln2_b", col(naf["ln2_b"])),
        ("c4_b", col(naf["conv4_b"])), ("c5_b", col(naf["conv5_b"])),
        ("beta", col(naf["beta"])), ("gamma", col(naf["gamma"])),
        ("end_b", col(params["ending_b"])),
    ]
    coff, crows, off = {}, [], 0
    for name, cval in c_list:
        n = cval.shape[0]
        coff[name] = (off, n)
        crows.append(cval)
        pad = (-n) % 8
        if pad:
            crows.append(jnp.zeros((pad, 1), jnp.float32))
        off += n + pad
    cvec = jnp.concatenate(crows, axis=0)

    bm = _border_masks(H, W, lane_batch)
    expand = jnp.kron(jnp.eye(lane_batch, dtype=jnp.float32),
                      jnp.ones((1, HW), jnp.float32))                 # (Bt, Bt*HW) 0/1

    consts = dict(bm=bm, expand=expand, xw=xw, sw=sw, dww=dww,
                  w1x1=w1x1, endw=endw, cvec=cvec)
    meta = dict(seg_ch=seg_ch, width=width, coff=coff, woff=woff)
    return consts, meta


# ---------------------------------------------------------------------------
# Public forward: NCHW in, NCHW out (like the PyTorch module, eval mode).
# ---------------------------------------------------------------------------
def seg_nafnet_forward(params, inp, masks, img_channel=3, lane_batch=None):
    B, C, H, W = inp.shape
    HW = H * W
    if lane_batch is None:
        # Bt=2 keeps the f32 depthwise stencil live-set under the 64-vreg file at
        # width=16; larger batches go through extra (serial) grid steps instead.
        lane_batch = 2 if B % 2 == 0 else 1
    assert B % lane_batch == 0
    G = B // lane_batch
    BHW = lane_batch * HW

    consts, meta = _prep_inputs(params, H, W, lane_batch, img_channel)
    seg_ch, width = meta["seg_ch"], meta["width"]

    # Activations: channel-major, `lane_batch` images concatenated along the lane axis.
    x = inp.reshape(G, lane_batch, C, HW).transpose(0, 2, 1, 3)
    x = x.reshape(G, C, BHW).astype(jnp.float32)

    # Masks: append the per-image "remaining" region as an extra mask, then extend
    # each mask block-diagonally along the batched lane axis.  Pre-fold 1/(area+1e-8)
    # into a scaled copy so the kernel needs no divides.
    M = masks.shape[1]
    m_in = masks[:, :, 0, :, :].reshape(B, M, HW).astype(jnp.float32)
    remaining = 1.0 - jnp.clip(jnp.sum(m_in, axis=1, keepdims=True), 0.0, 1.0)
    aug = jnp.concatenate([m_in, remaining], axis=1)                  # (B, M+1, HW)
    aug = aug.reshape(G, lane_batch, M + 1, HW)
    eye = jnp.eye(lane_batch, dtype=jnp.float32)
    big = jnp.einsum("gbmh,bc->gbmch", aug, eye)
    big = big.reshape(G, lane_batch * (M + 1), BHW)                   # (G, Nmask, BHW)
    inv_area = 1.0 / (jnp.sum(big, axis=2, keepdims=True) + 1e-8)
    big_scaled = big * inv_area
    Nmask = lane_batch * (M + 1)

    per_step = [
        (x, pl.BlockSpec((None, C, BHW), lambda i: (i, 0, 0))),
        (big, pl.BlockSpec((None, Nmask, BHW), lambda i: (i, 0, 0))),
        (big_scaled, pl.BlockSpec((None, Nmask, BHW), lambda i: (i, 0, 0))),
    ]
    const_order = ["bm", "expand", "xw", "sw", "dww", "w1x1", "endw", "cvec"]
    const_arrays = [consts[k] for k in const_order]

    def const_spec(a):
        nd = a.ndim
        return pl.BlockSpec(a.shape, lambda i, _nd=nd: (0,) * _nd)

    in_specs = [s for _, s in per_step] + [const_spec(a) for a in const_arrays]
    operands = [a for a, _ in per_step] + const_arrays

    kernel = _make_fused_kernel(H, W, lane_batch, img_channel, seg_ch, width,
                                meta["coff"], meta["woff"])
    out = pl.pallas_call(
        kernel,
        out_shape=jax.ShapeDtypeStruct((G, img_channel, BHW), inp.dtype),
        grid=(G,),
        in_specs=in_specs,
        out_specs=pl.BlockSpec((None, img_channel, BHW), lambda i: (i, 0, 0)),
        compiler_params=pltpu.CompilerParams(dimension_semantics=("parallel",)),
    )(*operands)

    out = out.reshape(G, img_channel, lane_batch, HW).transpose(0, 2, 1, 3)
    return out.reshape(B, img_channel, H, W)


# ---------------------------------------------------------------------------
# Pure-XLA reference (for numerical verification only).
# ---------------------------------------------------------------------------
def _conv2d_ref(x, w, b, groups=1):
    kh, kw = int(w.shape[2]), int(w.shape[3])
    y = jax.lax.conv_general_dilated(
        x, w, window_strides=(1, 1),
        padding=((kh // 2, kh // 2), (kw // 2, kw // 2)),
        dimension_numbers=("NCHW", "OIHW", "NCHW"),
        feature_group_count=groups, precision=_HI)
    return y + b[None, :, None, None]


def _layer_norm2d_ref(x, g, b, eps=1e-6):
    mu = jnp.mean(x, axis=1, keepdims=True)
    xc = x - mu
    var = jnp.mean(xc * xc, axis=1, keepdims=True)
    return xc * jax.lax.rsqrt(var + eps) * g[None, :, None, None] + b[None, :, None, None]


def _mask_average_ref(img, masks):
    B, C, H, W = img.shape
    x = img.reshape(B, C, H * W)
    m = masks.reshape(B, masks.shape[1], H * W).astype(x.dtype)
    areas = jnp.sum(m, axis=2, keepdims=True)
    sums = jnp.einsum("bmp,bcp->bmc", m, x, precision=_HI)
    avg = sums / (areas + 1e-8)
    res = jnp.einsum("bmc,bmp->bcp", avg, m, precision=_HI)
    covered = jnp.clip(jnp.sum(m, axis=1, keepdims=True), 0.0, 1.0)
    remaining = 1.0 - covered
    rem_area = jnp.sum(remaining, axis=2, keepdims=True)
    rem_sum = jnp.sum(x * remaining, axis=2, keepdims=True)
    res = res + (rem_sum / (rem_area + 1e-8)) * remaining
    return res.reshape(B, C, H, W)


def _naf_block_ref(x, p):
    c = p["conv3_w"].shape[0]
    h = _layer_norm2d_ref(x, p["ln1_w"], p["ln1_b"])
    h = _conv2d_ref(h, p["conv1_w"], p["conv1_b"])
    h = _conv2d_ref(h, p["dw_w"], p["dw_b"], groups=p["dw_w"].shape[0])
    h = h[:, :c] * h[:, c:]
    pooled = jnp.mean(h, axis=(2, 3), keepdims=True)
    att = _conv2d_ref(pooled, p["sca_w"], p["sca_b"])
    h = h * att
    h = _conv2d_ref(h, p["conv3_w"], p["conv3_b"])
    y = x + h * p["beta"]
    h = _layer_norm2d_ref(y, p["ln2_w"], p["ln2_b"])
    h = _conv2d_ref(h, p["conv4_w"], p["conv4_b"])
    h = h[:, :c] * h[:, c:]
    h = _conv2d_ref(h, p["conv5_w"], p["conv5_b"])
    return y + h * p["gamma"]


def seg_nafnet_reference(params, inp, masks, img_channel=3):
    seg = _conv2d_ref(inp, params["pre_seg_w"], params["pre_seg_b"])
    seg = _conv2d_ref(seg, params["pre_seg_in_w"], params["pre_seg_in_b"])
    seg = _mask_average_ref(seg, masks[:, :, 0, :, :])
    x = _conv2d_ref(jnp.concatenate([inp, seg], axis=1),
                    params["intro_w"], params["intro_b"])
    x = _naf_block_ref(x, params["naf"])
    x = _conv2d_ref(x, params["ending_w"], params["ending_b"])
    return x[:, :img_channel] + inp[:, :img_channel]


# ---------------------------------------------------------------------------
# Deterministic parameter init (PyTorch-native layouts; values synthetic).
# ---------------------------------------------------------------------------
def init_params(key, img_ch=3, seg_ch=3, width=16):
    ks = iter(jax.random.split(key, 24))

    def nrm(shape, scale=0.1):
        return (scale * jax.random.normal(next(ks), shape)).astype(jnp.float32)

    c = width
    return {
        "pre_seg_w": nrm((seg_ch, img_ch, 3, 3)), "pre_seg_b": nrm((seg_ch,)),
        "pre_seg_in_w": nrm((seg_ch, seg_ch, 1, 1)), "pre_seg_in_b": nrm((seg_ch,)),
        "intro_w": nrm((c, img_ch + seg_ch, 3, 3)), "intro_b": nrm((c,)),
        "ending_w": nrm((img_ch, c, 3, 3)), "ending_b": nrm((img_ch,)),
        "naf": {
            "ln1_w": jnp.ones((c,), jnp.float32), "ln1_b": jnp.zeros((c,), jnp.float32),
            "conv1_w": nrm((2 * c, c, 1, 1)), "conv1_b": nrm((2 * c,)),
            "dw_w": nrm((2 * c, 1, 3, 3)), "dw_b": nrm((2 * c,)),
            "sca_w": nrm((c, c, 1, 1)), "sca_b": nrm((c,)),
            "conv3_w": nrm((c, c, 1, 1)), "conv3_b": nrm((c,)),
            "ln2_w": jnp.ones((c,), jnp.float32), "ln2_b": jnp.zeros((c,), jnp.float32),
            "conv4_w": nrm((2 * c, c, 1, 1)), "conv4_b": nrm((2 * c,)),
            "conv5_w": nrm((c, c, 1, 1)), "conv5_b": nrm((c,)),
            # PyTorch initializes beta/gamma to zeros; nonzero here so the
            # residual-scaling path is actually exercised numerically.
            "beta": nrm((1, c, 1, 1)), "gamma": nrm((1, c, 1, 1)),
        },
    }


if __name__ == "__main__":
    key = jax.random.PRNGKey(0)
    kp, kx = jax.random.split(key)
    B, C, H, W, M = 2, 3, 16, 16, 3

    params = init_params(kp, img_ch=C, seg_ch=3, width=16)
    inp = jax.random.normal(kx, (B, C, H, W), jnp.float32)

    # Deterministic binary masks, shape (B, M, 1, H, W) as in the PyTorch API.
    rows = jnp.arange(H, dtype=jnp.float32)[:, None] * jnp.ones((1, W), jnp.float32)
    cols = jnp.ones((H, 1), jnp.float32) * jnp.arange(W, dtype=jnp.float32)[None, :]
    m0 = (cols < W // 2).astype(jnp.float32)
    m1 = ((cols >= W // 2) & (rows < H // 2)).astype(jnp.float32)
    m2 = ((rows >= 4) & (rows < 12) & (cols >= 4) & (cols < 12)).astype(jnp.float32)
    masks = jnp.stack([m0, m1, m2], axis=0)[None, :, None, :, :]
    masks = jnp.tile(masks, (B, 1, 1, 1, 1))

    fwd = jax.jit(functools.partial(seg_nafnet_forward, img_channel=C))
    out = jax.block_until_ready(fwd(params, inp, masks))

    assert out.shape == (B, C, H, W), out.shape
    assert bool(jnp.all(jnp.isfinite(out)))

    ref_fn = jax.jit(functools.partial(seg_nafnet_reference, img_channel=C))
    ref = jax.block_until_ready(ref_fn(params, inp, masks))
    err = float(jnp.max(jnp.abs(out - ref)))
    assert err < 2e-3, f"max abs error vs XLA reference: {err}"

    print("KERNEL_OK")
</pallas_src>

<mosaic_0001>
module attributes {stable_mosaic.version = 11 : i64} {
  func.func @kernel(%arg0: i32, %arg1: memref<1x3x512xf32, #tpu.memory_space<vmem>>, %arg2: memref<1x8x512xf32, #tpu.memory_space<vmem>>, %arg3: memref<1x8x512xf32, #tpu.memory_space<vmem>>, %arg4: memref<9x1x512xf32, #tpu.memory_space<vmem>>, %arg5: memref<2x512xf32, #tpu.memory_space<vmem>>, %arg6: memref<9x19x3xf32, #tpu.memory_space<vmem>>, %arg7: memref<9x16x3xf32, #tpu.memory_space<vmem>>, %arg8: memref<9x32x1xf32, #tpu.memory_space<vmem>>, %arg9: memref<112x16xf32, #tpu.memory_space<vmem>>, %arg10: memref<9x3x16xf32, #tpu.memory_space<vmem>>, %arg11: memref<272x1xf32, #tpu.memory_space<vmem>>, %arg12: memref<1x3x512xf32, #tpu.memory_space<vmem>>) attributes {dimension_semantics = [#tpu.dimension_semantics<parallel>], iteration_bounds = array<i64: 1>, scalar_prefetch = 0 : i64, scratch_operands = 0 : i64, tpu.core_type = #tpu.core_type<tc>, window_params = [{transform_indices = @transform_0, window_bounds = array<i64: 1, 3, 512>}, {transform_indices = @transform_1, window_bounds = array<i64: 1, 8, 512>}, {transform_indices = @transform_2, window_bounds = array<i64: 1, 8, 512>}, {pipeline_mode = #tpu.pipeline_mode<synchronous>, transform_indices = @transform_3, window_bounds = array<i64: 9, 1, 512>}, {pipeline_mode = #tpu.pipeline_mode<synchronous>, transform_indices = @transform_4, window_bounds = array<i64: 2, 512>}, {pipeline_mode = #tpu.pipeline_mode<synchronous>, transform_indices = @transform_5, window_bounds = array<i64: 9, 19, 3>}, {pipeline_mode = #tpu.pipeline_mode<synchronous>, transform_indices = @transform_6, window_bounds = array<i64: 9, 16, 3>}, {pipeline_mode = #tpu.pipeline_mode<synchronous>, transform_indices = @transform_7, window_bounds = array<i64: 9, 32, 1>}, {pipeline_mode = #tpu.pipeline_mode<synchronous>, transform_indices = @transform_8, window_bounds = array<i64: 112, 16>}, {pipeline_mode = #tpu.pipeline_mode<synchronous>, transform_indices = @transform_9, window_bounds = array<i64: 9, 3, 16>}, {pipeline_mode = #tpu.pipeline_mode<synchronous>, transform_indices = @transform_10, window_bounds = array<i64: 272, 1>}, {transform_indices = @transform_11, window_bounds = array<i64: 1, 3, 512>}]} {
    %c0 = arith.constant 0 : index
    %c0_0 = arith.constant 0 : index
    %c0_1 = arith.constant 0 : index
    %0 = vector.load %arg1[%c0, %c0_0, %c0_1] : memref<1x3x512xf32, #tpu.memory_space<vmem>>, vector<1x3x512xf32>
    %1 = vector.shape_cast %0 : vector<1x3x512xf32> to vector<3x512xf32>
    %c0_2 = arith.constant 0 : index
    %c0_3 = arith.constant 0 : index
    %2 = vector.load %arg11[%c0_2, %c0_3] : memref<272x1xf32, #tpu.memory_space<vmem>>, vector<19x1xf32>
    %c17_i32 = arith.constant 17 : i32
    %3 = tpu.dynamic_rotate %1 by %c17_i32 dim 1 : vector<3x512xf32>, i32 -> vector<3x512xf32>
    %c0_4 = arith.constant 0 : index
    %c0_5 = arith.constant 0 : index
    %c0_6 = arith.constant 0 : index
    %4 = vector.load %arg4[%c0_4, %c0_5, %c0_6] : memref<9x1x512xf32, #tpu.memory_space<vmem>>, vector<1x1x512xf32>
    %5 = vector.shape_cast %4 : vector<1x1x512xf32> to vector<1x512xf32>
    %6 = vector.broadcast %5 : vector<1x512xf32> to vector<3x512xf32>
    %7 = arith.mulf %3, %6 : vector<3x512xf32>
    %c0_7 = arith.constant 0 : index
    %c0_8 = arith.constant 0 : index
    %c0_9 = arith.constant 0 : index
    %8 = vector.load %arg6[%c0_7, %c0_8, %c0_9] : memref<9x19x3xf32, #tpu.memory_space<vmem>>, vector<1x19x3xf32>
    %9 = vector.shape_cast %8 : vector<1x19x3xf32> to vector<19x3xf32>
    %cst = arith.constant dense<0.000000e+00> : vector<19x512xf32>
    %10 = tpu.matmul %9, %7, %cst {dimension_numbers = #tpu.dot_dimension_numbers<[1], [0], [0], [1], [0, 0, 1, 1], [], []>} : vector<19x3xf32>, vector<3x512xf32>, vector<19x512xf32> -> vector<19x512xf32>
    %11 = vector.broadcast %2 : vector<19x1xf32> to vector<19x512xf32>
    %12 = arith.addf %11, %10 : vector<19x512xf32>
    %c16_i32 = arith.constant 16 : i32
    %13 = tpu.dynamic_rotate %1 by %c16_i32 dim 1 : vector<3x512xf32>, i32 -> vector<3x512xf32>
    %c1 = arith.constant 1 : index
    %c0_10 = arith.constant 0 : index
    %c0_11 = arith.constant 0 : index
    %14 = vector.load %arg4[%c1, %c0_10, %c0_11] : memref<9x1x512xf32, #tpu.memory_space<vmem>>, vector<1x1x512xf32>
    %15 = vector.shape_cast %14 : vector<1x1x512xf32> to vector<1x512xf32>
    %16 = vector.broadcast %15 : vector<1x512xf32> to vector<3x512xf32>
    %17 = arith.mulf %13, %16 : vector<3x512xf32>
    %c1_12 = arith.constant 1 : index
    %c0_13 = arith.constant 0 : index
    %c0_14 = arith.constant 0 : index
    %18 = vector.load %arg6[%c1_12, %c0_13, %c0_14] : memref<9x19x3xf32, #tpu.memory_space<vmem>>, vector<1x19x3xf32>
    %19 = vector.shape_cast %18 : vector<1x19x3xf32> to vector<19x3xf32>
    %cst_15 = arith.constant dense<0.000000e+00> : vector<19x512xf32>
    %20 = tpu.matmul %19, %17, %cst_15 {dimension_numbers = #tpu.dot_dimension_numbers<[1], [0], [0], [1], [0, 0, 1, 1], [], []>} : vector<19x3xf32>, vector<3x512xf32>, vector<19x512xf32> -> vector<19x512xf32>
    %21 = arith.addf %12, %20 : vector<19x512xf32>
    %c15_i32 = arith.constant 15 : i32
    %22 = tpu.dynamic_rotate %1 by %c15_i32 dim 1 : vector<3x512xf32>, i32 -> vector<3x512xf32>
    %c2 = arith.constant 2 : index
    %c0_16 = arith.constant 0 : index
    %c0_17 = arith.constant 0 : index
    %23 = vector.load %arg4[%c2, %c0_16, %c0_17] : memref<9x1x512xf32, #tpu.memory_space<vmem>>, vector<1x1x512xf32>
    %24 = vector.shape_cast %23 : vector<1x1x512xf32> to vector<1x512xf32>
    %25 = vector.broadcast %24 : vector<1x512xf32> to vector<3x512xf32>
    %26 = arith.mulf %22, %25 : vector<3x512xf32>
    %c2_18 = arith.constant 2 : index
    %c0_19 = arith.constant 0 : index
    %c0_20 = arith.constant 0 : index
    %27 = vector.load %arg6[%c2_18, %c0_19, %c0_20] : memref<9x19x3xf32, #tpu.memory_space<vmem>>, vector<1x19x3xf32>
    %28 = vector.shape_cast %27 : vector<1x19x3xf32> to vector<19x3xf32>
    %cst_21 = arith.constant dense<0.000000e+00> : vector<19x512xf32>
    %29 = tpu.matmul %28, %26, %cst_21 {dimension_numbers = #tpu.dot_dimension_numbers<[1], [0], [0], [1], [0, 0, 1, 1], [], []>} : vector<19x3xf32>, vector<3x512xf32>, vector<19x512xf32> -> vector<19x512xf32>
    %30 = arith.addf %21, %29 : vector<19x512xf32>
    %c1_i32 = arith.constant 1 : i32
    %31 = tpu.dynamic_rotate %1 by %c1_i32 dim 1 : vector<3x512xf32>, i32 -> vector<3x512xf32>
    %c3 = arith.constant 3 : index
    %c0_22 = arith.constant 0 : index
    %c0_23 = arith.constant 0 : index
    %32 = vector.load %arg4[%c3, %c0_22, %c0_23] : memref<9x1x512xf32, #tpu.memory_space<vmem>>, vector<1x1x512xf32>
    %33 = vector.shape_cast %32 : vector<1x1x512xf32> to vector<1x512xf32>
    %34 = vector.broadcast %33 : vector<1x512xf32> to vector<3x512xf32>
    %35 = arith.mulf %31, %34 : vector<3x512xf32>
    %c3_24 = arith.constant 3 : index
    %c0_25 = arith.constant 0 : index
    %c0_26 = arith.constant 0 : index
    %36 = vector.load %arg6[%c3_24, %c0_25, %c0_26] : memref<9x19x3xf32, #tpu.memory_space<vmem>>, vector<1x19x3xf32>
    %37 = vector.shape_cast %36 : vector<1x19x3xf32> to vector<19x3xf32>
    %cst_27 = arith.constant dense<0.000000e+00> : vector<19x512xf32>
    %38 = tpu.matmul %37, %35, %cst_27 {dimension_numbers = #tpu.dot_dimension_numbers<[1], [0], [0], [1], [0, 0, 1, 1], [], []>} : vector<19x3xf32>, vector<3x512xf32>, vector<19x512xf32> -> vector<19x512xf32>
    %39 = arith.addf %30, %38 : vector<19x512xf32>
    %c4 = arith.constant 4 : index
    %c0_28 = arith.constant 0 : index
    %c0_29 = arith.constant 0 : index
    %40 = vector.load %arg6[%c4, %c0_28, %c0_29] : memref<9x19x3xf32, #tpu.memory_space<vmem>>, vector<1x19x3xf32>
    %41 = vector.shape_cast %40 : vector<1x19x3xf32> to vector<19x3xf32>
    %cst_30 = arith.constant dense<0.000000e+00> : vector<19x512xf32>
    %42 = tpu.matmul %41, %1, %cst_30 {dimension_numbers = #tpu.dot_dimension_numbers<[1], [0], [0], [1], [0, 0, 1, 1], [], []>} : vector<19x3xf32>, vector<3x512xf32>, vector<19x512xf32> -> vector<19x512xf32>
    %43 = arith.addf %39, %42 : vector<19x512xf32>
    %c511_i32 = arith.constant 511 : i32
    %44 = tpu.dynamic_rotate %1 by %c511_i32 dim 1 : vector<3x512xf32>, i32 -> vector<3x512xf32>
    %c5 = arith.constant 5 : index
    %c0_31 = arith.constant 0 : index
    %c0_32 = arith.constant 0 : index
    %45 = vector.load %arg4[%c5, %c0_31, %c0_32] : memref<9x1x512xf32, #tpu.memory_space<vmem>>, vector<1x1x512xf32>
    %46 = vector.shape_cast %45 : vector<1x1x512xf32> to vector<1x512xf32>
    %47 = vector.broadcast %46 : vector<1x512xf32> to vector<3x512xf32>
    %48 = arith.mulf %44, %47 : vector<3x512xf32>
    %c5_33 = arith.constant 5 : index
    %c0_34 = arith.constant 0 : index
    %c0_35 = arith.constant 0 : index
    %49 = vector.load %arg6[%c5_33, %c0_34, %c0_35] : memref<9x19x3xf32, #tpu.memory_space<vmem>>, vector<1x19x3xf32>
    %50 = vector.shape_cast %49 : vector<1x19x3xf32> to vector<19x3xf32>
    %cst_36 = arith.constant dense<0.000000e+00> : vector<19x512xf32>
    %51 = tpu.matmul %50, %48, %cst_36 {dimension_numbers = #tpu.dot_dimension_numbers<[1], [0], [0], [1], [0, 0, 1, 1], [], []>} : vector<19x3xf32>, vector<3x512xf32>, vector<19x512xf32> -> vector<19x512xf32>
    %52 = arith.addf %43, %51 : vector<19x512xf32>
    %c497_i32 = arith.constant 497 : i32
    %53 = tpu.dynamic_rotate %1 by %c497_i32 dim 1 : vector<3x512xf32>, i32 -> vector<3x512xf32>
    %c6 = arith.constant 6 : index
    %c0_37 = arith.constant 0 : index
    %c0_38 = arith.constant 0 : index
    %54 = vector.load %arg4[%c6, %c0_37, %c0_38] : memref<9x1x512xf32, #tpu.memory_space<vmem>>, vector<1x1x512xf32>
    %55 = vector.shape_cast %54 : vector<1x1x512xf32> to vector<1x512xf32>
    %56 = vector.broadcast %55 : vector<1x512xf32> to vector<3x512xf32>
    %57 = arith.mulf %53, %56 : vector<3x512xf32>
    %c6_39 = arith.constant 6 : index
    %c0_40 = arith.constant 0 : index
    %c0_41 = arith.constant 0 : index
    %58 = vector.load %arg6[%c6_39, %c0_40, %c0_41] : memref<9x19x3xf32, #tpu.memory_space<vmem>>, vector<1x19x3xf32>
    %59 = vector.shape_cast %58 : vector<1x19x3xf32> to vector<19x3xf32>
    %cst_42 = arith.constant dense<0.000000e+00> : vector<19x512xf32>
    %60 = tpu.matmul %59, %57, %cst_42 {dimension_numbers = #tpu.dot_dimension_numbers<[1], [0], [0], [1], [0, 0, 1, 1], [], []>} : vector<19x3xf32>, vector<3x512xf32>, vector<19x512xf32> -> vector<19x512xf32>
    %61 = arith.addf %52, %60 : vector<19x512xf32>
    %c496_i32 = arith.constant 496 : i32
    %62 = tpu.dynamic_rotate %1 by %c496_i32 dim 1 : vector<3x512xf32>, i32 -> vector<3x512xf32>
    %c7 = arith.constant 7 : index
    %c0_43 = arith.constant 0 : index
    %c0_44 = arith.constant 0 : index
    %63 = vector.load %arg4[%c7, %c0_43, %c0_44] : memref<9x1x512xf32, #tpu.memory_space<vmem>>, vector<1x1x512xf32>
    %64 = vector.shape_cast %63 : vector<1x1x512xf32> to vector<1x512xf32>
    %65 = vector.broadcast %64 : vector<1x512xf32> to vector<3x512xf32>
    %66 = arith.mulf %62, %65 : vector<3x512xf32>
    %c7_45 = arith.constant 7 : index
    %c0_46 = arith.constant 0 : index
    %c0_47 = arith.constant 0 : index
    %67 = vector.load %arg6[%c7_45, %c0_46, %c0_47] : memref<9x19x3xf32, #tpu.memory_space<vmem>>, vector<1x19x3xf32>
    %68 = vector.shape_cast %67 : vector<1x19x3xf32> to vector<19x3xf32>
    %cst_48 = arith.constant dense<0.000000e+00> : vector<19x512xf32>
    %69 = tpu.matmul %68, %66, %cst_48 {dimension_numbers = #tpu.dot_dimension_numbers<[1], [0], [0], [1], [0, 0, 1, 1], [], []>} : vector<19x3xf32>, vector<3x512xf32>, vector<19x512xf32> -> vector<19x512xf32>
    %70 = arith.addf %61, %69 : vector<19x512xf32>
    %c495_i32 = arith.constant 495 : i32
    %71 = tpu.dynamic_rotate %1 by %c495_i32 dim 1 : vector<3x512xf32>, i32 -> vector<3x512xf32>
    %c8 = arith.constant 8 : index
    %c0_49 = arith.constant 0 : index
    %c0_50 = arith.constant 0 : index
    %72 = vector.load %arg4[%c8, %c0_49, %c0_50] : memref<9x1x512xf32, #tpu.memory_space<vmem>>, vector<1x1x512xf32>
    %73 = vector.shape_cast %72 : vector<1x1x512xf32> to vector<1x512xf32>
    %74 = vector.broadcast %73 : vector<1x512xf32> to vector<3x512xf32>
    %75 = arith.mulf %71, %74 : vector<3x512xf32>
    %c8_51 = arith.constant 8 : index
    %c0_52 = arith.constant 0 : index
    %c0_53 = arith.constant 0 : index
    %76 = vector.load %arg6[%c8_51, %c0_52, %c0_53] : memref<9x19x3xf32, #tpu.memory_space<vmem>>, vector<1x19x3xf32>
    %77 = vector.shape_cast %76 : vector<1x19x3xf32> to vector<19x3xf32>
    %cst_54 = arith.constant dense<0.000000e+00> : vector<19x512xf32>
    %78 = tpu.matmul %77, %75, %cst_54 {dimension_numbers = #tpu.dot_dimension_numbers<[1], [0], [0], [1], [0, 0, 1, 1], [], []>} : vector<19x3xf32>, vector<3x512xf32>, vector<19x512xf32> -> vector<19x512xf32>
    %79 = arith.addf %70, %78 : vector<19x512xf32>
    %80 = vector.extract_strided_slice %79 {offsets = [0, 0], sizes = [16, 512], strides = [1, 1]} : vector<19x512xf32> to vector<16x512xf32>
    %81 = vector.extract_strided_slice %79 {offsets = [16, 0], sizes = [3, 512], strides = [1, 1]} : vector<19x512xf32> to vector<3x512xf32>
    %c0_55 = arith.constant 0 : index
    %c0_56 = arith.constant 0 : index
    %c0_57 = arith.constant 0 : index
    %82 = vector.load %arg3[%c0_55, %c0_56, %c0_57] : memref<1x8x512xf32, #tpu.memory_space<vmem>>, vector<1x8x512xf32>
    %83 = vector.shape_cast %82 : vector<1x8x512xf32> to vector<8x512xf32>
    %cst_58 = arith.constant dense<0.000000e+00> : vector<3x8xf32>
    %84 = tpu.matmul %81, %83, %cst_58 {dimension_numbers = #tpu.dot_dimension_numbers<[1], [1], [0], [0], [0, 0, 1, 0], [], []>} : vector<3x512xf32>, vector<8x512xf32>, vector<3x8xf32> -> vector<3x8xf32>
    %c0_59 = arith.constant 0 : index
    %c0_60 = arith.constant 0 : index
    %c0_61 = arith.constant 0 : index
    %85 = vector.load %arg2[%c0_59, %c0_60, %c0_61] : memref<1x8x512xf32, #tpu.memory_space<vmem>>, vector<1x8x512xf32>
    %86 = vector.shape_cast %85 : vector<1x8x512xf32> to vector<8x512xf32>
    %cst_62 = arith.constant dense<0.000000e+00> : vector<3x512xf32>
    %87 = tpu.matmul %84, %86, %cst_62 {dimension_numbers = #tpu.dot_dimension_numbers<[1], [0], [0], [1], [0, 0, 1, 1], [], []>} : vector<3x8xf32>, vector<8x512xf32>, vector<3x512xf32> -> vector<3x512xf32>
    %c17_i32_63 = arith.constant 17 : i32
    %88 = tpu.dynamic_rotate %87 by %c17_i32_63 dim 1 : vector<3x512xf32>, i32 -> vector<3x512xf32>
    %c0_64 = arith.constant 0 : index
    %c0_65 = arith.constant 0 : index
    %c0_66 = arith.constant 0 : index
    %89 = vector.load %arg4[%c0_64, %c0_65, %c0_66] : memref<9x1x512xf32, #tpu.memory_space<vmem>>, vector<1x1x512xf32>
    %90 = vector.shape_cast %89 : vector<1x1x512xf32> to vector<1x512xf32>
    %91 = vector.broadcast %90 : vector<1x512xf32> to vector<3x512xf32>
    %92 = arith.mulf %88, %91 : vector<3x512xf32>
    %c0_67 = arith.constant 0 : index
    %c0_68 = arith.constant 0 : index
    %c0_69 = arith.constant 0 : index
    %93 = vector.load %arg7[%c0_67, %c0_68, %c0_69] : memref<9x16x3xf32, #tpu.memory_space<vmem>>, vector<1x16x3xf32>
    %94 = vector.shape_cast %93 : vector<1x16x3xf32> to vector<16x3xf32>
    %cst_70 = arith.constant dense<0.000000e+00> : vector<16x512xf32>
    %95 = tpu.matmul %94, %92, %cst_70 {dimension_numbers = #tpu.dot_dimension_numbers<[1], [0], [0], [1], [0, 0, 1, 1], [], []>} : vector<16x3xf32>, vector<3x512xf32>, vector<16x512xf32> -> vector<16x512xf32>
    %96 = arith.addf %80, %95 : vector<16x512xf32>
    %c16_i32_71 = arith.constant 16 : i32
    %97 = tpu.dynamic_rotate %87 by %c16_i32_71 dim 1 : vector<3x512xf32>, i32 -> vector<3x512xf32>
    %c1_72 = arith.constant 1 : index
    %c0_73 = arith.constant 0 : index
    %c0_74 = arith.constant 0 : index
    %98 = vector.load %arg4[%c1_72, %c0_73, %c0_74] : memref<9x1x512xf32, #tpu.memory_space<vmem>>, vector<1x1x512xf32>
    %99 = vector.shape_cast %98 : vector<1x1x512xf32> to vector<1x512xf32>
    %100 = vector.broadcast %99 : vector<1x512xf32> to vector<3x512xf32>
    %101 = arith.mulf %97, %100 : vector<3x512xf32>
    %c1_75 = arith.constant 1 : index
    %c0_76 = arith.constant 0 : index
    %c0_77 = arith.constant 0 : index
    %102 = vector.load %arg7[%c1_75, %c0_76, %c0_77] : memref<9x16x3xf32, #tpu.memory_space<vmem>>, vector<1x16x3xf32>
    %103 = vector.shape_cast %102 : vector<1x16x3xf32> to vector<16x3xf32>
    %cst_78 = arith.constant dense<0.000000e+00> : vector<16x512xf32>
    %104 = tpu.matmul %103, %101, %cst_78 {dimension_numbers = #tpu.dot_dimension_numbers<[1], [0], [0], [1], [0, 0, 1, 1], [], []>} : vector<16x3xf32>, vector<3x512xf32>, vector<16x512xf32> -> vector<16x512xf32>
    %105 = arith.addf %96, %104 : vector<16x512xf32>
    %c15_i32_79 = arith.constant 15 : i32
    %106 = tpu.dynamic_rotate %87 by %c15_i32_79 dim 1 : vector<3x512xf32>, i32 -> vector<3x512xf32>
    %c2_80 = arith.constant 2 : index
    %c0_81 = arith.constant 0 : index
    %c0_82 = arith.constant 0 : index
    %107 = vector.load %arg4[%c2_80, %c0_81, %c0_82] : memref<9x1x512xf32, #tpu.memory_space<vmem>>, vector<1x1x512xf32>
    %108 = vector.shape_cast %107 : vector<1x1x512xf32> to vector<1x512xf32>
    %109 = vector.broadcast %108 : vector<1x512xf32> to vector<3x512xf32>
    %110 = arith.mulf %106, %109 : vector<3x512xf32>
    %c2_83 = arith.constant 2 : index
    %c0_84 = arith.constant 0 : index
    %c0_85 = arith.constant 0 : index
    %111 = vector.load %arg7[%c2_83, %c0_84, %c0_85] : memref<9x16x3xf32, #tpu.memory_space<vmem>>, vector<1x16x3xf32>
    %112 = vector.shape_cast %111 : vector<1x16x3xf32> to vector<16x3xf32>
    %cst_86 = arith.constant dense<0.000000e+00> : vector<16x512xf32>
    %113 = tpu.matmul %112, %110, %cst_86 {dimension_numbers = #tpu.dot_dimension_numbers<[1], [0], [0], [1], [0, 0, 1, 1], [], []>} : vector<16x3xf32>, vector<3x512xf32>, vector<16x512xf32> -> vector<16x512xf32>
    %114 = arith.addf %105, %113 : vector<16x512xf32>
    %c1_i32_87 = arith.constant 1 : i32
    %115 = tpu.dynamic_rotate %87 by %c1_i32_87 dim 1 : vector<3x512xf32>, i32 -> vector<3x512xf32>
    %c3_88 = arith.constant 3 : index
    %c0_89 = arith.constant 0 : index
    %c0_90 = arith.constant 0 : index
    %116 = vector.load %arg4[%c3_88, %c0_89, %c0_90] : memref<9x1x512xf32, #tpu.memory_space<vmem>>, vector<1x1x512xf32>
    %117 = vector.shape_cast %116 : vector<1x1x512xf32> to vector<1x512xf32>
    %118 = vector.broadcast %117 : vector<1x512xf32> to vector<3x512xf32>
    %119 = arith.mulf %115, %118 : vector<3x512xf32>
    %c3_91 = arith.constant 3 : index
    %c0_92 = arith.constant 0 : index
    %c0_93 = arith.constant 0 : index
    %120 = vector.load %arg7[%c3_91, %c0_92, %c0_93] : memref<9x16x3xf32, #tpu.memory_space<vmem>>, vector<1x16x3xf32>
    %121 = vector.shape_cast %120 : vector<1x16x3xf32> to vector<16x3xf32>
    %cst_94 = arith.constant dense<0.000000e+00> : vector<16x512xf32>
    %122 = tpu.matmul %121, %119, %cst_94 {dimension_numbers = #tpu.dot_dimension_numbers<[1], [0], [0], [1], [0, 0, 1, 1], [], []>} : vector<16x3xf32>, vector<3x512xf32>, vector<16x512xf32> -> vector<16x512xf32>
    %123 = arith.addf %114, %122 : vector<16x512xf32>
    %c4_95 = arith.constant 4 : index
    %c0_96 = arith.constant 0 : index
    %c0_97 = arith.constant 0 : index
    %124 = vector.load %arg7[%c4_95, %c0_96, %c0_97] : memref<9x16x3xf32, #tpu.memory_space<vmem>>, vector<1x16x3xf32>
    %125 = vector.shape_cast %124 : vector<1x16x3xf32> to vector<16x3xf32>
    %cst_98 = arith.constant dense<0.000000e+00> : vector<16x512xf32>
    %126 = tpu.matmul %125, %87, %cst_98 {dimension_numbers = #tpu.dot_dimension_numbers<[1], [0], [0], [1], [0, 0, 1, 1], [], []>} : vector<16x3xf32>, vector<3x512xf32>, vector<16x512xf32> -> vector<16x512xf32>
    %127 = arith.addf %123, %126 : vector<16x512xf32>
    %c511_i32_99 = arith.constant 511 : i32
    %128 = tpu.dynamic_rotate %87 by %c511_i32_99 dim 1 : vector<3x512xf32>, i32 -> vector<3x512xf32>
    %c5_100 = arith.constant 5 : index
    %c0_101 = arith.constant 0 : index
    %c0_102 = arith.constant 0 : index
    %129 = vector.load %arg4[%c5_100, %c0_101, %c0_102] : memref<9x1x512xf32, #tpu.memory_space<vmem>>, vector<1x1x512xf32>
    %130 = vector.shape_cast %129 : vector<1x1x512xf32> to vector<1x512xf32>
    %131 = vector.broadcast %130 : vector<1x512xf32> to vector<3x512xf32>
    %132 = arith.mulf %128, %131 : vector<3x512xf32>
    %c5_103 = arith.constant 5 : index
    %c0_104 = arith.constant 0 : index
    %c0_105 = arith.constant 0 : index
    %133 = vector.load %arg7[%c5_103, %c0_104, %c0_105] : memref<9x16x3xf32, #tpu.memory_space<vmem>>, vector<1x16x3xf32>
    %134 = vector.shape_cast %133 : vector<1x16x3xf32> to vector<16x3xf32>
    %cst_106 = arith.constant dense<0.000000e+00> : vector<16x512xf32>
    %135 = tpu.matmul %134, %132, %cst_106 {dimension_numbers = #tpu.dot_dimension_numbers<[1], [0], [0], [1], [0, 0, 1, 1], [], []>} : vector<16x3xf32>, vector<3x512xf32>, vector<16x512xf32> -> vector<16x512xf32>
    %136 = arith.addf %127, %135 : vector<16x512xf32>
    %c497_i32_107 = arith.constant 497 : i32
    %137 = tpu.dynamic_rotate %87 by %c497_i32_107 dim 1 : vector<3x512xf32>, i32 -> vector<3x512xf32>
    %c6_108 = arith.constant 6 : index
    %c0_109 = arith.constant 0 : index
    %c0_110 = arith.constant 0 : index
    %138 = vector.load %arg4[%c6_108, %c0_109, %c0_110] : memref<9x1x512xf32, #tpu.memory_space<vmem>>, vector<1x1x512xf32>
    %139 = vector.shape_cast %138 : vector<1x1x512xf32> to vector<1x512xf32>
    %140 = vector.broadcast %139 : vector<1x512xf32> to vector<3x512xf32>
    %141 = arith.mulf %137, %140 : vector<3x512xf32>
    %c6_111 = arith.constant 6 : index
    %c0_112 = arith.constant 0 : index
    %c0_113 = arith.constant 0 : index
    %142 = vector.load %arg7[%c6_111, %c0_112, %c0_113] : memref<9x16x3xf32, #tpu.memory_space<vmem>>, vector<1x16x3xf32>
    %143 = vector.shape_cast %142 : vector<1x16x3xf32> to vector<16x3xf32>
    %cst_114 = arith.constant dense<0.000000e+00> : vector<16x512xf32>
    %144 = tpu.matmul %143, %141, %cst_114 {dimension_numbers = #tpu.dot_dimension_numbers<[1], [0], [0], [1], [0, 0, 1, 1], [], []>} : vector<16x3xf32>, vector<3x512xf32>, vector<16x512xf32> -> vector<16x512xf32>
    %145 = arith.addf %136, %144 : vector<16x512xf32>
    %c496_i32_115 = arith.constant 496 : i32
    %146 = tpu.dynamic_rotate %87 by %c496_i32_115 dim 1 : vector<3x512xf32>, i32 -> vector<3x512xf32>
    %c7_116 = arith.constant 7 : index
    %c0_117 = arith.constant 0 : index
    %c0_118 = arith.constant 0 : index
    %147 = vector.load %arg4[%c7_116, %c0_117, %c0_118] : memref<9x1x512xf32, #tpu.memory_space<vmem>>, vector<1x1x512xf32>
    %148 = vector.shape_cast %147 : vector<1x1x512xf32> to vector<1x512xf32>
    %149 = vector.broadcast %148 : vector<1x512xf32> to vector<3x512xf32>
    %150 = arith.mulf %146, %149 : vector<3x512xf32>
    %c7_119 = arith.constant 7 : index
    %c0_120 = arith.constant 0 : index
    %c0_121 = arith.constant 0 : index
    %151 = vector.load %arg7[%c7_119, %c0_120, %c0_121] : memref<9x16x3xf32, #tpu.memory_space<vmem>>, vector<1x16x3xf32>
    %152 = vector.shape_cast %151 : vector<1x16x3xf32> to vector<16x3xf32>
    %cst_122 = arith.constant dense<0.000000e+00> : vector<16x512xf32>
    %153 = tpu.matmul %152, %150, %cst_122 {dimension_numbers = #tpu.dot_dimension_numbers<[1], [0], [0], [1], [0, 0, 1, 1], [], []>} : vector<16x3xf32>, vector<3x512xf32>, vector<16x512xf32> -> vector<16x512xf32>
    %154 = arith.addf %145, %153 : vector<16x512xf32>
    %c495_i32_123 = arith.constant 495 : i32
    %155 = tpu.dynamic_rotate %87 by %c495_i32_123 dim 1 : vector<3x512xf32>, i32 -> vector<3x512xf32>
    %c8_124 = arith.constant 8 : index
    %c0_125 = arith.constant 0 : index
    %c0_126 = arith.constant 0 : index
    %156 = vector.load %arg4[%c8_124, %c0_125, %c0_126] : memref<9x1x512xf32, #tpu.memory_space<vmem>>, vector<1x1x512xf32>
    %157 = vector.shape_cast %156 : vector<1x1x512xf32> to vector<1x512xf32>
    %158 = vector.broadcast %157 : vector<1x512xf32> to vector<3x512xf32>
    %159 = arith.mulf %155, %158 : vector<3x512xf32>
    %c8_127 = arith.constant 8 : index
    %c0_128 = arith.constant 0 : index
    %c0_129 = arith.constant 0 : index
    %160 = vector.load %arg7[%c8_127, %c0_128, %c0_129] : memref<9x16x3xf32, #tpu.memory_space<vmem>>, vector<1x16x3xf32>
    %161 = vector.shape_cast %160 : vector<1x16x3xf32> to vector<16x3xf32>
    %cst_130 = arith.constant dense<0.000000e+00> : vector<16x512xf32>
    %162 = tpu.matmul %161, %159, %cst_130 {dimension_numbers = #tpu.dot_dimension_numbers<[1], [0], [0], [1], [0, 0, 1, 1], [], []>} : vector<16x3xf32>, vector<3x512xf32>, vector<16x512xf32> -> vector<16x512xf32>
    %163 = arith.addf %154, %162 : vector<16x512xf32>
    %c24 = arith.constant 24 : index
    %c0_131 = arith.constant 0 : index
    %164 = vector.load %arg11[%c24, %c0_131] : memref<272x1xf32, #tpu.memory_space<vmem>>, vector<16x1xf32>
    %c40 = arith.constant 40 : index
    %c0_132 = arith.constant 0 : index
    %165 = vector.load %arg11[%c40, %c0_132] : memref<272x1xf32, #tpu.memory_space<vmem>>, vector<16x1xf32>
    %cst_133 = arith.constant dense<0.000000e+00> : vector<512xf32>
    %166 = vector.multi_reduction <add>, %163, %cst_133 [0] : vector<16x512xf32> to vector<512xf32>
    %167 = vector.shape_cast %166 : vector<512xf32> to vector<1x512xf32>
    %cst_134 = arith.constant 1.600000e+01 : f32
    %168 = vector.broadcast %cst_134 : f32 to vector<1x512xf32>
    %169 = arith.divf %167, %168 : vector<1x512xf32>
    %170 = vector.broadcast %169 : vector<1x512xf32> to vector<16x512xf32>
    %171 = arith.subf %163, %170 : vector<16x512xf32>
    %172 = arith.mulf %171, %171 : vector<16x512xf32>
    %cst_135 = arith.constant dense<0.000000e+00> : vector<512xf32>
    %173 = vector.multi_reduction <add>, %172, %cst_135 [0] : vector<16x512xf32> to vector<512xf32>
    %174 = vector.shape_cast %173 : vector<512xf32> to vector<1x512xf32>
    %cst_136 = arith.constant 1.600000e+01 : f32
    %175 = vector.broadcast %cst_136 : f32 to vector<1x512xf32>
    %176 = arith.divf %174, %175 : vector<1x512xf32>
    %cst_137 = arith.constant 9.99999997E-7 : f32
    %177 = vector.broadcast %cst_137 : f32 to vector<1x512xf32>
    %178 = arith.addf %176, %177 : vector<1x512xf32>
    %179 = math.rsqrt %178 : vector<1x512xf32>
    %180 = vector.broadcast %179 : vector<1x512xf32> to vector<16x512xf32>
    %181 = arith.mulf %171, %180 : vector<16x512xf32>
    %182 = vector.broadcast %164 : vector<16x1xf32> to vector<16x512xf32>
    %183 = arith.mulf %181, %182 : vector<16x512xf32>
    %184 = vector.broadcast %165 : vector<16x1xf32> to vector<16x512xf32>
    %185 = arith.addf %183, %184 : vector<16x512xf32>
    %c0_138 = arith.constant 0 : index
    %c0_139 = arith.constant 0 : index
    %186 = vector.load %arg9[%c0_138, %c0_139] : memref<112x16xf32, #tpu.memory_space<vmem>>, vector<32x16xf32>
    %cst_140 = arith.constant dense<0.000000e+00> : vector<32x512xf32>
    %187 = tpu.matmul %186, %185, %cst_140 {dimension_numbers = #tpu.dot_dimension_numbers<[1], [0], [0], [1], [0, 0, 1, 1], [], []>} : vector<32x16xf32>, vector<16x512xf32>, vector<32x512xf32> -> vector<32x512xf32>
    %c56 = arith.constant 56 : index
    %c0_141 = arith.constant 0 : index
    %188 = vector.load %arg11[%c56, %c0_141] : memref<272x1xf32, #tpu.memory_space<vmem>>, vector<32x1xf32>
    %189 = vector.broadcast %188 : vector<32x1xf32> to vector<32x512xf32>
    %190 = arith.addf %187, %189 : vector<32x512xf32>
    %c88 = arith.constant 88 : index
    %c0_142 = arith.constant 0 : index
    %191 = vector.load %arg11[%c88, %c0_142] : memref<272x1xf32, #tpu.memory_space<vmem>>, vector<32x1xf32>
    %c4_143 = arith.constant 4 : index
    %c0_144 = arith.constant 0 : index
    %c0_145 = arith.constant 0 : index
    %192 = vector.load %arg8[%c4_143, %c0_144, %c0_145] : memref<9x32x1xf32, #tpu.memory_space<vmem>>, vector<1x32x1xf32>
    %193 = vector.shape_cast %192 : vector<1x32x1xf32> to vector<32x1xf32>
    %194 = vector.broadcast %193 : vector<32x1xf32> to vector<32x512xf32>
    %195 = arith.mulf %194, %190 : vector<32x512xf32>
    %196 = vector.broadcast %191 : vector<32x1xf32> to vector<32x512xf32>
    %197 = arith.addf %195, %196 : vector<32x512xf32>
    %c0_146 = arith.constant 0 : index
    %c0_147 = arith.constant 0 : index
    %c0_148 = arith.constant 0 : index
    %198 = vector.load %arg8[%c0_146, %c0_147, %c0_148] : memref<9x32x1xf32, #tpu.memory_space<vmem>>, vector<1x32x1xf32>
    %199 = vector.shape_cast %198 : vector<1x32x1xf32> to vector<32x1xf32>
    %c17_i32_149 = arith.constant 17 : i32
    %200 = tpu.dynamic_rotate %190 by %c17_i32_149 dim 1 : vector<32x512xf32>, i32 -> vector<32x512xf32>
    %c0_150 = arith.constant 0 : index
    %c0_151 = arith.constant 0 : index
    %c0_152 = arith.constant 0 : index
    %201 = vector.load %arg4[%c0_150, %c0_151, %c0_152] : memref<9x1x512xf32, #tpu.memory_space<vmem>>, vector<1x1x512xf32>
    %202 = vector.shape_cast %201 : vector<1x1x512xf32> to vector<1x512xf32>
    %203 = vector.broadcast %202 : vector<1x512xf32> to vector<32x512xf32>
    %204 = arith.mulf %200, %203 : vector<32x512xf32>
    %205 = vector.broadcast %199 : vector<32x1xf32> to vector<32x512xf32>
    %206 = arith.mulf %205, %204 : vector<32x512xf32>
    %207 = arith.addf %197, %206 : vector<32x512xf32>
    %c1_153 = arith.constant 1 : index
    %c0_154 = arith.constant 0 : index
    %c0_155 = arith.constant 0 : index
    %208 = vector.load %arg8[%c1_153, %c0_154, %c0_155] : memref<9x32x1xf32, #tpu.memory_space<vmem>>, vector<1x32x1xf32>
    %209 = vector.shape_cast %208 : vector<1x32x1xf32> to vector<32x1xf32>
    %c16_i32_156 = arith.constant 16 : i32
    %210 = tpu.dynamic_rotate %190 by %c16_i32_156 dim 1 : vector<32x512xf32>, i32 -> vector<32x512xf32>
    %c1_157 = arith.constant 1 : index
    %c0_158 = arith.constant 0 : index
    %c0_159 = arith.constant 0 : index
    %211 = vector.load %arg4[%c1_157, %c0_158, %c0_159] : memref<9x1x512xf32, #tpu.memory_space<vmem>>, vector<1x1x512xf32>
    %212 = vector.shape_cast %211 : vector<1x1x512xf32> to vector<1x512xf32>
    %213 = vector.broadcast %212 : vector<1x512xf32> to vector<32x512xf32>
    %214 = arith.mulf %210, %213 : vector<32x512xf32>
    %215 = vector.broadcast %209 : vector<32x1xf32> to vector<32x512xf32>
    %216 = arith.mulf %215, %214 : vector<32x512xf32>
    %217 = arith.addf %207, %216 : vector<32x512xf32>
    %c2_160 = arith.constant 2 : index
    %c0_161 = arith.constant 0 : index
    %c0_162 = arith.constant 0 : index
    %218 = vector.load %arg8[%c2_160, %c0_161, %c0_162] : memref<9x32x1xf32, #tpu.memory_space<vmem>>, vector<1x32x1xf32>
    %219 = vector.shape_cast %218 : vector<1x32x1xf32> to vector<32x1xf32>
    %c15_i32_163 = arith.constant 15 : i32
    %220 = tpu.dynamic_rotate %190 by %c15_i32_163 dim 1 : vector<32x512xf32>, i32 -> vector<32x512xf32>
    %c2_164 = arith.constant 2 : index
    %c0_165 = arith.constant 0 : index
    %c0_166 = arith.constant 0 : index
    %221 = vector.load %arg4[%c2_164, %c0_165, %c0_166] : memref<9x1x512xf32, #tpu.memory_space<vmem>>, vector<1x1x512xf32>
    %222 = vector.shape_cast %221 : vector<1x1x512xf32> to vector<1x512xf32>
    %223 = vector.broadcast %222 : vector<1x512xf32> to vector<32x512xf32>
    %224 = arith.mulf %220, %223 : vector<32x512xf32>
    %225 = vector.broadcast %219 : vector<32x1xf32> to vector<32x512xf32>
    %226 = arith.mulf %225, %224 : vector<32x512xf32>
    %227 = arith.addf %217, %226 : vector<32x512xf32>
    %c3_167 = arith.constant 3 : index
    %c0_168 = arith.constant 0 : index
    %c0_169 = arith.constant 0 : index
    %228 = vector.load %arg8[%c3_167, %c0_168, %c0_169] : memref<9x32x1xf32, #tpu.memory_space<vmem>>, vector<1x32x1xf32>
    %229 = vector.shape_cast %228 : vector<1x32x1xf32> to vector<32x1xf32>
    %c1_i32_170 = arith.constant 1 : i32
    %230 = tpu.dynamic_rotate %190 by %c1_i32_170 dim 1 : vector<32x512xf32>, i32 -> vector<32x512xf32>
    %c3_171 = arith.constant 3 : index
    %c0_172 = arith.constant 0 : index
    %c0_173 = arith.constant 0 : index
    %231 = vector.load %arg4[%c3_171, %c0_172, %c0_173] : memref<9x1x512xf32, #tpu.memory_space<vmem>>, vector<1x1x512xf32>
    %232 = vector.shape_cast %231 : vector<1x1x512xf32> to vector<1x512xf32>
    %233 = vector.broadcast %232 : vector<1x512xf32> to vector<32x512xf32>
    %234 = arith.mulf %230, %233 : vector<32x512xf32>
    %235 = vector.broadcast %229 : vector<32x1xf32> to vector<32x512xf32>
    %236 = arith.mulf %235, %234 : vector<32x512xf32>
    %237 = arith.addf %227, %236 : vector<32x512xf32>
    %c5_174 = arith.constant 5 : index
    %c0_175 = arith.constant 0 : index
    %c0_176 = arith.constant 0 : index
    %238 = vector.load %arg8[%c5_174, %c0_175, %c0_176] : memref<9x32x1xf32, #tpu.memory_space<vmem>>, vector<1x32x1xf32>
    %239 = vector.shape_cast %238 : vector<1x32x1xf32> to vector<32x1xf32>
    %c511_i32_177 = arith.constant 511 : i32
    %240 = tpu.dynamic_rotate %190 by %c511_i32_177 dim 1 : vector<32x512xf32>, i32 -> vector<32x512xf32>
    %c5_178 = arith.constant 5 : index
    %c0_179 = arith.constant 0 : index
    %c0_180 = arith.constant 0 : index
    %241 = vector.load %arg4[%c5_178, %c0_179, %c0_180] : memref<9x1x512xf32, #tpu.memory_space<vmem>>, vector<1x1x512xf32>
    %242 = vector.shape_cast %241 : vector<1x1x512xf32> to vector<1x512xf32>
    %243 = vector.broadcast %242 : vector<1x512xf32> to vector<32x512xf32>
    %244 = arith.mulf %240, %243 : vector<32x512xf32>
    %245 = vector.broadcast %239 : vector<32x1xf32> to vector<32x512xf32>
    %246 = arith.mulf %245, %244 : vector<32x512xf32>
    %247 = arith.addf %237, %246 : vector<32x512xf32>
    %c6_181 = arith.constant 6 : index
    %c0_182 = arith.constant 0 : index
    %c0_183 = arith.constant 0 : index
    %248 = vector.load %arg8[%c6_181, %c0_182, %c0_183] : memref<9x32x1xf32, #tpu.memory_space<vmem>>, vector<1x32x1xf32>
    %249 = vector.shape_cast %248 : vector<1x32x1xf32> to vector<32x1xf32>
    %c497_i32_184 = arith.constant 497 : i32
    %250 = tpu.dynamic_rotate %190 by %c497_i32_184 dim 1 : vector<32x512xf32>, i32 -> vector<32x512xf32>
    %c6_185 = arith.constant 6 : index
    %c0_186 = arith.constant 0 : index
    %c0_187 = arith.constant 0 : index
    %251 = vector.load %arg4[%c6_185, %c0_186, %c0_187] : memref<9x1x512xf32, #tpu.memory_space<vmem>>, vector<1x1x512xf32>
    %252 = vector.shape_cast %251 : vector<1x1x512xf32> to vector<1x512xf32>
    %253 = vector.broadcast %252 : vector<1x512xf32> to vector<32x512xf32>
    %254 = arith.mulf %250, %253 : vector<32x512xf32>
    %255 = vector.broadcast %249 : vector<32x1xf32> to vector<32x512xf32>
    %256 = arith.mulf %255, %254 : vector<32x512xf32>
    %257 = arith.addf %247, %256 : vector<32x512xf32>
    %c7_188 = arith.constant 7 : index
    %c0_189 = arith.constant 0 : index
    %c0_190 = arith.constant 0 : index
    %258 = vector.load %arg8[%c7_188, %c0_189, %c0_190] : memref<9x32x1xf32, #tpu.memory_space<vmem>>, vector<1x32x1xf32>
    %259 = vector.shape_cast %258 : vector<1x32x1xf32> to vector<32x1xf32>
    %c496_i32_191 = arith.constant 496 : i32
    %260 = tpu.dynamic_rotate %190 by %c496_i32_191 dim 1 : vector<32x512xf32>, i32 -> vector<32x512xf32>
    %c7_192 = arith.constant 7 : index
    %c0_193 = arith.constant 0 : index
    %c0_194 = arith.constant 0 : index
    %261 = vector.load %arg4[%c7_192, %c0_193, %c0_194] : memref<9x1x512xf32, #tpu.memory_space<vmem>>, vector<1x1x512xf32>
    %262 = vector.shape_cast %261 : vector<1x1x512xf32> to vector<1x512xf32>
    %263 = vector.broadcast %262 : vector<1x512xf32> to vector<32x512xf32>
    %264 = arith.mulf %260, %263 : vector<32x512xf32>
    %265 = vector.broadcast %259 : vector<32x1xf32> to vector<32x512xf32>
    %266 = arith.mulf %265, %264 : vector<32x512xf32>
    %267 = arith.addf %257, %266 : vector<32x512xf32>
    %c8_195 = arith.constant 8 : index
    %c0_196 = arith.constant 0 : index
    %c0_197 = arith.constant 0 : index
    %268 = vector.load %arg8[%c8_195, %c0_196, %c0_197] : memref<9x32x1xf32, #tpu.memory_space<vmem>>, vector<1x32x1xf32>
    %269 = vector.shape_cast %268 : vector<1x32x1xf32> to vector<32x1xf32>
    %c495_i32_198 = arith.constant 495 : i32
    %270 = tpu.dynamic_rotate %190 by %c495_i32_198 dim 1 : vector<32x512xf32>, i32 -> vector<32x512xf32>
    %c8_199 = arith.constant 8 : index
    %c0_200 = arith.constant 0 : index
    %c0_201 = arith.constant 0 : index
    %271 = vector.load %arg4[%c8_199, %c0_200, %c0_201] : memref<9x1x512xf32, #tpu.memory_space<vmem>>, vector<1x1x512xf32>
    %272 = vector.shape_cast %271 : vector<1x1x512xf32> to vector<1x512xf32>
    %273 = vector.broadcast %272 : vector<1x512xf32> to vector<32x512xf32>
    %274 = arith.mulf %270, %273 : vector<32x512xf32>
    %275 = vector.broadcast %269 : vector<32x1xf32> to vector<32x512xf32>
    %276 = arith.mulf %275, %274 : vector<32x512xf32>
    %277 = arith.addf %267, %276 : vector<32x512xf32>
    %278 = vector.extract_strided_slice %277 {offsets = [0, 0], sizes = [16, 512], strides = [1, 1]} : vector<32x512xf32> to vector<16x512xf32>
    %279 = vector.extract_strided_slice %277 {offsets = [16, 0], sizes = [16, 512], strides = [1, 1]} : vector<32x512xf32> to vector<16x512xf32>
    %280 = arith.mulf %278, %279 : vector<16x512xf32>
    %c0_202 = arith.constant 0 : index
    %c0_203 = arith.constant 0 : index
    %281 = vector.load %arg5[%c0_202, %c0_203] : memref<2x512xf32, #tpu.memory_space<vmem>>, vector<2x512xf32>
    %cst_204 = arith.constant dense<0.000000e+00> : vector<16x2xf32>
    %282 = tpu.matmul %280, %281, %cst_204 {dimension_numbers = #tpu.dot_dimension_numbers<[1], [1], [0], [0], [0, 0, 1, 0], [], []>} : vector<16x512xf32>, vector<2x512xf32>, vector<16x2xf32> -> vector<16x2xf32>
    %c32 = arith.constant 32 : index
    %c0_205 = arith.constant 0 : index
    %283 = vector.load %arg9[%c32, %c0_205] : memref<112x16xf32, #tpu.memory_space<vmem>>, vector<16x16xf32>
    %cst_206 = arith.constant dense<0.000000e+00> : vector<16x2xf32>
    %284 = tpu.matmul %283, %282, %cst_206 {dimension_numbers = #tpu.dot_dimension_numbers<[1], [0], [0], [1], [0, 0, 1, 1], [], []>} : vector<16x16xf32>, vector<16x2xf32>, vector<16x2xf32> -> vector<16x2xf32>
    %c120 = arith.constant 120 : index
    %c0_207 = arith.constant 0 : index
    %285 = vector.load %arg11[%c120, %c0_207] : memref<272x1xf32, #tpu.memory_space<vmem>>, vector<16x1xf32>
    %286 = vector.broadcast %285 : vector<16x1xf32> to vector<16x2xf32>
    %287 = arith.addf %284, %286 : vector<16x2xf32>
    %c0_208 = arith.constant 0 : index
    %c0_209 = arith.constant 0 : index
    %288 = vector.load %arg5[%c0_208, %c0_209] : memref<2x512xf32, #tpu.memory_space<vmem>>, vector<2x512xf32>
    %cst_210 = arith.constant dense<0.000000e+00> : vector<16x512xf32>
    %289 = tpu.matmul %287, %288, %cst_210 {dimension_numbers = #tpu.dot_dimension_numbers<[1], [0], [0], [1], [0, 0, 1, 1], [], []>} : vector<16x2xf32>, vector<2x512xf32>, vector<16x512xf32> -> vector<16x512xf32>
    %290 = arith.mulf %280, %289 : vector<16x512xf32>
    %c48 = arith.constant 48 : index
    %c0_211 = arith.constant 0 : index
    %291 = vector.load %arg9[%c48, %c0_211] : memref<112x16xf32, #tpu.memory_space<vmem>>, vector<16x16xf32>
    %cst_212 = arith.constant dense<0.000000e+00> : vector<16x512xf32>
    %292 = tpu.matmul %291, %290, %cst_212 {dimension_numbers = #tpu.dot_dimension_numbers<[1], [0], [0], [1], [0, 0, 1, 1], [], []>} : vector<16x16xf32>, vector<16x512xf32>, vector<16x512xf32> -> vector<16x512xf32>
    %c136 = arith.constant 136 : index
    %c0_213 = arith.constant 0 : index
    %293 = vector.load %arg11[%c136, %c0_213] : memref<272x1xf32, #tpu.memory_space<vmem>>, vector<16x1xf32>
    %294 = vector.broadcast %293 : vector<16x1xf32> to vector<16x512xf32>
    %295 = arith.addf %292, %294 : vector<16x512xf32>
    %c232 = arith.constant 232 : index
    %c0_214 = arith.constant 0 : index
    %296 = vector.load %arg11[%c232, %c0_214] : memref<272x1xf32, #tpu.memory_space<vmem>>, vector<16x1xf32>
    %297 = vector.broadcast %296 : vector<16x1xf32> to vector<16x512xf32>
    %298 = arith.mulf %295, %297 : vector<16x512xf32>
    %299 = arith.addf %163, %298 : vector<16x512xf32>
    %c152 = arith.constant 152 : index
    %c0_215 = arith.constant 0 : index
    %300 = vector.load %arg11[%c152, %c0_215] : memref<272x1xf32, #tpu.memory_space<vmem>>, vector<16x1xf32>
    %c168 = arith.constant 168 : index
    %c0_216 = arith.constant 0 : index
    %301 = vector.load %arg11[%c168, %c0_216] : memref<272x1xf32, #tpu.memory_space<vmem>>, vector<16x1xf32>
    %cst_217 = arith.constant dense<0.000000e+00> : vector<512xf32>
    %302 = vector.multi_reduction <add>, %299, %cst_217 [0] : vector<16x512xf32> to vector<512xf32>
    %303 = vector.shape_cast %302 : vector<512xf32> to vector<1x512xf32>
    %cst_218 = arith.constant 1.600000e+01 : f32
    %304 = vector.broadcast %cst_218 : f32 to vector<1x512xf32>
    %305 = arith.divf %303, %304 : vector<1x512xf32>
    %306 = vector.broadcast %305 : vector<1x512xf32> to vector<16x512xf32>
    %307 = arith.subf %299, %306 : vector<16x512xf32>
    %308 = arith.mulf %307, %307 : vector<16x512xf32>
    %cst_219 = arith.constant dense<0.000000e+00> : vector<512xf32>
    %309 = vector.multi_reduction <add>, %308, %cst_219 [0] : vector<16x512xf32> to vector<512xf32>
    %310 = vector.shape_cast %309 : vector<512xf32> to vector<1x512xf32>
    %cst_220 = arith.constant 1.600000e+01 : f32
    %311 = vector.broadcast %cst_220 : f32 to vector<1x512xf32>
    %312 = arith.divf %310, %311 : vector<1x512xf32>
    %cst_221 = arith.constant 9.99999997E-7 : f32
    %313 = vector.broadcast %cst_221 : f32 to vector<1x512xf32>
    %314 = arith.addf %312, %313 : vector<1x512xf32>
    %315 = math.rsqrt %314 : vector<1x512xf32>
    %316 = vector.broadcast %315 : vector<1x512xf32> to vector<16x512xf32>
    %317 = arith.mulf %307, %316 : vector<16x512xf32>
    %318 = vector.broadcast %300 : vector<16x1xf32> to vector<16x512xf32>
    %319 = arith.mulf %317, %318 : vector<16x512xf32>
    %320 = vector.broadcast %301 : vector<16x1xf32> to vector<16x512xf32>
    %321 = arith.addf %319, %320 : vector<16x512xf32>
    %c64 = arith.constant 64 : index
    %c0_222 = arith.constant 0 : index
    %322 = vector.load %arg9[%c64, %c0_222] : memref<112x16xf32, #tpu.memory_space<vmem>>, vector<32x16xf32>
    %cst_223 = arith.constant dense<0.000000e+00> : vector<32x512xf32>
    %323 = tpu.matmul %322, %321, %cst_223 {dimension_numbers = #tpu.dot_dimension_numbers<[1], [0], [0], [1], [0, 0, 1, 1], [], []>} : vector<32x16xf32>, vector<16x512xf32>, vector<32x512xf32> -> vector<32x512xf32>
    %c184 = arith.constant 184 : index
    %c0_224 = arith.constant 0 : index
    %324 = vector.load %arg11[%c184, %c0_224] : memref<272x1xf32, #tpu.memory_space<vmem>>, vector<32x1xf32>
    %325 = vector.broadcast %324 : vector<32x1xf32> to vector<32x512xf32>
    %326 = arith.addf %323, %325 : vector<32x512xf32>
    %327 = vector.extract_strided_slice %326 {offsets = [0, 0], sizes = [16, 512], strides = [1, 1]} : vector<32x512xf32> to vector<16x512xf32>
    %328 = vector.extract_strided_slice %326 {offsets = [16, 0], sizes = [16, 512], strides = [1, 1]} : vector<32x512xf32> to vector<16x512xf32>
    %329 = arith.mulf %327, %328 : vector<16x512xf32>
    %c96 = arith.constant 96 : index
    %c0_225 = arith.constant 0 : index
    %330 = vector.load %arg9[%c96, %c0_225] : memref<112x16xf32, #tpu.memory_space<vmem>>, vector<16x16xf32>
    %cst_226 = arith.constant dense<0.000000e+00> : vector<16x512xf32>
    %331 = tpu.matmul %330, %329, %cst_226 {dimension_numbers = #tpu.dot_dimension_numbers<[1], [0], [0], [1], [0, 0, 1, 1], [], []>} : vector<16x16xf32>, vector<16x512xf32>, vector<16x512xf32> -> vector<16x512xf32>
    %c216 = arith.constant 216 : index
    %c0_227 = arith.constant 0 : index
    %332 = vector.load %arg11[%c216, %c0_227] : memref<272x1xf32, #tpu.memory_space<vmem>>, vector<16x1xf32>
    %333 = vector.broadcast %332 : vector<16x1xf32> to vector<16x512xf32>
    %334 = arith.addf %331, %333 : vector<16x512xf32>
    %c248 = arith.constant 248 : index
    %c0_228 = arith.constant 0 : index
    %335 = vector.load %arg11[%c248, %c0_228] : memref<272x1xf32, #tpu.memory_space<vmem>>, vector<16x1xf32>
    %336 = vector.broadcast %335 : vector<16x1xf32> to vector<16x512xf32>
    %337 = arith.mulf %334, %336 : vector<16x512xf32>
    %338 = arith.addf %299, %337 : vector<16x512xf32>
    %c264 = arith.constant 264 : index
    %c0_229 = arith.constant 0 : index
    %339 = vector.load %arg11[%c264, %c0_229] : memref<272x1xf32, #tpu.memory_space<vmem>>, vector<3x1xf32>
    %340 = vector.broadcast %339 : vector<3x1xf32> to vector<3x512xf32>
    %341 = arith.addf %340, %1 : vector<3x512xf32>
    %c17_i32_230 = arith.constant 17 : i32
    %342 = tpu.dynamic_rotate %338 by %c17_i32_230 dim 1 : vector<16x512xf32>, i32 -> vector<16x512xf32>
    %c0_231 = arith.constant 0 : index
    %c0_232 = arith.constant 0 : index
    %c0_233 = arith.constant 0 : index
    %343 = vector.load %arg4[%c0_231, %c0_232, %c0_233] : memref<9x1x512xf32, #tpu.memory_space<vmem>>, vector<1x1x512xf32>
    %344 = vector.shape_cast %343 : vector<1x1x512xf32> to vector<1x512xf32>
    %345 = vector.broadcast %344 : vector<1x512xf32> to vector<16x512xf32>
    %346 = arith.mulf %342, %345 : vector<16x512xf32>
    %c0_234 = arith.constant 0 : index
    %c0_235 = arith.constant 0 : index
    %c0_236 = arith.constant 0 : index
    %347 = vector.load %arg10[%c0_234, %c0_235, %c0_236] : memref<9x3x16xf32, #tpu.memory_space<vmem>>, vector<1x3x16xf32>
    %348 = vector.shape_cast %347 : vector<1x3x16xf32> to vector<3x16xf32>
    %cst_237 = arith.constant dense<0.000000e+00> : vector<3x512xf32>
    %349 = tpu.matmul %348, %346, %cst_237 {dimension_numbers = #tpu.dot_dimension_numbers<[1], [0], [0], [1], [0, 0, 1, 1], [], []>} : vector<3x16xf32>, vector<16x512xf32>, vector<3x512xf32> -> vector<3x512xf32>
    %350 = arith.addf %341, %349 : vector<3x512xf32>
    %c16_i32_238 = arith.constant 16 : i32
    %351 = tpu.dynamic_rotate %338 by %c16_i32_238 dim 1 : vector<16x512xf32>, i32 -> vector<16x512xf32>
    %c1_239 = arith.constant 1 : index
    %c0_240 = arith.constant 0 : index
    %c0_241 = arith.constant 0 : index
    %352 = vector.load %arg4[%c1_239, %c0_240, %c0_241] : memref<9x1x512xf32, #tpu.memory_space<vmem>>, vector<1x1x512xf32>
    %353 = vector.shape_cast %352 : vector<1x1x512xf32> to vector<1x512xf32>
    %354 = vector.broadcast %353 : vector<1x512xf32> to vector<16x512xf32>
    %355 = arith.mulf %351, %354 : vector<16x512xf32>
    %c1_242 = arith.constant 1 : index
    %c0_243 = arith.constant 0 : index
    %c0_244 = arith.constant 0 : index
    %356 = vector.load %arg10[%c1_242, %c0_243, %c0_244] : memref<9x3x16xf32, #tpu.memory_space<vmem>>, vector<1x3x16xf32>
    %357 = vector.shape_cast %356 : vector<1x3x16xf32> to vector<3x16xf32>
    %cst_245 = arith.constant dense<0.000000e+00> : vector<3x512xf32>
    %358 = tpu.matmul %357, %355, %cst_245 {dimension_numbers = #tpu.dot_dimension_numbers<[1], [0], [0], [1], [0, 0, 1, 1], [], []>} : vector<3x16xf32>, vector<16x512xf32>, vector<3x512xf32> -> vector<3x512xf32>
    %359 = arith.addf %350, %358 : vector<3x512xf32>
    %c15_i32_246 = arith.constant 15 : i32
    %360 = tpu.dynamic_rotate %338 by %c15_i32_246 dim 1 : vector<16x512xf32>, i32 -> vector<16x512xf32>
    %c2_247 = arith.constant 2 : index
    %c0_248 = arith.constant 0 : index
    %c0_249 = arith.constant 0 : index
    %361 = vector.load %arg4[%c2_247, %c0_248, %c0_249] : memref<9x1x512xf32, #tpu.memory_space<vmem>>, vector<1x1x512xf32>
    %362 = vector.shape_cast %361 : vector<1x1x512xf32> to vector<1x512xf32>
    %363 = vector.broadcast %362 : vector<1x512xf32> to vector<16x512xf32>
    %364 = arith.mulf %360, %363 : vector<16x512xf32>
    %c2_250 = arith.constant 2 : index
    %c0_251 = arith.constant 0 : index
    %c0_252 = arith.constant 0 : index
    %365 = vector.load %arg10[%c2_250, %c0_251, %c0_252] : memref<9x3x16xf32, #tpu.memory_space<vmem>>, vector<1x3x16xf32>
    %366 = vector.shape_cast %365 : vector<1x3x16xf32> to vector<3x16xf32>
    %cst_253 = arith.constant dense<0.000000e+00> : vector<3x512xf32>
    %367 = tpu.matmul %366, %364, %cst_253 {dimension_numbers = #tpu.dot_dimension_numbers<[1], [0], [0], [1], [0, 0, 1, 1], [], []>} : vector<3x16xf32>, vector<16x512xf32>, vector<3x512xf32> -> vector<3x512xf32>
    %368 = arith.addf %359, %367 : vector<3x512xf32>
    %c1_i32_254 = arith.constant 1 : i32
    %369 = tpu.dynamic_rotate %338 by %c1_i32_254 dim 1 : vector<16x512xf32>, i32 -> vector<16x512xf32>
    %c3_255 = arith.constant 3 : index
    %c0_256 = arith.constant 0 : index
    %c0_257 = arith.constant 0 : index
    %370 = vector.load %arg4[%c3_255, %c0_256, %c0_257] : memref<9x1x512xf32, #tpu.memory_space<vmem>>, vector<1x1x512xf32>
    %371 = vector.shape_cast %370 : vector<1x1x512xf32> to vector<1x512xf32>
    %372 = vector.broadcast %371 : vector<1x512xf32> to vector<16x512xf32>
    %373 = arith.mulf %369, %372 : vector<16x512xf32>
    %c3_258 = arith.constant 3 : index
    %c0_259 = arith.constant 0 : index
    %c0_260 = arith.constant 0 : index
    %374 = vector.load %arg10[%c3_258, %c0_259, %c0_260] : memref<9x3x16xf32, #tpu.memory_space<vmem>>, vector<1x3x16xf32>
    %375 = vector.shape_cast %374 : vector<1x3x16xf32> to vector<3x16xf32>
    %cst_261 = arith.constant dense<0.000000e+00> : vector<3x512xf32>
    %376 = tpu.matmul %375, %373, %cst_261 {dimension_numbers = #tpu.dot_dimension_numbers<[1], [0], [0], [1], [0, 0, 1, 1], [], []>} : vector<3x16xf32>, vector<16x512xf32>, vector<3x512xf32> -> vector<3x512xf32>
    %377 = arith.addf %368, %376 : vector<3x512xf32>
    %c4_262 = arith.constant 4 : index
    %c0_263 = arith.constant 0 : index
    %c0_264 = arith.constant 0 : index
    %378 = vector.load %arg10[%c4_262, %c0_263, %c0_264] : memref<9x3x16xf32, #tpu.memory_space<vmem>>, vector<1x3x16xf32>
    %379 = vector.shape_cast %378 : vector<1x3x16xf32> to vector<3x16xf32>
    %cst_265 = arith.constant dense<0.000000e+00> : vector<3x512xf32>
    %380 = tpu.matmul %379, %338, %cst_265 {dimension_numbers = #tpu.dot_dimension_numbers<[1], [0], [0], [1], [0, 0, 1, 1], [], []>} : vector<3x16xf32>, vector<16x512xf32>, vector<3x512xf32> -> vector<3x512xf32>
    %381 = arith.addf %377, %380 : vector<3x512xf32>
    %c511_i32_266 = arith.constant 511 : i32
    %382 = tpu.dynamic_rotate %338 by %c511_i32_266 dim 1 : vector<16x512xf32>, i32 -> vector<16x512xf32>
    %c5_267 = arith.constant 5 : index
    %c0_268 = arith.constant 0 : index
    %c0_269 = arith.constant 0 : index
    %383 = vector.load %arg4[%c5_267, %c0_268, %c0_269] : memref<9x1x512xf32, #tpu.memory_space<vmem>>, vector<1x1x512xf32>
    %384 = vector.shape_cast %383 : vector<1x1x512xf32> to vector<1x512xf32>
    %385 = vector.broadcast %384 : vector<1x512xf32> to vector<16x512xf32>
    %386 = arith.mulf %382, %385 : vector<16x512xf32>
    %c5_270 = arith.constant 5 : index
    %c0_271 = arith.constant 0 : index
    %c0_272 = arith.constant 0 : index
    %387 = vector.load %arg10[%c5_270, %c0_271, %c0_272] : memref<9x3x16xf32, #tpu.memory_space<vmem>>, vector<1x3x16xf32>
    %388 = vector.shape_cast %387 : vector<1x3x16xf32> to vector<3x16xf32>
    %cst_273 = arith.constant dense<0.000000e+00> : vector<3x512xf32>
    %389 = tpu.matmul %388, %386, %cst_273 {dimension_numbers = #tpu.dot_dimension_numbers<[1], [0], [0], [1], [0, 0, 1, 1], [], []>} : vector<3x16xf32>, vector<16x512xf32>, vector<3x512xf32> -> vector<3x512xf32>
    %390 = arith.addf %381, %389 : vector<3x512xf32>
    %c497_i32_274 = arith.constant 497 : i32
    %391 = tpu.dynamic_rotate %338 by %c497_i32_274 dim 1 : vector<16x512xf32>, i32 -> vector<16x512xf32>
    %c6_275 = arith.constant 6 : index
    %c0_276 = arith.constant 0 : index
    %c0_277 = arith.constant 0 : index
    %392 = vector.load %arg4[%c6_275, %c0_276, %c0_277] : memref<9x1x512xf32, #tpu.memory_space<vmem>>, vector<1x1x512xf32>
    %393 = vector.shape_cast %392 : vector<1x1x512xf32> to vector<1x512xf32>
    %394 = vector.broadcast %393 : vector<1x512xf32> to vector<16x512xf32>
    %395 = arith.mulf %391, %394 : vector<16x512xf32>
    %c6_278 = arith.constant 6 : index
    %c0_279 = arith.constant 0 : index
    %c0_280 = arith.constant 0 : index
    %396 = vector.load %arg10[%c6_278, %c0_279, %c0_280] : memref<9x3x16xf32, #tpu.memory_space<vmem>>, vector<1x3x16xf32>
    %397 = vector.shape_cast %396 : vector<1x3x16xf32> to vector<3x16xf32>
    %cst_281 = arith.constant dense<0.000000e+00> : vector<3x512xf32>
    %398 = tpu.matmul %397, %395, %cst_281 {dimension_numbers = #tpu.dot_dimension_numbers<[1], [0], [0], [1], [0, 0, 1, 1], [], []>} : vector<3x16xf32>, vector<16x512xf32>, vector<3x512xf32> -> vector<3x512xf32>
    %399 = arith.addf %390, %398 : vector<3x512xf32>
    %c496_i32_282 = arith.constant 496 : i32
    %400 = tpu.dynamic_rotate %338 by %c496_i32_282 dim 1 : vector<16x512xf32>, i32 -> vector<16x512xf32>
    %c7_283 = arith.constant 7 : index
    %c0_284 = arith.constant 0 : index
    %c0_285 = arith.constant 0 : index
    %401 = vector.load %arg4[%c7_283, %c0_284, %c0_285] : memref<9x1x512xf32, #tpu.memory_space<vmem>>, vector<1x1x512xf32>
    %402 = vector.shape_cast %401 : vector<1x1x512xf32> to vector<1x512xf32>
    %403 = vector.broadcast %402 : vector<1x512xf32> to vector<16x512xf32>
    %404 = arith.mulf %400, %403 : vector<16x512xf32>
    %c7_286 = arith.constant 7 : index
    %c0_287 = arith.constant 0 : index
    %c0_288 = arith.constant 0 : index
    %405 = vector.load %arg10[%c7_286, %c0_287, %c0_288] : memref<9x3x16xf32, #tpu.memory_space<vmem>>, vector<1x3x16xf32>
    %406 = vector.shape_cast %405 : vector<1x3x16xf32> to vector<3x16xf32>
    %cst_289 = arith.constant dense<0.000000e+00> : vector<3x512xf32>
    %407 = tpu.matmul %406, %404, %cst_289 {dimension_numbers = #tpu.dot_dimension_numbers<[1], [0], [0], [1], [0, 0, 1, 1], [], []>} : vector<3x16xf32>, vector<16x512xf32>, vector<3x512xf32> -> vector<3x512xf32>
    %408 = arith.addf %399, %407 : vector<3x512xf32>
    %c495_i32_290 = arith.constant 495 : i32
    %409 = tpu.dynamic_rotate %338 by %c495_i32_290 dim 1 : vector<16x512xf32>, i32 -> vector<16x512xf32>
    %c8_291 = arith.constant 8 : index
    %c0_292 = arith.constant 0 : index
    %c0_293 = arith.constant 0 : index
    %410 = vector.load %arg4[%c8_291, %c0_292, %c0_293] : memref<9x1x512xf32, #tpu.memory_space<vmem>>, vector<1x1x512xf32>
    %411 = vector.shape_cast %410 : vector<1x1x512xf32> to vector<1x512xf32>
    %412 = vector.broadcast %411 : vector<1x512xf32> to vector<16x512xf32>
    %413 = arith.mulf %409, %412 : vector<16x512xf32>
    %c8_294 = arith.constant 8 : index
    %c0_295 = arith.constant 0 : index
    %c0_296 = arith.constant 0 : index
    %414 = vector.load %arg10[%c8_294, %c0_295, %c0_296] : memref<9x3x16xf32, #tpu.memory_space<vmem>>, vector<1x3x16xf32>
    %415 = vector.shape_cast %414 : vector<1x3x16xf32> to vector<3x16xf32>
    %cst_297 = arith.constant dense<0.000000e+00> : vector<3x512xf32>
    %416 = tpu.matmul %415, %413, %cst_297 {dimension_numbers = #tpu.dot_dimension_numbers<[1], [0], [0], [1], [0, 0, 1, 1], [], []>} : vector<3x16xf32>, vector<16x512xf32>, vector<3x512xf32> -> vector<3x512xf32>
    %417 = arith.addf %408, %416 : vector<3x512xf32>
    %c0_298 = arith.constant 0 : index
    %c0_299 = arith.constant 0 : index
    %c0_300 = arith.constant 0 : index
    %418 = vector.load %arg12[%c0_298, %c0_299, %c0_300] : memref<1x3x512xf32, #tpu.memory_space<vmem>>, vector<1x3x512xf32>
    %419 = vector.shape_cast %418 : vector<1x3x512xf32> to vector<3x512xf32>
    %420 = vector.shape_cast %417 : vector<3x512xf32> to vector<1x3x512xf32>
    tpu.vector_store %arg12[%c0_298, %c0_299, %c0_300], %420 {strides = array<i32>} : memref<1x3x512xf32, #tpu.memory_space<vmem>>, vector<1x3x512xf32>,
    return
  }
  func.func @transform_0(%arg0: i32) -> (i32, i32, i32) {
    %c0_i32 = arith.constant 0 : i32
    %c0_i32_0 = arith.constant 0 : i32
    %c0_i32_1 = arith.constant 0 : i32
    return %arg0, %c0_i32, %c0_i32_0 : i32, i32, i32
  }
  func.func @transform_1(%arg0: i32) -> (i32, i32, i32) {
    %c0_i32 = arith.constant 0 : i32
    %c0_i32_0 = arith.constant 0 : i32
    %c0_i32_1 = arith.constant 0 : i32
    return %arg0, %c0_i32, %c0_i32_0 : i32, i32, i32
  }
  func.func @transform_2(%arg0: i32) -> (i32, i32, i32) {
    %c0_i32 = arith.constant 0 : i32
    %c0_i32_0 = arith.constant 0 : i32
    %c0_i32_1 = arith.constant 0 : i32
    return %arg0, %c0_i32, %c0_i32_0 : i32, i32, i32
  }
  func.func @transform_3(%arg0: i32) -> (i32, i32, i32) {
    %c0_i32 = arith.constant 0 : i32
    %c0_i32_0 = arith.constant 0 : i32
    %c0_i32_1 = arith.constant 0 : i32
    %c0_i32_2 = arith.constant 0 : i32
    return %c0_i32, %c0_i32_0, %c0_i32_1 : i32, i32, i32
  }
  func.func @transform_4(%arg0: i32) -> (i32, i32) {
    %c0_i32 = arith.constant 0 : i32
    %c0_i32_0 = arith.constant 0 : i32
    %c0_i32_1 = arith.constant 0 : i32
    return %c0_i32, %c0_i32_0 : i32, i32
  }
  func.func @transform_5(%arg0: i32) -> (i32, i32, i32) {
    %c0_i32 = arith.constant 0 : i32
    %c0_i32_0 = arith.constant 0 : i32
    %c0_i32_1 = arith.constant 0 : i32
    %c0_i32_2 = arith.constant 0 : i32
    return %c0_i32, %c0_i32_0, %c0_i32_1 : i32, i32, i32
  }
  func.func @transform_6(%arg0: i32) -> (i32, i32, i32) {
    %c0_i32 = arith.constant 0 : i32
    %c0_i32_0 = arith.constant 0 : i32
    %c0_i32_1 = arith.constant 0 : i32
    %c0_i32_2 = arith.constant 0 : i32
    return %c0_i32, %c0_i32_0, %c0_i32_1 : i32, i32, i32
  }
  func.func @transform_7(%arg0: i32) -> (i32, i32, i32) {
    %c0_i32 = arith.constant 0 : i32
    %c0_i32_0 = arith.constant 0 : i32
    %c0_i32_1 = arith.constant 0 : i32
    %c0_i32_2 = arith.constant 0 : i32
    return %c0_i32, %c0_i32_0, %c0_i32_1 : i32, i32, i32
  }
  func.func @transform_8(%arg0: i32) -> (i32, i32) {
    %c0_i32 = arith.constant 0 : i32
    %c0_i32_0 = arith.constant 0 : i32
    %c0_i32_1 = arith.constant 0 : i32
    return %c0_i32, %c0_i32_0 : i32, i32
  }
  func.func @transform_9(%arg0: i32) -> (i32, i32, i32) {
    %c0_i32 = arith.constant 0 : i32
    %c0_i32_0 = arith.constant 0 : i32
    %c0_i32_1 = arith.constant 0 : i32
    %c0_i32_2 = arith.constant 0 : i32
    return %c0_i32, %c0_i32_0, %c0_i32_1 : i32, i32, i32
  }
  func.func @transform_10(%arg0: i32) -> (i32, i32) {
    %c0_i32 = arith.constant 0 : i32
    %c0_i32_0 = arith.constant 0 : i32
    %c0_i32_1 = arith.constant 0 : i32
    return %c0_i32, %c0_i32_0 : i32, i32
  }
  func.func @transform_11(%arg0: i32) -> (i32, i32, i32) {
    %c0_i32 = arith.constant 0 : i32
    %c0_i32_0 = arith.constant 0 : i32
    %c0_i32_1 = arith.constant 0 : i32
    return %arg0, %c0_i32, %c0_i32_0 : i32, i32, i32
  }
}

</mosaic_0001>

<bundles_post_ra>
// kernel: seg_nafnet_forward.1
= control target key start
LH: loop header
LB: loop body
LE: loop exit
PB: predicated region body
PF: predicated region fallthrough
CT: control target
= control target key end

     0   :  { %s6875_s21 = smov 17   ;;  %s6877_s22 = smov 15   ;;  %v64_v26 = vlaneseq  ;;  %vm98_vm2 = vcmask 1042432   ;;  %vm88_vm3 = vcmask 23552   ;;  %vm1734_vm10 = vcmask 64512   ;;  %s10897_s0 = inlined_call_operand.vmem [shape: f32[1,3,512], index: 0, kind: input, shape index: {}]   ;;  %s10898_s3 = inlined_call_operand.vmem [shape: f32[9,1,512], index: 3, kind: input, shape index: {}]   ;;  %s10899_s5 = inlined_call_operand.vmem [shape: f32[9,19,3], index: 5, kind: input, shape index: {}]   ;;  %s10900_s10 = inlined_call_operand.vmem [shape: f32[272,1], index: 10, kind: input, shape index: {}]   ;;  %s10901_s2 = inlined_call_operand.vmem [shape: f32[1,8,512], index: 2, kind: input, shape index: {}]   ;;  %s10902_s1 = inlined_call_operand.vmem [shape: f32[1,8,512], index: 1, kind: input, shape index: {}]   ;;  %s10903_s7 = inlined_call_operand.vmem [shape: f32[9,32,1], index: 7, kind: input, shape index: {}]   ;;  %s10904_s6 = inlined_call_operand.vmem [shape: f32[9,16,3], index: 6, kind: input, shape index: {}]   ;;  %s10905_s8 = inlined_call_operand.vmem [shape: f32[112,16], index: 8, kind: input, shape index: {}]   ;;  %s10906_s4 = inlined_call_operand.vmem [shape: f32[2,512], index: 4, kind: input, shape index: {}]   ;;  %s10907_s9 = inlined_call_operand.vmem [shape: f32[9,3,16], index: 9, kind: input, shape index: {}]   ;;  %s10908_s11 = inlined_call_operand.vmem [shape: f32[1,3,512], index: 11, kind: output, shape index: {}]  }
   0x1   :  { %v6948_v0 = vld [vmem:[%s10897_s0 + $0x8] sm:$0x77]  ;;  %v6953_v1 = vld [vmem:[%s10897_s0] sm:$0x77]  ;;  %s6876_s0 = smov 16   ;;  %s6878_s23 = smov 1  }
   0x2   :  { %11153 = vst [vmem:[#allocation2_spill] sm:$0xff] %v6948_v0  ;;  %s6879_s24 = smov 127   ;;  %v6997_v30 = vand.u32 127, %v64_v26  ;;  %v71_v31 = vld [vmem:[%s10898_s3] sm:$0xf]  ;;  %s6880_s29 = smov 113  }
   0x3   :  { %11154 = vst [vmem:[#allocation3_spill] sm:$0xff] %v6953_v1  ;;  %v7003_v32 = vperm.slane %v71_v31, 0  ;;  %v6419_v33 = vld [vmem:[%s10898_s3 + $0x4] sm:$0xf]  ;;  %v7008_v34 = vperm.slane %v71_v31, 1  ;;  %v7010_v35 = vperm.slane %v71_v31, 2 }
   0x4   :  { %47 = vst [vmem:[#allocation1 + $0x10] ss:$2 sm:$0xff] %v6948_v0  ;;  %vm66_vm0 = vcmp.lt.s32.totalorder %v6997_v30, 17  ;;  %v7012_v36 = vperm.slane %v71_v31, 3  ;;  %vm261_vm1 = vcmp.lt.s32.totalorder %v6997_v30, 16  ;;  %v7015_v41 = vperm.slane %v6419_v33, 2 }
   0x5   :  { %45 = vst [vmem:[#allocation1] ss:$2 sm:$0xff] %v6953_v1  ;;  %v85_v53 = vld [vmem:[%s10899_s5] sm:$0xff]  ;;  %v7045_v55 = vperm.slane %v6419_v33, 1  ;;  %v7049_v56 = vperm.slane %v6419_v33, 0  ;;  %v7051_v57 = vperm.slane %v6419_v33, 3 }
   0x6   :  { %11155 = vst [vmem:[#allocation4_spill] sm:$0xff] %v6997_v30  ;;  %s6881_s15 = smov 112   ;;  %vm441_vm4 = vcmp.lt.s32.totalorder %v6997_v30, 15  ;;  %v87_v26 = vld [vmem:[%s10899_s5 + $0x10] sm:$0x7]  ;;  %s6883_s26 = smov 111  }
   0x7   :  { %11156 = vst [vmem:[#allocation5_spill] sm:$0xff] %v7003_v32  ;;  %vm621_vm5 = vcmp.lt.s32.totalorder %v6997_v30, 1  ;;  %vm945_vm6 = vcmp.lt.s32.totalorder %v6997_v30, 127  ;;  %vm10991_vm7 = vcmp.lt.s32.totalorder %v6997_v30, 113  ;;  %vm10990_vm8 = vcmp.lt.s32.totalorder %v6997_v30, 112 }
   0x8   :  { %11157 = vst [vmem:[#allocation6_spill] sm:$0xff] %v7008_v34  ;;  %vm10989_vm9 = vcmp.lt.s32.totalorder %v6997_v30, 111 }
   0x9   :  { %11158 = vst [vmem:[#allocation7_spill] sm:$0xff] %v7010_v35 }
   0xa   :  { %11159 = vst [vmem:[#allocation8_spill] sm:$0xff] %v7012_v36 }
   0xb   :  { %v51_v2 = vld.sshfl [vmem:[#allocation1 + $0x18] sm:$0xff pattern:$0x75316420]  ;;  %v50_v3 = vld.sshfl [vmem:[#allocation1 + $0x10] sm:$0xff pattern:$0x75316420] }
   0xc   :  { %62 = vrot.lane.b32.xlu1 %v51_v2, %s6875_s21  ;;  %v49_v4 = vld.sshfl [vmem:[#allocation1 + $0x8] sm:$0xff pattern:$0x75316420]  ;;  %244 = vst [vmem:[#allocation1 + $0x10] ss:$2 sm:$0xff] %v6948_v0 }
   0xd   :  { %58 = vrot.lane.b32.xlu0 %v49_v4, %s6875_s21  ;;  %v48_v5 = vld.sshfl [vmem:[#allocation1] sm:$0xff pattern:$0x75316420]  ;;  %11160 = vst [vmem:[#allocation9_spill] sm:$0xff] %v7015_v41  ;;  %v86_v4 = vld [vmem:[%s10899_s5 + $0x8] sm:$0xff] }
   0xe   :  { %242 = vst [vmem:[#allocation1] ss:$2 sm:$0xff] %v6953_v1 }
   0xf   :  { %11161 = vst [vmem:[#allocation10_spill] sm:$0xff] %v7045_v55 }
  0x10   :  { %11162 = vst [vmem:[#allocation11_spill] sm:$0xff] %v7049_v56 }
  0x11   :  { %11163 = vst [vmem:[#allocation12_spill] sm:$0xff] %v7051_v57 }
  0x13   :  { %v248_v6 = vld.sshfl [vmem:[#allocation1 + $0x18] sm:$0xff pattern:$0x75316420]  ;;  %v247_v7 = vld.sshfl [vmem:[#allocation1 + $0x10] sm:$0xff pattern:$0x75316420] }
  0x14   :  { %56 = vrot.lane.b32.xlu1 %v48_v5, %s6875_s21  ;;  %424 = vst [vmem:[#allocation1 + $0x10] ss:$2 sm:$0xff] %v6948_v0 }
  0x15   :  { %60 = vrot.lane.b32.xlu0 %v50_v3, %s6875_s21  ;;  %v245_v8 = vld.sshfl [vmem:[#allocation1] sm:$0xff pattern:$0x75316420]  ;;  %v246_v9 = vld.sshfl [vmem:[#allocation1 + $0x8] sm:$0xff pattern:$0x75316420] }
  0x16   :  { %255 = vrot.lane.b32.xlu2 %v246_v9, %s6876_s0  ;;  %422 = vst [vmem:[#allocation1] ss:$2 sm:$0xff] %v6953_v1 }
  0x1b   :  { %v427_v10 = vld.sshfl [vmem:[#allocation1 + $0x10] sm:$0xff pattern:$0x75316420]  ;;  %v428_v11 = vld.sshfl [vmem:[#allocation1 + $0x18] sm:$0xff pattern:$0x75316420] }
  0x1c   :  { %253 = vrot.lane.b32.xlu1 %v245_v8, %s6876_s0  ;;  %604 = vst [vmem:[#allocation1 + $0x10] ss:$2 sm:$0xff] %v6948_v0 }
  0x1d   :  { %259 = vrot.lane.b32.xlu0 %v248_v6, %s6876_s0  ;;  %v426_v12 = vld.sshfl [vmem:[#allocation1 + $0x8] sm:$0xff pattern:$0x75316420]  ;;  %v425_v13 = vld.sshfl [vmem:[#allocation1] sm:$0xff pattern:$0x75316420] }
  0x1e   :  { %257 = vrot.lane.b32.xlu2 %v247_v7, %s6876_s0  ;;  %602 = vst [vmem:[#allocation1] ss:$2 sm:$0xff] %v6953_v1 }
  0x23   :  { %v607_v14 = vld.sshfl [vmem:[#allocation1 + $0x10] sm:$0xff pattern:$0x75316420]  ;;  %v608_v15 = vld.sshfl [vmem:[#allocation1 + $0x18] sm:$0xff pattern:$0x75316420] }
  0x24   :  { %439 = vrot.lane.b32.xlu1 %v428_v11, %s6877_s22  ;;  %788 = vst [vmem:[#allocation1 + $0x10] ss:$2 sm:$0xff] %v6948_v0 }
  0x25   :  { %437 = vrot.lane.b32.xlu0 %v427_v10, %s6877_s22  ;;  %v606_v16 = vld.sshfl [vmem:[#allocation1 + $0x8] sm:$0xff pattern:$0x75316420]  ;;  %v605_v17 = vld.sshfl [vmem:[#allocation1] sm:$0xff pattern:$0x75316420] }
  0x26   :  { %435 = vrot.lane.b32.xlu2 %v426_v12, %s6877_s22  ;;  %786 = vst [vmem:[#allocation1] ss:$2 sm:$0xff] %v6953_v1  ;;  %v6439_v10 = vld [vmem:[%s10898_s3 + $0x8] sm:$0xf] }
  0x27   :  { %v7081_v12 = vperm.slane %v6439_v10, 2 }
  0x29   :  { %11164 = vst [vmem:[#allocation13_spill] sm:$0xff] %v7081_v12 }
  0x2b   :  { %v6976_v18 = vld.sshfl [vmem:[#allocation1 + $0x10] sm:$0xff pattern:$0x75316420]  ;;  %v6978_v19 = vld.sshfl [vmem:[#allocation1 + $0x18] sm:$0xff pattern:$0x75316420] }
  0x2c   :  { %617 = vrot.lane.b32.xlu1 %v607_v14, %s6878_s23  ;;  %928 = vst [vmem:[#allocation1 + $0x10] ss:$2 sm:$0xff] %v6948_v0  ;;  %v7083_v14 = vperm.slane %v6439_v10, 3 }
  0x2d   :  { %615 = vrot.lane.b32.xlu0 %v606_v16, %s6878_s23  ;;  %v6983_v20 = vld.sshfl [vmem:[#allocation1] sm:$0xff pattern:$0x75316420]  ;;  %v6985_v21 = vld.sshfl [vmem:[#allocation1 + $0x8] sm:$0xff pattern:$0x75316420] }
  0x2e   :  { %433 = vrot.lane.b32.xlu2 %v425_v13, %s6877_s22  ;;  %926 = vst [vmem:[#allocation1] ss:$2 sm:$0xff] %v6953_v1  ;;  %v7087_v16 = vperm.slane %v6439_v10, 1 }
  0x2f   :  { %11165 = vst [vmem:[#allocation14_spill] sm:$0xff] %v7083_v14 }
  0x30   :  { %11167 = vst [vmem:[#allocation16_spill] sm:$0xff] %v7087_v16 }
  0x33   :  { %v931_v22 = vld.sshfl [vmem:[#allocation1 + $0x10] sm:$0xff pattern:$0x75316420]  ;;  %v932_v27 = vld.sshfl [vmem:[#allocation1 + $0x18] sm:$0xff pattern:$0x75316420] }
  0x34   :  { %941 = vrot.lane.b32.xlu1 %v931_v22, %s6879_s24  ;;  %1108 = vst [vmem:[#allocation1 + $0x10] ss:$2 sm:$0xff] %v6948_v0 }
  0x35   :  { %613 = vrot.lane.b32.xlu0 %v605_v17, %s6878_s23  ;;  %v930_v23 = vld.sshfl [vmem:[#allocation1 + $0x8] sm:$0xff pattern:$0x75316420]  ;;  %v929_v24 = vld.sshfl [vmem:[#allocation1] sm:$0xff pattern:$0x75316420] }
  0x36   :  { %619 = vrot.lane.b32.xlu2 %v608_v15, %s6878_s23  ;;  %1106 = vst [vmem:[#allocation1] ss:$2 sm:$0xff] %v6953_v1  ;;  %v7085_v15 = vperm.slane %v6439_v10, 0 }
  0x38   :  { %11166 = vst [vmem:[#allocation15_spill] sm:$0xff] %v7085_v15 }
  0x3b   :  { %v1111_v38 = vld.sshfl [vmem:[#allocation1 + $0x10] sm:$0xff pattern:$0x75316420]  ;;  %v1112_v39 = vld.sshfl [vmem:[#allocation1 + $0x18] sm:$0xff pattern:$0x75316420] }
  0x3c   :  { %939 = vrot.lane.b32.xlu1 %v930_v23, %s6879_s24  ;;  %1288 = vst [vmem:[#allocation1 + $0x10] ss:$2 sm:$0xff] %v6948_v0 }
  0x3d   :  { %937 = vrot.lane.b32.xlu0 %v929_v24, %s6879_s24  ;;  %v1109_v42 = vld.sshfl [vmem:[#allocation1] sm:$0xff pattern:$0x75316420]  ;;  %v1110_v58 = vld.sshfl [vmem:[#allocation1 + $0x8] sm:$0xff pattern:$0x75316420] }
  0x3e   :  { %943 = vrot.lane.b32.xlu2 %v932_v27, %s6879_s24  ;;  %1286 = vst [vmem:[#allocation1] ss:$2 sm:$0xff] %v6953_v1 }
  0x43   :  { %v1291_v7 = vld.sshfl [vmem:[#allocation1 + $0x10] sm:$0xff pattern:$0x75316420] }
  0x44   :  { %1117 = vrot.lane.b32.xlu1 %v1109_v42, %s6880_s29  ;;  %v42_v42 = vld [vmem:[%s10900_s10 + $0x10] sm:$0x7] }
  0x45   :  { %1123 = vrot.lane.b32.xlu0 %v1112_v39, %s6880_s29  ;;  %v1289_v8 = vld.sshfl [vmem:[#allocation1] sm:$0xff pattern:$0x75316420]  ;;  %v1290_v33 = vld.sshfl [vmem:[#allocation1 + $0x8] sm:$0xff pattern:$0x75316420] }
  0x46   :  { %1121 = vrot.lane.b32.xlu2 %v1111_v38, %s6880_s29  ;;  %1466 = vst [vmem:[#allocation1] ss:$2 sm:$0xff] %v6953_v1  ;;  %v6420_v38 = vld [vmem:[%s10899_s5 + $0x18] sm:$0xff] }
  0x4d   :  { %1301 = vrot.lane.b32.xlu0 %v1291_v7, %s6881_s15 }
  0x4e   :  { %1119 = vrot.lane.b32.xlu2 %v1110_v58, %s6880_s29 }
  0x55   :  { %1299 = vrot.lane.b32.xlu0 %v1290_v33, %s6881_s15 }
  0x56   :  { %1297 = vrot.lane.b32.xlu2 %v1289_v8, %s6881_s15 }
  0x70   :  { %v256_v25 = vpop.permute.xlu2 %255 }
  0x78   :  { %v258_v37 = vpop.permute.xlu2 %257 }
  0x79   :  { %v263_v46 = vsel %vm261_vm1, %v256_v25, %v258_v37 }
  0x7a   :  { %v279_v54 = vmul.f32 %v7015_v41, %v263_v46 }
  0x7e   :  { %v63_v28 = vpop.permute.xlu1 %62 }
  0x7f   :  { %v59_v29 = vpop.permute.xlu0 %58 }
  0x80   :  { %v436_v59 = vpop.permute.xlu2 %435 }
  0x86   :  { %v57_v40 = vpop.permute.xlu1 %56 }
  0x87   :  { %v61_v43 = vpop.permute.xlu0 %60  ;;  %v70_v44 = vsel %vm66_vm0, %v63_v28, %v57_v40  ;;  %v69_v45 = vsel %vm66_vm0, %v57_v40, %v59_v29 }
  0x88   :  { %v81_v47 = vmul.f32 %v7003_v32, %v70_v44  ;;  %v82_v48 = vmul.f32 %v7008_v34, %v69_v45  ;;  %v68_v49 = vsel %vm66_vm0, %v59_v29, %v61_v43  ;;  %v67_v50 = vsel %vm66_vm0, %v61_v43, %v63_v28  ;;  %v434_v9 = vpop.permute.xlu2 %433  ;;  %v6421_v43 = vld [vmem:[%s10899_s5 + $0x20] sm:$0xff]  ;;  %v6459_v45 = vld [vmem:[%s10898_s3 + $0xc] sm:$0xf] }
  0x89   :  { %v83_v51 = vmul.f32 %v7010_v35, %v68_v49  ;;  %v84_v52 = vmul.f32 %v7012_v36, %v67_v50  ;;  %v444_v23 = vsel %vm441_vm4, %v434_v9, %v436_v59  ;;  %v7143_v50 = vperm.slane %v6459_v45, 3 }
  0x8a   :  { %6403 = vmatpush.msk.msra.mxu0 %vm98_vm2, %v81_v47  ;;  %6407 = vmatpush.msk.msra.mxu1 %vm98_vm2, %v82_v48  ;;  %v458_v28 = vmul.f32 %v7087_v16, %v444_v23  ;;  %v7139_v48 = vperm.slane %v6459_v45, 2 }
  0x8b   :  { %6411 = vmatpush.msk.msra.mxu2 %vm98_vm2, %v83_v51  ;;  %6415 = vmatpush.msk.msra.mxu3 %vm98_vm2, %v84_v52  ;;  %11169 = vst [vmem:[#allocation18_spill] sm:$0xff] %v7143_v50 }
  0x8c   :  { %6404 = vmatmul.msk.f32.vlgmr.msra.gmra.mxu0 %vm88_vm3, %v85_v53  ;;  %6408 = vmatmul.msk.f32.vlgmr.msra.gmra.mxu1 %vm88_vm3, %v85_v53  ;;  %11168 = vst [vmem:[#allocation17_spill] sm:$0xff] %v7139_v48 }
  0x8d   :  { %6412 = vmatmul.msk.f32.vlgmr.msra.gmra.mxu2 %vm88_vm3, %v85_v53  ;;  %6416 = vmatmul.msk.f32.vlgmr.msra.gmra.mxu3 %vm88_vm3, %v85_v53  ;;  %v7147_v53 = vperm.slane %v6459_v45, 0 }
  0x8e   :  { %v254_v60 = vpop.permute.xlu1 %253  ;;  %6431 = vmatpush.msk.msrb.mxu2 %vm98_vm2, %v279_v54  ;;  %v7149_v54 = vperm.slane %v6459_v45, 1  ;;  %v6480_v45 = vld [vmem:[%s10899_s5 + $0x68] sm:$0xff] }
  0x8f   :  { %v264_v61 = vsel %vm261_vm1, %v254_v60, %v256_v25  ;;  %v260_v62 = vpop.permute.xlu0 %259  ;;  %v1292_v25 = vld.sshfl [vmem:[#allocation1 + $0x18] sm:$0xff pattern:$0x75316420]  ;;  %11170 = vst [vmem:[#allocation19_spill] sm:$0xff] %v7147_v53 }
  0x90   :  { %v278_v63 = vmul.f32 %v7045_v55, %v264_v61  ;;  %v262_v2 = vsel %vm261_vm1, %v258_v37, %v260_v62  ;;  %v265_v3 = vsel %vm261_vm1, %v260_v62, %v254_v60  ;;  %1303 = vrot.lane.b32.xlu1 %v1292_v25, %s6881_s15  ;;  %1468 = vst [vmem:[#allocation1 + $0x10] ss:$2 sm:$0xff] %v6948_v0  ;;  %v6882_v37 = vmov 0   ;;  %v620_v47 = vpop.permute.xlu2 %619  ;;  %v6422_v62 = vld [vmem:[%s10899_s5 + $0x28] sm:$0x7] }
  0x91   :  { %v277_v5 = vmul.f32 %v7049_v56, %v265_v3  ;;  %v280_v6 = vmul.f32 %v7051_v57, %v262_v2  ;;  %6854 = vset.pattern.permute.xlu2 %v6882_v37  ;;  %6856 = vset.pattern.permute.xlu1 %v6882_v37  ;;  %11171 = vst [vmem:[#allocation20_spill] sm:$0xff] %v7149_v54  ;;  %v1470_v3 = vld.sshfl [vmem:[#allocation1 + $0x8] sm:$0xff pattern:$0x75316420]  ;;  %v6462_v25 = vld [vmem:[%s10899_s5 + $0x58] sm:$0x7] }
  0x92   :  { %6427 = vmatpush.msk.msrb.mxu1 %vm98_vm2, %v278_v63  ;;  %6855 = vset.pattern.permute.xlu0 %v6882_v37 }
  0x93   :  { %6423 = vmatpush.msk.msrb.mxu0 %vm98_vm2, %v277_v5  ;;  %6435 = vmatpush.msk.msrb.mxu3 %vm98_vm2, %v280_v6  ;;  %v6440_v5 = vld [vmem:[%s10899_s5 + $0x30] sm:$0xff]  ;;  %v6441_v6 = vld [vmem:[%s10899_s5 + $0x38] sm:$0xff] }
  0x94   :  { %6405 = vmatmul.msk.f32.gmra.mxu0 %vm88_vm3, %v86_v4  ;;  %6409 = vmatmul.msk.f32.gmra.mxu1 %vm88_vm3, %v86_v4 }
  0x95   :  { %6413 = vmatmul.msk.f32.gmra.mxu2 %vm88_vm3, %v86_v4  ;;  %6417 = vmatmul.msk.f32.gmra.mxu3 %vm88_vm3, %v86_v4  ;;  %v1469_v4 = vld.sshfl [vmem:[#allocation1] sm:$0xff pattern:$0x75316420] }
  0x96   :  { %v440_v11 = vpop.permute.xlu1 %439  ;;  %6447 = vmatpush.msk.msra.mxu1 %vm98_vm2, %v458_v28  ;;  %1477 = vrot.lane.b32.xlu0 %v1469_v4, %s6883_s26 }
  0x97   :  { %v438_v13 = vpop.permute.xlu0 %437  ;;  %v445_v24 = vsel %vm441_vm4, %v440_v11, %v434_v9  ;;  %v1472_v39 = vld.sshfl [vmem:[#allocation1 + $0x18] sm:$0xff pattern:$0x75316420]  ;;  %v1471_v44 = vld.sshfl [vmem:[#allocation1 + $0x10] sm:$0xff pattern:$0x75316420] }
  0x98   :  { %v443_v17 = vsel %vm441_vm4, %v436_v59, %v438_v13  ;;  %v442_v22 = vsel %vm441_vm4, %v438_v13, %v440_v11  ;;  %v457_v27 = vmul.f32 %v7085_v15, %v445_v24  ;;  %1483 = vrot.lane.b32.xlu2 %v1472_v39, %s6883_s26  ;;  %1481 = vrot.lane.b32.xlu1 %v1471_v44, %s6883_s26  ;;  %v944_v8 = vpop.permute.xlu2 %943  ;;  %v6461_v9 = vld [vmem:[%s10899_s5 + $0x50] sm:$0xff] }
  0x99   :  { %v459_v29 = vmul.f32 %v7081_v12, %v443_v17  ;;  %v460_v31 = vmul.f32 %v7083_v14, %v442_v22 }
  0x9a   :  { %6443 = vmatpush.msk.msra.mxu0 %vm98_vm2, %v457_v27 }
  0x9b   :  { %6451 = vmatpush.msk.msra.mxu2 %vm98_vm2, %v459_v29  ;;  %6455 = vmatpush.msk.msra.mxu3 %vm98_vm2, %v460_v31 }
  0x9c   :  { %6406 = vmatmul.msk.f32.gmra.mxu0 %vm88_vm3, %v87_v26  ;;  %6410 = vmatmul.msk.f32.gmra.mxu1 %vm88_vm3, %v87_v26 }
  0x9d   :  { %6414 = vmatmul.msk.f32.gmra.mxu2 %vm88_vm3, %v87_v26  ;;  %6418 = vmatmul.msk.f32.gmra.mxu3 %vm88_vm3, %v87_v26 }
  0x9e   :  { %v618_v46 = vpop.permute.xlu1 %617 }
  0x9f   :  { %v616_v40 = vpop.permute.xlu0 %615  ;;  %v622_v51 = vsel %vm621_vm5, %v618_v46, %v620_v47 }
  0xa0   :  { %227 = vperm.xlu2 %6854, %v42_v42   ;;  %v623_v49 = vsel %vm621_vm5, %v616_v40, %v618_v46  ;;  %v640_v61 = vmul.f32 %v7143_v50, %v622_v51  ;;  %1479 = vrot.lane.b32.xlu1 %v1470_v3, %s6883_s26  ;;  %v1122_v23 = vpop.permute.xlu2 %1121  ;;  %v6479_v42 = vld [vmem:[%s10899_s5 + $0x60] sm:$0xff]  ;;  %v6499_v3 = vld [vmem:[%s10899_s5 + $0x78] sm:$0xff] }
  0xa1   :  { %v639_v60 = vmul.f32 %v7139_v48, %v623_v49 }
  0xa4   :  { %6424 = vmatmul.msk.f32.vlgmr.msrb.gmra.mxu0 %vm88_vm3, %v6420_v38  ;;  %6428 = vmatmul.msk.f32.vlgmr.msrb.gmra.mxu1 %vm88_vm3, %v6420_v38 }
  0xa5   :  { %6432 = vmatmul.msk.f32.vlgmr.msrb.gmra.mxu2 %vm88_vm3, %v6420_v38  ;;  %6436 = vmatmul.msk.f32.vlgmr.msrb.gmra.mxu3 %vm88_vm3, %v6420_v38  ;;  %v6518_v38 = vld [vmem:[%s10898_s3 + $0x18] sm:$0xf] }
  0xa6   :  { %6471 = vmatpush.msk.msrb.mxu2 %vm98_vm2, %v639_v60  ;;  %6475 = vmatpush.msk.msrb.mxu3 %vm98_vm2, %v640_v61  ;;  %v7253_v39 = vperm.slane %v6518_v38, 1  ;;  %v7274_v46 = vperm.slane %v6518_v38, 2  ;;  %v7276_v49 = vperm.slane %v6518_v38, 0  ;;  %v7278_v51 = vperm.slane %v6518_v38, 3 }
  0xa7   :  { %v614_v52 = vpop.permute.xlu0 %613 }
  0xa8   :  { %v624_v58 = vsel %vm621_vm5, %v614_v52, %v616_v40  ;;  %v625_v59 = vsel %vm621_vm5, %v620_v47, %v614_v52  ;;  %11176 = vst [vmem:[#allocation25_spill] sm:$0xff] %v7253_v39  ;;  %v1120_v40 = vpop.permute.xlu2 %1119  ;;  %v6481_v52 = vld [vmem:[%s10899_s5 + $0x70] sm:$0x7] }
  0xa9   :  { %v637_v63 = vmul.f32 %v7147_v53, %v625_v59  ;;  %v638_v2 = vmul.f32 %v7149_v54, %v624_v58  ;;  %11177 = vst [vmem:[#allocation26_spill] sm:$0xff] %v7274_v46 }
  0xaa   :  { %11178 = vst [vmem:[#allocation27_spill] sm:$0xff] %v7276_v49 }
  0xab   :  { %6463 = vmatpush.msk.msrb.mxu0 %vm98_vm2, %v637_v63  ;;  %6467 = vmatpush.msk.msrb.mxu1 %vm98_vm2, %v638_v2  ;;  %11179 = vst [vmem:[#allocation28_spill] sm:$0xff] %v7278_v51 }
  0xac   :  { %6425 = vmatmul.msk.f32.gmra.mxu0 %vm88_vm3, %v6421_v43  ;;  %6429 = vmatmul.msk.f32.gmra.mxu1 %vm88_vm3, %v6421_v43 }
  0xad   :  { %6433 = vmatmul.msk.f32.gmra.mxu2 %vm88_vm3, %v6421_v43  ;;  %6437 = vmatmul.msk.f32.gmra.mxu3 %vm88_vm3, %v6421_v43  ;;  %v1127_v43 = vsel %vm10991_vm7, %v1120_v40, %v1122_v23 }
  0xae   :  { %v1142_v44 = vmul.f32 %v7253_v39, %v1127_v43 }
  0xaf   :  { %v938_v27 = vpop.permute.xlu0 %937 }
  0xb0   :  { %v949_v31 = vsel %vm945_vm6, %v944_v8, %v938_v27 }
  0xb4   :  { %6426 = vmatmul.msk.f32.gmra.mxu0 %vm88_vm3, %v6422_v62  ;;  %6430 = vmatmul.msk.f32.gmra.mxu1 %vm88_vm3, %v6422_v62 }
  0xb5   :  { %6434 = vmatmul.msk.f32.gmra.mxu2 %vm88_vm3, %v6422_v62  ;;  %6438 = vmatmul.msk.f32.gmra.mxu3 %vm88_vm3, %v6422_v62 }
  0xb7   :  { %v1124_v47 = vpop.permute.xlu0 %1123 }
  0xb8   :  { %v1126_v58 = vsel %vm10991_vm7, %v1122_v23, %v1124_v47 }
  0xb9   :  { %v1143_v60 = vmul.f32 %v7274_v46, %v1126_v58  ;;  %v6519_v58 = vld [vmem:[%s10899_s5 + $0x90] sm:$0xff] }
  0xbc   :  { %6444 = vmatmul.msk.f32.vlgmr.msra.gmra.mxu0 %vm88_vm3, %v6440_v5  ;;  %6448 = vmatmul.msk.f32.vlgmr.msra.gmra.mxu1 %vm88_vm3, %v6440_v5 }
  0xbd   :  { %6452 = vmatmul.msk.f32.vlgmr.msra.gmra.mxu2 %vm88_vm3, %v6440_v5  ;;  %6456 = vmatmul.msk.f32.vlgmr.msra.gmra.mxu3 %vm88_vm3, %v6440_v5 }
  0xbe   :  { %6482 = vmatpush.msk.msra.mxu0 %vm98_vm2, %v6983_v20  ;;  %6486 = vmatpush.msk.msra.mxu1 %vm98_vm2, %v6985_v21  ;;  %v6442_v20 = vld [vmem:[%s10899_s5 + $0x40] sm:$0x7]  ;;  %v942_v21 = vpop.permute.xlu1 %941 }
  0xbf   :  { %6490 = vmatpush.msk.msra.mxu2 %vm98_vm2, %v6976_v18  ;;  %6494 = vmatpush.msk.msra.mxu3 %vm98_vm2, %v6978_v19  ;;  %v6460_v18 = vld [vmem:[%s10899_s5 + $0x48] sm:$0xff]  ;;  %v6498_v19 = vld [vmem:[%s10898_s3 + $0x14] sm:$0xf]  ;;  %v946_v10 = vsel %vm945_vm6, %v942_v21, %v944_v8  ;;  %v1302_v4 = vpop.permute.xlu0 %1301 }
  0xc0   :  { %v7212_v7 = vperm.slane %v6498_v19, 2  ;;  %v7224_v13 = vperm.slane %v6498_v19, 1  ;;  %v7227_v17 = vperm.slane %v6498_v19, 0  ;;  %v7229_v22 = vperm.slane %v6498_v19, 3  ;;  %v6538_v19 = vld [vmem:[%s10898_s3 + $0x1c] sm:$0xf] }
  0xc2   :  { %11172 = vst [vmem:[#allocation21_spill] sm:$0xff] %v7212_v7  ;;  %v963_v11 = vmul.f32 %v7212_v7, %v946_v10  ;;  %v964_v37 = vmul.f32 %v7229_v22, %v949_v31  ;;  %v7327_v10 = vperm.slane %v6538_v19, 3 }
  0xc3   :  { %11173 = vst [vmem:[#allocation22_spill] sm:$0xff] %v7224_v13 }
  0xc4   :  { %6445 = vmatmul.msk.f32.gmra.mxu0 %vm88_vm3, %v6441_v6  ;;  %6449 = vmatmul.msk.f32.gmra.mxu1 %vm88_vm3, %v6441_v6  ;;  %11174 = vst [vmem:[#allocation23_spill] sm:$0xff] %v7227_v17 }
  0xc5   :  { %6453 = vmatmul.msk.f32.gmra.mxu2 %vm88_vm3, %v6441_v6  ;;  %6457 = vmatmul.msk.f32.gmra.mxu3 %vm88_vm3, %v6441_v6  ;;  %11175 = vst [vmem:[#allocation24_spill] sm:$0xff] %v7229_v22 }
  0xc6   :  { %v940_v24 = vpop.permute.xlu1 %939  ;;  %11185 = vst [vmem:[#allocation34_spill] sm:$0xff] %v7327_v10 }
  0xc7   :  { %v947_v26 = vsel %vm945_vm6, %v940_v24, %v942_v21  ;;  %v948_v29 = vsel %vm945_vm6, %v938_v27, %v940_v24 }
  0xc8   :  { %v962_v28 = vmul.f32 %v7224_v13, %v947_v26  ;;  %v961_v33 = vmul.f32 %v7227_v17, %v948_v29  ;;  %v7338_v26 = vperm.slane %v6538_v19, 1 }
  0xca   :  { %11189 = vst [vmem:[#allocation38_spill] sm:$0xff] %v7338_v26 }
  0xcc   :  { %6446 = vmatmul.msk.f32.gmra.mxu0 %vm88_vm3, %v6442_v20  ;;  %6450 = vmatmul.msk.f32.gmra.mxu1 %vm88_vm3, %v6442_v20 }
  0xcd   :  { %6454 = vmatmul.msk.f32.gmra.mxu2 %vm88_vm3, %v6442_v20  ;;  %6458 = vmatmul.msk.f32.gmra.mxu3 %vm88_vm3, %v6442_v20  ;;  %v6500_v20 = vld [vmem:[%s10899_s5 + $0x80] sm:$0xff] }
  0xce   :  { %v1118_v59 = vpop.permute.xlu1 %1117 }
  0xcf   :  { %v1128_v61 = vsel %vm10991_vm7, %v1118_v59, %v1120_v40  ;;  %v1129_v62 = vsel %vm10991_vm7, %v1124_v47, %v1118_v59 }
  0xd0   :  { %v1141_v63 = vmul.f32 %v7276_v49, %v1128_v61  ;;  %v1144_v2 = vmul.f32 %v7278_v51, %v1129_v62  ;;  %v6558_v61 = vld [vmem:[%s10898_s3 + $0x20] sm:$0xf] }
  0xd4   :  { %6464 = vmatmul.msk.f32.vlgmr.msrb.gmra.mxu0 %vm88_vm3, %v6460_v18  ;;  %6468 = vmatmul.msk.f32.vlgmr.msrb.gmra.mxu1 %vm88_vm3, %v6460_v18 }
  0xd5   :  { %6472 = vmatmul.msk.f32.vlgmr.msrb.gmra.mxu2 %vm88_vm3, %v6460_v18  ;;  %6476 = vmatmul.msk.f32.vlgmr.msrb.gmra.mxu3 %vm88_vm3, %v6460_v18  ;;  %v1298_v18 = vpop.permute.xlu2 %1297 }
  0xd6   :  { %6510 = vmatpush.msk.msrb.mxu2 %vm98_vm2, %v963_v11  ;;  %6502 = vmatpush.msk.msrb.mxu0 %vm98_vm2, %v961_v33  ;;  %v7329_v11 = vperm.slane %v6538_v19, 0 }
  0xd7   :  { %6506 = vmatpush.msk.msrb.mxu1 %vm98_vm2, %v962_v28  ;;  %6514 = vmatpush.msk.msrb.mxu3 %vm98_vm2, %v964_v37  ;;  %v1300_v28 = vpop.permute.xlu0 %1299 }
  0xd8   :  { %11186 = vst [vmem:[#allocation35_spill] sm:$0xff] %v7329_v11  ;;  %v1307_v33 = vsel %vm10990_vm8, %v1300_v28, %v1302_v4  ;;  %v1308_v37 = vsel %vm10990_vm8, %v1298_v18, %v1300_v28  ;;  %v7404_v28 = vperm.slane %v6558_v61, 1 }
  0xd9   :  { %v1322_v43 = vmul.f32 %v7338_v26, %v1307_v33 }
  0xda   :  { %11197 = vst [vmem:[#allocation46_spill] sm:$0xff] %v7404_v28 }
  0xdc   :  { %6465 = vmatmul.msk.f32.gmra.mxu0 %vm88_vm3, %v6461_v9  ;;  %6469 = vmatmul.msk.f32.gmra.mxu1 %vm88_vm3, %v6461_v9 }
  0xdd   :  { %6473 = vmatmul.msk.f32.gmra.mxu2 %vm88_vm3, %v6461_v9  ;;  %6477 = vmatmul.msk.f32.gmra.mxu3 %vm88_vm3, %v6461_v9  ;;  %v7325_v9 = vperm.slane %v6538_v19, 2 }
  0xdf   :  { %11184 = vst [vmem:[#allocation33_spill] sm:$0xff] %v7325_v9 }
  0xe4   :  { %6466 = vmatmul.msk.f32.gmra.mxu0 %vm88_vm3, %v6462_v25  ;;  %6470 = vmatmul.msk.f32.gmra.mxu1 %vm88_vm3, %v6462_v25 }
  0xe5   :  { %6474 = vmatmul.msk.f32.gmra.mxu2 %vm88_vm3, %v6462_v25  ;;  %6478 = vmatmul.msk.f32.gmra.mxu3 %vm88_vm3, %v6462_v25  ;;  %v6501_v25 = vld [vmem:[%s10899_s5 + $0x88] sm:$0x7] }
  0xec   :  { %6483 = vmatmul.msk.f32.vlgmr.msra.gmra.mxu0 %vm88_vm3, %v6479_v42  ;;  %6487 = vmatmul.msk.f32.vlgmr.msra.gmra.mxu1 %vm88_vm3, %v6479_v42 }
  0xed   :  { %6491 = vmatmul.msk.f32.vlgmr.msra.gmra.mxu2 %vm88_vm3, %v6479_v42  ;;  %6495 = vmatmul.msk.f32.vlgmr.msra.gmra.mxu3 %vm88_vm3, %v6479_v42  ;;  %v1321_v42 = vmul.f32 %v7329_v11, %v1308_v37 }
  0xee   :  { %6526 = vmatpush.msk.msra.mxu1 %vm98_vm2, %v1142_v44  ;;  %6522 = vmatpush.msk.msra.mxu0 %vm98_vm2, %v1141_v63 }
  0xef   :  { %6530 = vmatpush.msk.msra.mxu2 %vm98_vm2, %v1143_v60  ;;  %6534 = vmatpush.msk.msra.mxu3 %vm98_vm2, %v1144_v2  ;;  %v6520_v2 = vld [vmem:[%s10899_s5 + $0x98] sm:$0xff] }
  0xf4   :  { %6484 = vmatmul.msk.f32.gmra.mxu0 %vm88_vm3, %v6480_v45  ;;  %6488 = vmatmul.msk.f32.gmra.mxu1 %vm88_vm3, %v6480_v45 }
  0xf5   :  { %6492 = vmatmul.msk.f32.gmra.mxu2 %vm88_vm3, %v6480_v45  ;;  %6496 = vmatmul.msk.f32.gmra.mxu3 %vm88_vm3, %v6480_v45 }
  0xfc   :  { %6485 = vmatmul.msk.f32.gmra.mxu0 %vm88_vm3, %v6481_v52  ;;  %6489 = vmatmul.msk.f32.gmra.mxu1 %vm88_vm3, %v6481_v52 }
  0xfd   :  { %6493 = vmatmul.msk.f32.gmra.mxu2 %vm88_vm3, %v6481_v52  ;;  %6497 = vmatmul.msk.f32.gmra.mxu3 %vm88_vm3, %v6481_v52 }
 0x102   :  { %v1304_v27 = vpop.permute.xlu1 %1303 }
 0x103   :  { %v1306_v29 = vsel %vm10990_vm8, %v1302_v4, %v1304_v27  ;;  %v1309_v31 = vsel %vm10990_vm8, %v1304_v27, %v1298_v18  ;;  %v1484_v4 = vpop.permute.xlu2 %1483 }
 0x104   :  { %6503 = vmatmul.msk.f32.vlgmr.msrb.gmra.mxu0 %vm88_vm3, %v6499_v3  ;;  %6507 = vmatmul.msk.f32.vlgmr.msrb.gmra.mxu1 %vm88_vm3, %v6499_v3  ;;  %v1323_v38 = vmul.f32 %v7325_v9, %v1306_v29  ;;  %v1324_v40 = vmul.f32 %v7327_v10, %v1309_v31  ;;  %v7406_v29 = vperm.slane %v6558_v61, 0  ;;  %v7408_v31 = vperm.slane %v6558_v61, 3 }
 0x105   :  { %6511 = vmatmul.msk.f32.vlgmr.msrb.gmra.mxu2 %vm88_vm3, %v6499_v3  ;;  %6515 = vmatmul.msk.f32.vlgmr.msrb.gmra.mxu3 %vm88_vm3, %v6499_v3  ;;  %v7390_v3 = vperm.slane %v6558_v61, 2 }
 0x106   :  { %6542 = vmatpush.msk.msrb.mxu0 %vm98_vm2, %v1321_v42  ;;  %6550 = vmatpush.msk.msrb.mxu2 %vm98_vm2, %v1323_v38  ;;  %11198 = vst [vmem:[#allocation47_spill] sm:$0xff] %v7406_v29  ;;  %v6521_v38 = vld [vmem:[%s10899_s5 + $0xa0] sm:$0x7] }
 0x107   :  { %6546 = vmatpush.msk.msrb.mxu1 %vm98_vm2, %v1322_v43  ;;  %6554 = vmatpush.msk.msrb.mxu3 %vm98_vm2, %v1324_v40  ;;  %11194 = vst [vmem:[#allocation43_spill] sm:$0xff] %v7390_v3 }
 0x108   :  { %11199 = vst [vmem:[#allocation48_spill] sm:$0xff] %v7408_v31  ;;  %v1478_v42 = vpop.permute.xlu0 %1477 }
 0x109   :  { %v7306_v5 = vpop.f32.mrf.mxu0  ;;  %v7308_v6 = vpop.f32.mrf.mxu1  ;;  %v1489_v61 = vsel %vm10989_vm9, %v1484_v4, %v1478_v42 }
 0x10a   :  { %11180 = vst [vmem:[#allocation29_spill] sm:$0xff] %v7306_v5 }
 0x10b   :  { %11181 = vst [vmem:[#allocation30_spill] sm:$0xff] %v7308_v6 }
 0x10c   :  { %6504 = vmatmul.msk.f32.gmra.mxu0 %vm88_vm3, %v6500_v20  ;;  %6508 = vmatmul.msk.f32.gmra.mxu1 %vm88_vm3, %v6500_v20 }
 0x10d   :  { %6512 = vmatmul.msk.f32.gmra.mxu2 %vm88_vm3, %v6500_v20  ;;  %6516 = vmatmul.msk.f32.gmra.mxu3 %vm88_vm3, %v6500_v20  ;;  %v1482_v20 = vpop.permute.xlu1 %1481 }
 0x10e   :  { %v1486_v18 = vsel %vm10989_vm9, %v1482_v20, %v1484_v4 }
 0x10f   :  { %v1503_v19 = vmul.f32 %v7390_v3, %v1486_v18 }
 0x110   :  { %v7320_v21 = vpop.f32.mrf.mxu2  ;;  %v7322_v8 = vpop.f32.mrf.mxu3 }
 0x111   :  { %11182 = vst [vmem:[#allocation31_spill] sm:$0xff] %v7320_v21  ;;  %v7331_v23 = vpop.f32.mrf.mxu0  ;;  %v7333_v24 = vpop.f32.mrf.mxu1 }
 0x112   :  { %11183 = vst [vmem:[#allocation32_spill] sm:$0xff] %v7322_v8 }
 0x113   :  { %11187 = vst [vmem:[#allocation36_spill] sm:$0xff] %v7331_v23 }
 0x114   :  { %11188 = vst [vmem:[#allocation37_spill] sm:$0xff] %v7333_v24  ;;  %6505 = vmatmul.msk.f32.gmra.mxu0 %vm88_vm3, %v6501_v25  ;;  %6509 = vmatmul.msk.f32.gmra.mxu1 %vm88_vm3, %v6501_v25 }
 0x115   :  { %6513 = vmatmul.msk.f32.gmra.mxu2 %vm88_vm3, %v6501_v25  ;;  %6517 = vmatmul.msk.f32.gmra.mxu3 %vm88_vm3, %v6501_v25  ;;  %v1480_v40 = vpop.permute.xlu1 %1479 }
 0x116   :  { %v1487_v43 = vsel %vm10989_vm9, %v1480_v40, %v1482_v20 }
 0x118   :  { %v7360_v44 = vpop.f32.mrf.mxu2  ;;  %v7362_v45 = vpop.f32.mrf.mxu3 }
 0x119   :  { %11190 = vst [vmem:[#allocation39_spill] sm:$0xff] %v7360_v44  ;;  %v7364_v47 = vpop.f32.mrf.mxu0  ;;  %v7366_v52 = vpop.f32.mrf.mxu1 }
 0x11a   :  { %11191 = vst [vmem:[#allocation40_spill] sm:$0xff] %v7362_v45 }
 0x11c   :  { %6523 = vmatmul.msk.f32.vlgmr.msra.gmra.mxu0 %vm88_vm3, %v6519_v58  ;;  %6527 = vmatmul.msk.f32.vlgmr.msra.gmra.mxu1 %vm88_vm3, %v6519_v58 }
 0x11d   :  { %6531 = vmatmul.msk.f32.vlgmr.msra.gmra.mxu2 %vm88_vm3, %v6519_v58  ;;  %6535 = vmatmul.msk.f32.vlgmr.msra.gmra.mxu3 %vm88_vm3, %v6519_v58  ;;  %v1488_v58 = vsel %vm10989_vm9, %v1478_v42, %v1480_v40 }
 0x11e   :  { %6570 = vmatpush.msk.msra.mxu2 %vm98_vm2, %v1503_v19  ;;  %v1501_v18 = vmul.f32 %v7406_v29, %v1488_v58  ;;  %v1504_v19 = vmul.f32 %v7408_v31, %v1489_v61  ;;  %v228_v29 = vpop.permute.xlu2 %227 }
 0x11f   :  { %v238_v51 = vadd.f32 %v228_v29, %v7364_v47  ;;  %v239_v46 = vadd.f32 %v228_v29, %v7366_v52 }
 0x120   :  { %v7375_v59 = vpop.f32.mrf.mxu2  ;;  %v7377_v60 = vpop.f32.mrf.mxu3  ;;  %6562 = vmatpush.msk.msra.mxu0 %vm98_vm2, %v1501_v18  ;;  %6574 = vmatpush.msk.msra.mxu3 %vm98_vm2, %v1504_v19  ;;  %v6540_v18 = vld [vmem:[%s10899_s5 + $0xb0] sm:$0xff] }
 0x121   :  { %v7383_v62 = vpop.f32.mrf.mxu0  ;;  %v7385_v63 = vpop.f32.mrf.mxu1  ;;  %v240_v47 = vadd.f32 %v228_v29, %v7375_v59  ;;  %v241_v52 = vadd.f32 %v228_v29, %v7377_v60 }
 0x122   :  { %11192 = vst [vmem:[#allocation41_spill] sm:$0xff] %v7383_v62 }
 0x123   :  { %11193 = vst [vmem:[#allocation42_spill] sm:$0xff] %v7385_v63 }
 0x124   :  { %6524 = vmatmul.msk.f32.gmra.mxu0 %vm88_vm3, %v6520_v2  ;;  %6528 = vmatmul.msk.f32.gmra.mxu1 %vm88_vm3, %v6520_v2 }
 0x125   :  { %6532 = vmatmul.msk.f32.gmra.mxu2 %vm88_vm3, %v6520_v2  ;;  %6536 = vmatmul.msk.f32.gmra.mxu3 %vm88_vm3, %v6520_v2  ;;  %v1502_v2 = vmul.f32 %v7404_v28, %v1487_v43  ;;  %v6539_v43 = vld [vmem:[%s10899_s5 + $0xa8] sm:$0xff] }
 0x127   :  { %6566 = vmatpush.msk.msra.mxu1 %vm98_vm2, %v1502_v2 }
 0x128   :  { %v7400_v25 = vpop.f32.mrf.mxu2  ;;  %v7402_v27 = vpop.f32.mrf.mxu3 }
 0x129   :  { %11195 = vst [vmem:[#allocation44_spill] sm:$0xff] %v7400_v25  ;;  %v7410_v33 = vpop.f32.mrf.mxu0  ;;  %v7412_v37 = vpop.f32.mrf.mxu1 }
 0x12a   :  { %11196 = vst [vmem:[#allocation45_spill] sm:$0xff] %v7402_v27 }
 0x12b   :  { %11200 = vst [vmem:[#allocation49_spill] sm:$0xff] %v7410_v33 }
 0x12c   :  { %11201 = vst [vmem:[#allocation50_spill] sm:$0xff] %v7412_v37  ;;  %6525 = vmatmul.msk.f32.gmra.mxu0 %vm88_vm3, %v6521_v38  ;;  %6529 = vmatmul.msk.f32.gmra.mxu1 %vm88_vm3, %v6521_v38 }
 0x12d   :  { %6533 = vmatmul.msk.f32.gmra.mxu2 %vm88_vm3, %v6521_v38  ;;  %6537 = vmatmul.msk.f32.gmra.mxu3 %vm88_vm3, %v6521_v38 }
 0x130   :  { %v7433_v4 = vpop.f32.mrf.mxu2  ;;  %v7435_v20 = vpop.f32.mrf.mxu3 }
 0x131   :  { %11202 = vst [vmem:[#allocation51_spill] sm:$0xff] %v7433_v4  ;;  %v7437_v40 = vpop.f32.mrf.mxu0  ;;  %v7439_v42 = vpop.f32.mrf.mxu1 }
 0x132   :  { %11203 = vst [vmem:[#allocation52_spill] sm:$0xff] %v7435_v20  ;;  %v6560_v20 = vld [vmem:[%s10899_s5 + $0xc8] sm:$0xff]  ;;  %v418_v39 = vadd.f32 %v7437_v40, %v238_v51 }
 0x134   :  { %6543 = vmatmul.msk.f32.vlgmr.msrb.gmra.mxu0 %vm88_vm3, %v6539_v43  ;;  %6547 = vmatmul.msk.f32.vlgmr.msrb.gmra.mxu1 %vm88_vm3, %v6539_v43 }
 0x135   :  { %6551 = vmatmul.msk.f32.vlgmr.msrb.gmra.mxu2 %vm88_vm3, %v6539_v43  ;;  %6555 = vmatmul.msk.f32.vlgmr.msrb.gmra.mxu3 %vm88_vm3, %v6539_v43 }
 0x138   :  { %v7448_v38 = vpop.f32.mrf.mxu2  ;;  %v7450_v58 = vpop.f32.mrf.mxu3 }
 0x139   :  { %v7452_v61 = vpop.f32.mrf.mxu0  ;;  %v7454_v2 = vpop.f32.mrf.mxu1 }
 0x13a   :  { %11204 = vst [vmem:[#allocation53_spill] sm:$0xff] %v7452_v61 }
 0x13b   :  { %11205 = vst [vmem:[#allocation54_spill] sm:$0xff] %v7454_v2  ;;  %v6541_v2 = vld [vmem:[%s10899_s5 + $0xb8] sm:$0x7] }
 0x13c   :  { %6544 = vmatmul.msk.f32.gmra.mxu0 %vm88_vm3, %v6540_v18  ;;  %6548 = vmatmul.msk.f32.gmra.mxu1 %vm88_vm3, %v6540_v18 }
 0x13d   :  { %6552 = vmatmul.msk.f32.gmra.mxu2 %vm88_vm3, %v6540_v18  ;;  %6556 = vmatmul.msk.f32.gmra.mxu3 %vm88_vm3, %v6540_v18 }
 0x140   :  { %v7463_v19 = vpop.f32.mrf.mxu2  ;;  %v7465_v43 = vpop.f32.mrf.mxu3 }
 0x141   :  { %11206 = vst [vmem:[#allocation55_spill] sm:$0xff] %v7463_v19  ;;  %v7467_v0 = vpop.f32.mrf.mxu0  ;;  %v7469_v1 = vpop.f32.mrf.mxu1 }
 0x142   :  { %11207 = vst [vmem:[#allocation56_spill] sm:$0xff] %v7465_v43 }
 0x143   :  { %11208 = vst [vmem:[#allocation57_spill] sm:$0xff] %v7467_v0 }
 0x144   :  { %11209 = vst [vmem:[#allocation58_spill] sm:$0xff] %v7469_v1  ;;  %6545 = vmatmul.msk.f32.gmra.mxu0 %vm88_vm3, %v6541_v2  ;;  %6549 = vmatmul.msk.f32.gmra.mxu1 %vm88_vm3, %v6541_v2  ;;  %v6559_v1 = vld [vmem:[%s10899_s5 + $0xc0] sm:$0xff] }
 0x145   :  { %6553 = vmatmul.msk.f32.gmra.mxu2 %vm88_vm3, %v6541_v2  ;;  %6557 = vmatmul.msk.f32.gmra.mxu3 %vm88_vm3, %v6541_v2 }
 0x148   :  { %v7478_v18 = vpop.f32.mrf.mxu2  ;;  %v7480_v19 = vpop.f32.mrf.mxu3 }
 0x149   :  { %11210 = vst [vmem:[#allocation59_spill] sm:$0xff] %v7478_v18  ;;  %v7482_v43 = vpop.f32.mrf.mxu0  ;;  %v7484_v0 = vpop.f32.mrf.mxu1 }
 0x14a   :  { %11211 = vst [vmem:[#allocation60_spill] sm:$0xff] %v7480_v19 }
 0x14c   :  { %6563 = vmatmul.msk.f32.vlgmr.msra.gmra.mxu0 %vm88_vm3, %v6559_v1  ;;  %6567 = vmatmul.msk.f32.vlgmr.msra.gmra.mxu1 %vm88_vm3, %v6559_v1 }
 0x14d   :  { %6571 = vmatmul.msk.f32.vlgmr.msra.gmra.mxu2 %vm88_vm3, %v6559_v1  ;;  %6575 = vmatmul.msk.f32.vlgmr.msra.gmra.mxu3 %vm88_vm3, %v6559_v1 }
 0x150   :  { %v7493_v2 = vpop.f32.mrf.mxu2  ;;  %v7495_v18 = vpop.f32.mrf.mxu3 }
 0x151   :  { %v7497_v19 = vpop.f32.mrf.mxu0  ;;  %v7499_v61 = vpop.f32.mrf.mxu1 }
 0x152   :  { %11212 = vst [vmem:[#allocation61_spill] sm:$0xff] %v7497_v19 }
 0x153   :  { %11213 = vst [vmem:[#allocation62_spill] sm:$0xff] %v7499_v61  ;;  %v6561_v61 = vld [vmem:[%s10899_s5 + $0xd0] sm:$0x7] }
 0x154   :  { %6564 = vmatmul.msk.f32.gmra.mxu0 %vm88_vm3, %v6560_v20  ;;  %6568 = vmatmul.msk.f32.gmra.mxu1 %vm88_vm3, %v6560_v20 }
 0x155   :  { %6572 = vmatmul.msk.f32.gmra.mxu2 %vm88_vm3, %v6560_v20  ;;  %6576 = vmatmul.msk.f32.gmra.mxu3 %vm88_vm3, %v6560_v20 }
 0x158   :  { %v7508_v1 = vpop.f32.mrf.mxu2  ;;  %v7510_v4 = vpop.f32.mrf.mxu3 }
 0x159   :  { %11214 = vst [vmem:[#allocation63_spill] sm:$0xff] %v7508_v1  ;;  %v7512_v37 = vpop.f32.mrf.mxu0  ;;  %v7514_v19 = vpop.f32.mrf.mxu1 }
 0x15a   :  { %11215 = vst [vmem:[#allocation64_spill] sm:$0xff] %v7510_v4 }
 0x15b   :  { %11216 = vst [vmem:[#allocation65_spill] sm:$0xff] %v7512_v37 }
 0x15c   :  { %11217 = vst [vmem:[#allocation66_spill] sm:$0xff] %v7514_v19  ;;  %6565 = vmatmul.msk.f32.gmra.mxu0 %vm88_vm3, %v6561_v61  ;;  %6569 = vmatmul.msk.f32.gmra.mxu1 %vm88_vm3, %v6561_v61 }
 0x15d   :  { %6573 = vmatmul.msk.f32.gmra.mxu2 %vm88_vm3, %v6561_v61  ;;  %6577 = vmatmul.msk.f32.gmra.mxu3 %vm88_vm3, %v6561_v61 }
 0x160   :  { %v7523_v20 = vpop.f32.mrf.mxu2  ;;  %v7525_v1 = vpop.f32.mrf.mxu3 }
 0x161   :  { %11218 = vst [vmem:[#allocation67_spill] sm:$0xff] %v7523_v20  ;;  %v7527_v4 = vpop.f32.mrf.mxu0  ;;  %v7529_v37 = vpop.f32.mrf.mxu1 }
 0x162   :  { %11219 = vst [vmem:[#allocation68_spill] sm:$0xff] %v7525_v1 }
 0x168   :  { %v7531_v19 = vpop.f32.mrf.mxu2  ;;  %v7533_v27 = vpop.f32.mrf.mxu3 }
 0x169   :  { %v7535_v25 = vpop.f32.mrf.mxu0  ;;  %v7537_v33 = vpop.f32.mrf.mxu1 }
 0x16a   :  { %11220 = vst [vmem:[#allocation69_spill] sm:$0xff] %v7535_v25 }
 0x16b   :  { %11221 = vst [vmem:[#allocation70_spill] sm:$0xff] %v7537_v33 }
 0x170   :  { %v7539_v63 = vpop.f32.mrf.mxu2  ;;  %v7541_v62 = vpop.f32.mrf.mxu3 }
 0x171   :  { %11222 = vst [vmem:[#allocation71_spill] sm:$0xff] %v7539_v63  ;;  %v7543_v61 = vpop.f32.mrf.mxu0  ;;  %v7545_v20 = vpop.f32.mrf.mxu1 }
 0x172   :  { %11223 = vst [vmem:[#allocation72_spill] sm:$0xff] %v7541_v62 }
 0x173   :  { %11224 = vst [vmem:[#allocation73_spill] sm:$0xff] %v7543_v61 }
 0x174   :  { %11225 = vst [vmem:[#allocation74_spill] sm:$0xff] %v7545_v20 }
 0x178   :  { %v7547_v1 = vpop.f32.mrf.mxu2  ;;  %v7549_v45 = vpop.f32.mrf.mxu3 }
 0x179   :  { %11226 = vst [vmem:[#allocation75_spill] sm:$0xff] %v7547_v1  ;;  %v7551_v44 = vpop.f32.mrf.mxu0  ;;  %v7553_v24 = vpop.f32.mrf.mxu1 }
 0x17a   :  { %11227 = vst [vmem:[#allocation76_spill] sm:$0xff] %v7549_v45 }
 0x180   :  { %v7555_v8 = vpop.f32.mrf.mxu2  ;;  %v7557_v25 = vpop.f32.mrf.mxu3 }
 0x181   :  { %v7559_v33 = vpop.f32.mrf.mxu0  ;;  %v7561_v63 = vpop.f32.mrf.mxu1 }
 0x182   :  { %11228 = vst [vmem:[#allocation77_spill] sm:$0xff] %v7559_v33 }
 0x183   :  { %11229 = vst [vmem:[#allocation78_spill] sm:$0xff] %v7561_v63 }
 0x188   :  { %v7563_v62 = vpop.f32.mrf.mxu2  ;;  %v7565_v61 = vpop.f32.mrf.mxu3 }
 0x189   :  { %11230 = vst [vmem:[#allocation79_spill] sm:$0xff] %v7563_v62  ;;  %v7567_v20 = vpop.f32.mrf.mxu0  ;;  %v7569_v1 = vpop.f32.mrf.mxu1 }
 0x18a   :  { %11231 = vst [vmem:[#allocation80_spill] sm:$0xff] %v7565_v61 }
 0x18b   :  { %11232 = vst [vmem:[#allocation81_spill] sm:$0xff] %v7567_v20 }
 0x18c   :  { %11233 = vst [vmem:[#allocation82_spill] sm:$0xff] %v7569_v1 }
 0x190   :  { %v7571_v45 = vpop.f32.mrf.mxu2  ;;  %v7573_v21 = vpop.f32.mrf.mxu3 }
 0x191   :  { %11234 = vst [vmem:[#allocation83_spill] sm:$0xff] %v7571_v45  ;;  %v1013_v23 = vpop.f32.mrf.mxu0  ;;  %v1039_v6 = vpop.f32.mrf.mxu1 }
 0x192   :  { %11235 = vst [vmem:[#allocation84_spill] sm:$0xff] %v7573_v21 }
 0x198   :  { %v7575_v5 = vpop.f32.mrf.mxu2  ;;  %v7577_v3 = vpop.f32.mrf.mxu3 }
 0x199   :  { %v7579_v33 = vpop.f32.mrf.mxu0  ;;  %v7581_v63 = vpop.f32.mrf.mxu1 }
 0x19a   :  { %11236 = vst [vmem:[#allocation85_spill] sm:$0xff] %v7579_v33 }
 0x19b   :  { %11237 = vst [vmem:[#allocation86_spill] sm:$0xff] %v7581_v63 }
 0x1a0   :  { %v7583_v62 = vpop.f32.mrf.mxu2  ;;  %v7585_v61 = vpop.f32.mrf.mxu3 }
 0x1a1   :  { %11238 = vst [vmem:[#allocation87_spill] sm:$0xff] %v7583_v62  ;;  %v7587_v20 = vpop.f32.mrf.mxu0  ;;  %v7589_v1 = vpop.f32.mrf.mxu1 }
 0x1a2   :  { %11239 = vst [vmem:[#allocation88_spill] sm:$0xff] %v7585_v61 }
 0x1a3   :  { %11240 = vst [vmem:[#allocation89_spill] sm:$0xff] %v7587_v20 }
 0x1a4   :  { %11241 = vst [vmem:[#allocation90_spill] sm:$0xff] %v7589_v1 }
 0x1a8   :  { %v7591_v45 = vpop.f32.mrf.mxu2  ;;  %v7593_v21 = vpop.f32.mrf.mxu3 }
 0x1a9   :  { %11242 = vst [vmem:[#allocation91_spill] sm:$0xff] %v7591_v45  ;;  %v1193_v28 = vpop.f32.mrf.mxu0  ;;  %v1219_v31 = vpop.f32.mrf.mxu1  ;;  %v1647_v45 = vld [vmem:[%s10901_s2 + $0x8] sm:$0xff] }
 0x1aa   :  { %11243 = vst [vmem:[#allocation92_spill] sm:$0xff] %v7593_v21  ;;  %v1646_v21 = vld [vmem:[%s10901_s2] sm:$0xff]  ;;  %1685 = vmatpush.xpose.msrb.mxu1 %v1647_v45 }
 0x1ab   :  { %1665 = vmatpush.xpose.msrb.mxu0 %v1646_v21 }
 0x1b0   :  { %v7595_v10 = vpop.f32.mrf.mxu2  ;;  %v7597_v9 = vpop.f32.mrf.mxu3 }
 0x1b1   :  { %v7599_v33 = vpop.f32.mrf.mxu0  ;;  %v7601_v63 = vpop.f32.mrf.mxu1 }
 0x1b2   :  { %11244 = vst [vmem:[#allocation93_spill] sm:$0xff] %v7599_v33 }
 0x1b3   :  { %11245 = vst [vmem:[#allocation94_spill] sm:$0xff] %v7601_v63 }
 0x1b8   :  { %v7603_v62 = vpop.f32.mrf.mxu2  ;;  %v7605_v61 = vpop.f32.mrf.mxu3 }
 0x1b9   :  { %11246 = vst [vmem:[#allocation95_spill] sm:$0xff] %v7603_v62  ;;  %v7607_v20 = vpop.f32.mrf.mxu0  ;;  %v7609_v1 = vpop.f32.mrf.mxu1  ;;  %v1648_v62 = vld [vmem:[%s10901_s2 + $0x10] sm:$0xff] }
 0x1ba   :  { %11247 = vst [vmem:[#allocation96_spill] sm:$0xff] %v7605_v61  ;;  %v1649_v61 = vld [vmem:[%s10901_s2 + $0x18] sm:$0xff]  ;;  %1705 = vmatpush.xpose.msrb.mxu2 %v1648_v62  ;;  %v598_v62 = vadd.f32 %v7482_v43, %v418_v39 }
 0x1bb   :  { %11248 = vst [vmem:[#allocation97_spill] sm:$0xff] %v7607_v20  ;;  %1725 = vmatpush.xpose.msrb.mxu3 %v1649_v61 }
 0x1bc   :  { %11249 = vst [vmem:[#allocation98_spill] sm:$0xff] %v7609_v1 }
 0x1c0   :  { %v7623_v20 = vpop.f32.mrf.mxu2  ;;  %v7625_v1 = vpop.f32.mrf.mxu3 }
 0x1c1   :  { %11250 = vst [vmem:[#allocation99_spill] sm:$0xff] %v7623_v20  ;;  %v1373_v63 = vpop.f32.mrf.mxu0  ;;  %v1399_v33 = vpop.f32.mrf.mxu1  ;;  %v419_v20 = vadd.f32 %v7439_v42, %v239_v46  ;;  %v420_v46 = vadd.f32 %v7448_v38, %v240_v47 }
 0x1c2   :  { %11251 = vst [vmem:[#allocation100_spill] sm:$0xff] %v7625_v1  ;;  %v778_v1 = vadd.f32 %v7527_v4, %v598_v62 }
 0x1c3   :  { %v599_v61 = vadd.f32 %v7484_v0, %v419_v20  ;;  %v600_v42 = vadd.f32 %v7493_v2, %v420_v46 }
 0x1c4   :  { %v922_v39 = vadd.f32 %v7551_v44, %v778_v1 }
 0x1c5   :  { %v779_v7 = vadd.f32 %v7529_v37, %v599_v61  ;;  %v421_v37 = vadd.f32 %v7450_v58, %v241_v52  ;;  %v780_v29 = vadd.f32 %v7531_v19, %v600_v42 }
 0x1c6   :  { %v1102_v4 = vadd.f32 %v1013_v23, %v922_v39 }
 0x1c7   :  { %v923_v0 = vadd.f32 %v7553_v24, %v779_v7  ;;  %v601_v59 = vadd.f32 %v7495_v18, %v421_v37  ;;  %v924_v24 = vadd.f32 %v7555_v8, %v780_v29  ;;  %v41_v29 = vld [vmem:[%s10900_s10 + $0x8] sm:$0xff] }
 0x1c8   :  { %v1425_v26 = vpop.f32.mrf.mxu2  ;;  %v1451_v21 = vpop.f32.mrf.mxu3  ;;  %v1282_v43 = vadd.f32 %v1193_v28, %v1102_v4 }
 0x1c9   :  { %v7627_v45 = vpop.f32.mrf.mxu0  ;;  %v7629_v11 = vpop.f32.mrf.mxu1  ;;  %v1103_v40 = vadd.f32 %v1039_v6, %v923_v0  ;;  %v781_v20 = vadd.f32 %v7533_v27, %v601_v59  ;;  %v1104_v28 = vadd.f32 %v7575_v5, %v924_v24  ;;  %v1730_v5 = vld [vmem:[%s10902_s1] sm:$0xff]  ;;  %v3219_v24 = vld [vmem:[%s10900_s10 + $0x48] sm:$0xff] }
 0x1ca   :  { %11252 = vst [vmem:[#allocation101_spill] sm:$0xff] %v7627_v45  ;;  %v1462_v62 = vadd.f32 %v1373_v63, %v1282_v43  ;;  %1753 = vmatpush.msra.mxu0 %v1730_v5  ;;  %v40_v59 = vld [vmem:[%s10900_s10] sm:$0xff]  ;;  %v3034_v43 = vld [vmem:[%s10900_s10 + $0x18] sm:$0xff] }
 0x1cb   :  { %11253 = vst [vmem:[#allocation102_spill] sm:$0xff] %v7629_v11  ;;  %v1283_v60 = vadd.f32 %v1219_v31, %v1103_v40  ;;  %v925_v6 = vadd.f32 %v7557_v25, %v781_v20  ;;  %v1284_v63 = vadd.f32 %v7595_v10, %v1104_v28  ;;  %v1733_v10 = vld [vmem:[%s10902_s1 + $0x18] sm:$0xff]  ;;  %v6722_v28 = vld [vmem:[%s10903_s7 + $0x80] sm:$0xff] }
 0x1cc   :  { %1813 = vmatpush.msra.mxu3 %v1733_v10  ;;  %v3217_v20 = vld [vmem:[%s10900_s10 + $0x38] sm:$0xff] }
 0x1cd   :  { %v1463_v44 = vadd.f32 %v1399_v33, %v1283_v60  ;;  %v1105_v31 = vadd.f32 %v7577_v3, %v925_v6  ;;  %v1464_v33 = vadd.f32 %v1425_v26, %v1284_v63  ;;  %v1731_v3 = vld [vmem:[%s10902_s1 + $0x8] sm:$0xff]  ;;  %v3035_v60 = vld [vmem:[%s10900_s10 + $0x20] sm:$0xff]  ;;  %v3220_v6 = vld [vmem:[%s10900_s10 + $0x50] sm:$0xff] }
 0x1ce   :  { %1773 = vmatpush.msra.mxu1 %v1731_v3 }
 0x1cf   :  { %v1285_v27 = vadd.f32 %v7597_v9, %v1105_v31  ;;  %v1732_v9 = vld [vmem:[%s10902_s1 + $0x10] sm:$0xff] }
 0x1d0   :  { %v7639_v13 = vpop.f32.mrf.mxu2  ;;  %v7641_v45 = vpop.f32.mrf.mxu3  ;;  %1793 = vmatpush.msra.mxu2 %v1732_v9  ;;  %v6724_v31 = vld [vmem:[%s10903_s7 + $0x90] sm:$0xff] }
 0x1d1   :  { %v7645_v11 = vpop.f32.mrf.mxu0  ;;  %v7647_v51 = vpop.f32.mrf.mxu1  ;;  %v1465_v19 = vadd.f32 %v1451_v21, %v1285_v27 }
 0x1d8   :  { %v7657_v1 = vpop.f32.mrf.mxu2  ;;  %v7659_v7 = vpop.f32.mrf.mxu3 }
 0x1d9   :  { %v1553_v23 = vpop.f32.mrf.mxu0  ;;  %v1579_v38 = vpop.f32.mrf.mxu1 }
 0x1da   :  { %v1642_v58 = vadd.f32 %v1553_v23, %v1462_v62  ;;  %v1643_v18 = vadd.f32 %v1579_v38, %v1463_v44  ;;  %v3036_v62 = vld [vmem:[%s10900_s10 + $0x28] sm:$0xff]  ;;  %v3037_v44 = vld [vmem:[%s10900_s10 + $0x30] sm:$0xff]  ;;  %v3218_v38 = vld [vmem:[%s10900_s10 + $0x40] sm:$0xff] }
 0x1dc   :  { %1666 = vmatmul.f32.vlgmr.msrb.gmra.mxu0 %v1642_v58  ;;  %1686 = vmatmul.f32.vlgmr.msrb.gmra.mxu1 %v1643_v18  ;;  %v3370_v58 = vld [vmem:[%s10900_s10 + $0x58] sm:$0xff] }
 0x1e0   :  { %v1605_v2 = vpop.f32.mrf.mxu2  ;;  %v1631_v8 = vpop.f32.mrf.mxu3 }
 0x1e1   :  { %v1644_v61 = vadd.f32 %v1605_v2, %v1464_v33  ;;  %v1645_v25 = vadd.f32 %v1631_v8, %v1465_v19  ;;  %v3372_v33 = vld [vmem:[%s10900_s10 + $0x68] sm:$0xff]  ;;  %v3453_v19 = vld [vmem:[%s10903_s7 + $0x10] sm:$0xff]  ;;  %v3451_v2 = vld [vmem:[%s10903_s7] sm:$0xff] }
 0x1e3   :  { %1706 = vmatmul.f32.vlgmr.msrb.gmra.mxu2 %v1644_v61  ;;  %1726 = vmatmul.f32.vlgmr.msrb.gmra.mxu3 %v1645_v25 }
 0x259   :  { %v1667_v26 = vpop.f32.mrf.mxu0  ;;  %v1687_v21 = vpop.f32.mrf.mxu1 }
 0x25a   :  { %v1688_v47 = vadd.f32 %v1687_v21, %v1667_v26  ;;  %v1834_v21 = vld [vmem:[%s10904_s6] sm:$0xff] }
 0x266   :  { %v1707_v52 = vpop.f32.mrf.mxu2  ;;  %v1727_v0 = vpop.f32.mrf.mxu3 }
 0x267   :  { %v1708_v39 = vadd.f32 %v1707_v52, %v1688_v47 }
 0x269   :  { %v1728_v46 = vadd.f32 %v1727_v0, %v1708_v39  ;;  %v6732_v0 = vld [vmem:[%s10903_s7 + $0x50] sm:$0xff] }
 0x26b   :  { %6578 = vmatmul.msk.f32.vlgmr.msra.gmra.mxu0 %vm1734_vm10, %v1728_v46  ;;  %6579 = vmatmul.msk.f32.vlgmr.msra.gmra.mxu1 %vm1734_vm10, %v1728_v46 }
 0x26c   :  { %6580 = vmatmul.msk.f32.vlgmr.msra.gmra.mxu2 %vm1734_vm10, %v1728_v46  ;;  %6581 = vmatmul.msk.f32.vlgmr.msra.gmra.mxu3 %vm1734_vm10, %v1728_v46 }
 0x2e8   :  { %v7679_v37 = vpop.f32.mrf.mxu1  ;;  %v7687_v42 = vpop.f32.mrf.mxu0 }
 0x2e9   :  { %1820 = vrot.lane.b32.xlu0 %v7679_v37, %s6875_s21 }
 0x2ef   :  { %v7683_v4 = vpop.f32.mrf.mxu2  ;;  %v7685_v40 = vpop.f32.mrf.mxu3 }
 0x2f0   :  { %1824 = vrot.lane.b32.xlu2 %v7685_v40, %s6875_s21  ;;  %1822 = vrot.lane.b32.xlu1 %v7683_v4, %s6875_s21 }
 0x2f1   :  { %1818 = vrot.lane.b32.xlu0 %v7687_v42, %s6875_s21 }
 0x2f8   :  { %1958 = vrot.lane.b32.xlu2 %v7683_v4, %s6876_s0  ;;  %1956 = vrot.lane.b32.xlu1 %v7679_v37, %s6876_s0 }
 0x2f9   :  { %1960 = vrot.lane.b32.xlu0 %v7685_v40, %s6876_s0 }
 0x300   :  { %2093 = vrot.lane.b32.xlu2 %v7679_v37, %s6877_s22  ;;  %1954 = vrot.lane.b32.xlu1 %v7687_v42, %s6876_s0 }
 0x301   :  { %2095 = vrot.lane.b32.xlu0 %v7683_v4, %s6877_s22 }
 0x308   :  { %2091 = vrot.lane.b32.xlu2 %v7687_v42, %s6877_s22  ;;  %2488 = vrot.lane.b32.xlu1 %v7679_v37, %s6879_s24 }
 0x309   :  { %2230 = vrot.lane.b32.xlu0 %v7679_v37, %s6878_s23 }
 0x310   :  { %2625 = vrot.lane.b32.xlu2 %v7679_v37, %s6880_s29  ;;  %2097 = vrot.lane.b32.xlu1 %v7685_v40, %s6877_s22 }
 0x311   :  { %2228 = vrot.lane.b32.xlu0 %v7687_v42, %s6878_s23 }
 0x318   :  { %2760 = vrot.lane.b32.xlu2 %v7687_v42, %s6881_s15  ;;  %2232 = vrot.lane.b32.xlu1 %v7683_v4, %s6878_s23 }
 0x319   :  { %2486 = vrot.lane.b32.xlu0 %v7687_v42, %s6879_s24 }
 0x320   :  { %2234 = vrot.lane.b32.xlu2 %v7685_v40, %s6878_s23  ;;  %2623 = vrot.lane.b32.xlu1 %v7687_v42, %s6880_s29 }
 0x321   :  { %2762 = vrot.lane.b32.xlu0 %v7679_v37, %s6881_s15 }
 0x328   :  { %217 = vperm.xlu2 %6854, %v40_v59   ;;  %2899 = vrot.lane.b32.xlu1 %v7679_v37, %s6883_s26 }
 0x329   :  { %2897 = vrot.lane.b32.xlu0 %v7687_v42, %s6883_s26 }
 0x330   :  { %3179 = vperm.xlu2 %6854, %v3034_v43   ;;  %3184 = vperm.xlu1 %6856, %v3035_v60  }
 0x331   :  { %222 = vperm.xlu0 %6855, %v41_v29  }
 0x338   :  { %2492 = vrot.lane.b32.xlu2 %v7685_v40, %s6879_s24  ;;  %2490 = vrot.lane.b32.xlu1 %v7683_v4, %s6879_s24 }
 0x339   :  { %3223 = vperm.xlu0 %6855, %v3217_v20  }
 0x340   :  { %3197 = vperm.xlu2 %6854, %v3036_v62   ;;  %3202 = vperm.xlu1 %6856, %v3037_v44   ;;  %v1835_v62 = vld [vmem:[%s10904_s6 + $0x8] sm:$0xff] }
 0x341   :  { %2629 = vrot.lane.b32.xlu0 %v7685_v40, %s6880_s29 }
 0x348   :  { %2627 = vrot.lane.b32.xlu2 %v7683_v4, %s6880_s29  ;;  %3233 = vperm.xlu1 %6856, %v3219_v24   ;;  %v6728_v24 = vld [vmem:[%s10903_s7 + $0x30] sm:$0xff] }
 0x349   :  { %3238 = vperm.xlu0 %6855, %v3220_v6   ;;  %v6726_v6 = vld [vmem:[%s10903_s7 + $0x20] sm:$0xff] }
 0x34a   :  { %v1825_v23 = vpop.permute.xlu2 %1824 }
 0x350   :  { %3228 = vperm.xlu2 %6854, %v3218_v38   ;;  %3417 = vperm.xlu1 %6856, %v3370_v58  }
 0x351   :  { %2764 = vrot.lane.b32.xlu0 %v7683_v4, %s6881_s15 }
 0x352   :  { %v1959_v18 = vpop.permute.xlu2 %1958 }
 0x358   :  { %3381 = vperm.xlu2 %6854, %v6722_v28   ;;  %2766 = vrot.lane.b32.xlu1 %v7685_v40, %s6881_s15 }
 0x359   :  { %3391 = vperm.xlu0 %6855, %v6724_v31  }
 0x35a   :  { %v2094_v63 = vpop.permute.xlu2 %2093 }
 0x35b   :  { %v1821_v27 = vpop.permute.xlu0 %1820 }
 0x360   :  { %3427 = vperm.xlu2 %6854, %v3372_v33   ;;  %3531 = vperm.xlu1 %6856, %v3453_v19  }
 0x361   :  { %3521 = vperm.xlu0 %6855, %v3451_v2  }
 0x362   :  { %v1823_v8 = vpop.permute.xlu1 %1822  ;;  %v7795_v61 = vpop.permute.xlu2 %2091 }
 0x363   :  { %v1826_v25 = vsel %vm66_vm0, %v1823_v8, %v1825_v23  ;;  %v1827_v5 = vsel %vm66_vm0, %v1821_v27, %v1823_v8  ;;  %v1819_v3 = vpop.permute.xlu0 %1818  ;;  %v6594_v8 = vld [vmem:[%s10904_s6 + $0x10] sm:$0xff] }
 0x364   :  { %v1832_v9 = vmul.f32 %v1827_v5, %v7010_v35  ;;  %v1833_v10 = vmul.f32 %v1826_v25, %v7012_v36  ;;  %v1828_v26 = vsel %vm66_vm0, %v1819_v3, %v1821_v27  ;;  %v1829_v47 = vsel %vm66_vm0, %v1825_v23, %v1819_v3  ;;  %v6734_v23 = vld [vmem:[%s10903_s7 + $0x60] sm:$0xff]  ;;  %v11294_v35 = vld [vmem:[#allocation30_spill] sm:$0xff] }
 0x365   :  { %v1831_v52 = vmul.f32 %v1828_v26, %v7008_v34  ;;  %v1830_v39 = vmul.f32 %v1829_v47, %v7003_v32  ;;  %v6730_v5 = vld [vmem:[%s10903_s7 + $0x40] sm:$0xff]  ;;  %v6595_v47 = vld [vmem:[%s10904_s6 + $0x18] sm:$0xff] }
 0x366   :  { %6588 = vmatpush.msk.msrb.mxu2 %vm98_vm2, %v1832_v9  ;;  %6591 = vmatpush.msk.msrb.mxu3 %vm98_vm2, %v1833_v10  ;;  %v3452_v9 = vld [vmem:[%s10903_s7 + $0x8] sm:$0xff]  ;;  %v11293_v32 = vld [vmem:[#allocation29_spill] sm:$0xff] }
 0x367   :  { %6589 = vmatmul.msk.f32.vlgmr.msrb.gmra.mxu2 %vm88_vm3, %v1834_v21  ;;  %6592 = vmatmul.msk.f32.vlgmr.msrb.gmra.mxu3 %vm88_vm3, %v1834_v21 }
 0x368   :  { %2903 = vrot.lane.b32.xlu2 %v7685_v40, %s6883_s26  ;;  %2901 = vrot.lane.b32.xlu1 %v7683_v4, %s6883_s26 }
 0x369   :  { %6582 = vmatpush.msk.msrb.mxu0 %vm98_vm2, %v1830_v39  ;;  %6585 = vmatpush.msk.msrb.mxu1 %vm98_vm2, %v1831_v52  ;;  %v6725_v52 = vld [vmem:[%s10903_s7 + $0x98] sm:$0xff]  ;;  %v6736_v39 = vld [vmem:[%s10903_s7 + $0x70] sm:$0xff] }
 0x36a   :  { %6583 = vmatmul.msk.f32.vlgmr.msrb.gmra.mxu0 %vm88_vm3, %v1834_v21  ;;  %6586 = vmatmul.msk.f32.vlgmr.msrb.gmra.mxu1 %vm88_vm3, %v1834_v21  ;;  %v1957_v46 = vpop.permute.xlu1 %1956  ;;  %v7827_v59 = vpop.permute.xlu2 %2625 }
 0x36b   :  { %v1963_v43 = vsel %vm261_vm1, %v1957_v46, %v1959_v18  ;;  %3773 = vperm.xlu0 %6855, %v6732_v0   ;;  %v1961_v60 = vpop.permute.xlu0 %1960  ;;  %v6740_v0 = vld [vmem:[%s10903_s7 + $0xb0] sm:$0xff] }
 0x36c   :  { %v1968_v29 = vmul.f32 %v1963_v43, %v7015_v41  ;;  %v1962_v20 = vsel %vm261_vm1, %v1959_v18, %v1961_v60  ;;  %v2101_v18 = vsel %vm441_vm4, %v7795_v61, %v2094_v63 }
 0x36d   :  { %v1969_v44 = vmul.f32 %v1962_v20, %v7051_v57  ;;  %v2104_v3 = vmul.f32 %v2101_v18, %v7087_v16 }
 0x36e   :  { %6602 = vmatpush.msk.msra.mxu2 %vm98_vm2, %v1968_v29 }
 0x36f   :  { %6590 = vmatmul.msk.f32.gmra.mxu2 %vm88_vm3, %v1835_v62  ;;  %6593 = vmatmul.msk.f32.gmra.mxu3 %vm88_vm3, %v1835_v62 }
 0x370   :  { %3652 = vperm.xlu2 %6854, %v6728_v24   ;;  %3642 = vperm.xlu1 %6856, %v6726_v6   ;;  %v6608_v24 = vld [vmem:[%s10904_s6 + $0x20] sm:$0xff] }
 0x371   :  { %6605 = vmatpush.msk.msra.mxu3 %vm98_vm2, %v1969_v44 }
 0x372   :  { %6584 = vmatmul.msk.f32.gmra.mxu0 %vm88_vm3, %v1835_v62  ;;  %6587 = vmatmul.msk.f32.gmra.mxu1 %vm88_vm3, %v1835_v62  ;;  %v7853_v38 = vpop.permute.xlu2 %2760  ;;  %v1955_v58 = vpop.permute.xlu1 %1954 }
 0x373   :  { %v1964_v28 = vsel %vm261_vm1, %v1955_v58, %v1957_v46  ;;  %v1965_v31 = vsel %vm261_vm1, %v1961_v60, %v1955_v58  ;;  %3884 = vperm.xlu0 %6855, %v6734_v23   ;;  %v2096_v27 = vpop.permute.xlu0 %2095 }
 0x374   :  { %v1966_v33 = vmul.f32 %v1965_v31, %v7049_v56  ;;  %v1967_v19 = vmul.f32 %v1964_v28, %v7045_v55  ;;  %v2100_v2 = vsel %vm441_vm4, %v2094_v63, %v2096_v27  ;;  %v6723_v63 = vld [vmem:[%s10903_s7 + $0x88] sm:$0xff]  ;;  %v3371_v28 = vld [vmem:[%s10900_s10 + $0x60] sm:$0xff] }
 0x375   :  { %v2105_v25 = vmul.f32 %v2100_v2, %v7081_v12 }
 0x376   :  { %6596 = vmatpush.msk.msra.mxu0 %vm98_vm2, %v1966_v33  ;;  %6599 = vmatpush.msk.msra.mxu1 %vm98_vm2, %v1967_v19  ;;  %v6729_v33 = vld [vmem:[%s10903_s7 + $0x38] sm:$0xff] }
 0x377   :  { %6603 = vmatmul.msk.f32.vlgmr.msra.gmra.mxu2 %vm88_vm3, %v6594_v8  ;;  %6606 = vmatmul.msk.f32.vlgmr.msra.gmra.mxu3 %vm88_vm3, %v6594_v8 }
 0x378   :  { %6613 = vmatpush.msk.msrb.mxu1 %vm98_vm2, %v2104_v3  ;;  %3763 = vperm.xlu2 %6854, %v6730_v5   ;;  %v6609_v3 = vld [vmem:[%s10904_s6 + $0x28] sm:$0xff] }
 0x379   :  { %3386 = vperm.xlu1 %6856, %v6723_v63   ;;  %6616 = vmatpush.msk.msrb.mxu2 %vm98_vm2, %v2105_v25  ;;  %v3454_v63 = vld [vmem:[%s10903_s7 + $0x18] sm:$0xff] }
 0x37a   :  { %6597 = vmatmul.msk.f32.vlgmr.msra.gmra.mxu0 %vm88_vm3, %v6594_v8  ;;  %6600 = vmatmul.msk.f32.vlgmr.msra.gmra.mxu1 %vm88_vm3, %v6594_v8  ;;  %v2235_v10 = vpop.permute.xlu2 %2234  ;;  %v7888_v26 = vpop.permute.xlu1 %2488 }
 0x37b   :  { %3526 = vperm.xlu0 %6855, %v3452_v9   ;;  %v2231_v21 = vpop.permute.xlu0 %2230 }
 0x37f   :  { %6604 = vmatmul.msk.f32.gmra.mxu2 %vm88_vm3, %v6595_v47  ;;  %6607 = vmatmul.msk.f32.gmra.mxu3 %vm88_vm3, %v6595_v47 }
 0x380   :  { %3396 = vperm.xlu2 %6854, %v6725_v52   ;;  %v6727_v52 = vld [vmem:[%s10903_s7 + $0x28] sm:$0xff] }
 0x381   :  { %3894 = vperm.xlu1 %6856, %v6736_v39  }
 0x382   :  { %6598 = vmatmul.msk.f32.gmra.mxu0 %vm88_vm3, %v6595_v47  ;;  %6601 = vmatmul.msk.f32.gmra.mxu1 %vm88_vm3, %v6595_v47  ;;  %v7906_v46 = vpop.permute.xlu2 %217  ;;  %v2098_v43 = vpop.permute.xlu1 %2097 }
 0x383   :  { %4015 = vperm.xlu0 %6855, %v6740_v0   ;;  %v2229_v60 = vpop.permute.xlu0 %2228  ;;  %v2099_v29 = vsel %vm441_vm4, %v2096_v27, %v2098_v43  ;;  %v2102_v20 = vsel %vm441_vm4, %v2098_v43, %v7795_v61  ;;  %v3373_v61 = vld [vmem:[%s10900_s10 + $0x70] sm:$0xff]  ;;  %v6742_v0 = vld [vmem:[%s10903_s7 + $0xc0] sm:$0xff]  ;;  %v230_v41 = vadd.f32 %v7906_v46, %v11293_v32  ;;  %v231_v30 = vadd.f32 %v7906_v46, %v11294_v35  ;;  %v11301_v32 = vld [vmem:[#allocation40_spill] sm:$0xff] }
 0x384   :  { %v2238_v62 = vsel %vm621_vm5, %v2229_v60, %v2231_v21  ;;  %v2239_v44 = vsel %vm621_vm5, %v2235_v10, %v2229_v60  ;;  %v2103_v6 = vmul.f32 %v2102_v20, %v7085_v15  ;;  %v2106_v23 = vmul.f32 %v2099_v29, %v7083_v14  ;;  %v6737_v20 = vld [vmem:[%s10903_s7 + $0x78] sm:$0xff] }
 0x385   :  { %v2240_v58 = vmul.f32 %v2239_v44, %v7147_v53  ;;  %v2241_v18 = vmul.f32 %v2238_v62, %v7149_v54  ;;  %v6623_v44 = vld [vmem:[%s10904_s6 + $0x38] sm:$0xff] }
 0x386   :  { %6610 = vmatpush.msk.msrb.mxu0 %vm98_vm2, %v2103_v6  ;;  %6619 = vmatpush.msk.msrb.mxu3 %vm98_vm2, %v2106_v23  ;;  %v6731_v6 = vld [vmem:[%s10903_s7 + $0x48] sm:$0xff] }
 0x387   :  { %6617 = vmatmul.msk.f32.vlgmr.msrb.gmra.mxu2 %vm88_vm3, %v6608_v24  ;;  %6620 = vmatmul.msk.f32.vlgmr.msrb.gmra.mxu3 %vm88_vm3, %v6608_v24 }
 0x388   :  { %3432 = vperm.xlu2 %6854, %v3373_v61   ;;  %6624 = vmatpush.msk.msra.mxu0 %vm98_vm2, %v2240_v58  ;;  %v6745_v61 = vld [vmem:[%s10903_s7 + $0xd8] sm:$0xff] }
 0x389   :  { %3422 = vperm.xlu1 %6856, %v3371_v28   ;;  %6627 = vmatpush.msk.msra.mxu1 %vm98_vm2, %v2241_v18  ;;  %v6636_v28 = vld [vmem:[%s10904_s6 + $0x40] sm:$0xff] }
 0x38a   :  { %v7935_v31 = vpop.permute.xlu2 %3179  ;;  %v2233_v27 = vpop.permute.xlu1 %2232  ;;  %6611 = vmatmul.msk.f32.vlgmr.msrb.gmra.mxu0 %vm88_vm3, %v6608_v24  ;;  %6614 = vmatmul.msk.f32.vlgmr.msrb.gmra.mxu1 %vm88_vm3, %v6608_v24  ;;  %v6744_v24 = vld [vmem:[%s10903_s7 + $0xd0] sm:$0xff] }
 0x38b   :  { %11254 = vst [vmem:[#allocation103_spill] sm:$0xff] %v7935_v31  ;;  %v2236_v19 = vsel %vm621_vm5, %v2233_v27, %v2235_v10  ;;  %v2237_v2 = vsel %vm621_vm5, %v2231_v21, %v2233_v27  ;;  %v2487_v8 = vpop.permute.xlu0 %2486  ;;  %6638 = vmatpush.msk.msrb.mxu0 %vm98_vm2, %v7687_v42  ;;  %6641 = vmatpush.msk.msrb.mxu1 %vm98_vm2, %v7679_v37  ;;  %v6738_v42 = vld [vmem:[%s10903_s7 + $0xa0] sm:$0xff]  ;;  %v6733_v27 = vld [vmem:[%s10903_s7 + $0x58] sm:$0xff] }
 0x38c   :  { %v2242_v25 = vmul.f32 %v2237_v2, %v7139_v48  ;;  %v2243_v5 = vmul.f32 %v2236_v19, %v7143_v50  ;;  %3657 = vperm.xlu0 %6855, %v6729_v33   ;;  %v6746_v10 = vld [vmem:[%s10903_s7 + $0xe0] sm:$0xff]  ;;  %v2496_v39 = vsel %vm945_vm6, %v2487_v8, %v7888_v26  ;;  %v6748_v19 = vld [vmem:[%s10903_s7 + $0xf0] sm:$0xff] }
 0x38d   :  { %v2498_v43 = vmul.f32 %v2496_v39, %v7227_v17  ;;  %v11261_v39 = vld [vmem:[#allocation25_spill] sm:$0xff] }
 0x38e   :  { %6630 = vmatpush.msk.msra.mxu2 %vm98_vm2, %v2242_v25  ;;  %6633 = vmatpush.msk.msra.mxu3 %vm98_vm2, %v2243_v5  ;;  %v11298_v31 = vld [vmem:[#allocation37_spill] sm:$0xff] }
 0x38f   :  { %6618 = vmatmul.msk.f32.gmra.mxu2 %vm88_vm3, %v6609_v3  ;;  %6621 = vmatmul.msk.f32.gmra.mxu3 %vm88_vm3, %v6609_v3 }
 0x390   :  { %6647 = vmatpush.msk.msrb.mxu3 %vm98_vm2, %v7685_v40  ;;  %6644 = vmatpush.msk.msrb.mxu2 %vm98_vm2, %v7683_v4  ;;  %v6622_v4 = vld [vmem:[%s10904_s6 + $0x30] sm:$0xff] }
 0x391   :  { %4005 = vperm.xlu2 %6854, %v6738_v42   ;;  %3536 = vperm.xlu1 %6856, %v3454_v63  }
 0x392   :  { %v2493_v37 = vpop.permute.xlu2 %2492  ;;  %v7970_v9 = vpop.permute.xlu1 %2623  ;;  %6612 = vmatmul.msk.f32.gmra.mxu0 %vm88_vm3, %v6609_v3  ;;  %6615 = vmatmul.msk.f32.gmra.mxu1 %vm88_vm3, %v6609_v3  ;;  %v6747_v3 = vld [vmem:[%s10903_s7 + $0xe8] sm:$0xff] }
 0x393   :  { %v2497_v40 = vsel %vm945_vm6, %v2493_v37, %v2487_v8  ;;  %v7978_v21 = vpop.permute.xlu0 %2762  ;;  %v2633_v33 = vsel %vm10991_vm7, %v7970_v9, %v7827_v59 }
 0x394   :  { %4247 = vperm.xlu0 %6855, %v6746_v10   ;;  %v2501_v47 = vmul.f32 %v2497_v40, %v7229_v22  ;;  %v2635_v2 = vmul.f32 %v2633_v33, %v7276_v49 }
 0x397   :  { %6631 = vmatmul.msk.f32.vlgmr.msra.gmra.mxu2 %vm88_vm3, %v6622_v4  ;;  %6634 = vmatmul.msk.f32.vlgmr.msra.gmra.mxu3 %vm88_vm3, %v6622_v4 }
 0x398   :  { %6661 = vmatpush.msk.msra.mxu3 %vm98_vm2, %v2501_v47 }
 0x399   :  { %3647 = vperm.xlu2 %6854, %v6727_v52   ;;  %4126 = vperm.xlu1 %6856, %v6742_v0   ;;  %v6637_v52 = vld [vmem:[%s10904_s6 + $0x48] sm:$0xff]  ;;  %v6750_v0 = vld [vmem:[%s10903_s7 + $0x100] sm:$0xff] }
 0x39a   :  { %v7998_v60 = vpop.permute.xlu2 %3197  ;;  %v8000_v29 = vpop.permute.xlu1 %2899  ;;  %6625 = vmatmul.msk.f32.vlgmr.msra.gmra.mxu0 %vm88_vm3, %v6622_v4  ;;  %6628 = vmatmul.msk.f32.vlgmr.msra.gmra.mxu1 %vm88_vm3, %v6622_v4  ;;  %v11260_v4 = vld [vmem:[#allocation21_spill] sm:$0xff] }
 0x39b   :  { %11255 = vst [vmem:[#allocation104_spill] sm:$0xff] %v7998_v60  ;;  %v8006_v62 = vpop.permute.xlu0 %2897  ;;  %6652 = vmatpush.msk.msra.mxu0 %vm98_vm2, %v2498_v43  ;;  %v11297_v60 = vld [vmem:[#allocation32_spill] sm:$0xff] }
 0x39c   :  { %3899 = vperm.xlu0 %6855, %v6737_v20   ;;  %v6751_v20 = vld [vmem:[%s10903_s7 + $0x108] sm:$0xff] }
 0x39f   :  { %6632 = vmatmul.msk.f32.gmra.mxu2 %vm88_vm3, %v6623_v44  ;;  %6635 = vmatmul.msk.f32.gmra.mxu3 %vm88_vm3, %v6623_v44 }
 0x3a1   :  { %4136 = vperm.xlu2 %6854, %v6744_v24   ;;  %3768 = vperm.xlu1 %6856, %v6731_v6  }
 0x3a2   :  { %v2628_v23 = vpop.permute.xlu2 %2627  ;;  %v8021_v58 = vpop.permute.xlu1 %3184  ;;  %6626 = vmatmul.msk.f32.gmra.mxu0 %vm88_vm3, %v6623_v44  ;;  %6629 = vmatmul.msk.f32.gmra.mxu1 %vm88_vm3, %v6623_v44 }
 0x3a3   :  { %11256 = vst [vmem:[#allocation105_spill] sm:$0xff] %v8021_v58  ;;  %v8027_v18 = vpop.permute.xlu0 %222  ;;  %v2632_v8 = vsel %vm10991_vm7, %v7827_v59, %v2628_v23  ;;  %v11259_v59 = vld [vmem:[#allocation22_spill] sm:$0xff] }
 0x3a4   :  { %4141 = vperm.xlu0 %6855, %v6745_v61   ;;  %v235_v58 = vadd.f32 %v8027_v18, %v11298_v31  ;;  %v237_v35 = vadd.f32 %v8027_v18, %v11301_v32 }
 0x3a7   :  { %6645 = vmatmul.msk.f32.vlgmr.msrb.gmra.mxu2 %vm88_vm3, %v6636_v28  ;;  %6648 = vmatmul.msk.f32.vlgmr.msrb.gmra.mxu3 %vm88_vm3, %v6636_v28 }
 0x3a9   :  { %3778 = vperm.xlu2 %6854, %v6733_v27   ;;  %4257 = vperm.xlu1 %6856, %v6748_v19   ;;  %v11264_v27 = vld [vmem:[#allocation26_spill] sm:$0xff]  ;;  %v11265_v19 = vld [vmem:[#allocation28_spill] sm:$0xff] }
 0x3aa   :  { %v8049_v25 = vpop.permute.xlu2 %3228  ;;  %v2491_v5 = vpop.permute.xlu1 %2490  ;;  %6639 = vmatmul.msk.f32.vlgmr.msrb.gmra.mxu0 %vm88_vm3, %v6636_v28  ;;  %6642 = vmatmul.msk.f32.vlgmr.msrb.gmra.mxu1 %vm88_vm3, %v6636_v28  ;;  %v6650_v28 = vld [vmem:[%s10904_s6 + $0x50] sm:$0xff] }
 0x3ab   :  { %11257 = vst [vmem:[#allocation106_spill] sm:$0xff] %v8049_v25  ;;  %v2494_v42 = vsel %vm945_vm6, %v2491_v5, %v2493_v37  ;;  %v2495_v63 = vsel %vm945_vm6, %v7888_v26, %v2491_v5  ;;  %v8060_v10 = vpop.permute.xlu0 %3223  ;;  %6666 = vmatpush.msk.msrb.mxu0 %vm98_vm2, %v2635_v2  ;;  %v2636_v37 = vmul.f32 %v2632_v8, %v11261_v39  ;;  %v6735_v26 = vld [vmem:[%s10903_s7 + $0x68] sm:$0xff]  ;;  %v6752_v8 = vld [vmem:[%s10903_s7 + $0x110] sm:$0xff] }
 0x3ac   :  { %11258 = vst [vmem:[#allocation107_spill] sm:$0xff] %v8060_v10  ;;  %v2499_v40 = vmul.f32 %v2495_v63, %v11259_v59  ;;  %v2500_v47 = vmul.f32 %v2494_v42, %v11260_v4  ;;  %4252 = vperm.xlu0 %6855, %v6747_v3   ;;  %v11266_v5 = vld [vmem:[#allocation35_spill] sm:$0xff] }
 0x3ad   :  { %v11296_v25 = vld [vmem:[#allocation31_spill] sm:$0xff] }
 0x3ae   :  { %6655 = vmatpush.msk.msra.mxu1 %vm98_vm2, %v2499_v40  ;;  %6658 = vmatpush.msk.msra.mxu2 %vm98_vm2, %v2500_v47  ;;  %v6651_v40 = vld [vmem:[%s10904_s6 + $0x58] sm:$0xff]  ;;  %v232_v10 = vadd.f32 %v7906_v46, %v11296_v25 }
 0x3af   :  { %6646 = vmatmul.msk.f32.gmra.mxu2 %vm88_vm3, %v6637_v52  ;;  %6649 = vmatmul.msk.f32.gmra.mxu3 %vm88_vm3, %v6637_v52 }
 0x3b0   :  { %6669 = vmatpush.msk.msrb.mxu1 %vm98_vm2, %v2636_v37  ;;  %v6749_v37 = vld [vmem:[%s10903_s7 + $0xf8] sm:$0xff] }
 0x3b1   :  { %3889 = vperm.xlu2 %6854, %v6735_v26   ;;  %4368 = vperm.xlu1 %6856, %v6750_v0  }
 0x3b2   :  { %v8081_v43 = vpop.permute.xlu1 %3202  ;;  %6640 = vmatmul.msk.f32.gmra.mxu0 %vm88_vm3, %v6637_v52  ;;  %v8087_v44 = vpop.permute.xlu2 %3381  ;;  %6643 = vmatmul.msk.f32.gmra.mxu1 %vm88_vm3, %v6637_v52  ;;  %v6741_v52 = vld [vmem:[%s10903_s7 + $0xb8] sm:$0xff] }
 0x3b3   :  { %11262 = vst [vmem:[#allocation108_spill] sm:$0xff] %v8081_v43  ;;  %v2630_v24 = vpop.permute.xlu0 %2629  ;;  %v233_v43 = vadd.f32 %v7906_v46, %v11297_v60  ;;  %v11306_v46 = vld [vmem:[#allocation49_spill] sm:$0xff] }
 0x3b4   :  { %11263 = vst [vmem:[#allocation109_spill] sm:$0xff] %v8087_v44  ;;  %v2631_v6 = vsel %vm10991_vm7, %v2628_v23, %v2630_v24  ;;  %v2634_v61 = vsel %vm10991_vm7, %v2630_v24, %v7970_v9  ;;  %4373 = vperm.xlu0 %6855, %v6751_v20   ;;  %v2770_v23 = vsel %vm10990_vm8, %v7853_v38, %v7978_v21  ;;  %v6739_v9 = vld [vmem:[%s10903_s7 + $0xa8] sm:$0xff]  ;;  %v6664_v24 = vld [vmem:[%s10904_s6 + $0x60] sm:$0xff] }
 0x3b5   :  { %v2637_v33 = vmul.f32 %v2631_v6, %v11264_v27  ;;  %v2638_v2 = vmul.f32 %v2634_v61, %v11265_v19  ;;  %v2772_v3 = vmul.f32 %v2770_v23, %v11266_v5  ;;  %v11271_v6 = vld [vmem:[#allocation38_spill] sm:$0xff] }
 0x3b7   :  { %6659 = vmatmul.msk.f32.vlgmr.msra.gmra.mxu2 %vm88_vm3, %v6650_v28  ;;  %6675 = vmatpush.msk.msrb.mxu3 %vm98_vm2, %v2638_v2 }
 0x3b8   :  { %6672 = vmatpush.msk.msrb.mxu2 %vm98_vm2, %v2637_v33  ;;  %6662 = vmatmul.msk.f32.vlgmr.msra.gmra.mxu3 %vm88_vm3, %v6650_v28  ;;  %v2907_v33 = vsel %vm10989_vm9, %v8006_v62, %v8000_v29 }
 0x3b9   :  { %4378 = vperm.xlu2 %6854, %v6752_v8   ;;  %4010 = vperm.xlu1 %6856, %v6739_v9  }
 0x3ba   :  { %v8115_v42 = vpop.permute.xlu1 %3233  ;;  %6653 = vmatmul.msk.f32.vlgmr.msra.gmra.mxu0 %vm88_vm3, %v6650_v28  ;;  %6656 = vmatmul.msk.f32.vlgmr.msra.gmra.mxu1 %vm88_vm3, %v6650_v28  ;;  %v8125_v47 = vpop.permute.xlu2 %3427  ;;  %v6743_v28 = vld [vmem:[%s10903_s7 + $0xc8] sm:$0xff] }
 0x3bb   :  { %11267 = vst [vmem:[#allocation110_spill] sm:$0xff] %v8115_v42  ;;  %v8118_v63 = vpop.permute.xlu0 %3238  ;;  %6680 = vmatpush.msk.msra.mxu0 %vm98_vm2, %v2772_v3 }
 0x3bc   :  { %11268 = vst [vmem:[#allocation111_spill] sm:$0xff] %v8118_v63  ;;  %v11295_v63 = vld [vmem:[#allocation36_spill] sm:$0xff] }
 0x3bd   :  { %11269 = vst [vmem:[#allocation112_spill] sm:$0xff] %v8125_v47  ;;  %v234_v42 = vadd.f32 %v8027_v18, %v11295_v63 }
 0x3bf   :  { %6660 = vmatmul.msk.f32.gmra.mxu2 %vm88_vm3, %v6651_v40  ;;  %v414_v60 = vadd.f32 %v11306_v46, %v234_v42  ;;  %v11317_v46 = vld [vmem:[#allocation56_spill] sm:$0xff] }
 0x3c0   :  { %6663 = vmatmul.msk.f32.gmra.mxu3 %vm88_vm3, %v6651_v40 }
 0x3c1   :  { %4020 = vperm.xlu2 %6854, %v6741_v52   ;;  %4262 = vperm.xlu1 %6856, %v6749_v37   ;;  %v11273_v52 = vld [vmem:[#allocation33_spill] sm:$0xff] }
 0x3c2   :  { %v8135_v26 = vpop.permute.xlu1 %3417  ;;  %6654 = vmatmul.msk.f32.gmra.mxu0 %vm88_vm3, %v6651_v40  ;;  %6657 = vmatmul.msk.f32.gmra.mxu1 %vm88_vm3, %v6651_v40  ;;  %v2904_v2 = vpop.permute.xlu2 %2903 }
 0x3c3   :  { %11270 = vst [vmem:[#allocation113_spill] sm:$0xff] %v8135_v26  ;;  %v2765_v0 = vpop.permute.xlu0 %2764  ;;  %v2908_v23 = vsel %vm10989_vm9, %v2904_v2, %v8006_v62  ;;  %v6665_v62 = vld [vmem:[%s10904_s6 + $0x68] sm:$0xff] }
 0x3c4   :  { %v2769_v20 = vsel %vm10990_vm8, %v7978_v21, %v2765_v0  ;;  %v11272_v21 = vld [vmem:[#allocation47_spill] sm:$0xff] }
 0x3c5   :  { %v2773_v61 = vmul.f32 %v2769_v20, %v11271_v6  ;;  %v2909_v8 = vmul.f32 %v2907_v33, %v11272_v21  ;;  %v11274_v20 = vld [vmem:[#allocation34_spill] sm:$0xff] }
 0x3c7   :  { %6673 = vmatmul.msk.f32.vlgmr.msrb.gmra.mxu2 %vm88_vm3, %v6664_v24  ;;  %6683 = vmatpush.msk.msra.mxu1 %vm98_vm2, %v2773_v61 }
 0x3c8   :  { %6676 = vmatmul.msk.f32.vlgmr.msrb.gmra.mxu3 %vm88_vm3, %v6664_v24 }
 0x3c9   :  { %4131 = vperm.xlu2 %6854, %v6743_v28   ;;  %v11275_v28 = vld [vmem:[#allocation48_spill] sm:$0xff] }
 0x3ca   :  { %v2767_v9 = vpop.permute.xlu1 %2766  ;;  %6667 = vmatmul.msk.f32.vlgmr.msrb.gmra.mxu0 %vm88_vm3, %v6664_v24  ;;  %6670 = vmatmul.msk.f32.vlgmr.msrb.gmra.mxu1 %vm88_vm3, %v6664_v24  ;;  %v2912_v33 = vmul.f32 %v2908_v23, %v11275_v28 }
 0x3cb   :  { %v2768_v3 = vsel %vm10990_vm8, %v2765_v0, %v2767_v9  ;;  %v2771_v40 = vsel %vm10990_vm8, %v2767_v9, %v7853_v38  ;;  %6694 = vmatpush.msk.msrb.mxu0 %vm98_vm2, %v2909_v8  ;;  %v6678_v0 = vld [vmem:[%s10904_s6 + $0x70] sm:$0xff]  ;;  %v11277_v9 = vld [vmem:[#allocation46_spill] sm:$0xff] }
 0x3cc   :  { %v2774_v37 = vmul.f32 %v2768_v3, %v11273_v52  ;;  %v2775_v61 = vmul.f32 %v2771_v40, %v11274_v20  ;;  %v11278_v40 = vld [vmem:[#allocation43_spill] sm:$0xff] }
 0x3ce   :  { %6686 = vmatpush.msk.msra.mxu2 %vm98_vm2, %v2774_v37  ;;  %6689 = vmatpush.msk.msra.mxu3 %vm98_vm2, %v2775_v61  ;;  %v6679_v61 = vld [vmem:[%s10904_s6 + $0x78] sm:$0xff] }
 0x3cf   :  { %6674 = vmatmul.msk.f32.gmra.mxu2 %vm88_vm3, %v6665_v62 }
 0x3d0   :  { %6703 = vmatpush.msk.msrb.mxu3 %vm98_vm2, %v2912_v33 }
 0x3d1   :  { %6677 = vmatmul.msk.f32.gmra.mxu3 %vm88_vm3, %v6665_v62 }
 0x3d2   :  { %v8179_v38 = vpop.permute.xlu1 %3531  ;;  %6668 = vmatmul.msk.f32.gmra.mxu0 %vm88_vm3, %v6665_v62  ;;  %6671 = vmatmul.msk.f32.gmra.mxu1 %vm88_vm3, %v6665_v62 }
 0x3d3   :  { %11276 = vst [vmem:[#allocation114_spill] sm:$0xff] %v8179_v38 }
 0x3d7   :  { %6687 = vmatmul.msk.f32.vlgmr.msra.gmra.mxu2 %vm88_vm3, %v6678_v0 }
 0x3d9   :  { %6690 = vmatmul.msk.f32.vlgmr.msra.gmra.mxu3 %vm88_vm3, %v6678_v0 }
 0x3da   :  { %v2902_v24 = vpop.permute.xlu1 %2901  ;;  %6681 = vmatmul.msk.f32.vlgmr.msra.gmra.mxu0 %vm88_vm3, %v6678_v0  ;;  %6684 = vmatmul.msk.f32.vlgmr.msra.gmra.mxu1 %vm88_vm3, %v6678_v0 }
 0x3db   :  { %v2905_v8 = vsel %vm10989_vm9, %v2902_v24, %v2904_v2  ;;  %v2906_v23 = vsel %vm10989_vm9, %v8000_v29, %v2902_v24  ;;  %v6692_v29 = vld [vmem:[%s10904_s6 + $0x80] sm:$0xff]  ;;  %v6693_v24 = vld [vmem:[%s10904_s6 + $0x88] sm:$0xff] }
 0x3dc   :  { %v2910_v3 = vmul.f32 %v2906_v23, %v11277_v9  ;;  %v2911_v37 = vmul.f32 %v2905_v8, %v11278_v40 }
 0x3de   :  { %6697 = vmatpush.msk.msrb.mxu1 %vm98_vm2, %v2910_v3  ;;  %6700 = vmatpush.msk.msrb.mxu2 %vm98_vm2, %v2911_v37 }
 0x3df   :  { %6688 = vmatmul.msk.f32.gmra.mxu2 %vm88_vm3, %v6679_v61 }
 0x3e1   :  { %6691 = vmatmul.msk.f32.gmra.mxu3 %vm88_vm3, %v6679_v61 }
 0x3e2   :  { %6682 = vmatmul.msk.f32.gmra.mxu0 %vm88_vm3, %v6679_v61  ;;  %6685 = vmatmul.msk.f32.gmra.mxu1 %vm88_vm3, %v6679_v61 }
 0x3e7   :  { %v8209_v2 = vpop.f32.mrf.mxu0  ;;  %v8211_v62 = vpop.f32.mrf.mxu1  ;;  %6701 = vmatmul.msk.f32.vlgmr.msrb.gmra.mxu2 %vm88_vm3, %v6692_v29 }
 0x3e9   :  { %6704 = vmatmul.msk.f32.vlgmr.msrb.gmra.mxu3 %vm88_vm3, %v6692_v29 }
 0x3ea   :  { %v8215_v33 = vpop.f32.mrf.mxu2  ;;  %v8217_v0 = vpop.f32.mrf.mxu3  ;;  %6695 = vmatmul.msk.f32.vlgmr.msrb.gmra.mxu0 %vm88_vm3, %v6692_v29  ;;  %6698 = vmatmul.msk.f32.vlgmr.msrb.gmra.mxu1 %vm88_vm3, %v6692_v29 }
 0x3ef   :  { %v8224_v8 = vpop.f32.mrf.mxu0  ;;  %v8226_v23 = vpop.f32.mrf.mxu1  ;;  %6702 = vmatmul.msk.f32.gmra.mxu2 %vm88_vm3, %v6693_v24 }
 0x3f1   :  { %6705 = vmatmul.msk.f32.gmra.mxu3 %vm88_vm3, %v6693_v24 }
 0x3f2   :  { %v8230_v3 = vpop.f32.mrf.mxu2  ;;  %v8232_v37 = vpop.f32.mrf.mxu3  ;;  %6696 = vmatmul.msk.f32.gmra.mxu0 %vm88_vm3, %v6693_v24  ;;  %6699 = vmatmul.msk.f32.gmra.mxu1 %vm88_vm3, %v6693_v24 }
 0x3f7   :  { %v8236_v61 = vpop.f32.mrf.mxu0  ;;  %v8238_v29 = vpop.f32.mrf.mxu1 }
 0x3fa   :  { %v8240_v9 = vpop.f32.mrf.mxu2  ;;  %v8242_v38 = vpop.f32.mrf.mxu3 }
 0x3ff   :  { %v8244_v5 = vpop.f32.mrf.mxu0  ;;  %v8246_v21 = vpop.f32.mrf.mxu1 }
 0x402   :  { %v8248_v17 = vpop.f32.mrf.mxu2  ;;  %v8250_v49 = vpop.f32.mrf.mxu3 }
 0x407   :  { %v8252_v47 = vpop.f32.mrf.mxu0  ;;  %v8254_v26 = vpop.f32.mrf.mxu1 }
 0x40a   :  { %v8256_v24 = vpop.f32.mrf.mxu2  ;;  %v8258_v44 = vpop.f32.mrf.mxu3 }
 0x40f   :  { %v8260_v20 = vpop.f32.mrf.mxu0  ;;  %v8262_v28 = vpop.f32.mrf.mxu1 }
 0x412   :  { %v8264_v52 = vpop.f32.mrf.mxu2  ;;  %v8266_v40 = vpop.f32.mrf.mxu3 }
 0x417   :  { %v8268_v19 = vpop.f32.mrf.mxu0  ;;  %v8270_v27 = vpop.f32.mrf.mxu1 }
 0x41a   :  { %v8272_v6 = vpop.f32.mrf.mxu2  ;;  %v8274_v4 = vpop.f32.mrf.mxu3 }
 0x41f   :  { %v8276_v59 = vpop.f32.mrf.mxu0  ;;  %v8278_v39 = vpop.f32.mrf.mxu1 }
 0x422   :  { %v8280_v54 = vpop.f32.mrf.mxu2  ;;  %v8282_v50 = vpop.f32.mrf.mxu3 }
 0x423   :  { %11279 = vst [vmem:[#allocation115_spill] sm:$0xff] %v8280_v54  ;;  %v11314_v54 = vld [vmem:[#allocation54_spill] sm:$0xff] }
 0x424   :  { %11280 = vst [vmem:[#allocation116_spill] sm:$0xff] %v8282_v50 }
 0x427   :  { %v8284_v22 = vpop.f32.mrf.mxu0  ;;  %v8286_v48 = vpop.f32.mrf.mxu1 }
 0x428   :  { %11281 = vst [vmem:[#allocation117_spill] sm:$0xff] %v8284_v22 }
 0x429   :  { %11282 = vst [vmem:[#allocation118_spill] sm:$0xff] %v8286_v48 }
 0x42a   :  { %v8288_v16 = vpop.f32.mrf.mxu2  ;;  %v8290_v12 = vpop.f32.mrf.mxu3 }
 0x42b   :  { %11283 = vst [vmem:[#allocation119_spill] sm:$0xff] %v8288_v16  ;;  %v11308_v16 = vld [vmem:[#allocation45_spill] sm:$0xff] }
 0x42c   :  { %11284 = vst [vmem:[#allocation120_spill] sm:$0xff] %v8290_v12  ;;  %v413_v48 = vadd.f32 %v11308_v16, %v233_v43  ;;  %v11319_v43 = vld [vmem:[#allocation59_spill] sm:$0xff] }
 0x42f   :  { %v8292_v55 = vpop.f32.mrf.mxu0  ;;  %v8294_v53 = vpop.f32.mrf.mxu1 }
 0x430   :  { %11285 = vst [vmem:[#allocation121_spill] sm:$0xff] %v8292_v55 }
 0x431   :  { %11286 = vst [vmem:[#allocation122_spill] sm:$0xff] %v8294_v53  ;;  %v11307_v53 = vld [vmem:[#allocation44_spill] sm:$0xff] }
 0x432   :  { %v8296_v57 = vpop.f32.mrf.mxu2  ;;  %v8298_v56 = vpop.f32.mrf.mxu3  ;;  %v412_v31 = vadd.f32 %v11307_v53, %v232_v10  ;;  %v593_v53 = vadd.f32 %v11317_v46, %v413_v48  ;;  %v11318_v10 = vld [vmem:[#allocation58_spill] sm:$0xff]  ;;  %v11330_v46 = vld [vmem:[#allocation67_spill] sm:$0xff] }
 0x433   :  { %11287 = vst [vmem:[#allocation123_spill] sm:$0xff] %v8296_v57  ;;  %v11305_v57 = vld [vmem:[#allocation42_spill] sm:$0xff] }
 0x434   :  { %11288 = vst [vmem:[#allocation124_spill] sm:$0xff] %v8298_v56  ;;  %v411_v12 = vadd.f32 %v11305_v57, %v231_v30  ;;  %v11316_v57 = vld [vmem:[#allocation55_spill] sm:$0xff] }
 0x435   :  { %v592_v42 = vadd.f32 %v11316_v57, %v412_v31  ;;  %v11329_v57 = vld [vmem:[#allocation66_spill] sm:$0xff] }
 0x437   :  { %v8300_v14 = vpop.f32.mrf.mxu0  ;;  %v8302_v15 = vpop.f32.mrf.mxu1 }
 0x438   :  { %11289 = vst [vmem:[#allocation125_spill] sm:$0xff] %v8300_v14  ;;  %v11304_v14 = vld [vmem:[#allocation41_spill] sm:$0xff] }
 0x439   :  { %11290 = vst [vmem:[#allocation126_spill] sm:$0xff] %v8302_v15  ;;  %v410_v25 = vadd.f32 %v11304_v14, %v230_v41  ;;  %v591_v41 = vadd.f32 %v11314_v54, %v411_v12  ;;  %v11315_v14 = vld [vmem:[#allocation57_spill] sm:$0xff]  ;;  %v11325_v54 = vld [vmem:[#allocation62_spill] sm:$0xff] }
 0x43a   :  { %v8304_v34 = vpop.f32.mrf.mxu2  ;;  %v594_v30 = vadd.f32 %v11315_v14, %v414_v60  ;;  %v11326_v60 = vld [vmem:[#allocation65_spill] sm:$0xff]  ;;  %v11328_v14 = vld [vmem:[#allocation64_spill] sm:$0xff] }
 0x43b   :  { %11291 = vst [vmem:[#allocation127_spill] sm:$0xff] %v8304_v34  ;;  %v8306_v36 = vpop.f32.mrf.mxu3  ;;  %v11299_v34 = vld [vmem:[#allocation39_spill] sm:$0xff] }
 0x43c   :  { %11292 = vst [vmem:[#allocation128_spill] sm:$0xff] %v8306_v36  ;;  %v236_v36 = vadd.f32 %v8027_v18, %v11299_v34  ;;  %v11309_v34 = vld [vmem:[#allocation50_spill] sm:$0xff]  ;;  %v11312_v18 = vld [vmem:[#allocation52_spill] sm:$0xff]  ;;  %v774_v31 = vadd.f32 %v11326_v60, %v594_v30 }
 0x43d   :  { %v415_v50 = vadd.f32 %v11309_v34, %v235_v58  ;;  %v417_v32 = vadd.f32 %v11312_v18, %v237_v35  ;;  %v11327_v18 = vld [vmem:[#allocation63_spill] sm:$0xff]  ;;  %v11337_v60 = vld [vmem:[#allocation72_spill] sm:$0xff] }
 0x43e   :  { %v772_v48 = vadd.f32 %v11327_v18, %v592_v42  ;;  %v11338_v18 = vld [vmem:[#allocation74_spill] sm:$0xff] }
 0x43f   :  { %v8322_v15 = vpop.f32.mrf.mxu0  ;;  %v8326_v56 = vpop.f32.mrf.mxu1  ;;  %v595_v16 = vadd.f32 %v11318_v10, %v415_v50  ;;  %v773_v50 = vadd.f32 %v11328_v14, %v593_v53  ;;  %v11339_v14 = vld [vmem:[#allocation75_spill] sm:$0xff] }
 0x440   :  { %11300 = vst [vmem:[#allocation29_spill] sm:$0xff] %v8322_v15  ;;  %v11310_v15 = vld [vmem:[#allocation51_spill] sm:$0xff] }
 0x441   :  { %11302 = vst [vmem:[#allocation30_spill] sm:$0xff] %v8326_v56  ;;  %v416_v55 = vadd.f32 %v11310_v15, %v236_v36  ;;  %v11313_v56 = vld [vmem:[#allocation53_spill] sm:$0xff]  ;;  %v11321_v36 = vld [vmem:[#allocation60_spill] sm:$0xff]  ;;  %v917_v42 = vadd.f32 %v11337_v60, %v773_v50  ;;  %v11350_v60 = vld [vmem:[#allocation83_spill] sm:$0xff] }
 0x442   :  { %v8328_v63 = vpop.f32.mrf.mxu2  ;;  %v597_v15 = vadd.f32 %v11321_v36, %v417_v32  ;;  %v11332_v32 = vld [vmem:[#allocation68_spill] sm:$0xff] }
 0x443   :  { %11303 = vst [vmem:[#allocation36_spill] sm:$0xff] %v8328_v63  ;;  %v8337_v22 = vpop.f32.mrf.mxu3  ;;  %v590_v63 = vadd.f32 %v11313_v56, %v410_v25  ;;  %v596_v58 = vadd.f32 %v11319_v43, %v416_v55  ;;  %v11324_v56 = vld [vmem:[#allocation61_spill] sm:$0xff]  ;;  %v771_v25 = vadd.f32 %v11325_v54, %v591_v41  ;;  %v775_v55 = vadd.f32 %v11329_v57, %v595_v16  ;;  %v11336_v54 = vld [vmem:[#allocation71_spill] sm:$0xff] }
 0x444   :  { %11311 = vst [vmem:[#allocation31_spill] sm:$0xff] %v8337_v22  ;;  %v777_v36 = vadd.f32 %v11332_v32, %v597_v15  ;;  %v916_v30 = vadd.f32 %v11336_v54, %v772_v48  ;;  %v11347_v32 = vld [vmem:[#allocation79_spill] sm:$0xff]  ;;  %v11349_v54 = vld [vmem:[#allocation82_spill] sm:$0xff] }
 0x445   :  { %v770_v12 = vadd.f32 %v11324_v56, %v590_v63  ;;  %v776_v10 = vadd.f32 %v11330_v46, %v596_v58  ;;  %v11335_v56 = vld [vmem:[#allocation73_spill] sm:$0xff]  ;;  %v919_v53 = vadd.f32 %v11338_v18, %v775_v55  ;;  %v11341_v58 = vld [vmem:[#allocation76_spill] sm:$0xff] }
 0x446   :  { %v918_v41 = vadd.f32 %v11335_v56, %v774_v31  ;;  %v921_v46 = vadd.f32 %v11341_v58, %v777_v36  ;;  %v11346_v31 = vld [vmem:[#allocation81_spill] sm:$0xff]  ;;  %v1096_v50 = vadd.f32 %v11347_v32, %v916_v30  ;;  %v11348_v56 = vld [vmem:[#allocation80_spill] sm:$0xff]  ;;  %v11358_v32 = vld [vmem:[#allocation90_spill] sm:$0xff] }
 0x447   :  { %v8347_v34 = vpop.f32.mrf.mxu0  ;;  %v8350_v22 = vpop.f32.mrf.mxu1  ;;  %v920_v16 = vadd.f32 %v11339_v14, %v776_v10  ;;  %v1097_v55 = vadd.f32 %v11348_v56, %v917_v42  ;;  %v1099_v10 = vadd.f32 %v11349_v54, %v919_v53  ;;  %v11352_v36 = vld [vmem:[#allocation84_spill] sm:$0xff]  ;;  %v11359_v56 = vld [vmem:[#allocation91_spill] sm:$0xff] }
 0x448   :  { %11320 = vst [vmem:[#allocation32_spill] sm:$0xff] %v8347_v34  ;;  %v11334_v34 = vld [vmem:[#allocation70_spill] sm:$0xff]  ;;  %v1098_v48 = vadd.f32 %v11346_v31, %v918_v41  ;;  %v1101_v58 = vadd.f32 %v11352_v36, %v921_v46  ;;  %v11357_v31 = vld [vmem:[#allocation88_spill] sm:$0xff]  ;;  %v11367_v36 = vld [vmem:[#allocation95_spill] sm:$0xff] }
 0x449   :  { %11322 = vst [vmem:[#allocation37_spill] sm:$0xff] %v8350_v22  ;;  %v11333_v22 = vld [vmem:[#allocation69_spill] sm:$0xff]  ;;  %v915_v63 = vadd.f32 %v11334_v34, %v771_v25  ;;  %v1100_v18 = vadd.f32 %v11350_v60, %v920_v16  ;;  %v1277_v30 = vadd.f32 %v11357_v31, %v1097_v55  ;;  %v1279_v42 = vadd.f32 %v11358_v32, %v1099_v10  ;;  %v11361_v16 = vld [vmem:[#allocation92_spill] sm:$0xff]  ;;  %v11370_v31 = vld [vmem:[#allocation99_spill] sm:$0xff] }
 0x44a   :  { %v8352_v35 = vpop.f32.mrf.mxu2  ;;  %v1281_v60 = vadd.f32 %v11361_v16, %v1101_v58  ;;  %v11371_v58 = vld [vmem:[#allocation100_spill] sm:$0xff] }
 0x44b   :  { %11323 = vst [vmem:[#allocation39_spill] sm:$0xff] %v8352_v35  ;;  %v8361_v43 = vpop.f32.mrf.mxu3  ;;  %v914_v35 = vadd.f32 %v11333_v22, %v770_v12  ;;  %v11344_v22 = vld [vmem:[#allocation77_spill] sm:$0xff]  ;;  %v11345_v12 = vld [vmem:[#allocation78_spill] sm:$0xff]  ;;  %v1280_v53 = vadd.f32 %v11359_v56, %v1100_v18 }
 0x44c   :  { %11331 = vst [vmem:[#allocation40_spill] sm:$0xff] %v8361_v43  ;;  %v1095_v25 = vadd.f32 %v11345_v12, %v915_v63  ;;  %v11356_v12 = vld [vmem:[#allocation87_spill] sm:$0xff]  ;;  %v1461_v16 = vadd.f32 %v11371_v58, %v1281_v60  ;;  %v11381_v58 = vld [vmem:[#allocation120_spill] sm:$0xff] }
 0x44d   :  { %v1094_v34 = vadd.f32 %v11344_v22, %v914_v35  ;;  %v11355_v22 = vld [vmem:[#allocation89_spill] sm:$0xff]  ;;  %v1276_v41 = vadd.f32 %v11356_v12, %v1096_v50  ;;  %v11369_v12 = vld [vmem:[#allocation98_spill] sm:$0xff]  ;;  %v1460_v32 = vadd.f32 %v11370_v31, %v1280_v53 }
 0x44e   :  { %v1278_v63 = vadd.f32 %v11355_v22, %v1098_v48  ;;  %v11366_v48 = vld [vmem:[#allocation97_spill] sm:$0xff]  ;;  %v11368_v22 = vld [vmem:[#allocation96_spill] sm:$0xff]  ;;  %v1459_v18 = vadd.f32 %v11369_v12, %v1279_v42  ;;  %v11378_v12 = vld [vmem:[#allocation118_spill] sm:$0xff] }
 0x44f   :  { %v8371_v57 = vpop.f32.mrf.mxu0  ;;  %v8374_v43 = vpop.f32.mrf.mxu1  ;;  %v1456_v55 = vadd.f32 %v11367_v36, %v1276_v41  ;;  %v1457_v10 = vadd.f32 %v11368_v22, %v1277_v30  ;;  %v1640_v42 = vadd.f32 %v7657_v1, %v1460_v32  ;;  %v11380_v31 = vld [vmem:[#allocation122_spill] sm:$0xff] }
 0x450   :  { %11340 = vst [vmem:[#allocation41_spill] sm:$0xff] %v8371_v57  ;;  %v11354_v57 = vld [vmem:[#allocation86_spill] sm:$0xff]  ;;  %v1458_v50 = vadd.f32 %v11366_v48, %v1278_v63  ;;  %v1639_v30 = vadd.f32 %v7647_v51, %v1459_v18  ;;  %v11379_v18 = vld [vmem:[#allocation119_spill] sm:$0xff] }
 0x451   :  { %11342 = vst [vmem:[#allocation42_spill] sm:$0xff] %v8374_v43  ;;  %v11353_v43 = vld [vmem:[#allocation85_spill] sm:$0xff]  ;;  %v1275_v35 = vadd.f32 %v11354_v57, %v1095_v25  ;;  %v1636_v63 = vadd.f32 %v7639_v13, %v1456_v55  ;;  %v1637_v41 = vadd.f32 %v7641_v45, %v1457_v10  ;;  %v1952_v1 = vadd.f32 %v8230_v3, %v1640_v42  ;;  %v11377_v10 = vld [vmem:[#allocation116_spill] sm:$0xff] }
 0x452   :  { %v8376_v15 = vpop.f32.mrf.mxu2  ;;  %v1951_v45 = vadd.f32 %v8226_v23, %v1639_v30  ;;  %v11385_v42 = vld [vmem:[#allocation124_spill] sm:$0xff] }
 0x453   :  { %11343 = vst [vmem:[#allocation49_spill] sm:$0xff] %v8376_v15  ;;  %v1274_v15 = vadd.f32 %v11353_v43, %v1094_v34  ;;  %v11364_v43 = vld [vmem:[#allocation93_spill] sm:$0xff]  ;;  %v11365_v34 = vld [vmem:[#allocation94_spill] sm:$0xff]  ;;  %v1948_v13 = vadd.f32 %v8215_v33, %v1636_v63  ;;  %v2089_v23 = vadd.f32 %v8248_v17, %v1952_v1 }
 0x454   :  { %v8385_v14 = vpop.f32.mrf.mxu3  ;;  %v1455_v25 = vadd.f32 %v11365_v34, %v1275_v35  ;;  %v1638_v35 = vadd.f32 %v7645_v11, %v1458_v50  ;;  %v1949_v11 = vadd.f32 %v8217_v0, %v1637_v41  ;;  %v2088_v0 = vadd.f32 %v8246_v21, %v1951_v45  ;;  %v11384_v41 = vld [vmem:[#allocation29_spill] sm:$0xff] }
 0x455   :  { %11351 = vst [vmem:[#allocation44_spill] sm:$0xff] %v8385_v14  ;;  %v1454_v57 = vadd.f32 %v11364_v43, %v1274_v15 }
 0x456   :  { %v2086_v33 = vadd.f32 %v8242_v38, %v1949_v11  ;;  %v2225_v38 = vadd.f32 %v8262_v28, %v2088_v0  ;;  %v11374_v28 = vld [vmem:[#allocation115_spill] sm:$0xff]  ;;  %v11388_v11 = vld [vmem:[#allocation30_spill] sm:$0xff] }
 0x457   :  { %v8395_v54 = vpop.f32.mrf.mxu0  ;;  %v8398_v14 = vpop.f32.mrf.mxu1  ;;  %v11392_v0 = vld [vmem:[#allocation41_spill] sm:$0xff] }
 0x458   :  { %11360 = vst [vmem:[#allocation45_spill] sm:$0xff] %v8395_v54  ;;  %v11373_v54 = vld [vmem:[#allocation102_spill] sm:$0xff]  ;;  %v2223_v21 = vadd.f32 %v8258_v44, %v2086_v33  ;;  %v11375_v44 = vld [vmem:[#allocation117_spill] sm:$0xff] }
 0x459   :  { %11362 = vst [vmem:[#allocation50_spill] sm:$0xff] %v8398_v14  ;;  %v11372_v14 = vld [vmem:[#allocation101_spill] sm:$0xff]  ;;  %v1635_v15 = vadd.f32 %v11373_v54, %v1455_v25  ;;  %v1641_v54 = vadd.f32 %v7659_v7, %v1461_v16  ;;  %v6884_v25 = vmov 16.0   ;;  %v11382_v16 = vld [vmem:[#allocation123_spill] sm:$0xff] }
 0x45a   :  { %v8400_v46 = vpop.f32.mrf.mxu2  ;;  %6857 = vrcp.f32 %v6884_v25  ;;  %v11394_v25 = vld [vmem:[#allocation37_spill] sm:$0xff] }
 0x45b   :  { %11363 = vst [vmem:[#allocation51_spill] sm:$0xff] %v8400_v46  ;;  %v1634_v46 = vadd.f32 %v11372_v14, %v1454_v57  ;;  %v1947_v60 = vadd.f32 %v8211_v62, %v1635_v15  ;;  %v1950_v14 = vadd.f32 %v8224_v8, %v1638_v35  ;;  %v11383_v35 = vld [vmem:[#allocation125_spill] sm:$0xff] }
 0x45c   :  { %v8409_v56 = vpop.f32.mrf.mxu3 }
 0x45d   :  { %v1946_v53 = vadd.f32 %v8209_v2, %v1634_v46  ;;  %v1953_v2 = vadd.f32 %v8232_v37, %v1641_v54  ;;  %v2087_v8 = vadd.f32 %v8244_v5, %v1950_v14  ;;  %v2084_v7 = vadd.f32 %v8238_v29, %v1947_v60  ;;  %v11386_v60 = vld [vmem:[#allocation126_spill] sm:$0xff]  ;;  %v11387_v54 = vld [vmem:[#allocation127_spill] sm:$0xff] }
 0x45e   :  { %v2085_v46 = vadd.f32 %v8240_v9, %v1948_v13  ;;  %v2226_v29 = vadd.f32 %v8264_v52, %v2089_v23  ;;  %v11376_v52 = vld [vmem:[#allocation121_spill] sm:$0xff] }
 0x45f   :  { %v8419_v43 = vpop.f32.mrf.mxu0  ;;  %v8425_v57 = vpop.f32.mrf.mxu1  ;;  %v2083_v62 = vadd.f32 %v8236_v61, %v1946_v53  ;;  %v2224_v37 = vadd.f32 %v8260_v20, %v2087_v8  ;;  %v2090_v5 = vadd.f32 %v8250_v49, %v1953_v2  ;;  %v2221_v61 = vadd.f32 %v8254_v26, %v2084_v7  ;;  %v11389_v2 = vld [vmem:[#allocation128_spill] sm:$0xff] }
 0x460   :  { %v2222_v9 = vadd.f32 %v8256_v24, %v2085_v46  ;;  %v2362_v26 = vadd.f32 %v8278_v39, %v2225_v38  ;;  %v2360_v24 = vadd.f32 %v8274_v4, %v2223_v21  ;;  %v2363_v36 = vadd.f32 %v11374_v28, %v2226_v29  ;;  %v8465_v39 = vpop.eup %6857  ;;  %v11390_v8 = vld [vmem:[#allocation36_spill] sm:$0xff]  ;;  %v11396_v21 = vld [vmem:[#allocation39_spill] sm:$0xff] }
 0x461   :  { %v2220_v3 = vadd.f32 %v8252_v47, %v2083_v62  ;;  %v2361_v47 = vadd.f32 %v8276_v59, %v2224_v37  ;;  %v2227_v20 = vadd.f32 %v8266_v40, %v2090_v5  ;;  %v2358_v48 = vadd.f32 %v8270_v27, %v2221_v61  ;;  %v11391_v46 = vld [vmem:[#allocation32_spill] sm:$0xff]  ;;  %v11395_v61 = vld [vmem:[#allocation42_spill] sm:$0xff] }
 0x462   :  { %v8430_v51 = vpop.f32.mrf.mxu2  ;;  %v2359_v49 = vadd.f32 %v8272_v6, %v2222_v9  ;;  %v2483_v6 = vadd.f32 %v11380_v31, %v2362_v26  ;;  %v2481_v4 = vadd.f32 %v11381_v58, %v2360_v24  ;;  %v2484_v15 = vadd.f32 %v11382_v16, %v2363_v36  ;;  %v11399_v26 = vld [vmem:[#allocation40_spill] sm:$0xff] }
 0x463   :  { %v2357_v17 = vadd.f32 %v8268_v19, %v2220_v3  ;;  %v2482_v22 = vadd.f32 %v11376_v52, %v2361_v47  ;;  %v2364_v59 = vadd.f32 %v11377_v10, %v2227_v20  ;;  %v2479_v40 = vadd.f32 %v11378_v12, %v2358_v48  ;;  %v11393_v3 = vld [vmem:[#allocation31_spill] sm:$0xff]  ;;  %v11398_v20 = vld [vmem:[#allocation45_spill] sm:$0xff]  ;;  %v11400_v28 = vld [vmem:[#allocation44_spill] sm:$0xff] }
 0x464   :  { %v8440_v34 = vpop.f32.mrf.mxu3  ;;  %v2480_v27 = vadd.f32 %v11379_v18, %v2359_v49  ;;  %v2620_v45 = vadd.f32 %v11388_v11, %v2483_v6  ;;  %v2618_v62 = vadd.f32 %v11389_v2, %v2481_v4  ;;  %v2621_v7 = vadd.f32 %v11390_v8, %v2484_v15  ;;  %v11402_v10 = vld [vmem:[#allocation51_spill] sm:$0xff] }
 0x465   :  { %v2478_v55 = vadd.f32 %v11375_v44, %v2357_v17  ;;  %v2619_v30 = vadd.f32 %v11384_v41, %v2482_v22  ;;  %v2485_v53 = vadd.f32 %v11385_v42, %v2364_v59  ;;  %v2616_v14 = vadd.f32 %v11386_v60, %v2479_v40  ;;  %v11397_v17 = vld [vmem:[#allocation49_spill] sm:$0xff]  ;;  %v11401_v44 = vld [vmem:[#allocation50_spill] sm:$0xff] }
 0x466   :  { %v2617_v13 = vadd.f32 %v11387_v54, %v2480_v27  ;;  %v2757_v9 = vadd.f32 %v11395_v61, %v2620_v45  ;;  %v3067_v38 = vmul.f32 16.0, %v8465_v39  ;;  %v2758_v47 = vadd.f32 %v11397_v17, %v2621_v7 }
 0x467   :  { %v2951_v50 = vpop.f32.mrf.mxu0  ;;  %v2974_v19 = vpop.f32.mrf.mxu1  ;;  %v2615_v63 = vadd.f32 %v11383_v35, %v2478_v55  ;;  %v2756_v23 = vadd.f32 %v11392_v0, %v2619_v30  ;;  %v2622_v37 = vadd.f32 %v11393_v3, %v2485_v53  ;;  %v2753_v5 = vadd.f32 %v11394_v25, %v2616_v14 }
 0x468   :  { %v2754_v29 = vadd.f32 %v11396_v21, %v2617_v13  ;;  %v2755_v24 = vadd.f32 %v11399_v26, %v2618_v62  ;;  %v2894_v52 = vadd.f32 %v8425_v57, %v2757_v9  ;;  %v2895_v12 = vadd.f32 %v8430_v51, %v2758_v47 }
 0x469   :  { %v2752_v33 = vadd.f32 %v11391_v46, %v2615_v63  ;;  %v2893_v49 = vadd.f32 %v8419_v43, %v2756_v23  ;;  %v2759_v36 = vadd.f32 %v11400_v28, %v2622_v37  ;;  %v2890_v55 = vadd.f32 %v11401_v44, %v2753_v5 }
 0x46a   :  { %v2997_v32 = vpop.f32.mrf.mxu2  ;;  %v2891_v59 = vadd.f32 %v11402_v10, %v2754_v29  ;;  %v2892_v43 = vadd.f32 %v8409_v56, %v2755_v24  ;;  %v3068_v6 = vsub.f32 1.0, %v3067_v38  ;;  %vm3071_vm11 = vweird.f32 %v8465_v39 }
 0x46b   :  { %v2889_v48 = vadd.f32 %v11398_v20, %v2752_v33  ;;  %v8498_v31 = vadd.f32 %v2974_v19, %v2890_v55  ;;  %v2896_v57 = vadd.f32 %v8440_v34, %v2759_v36 }
 0x46c   :  { %v3020_v1 = vpop.f32.mrf.mxu3  ;;  %v8503_v16 = vadd.f32 %v2997_v32, %v2891_v59  ;;  %v3069_v34 = vmul.f32 %v8465_v39, %v3068_v6 }
 0x46d   :  { %v8493_v40 = vadd.f32 %v2951_v50, %v2889_v48  ;;  %11405 = vst [vmem:[#allocation54_spill] sm:$0xff] %v8498_v31  ;;  %v8511_v56 = vadd.f32 %v3020_v1, %v2892_v43 }
 0x46e   :  { %11407 = vst [vmem:[#allocation55_spill] sm:$0xff] %v8503_v16  ;;  %v3070_v11 = vadd.f32 %v8465_v39, %v3069_v34 }
 0x46f   :  { %v2954_v22 = vpop.f32.mrf.mxu0  ;;  %11403 = vst [vmem:[#allocation52_spill] sm:$0xff] %v8493_v40  ;;  %v2977_v27 = vpop.f32.mrf.mxu1 }
 0x470   :  { %v8495_v18 = vadd.f32 %v2954_v22, %v2893_v49  ;;  %v8500_v58 = vadd.f32 %v2977_v27, %v2894_v52  ;;  %11409 = vst [vmem:[#allocation58_spill] sm:$0xff] %v8511_v56  ;;  %v8523_v0 = vsel %vm3071_vm11, %v8465_v39, %v3070_v11 }
 0x471   :  { %11411 = vst [vmem:[#allocation60_spill] sm:$0xff] %v8523_v0 }
 0x472   :  { %11404 = vst [vmem:[#allocation53_spill] sm:$0xff] %v8495_v18  ;;  %v3000_v4 = vpop.f32.mrf.mxu2  ;;  %v3038_v51 = vadd.f32 %v8495_v18, %v8493_v40  ;;  %v3045_v15 = vadd.f32 %v8500_v58, %v8498_v31 }
 0x473   :  { %11406 = vst [vmem:[#allocation57_spill] sm:$0xff] %v8500_v58  ;;  %v8507_v50 = vadd.f32 %v3000_v4, %v2895_v12 }
 0x474   :  { %v3023_v35 = vpop.f32.mrf.mxu3  ;;  %v3039_v19 = vrot.slane %v3038_v51, 4  ;;  %v3046_v32 = vrot.slane %v3045_v15, 4 }
 0x475   :  { %11408 = vst [vmem:[#allocation56_spill] sm:$0xff] %v8507_v50  ;;  %v3052_v63 = vadd.f32 %v8507_v50, %v8503_v16  ;;  %v8515_v41 = vadd.f32 %v3023_v35, %v2896_v57 }
 0x476   :  { %v3040_v30 = vadd.f32 %v3039_v19, %v3038_v51  ;;  %v3047_v60 = vadd.f32 %v3046_v32, %v3045_v15 }
 0x477   :  { %11410 = vst [vmem:[#allocation59_spill] sm:$0xff] %v8515_v41  ;;  %v3053_v42 = vrot.slane %v3052_v63, 4  ;;  %v3059_v53 = vadd.f32 %v8515_v41, %v8511_v56 }
 0x478   :  { %v3041_v14 = vrot.slane %v3040_v30, 2  ;;  %v3048_v45 = vrot.slane %v3047_v60, 2 }
 0x479   :  { %v3054_v54 = vadd.f32 %v3053_v42, %v3052_v63  ;;  %v3060_v13 = vrot.slane %v3059_v53, 4 }
 0x47a   :  { %v3042_v1 = vadd.f32 %v3041_v14, %v3040_v30  ;;  %v3049_v8 = vadd.f32 %v3048_v45, %v3047_v60 }
 0x47b   :  { %v3055_v2 = vrot.slane %v3054_v54, 2  ;;  %v3061_v62 = vadd.f32 %v3060_v13, %v3059_v53 }
 0x47c   :  { %v3043_v7 = vrot.slane %v3042_v1, 1  ;;  %v3050_v23 = vrot.slane %v3049_v8, 1 }
 0x47d   :  { %v3056_v46 = vadd.f32 %v3055_v2, %v3054_v54  ;;  %v3062_v33 = vrot.slane %v3061_v62, 2 }
 0x47e   :  { %v3044_v3 = vadd.f32 %v3043_v7, %v3042_v1  ;;  %v3051_v5 = vadd.f32 %v3050_v23, %v3049_v8 }
 0x47f   :  { %v3057_v37 = vrot.slane %v3056_v46, 1  ;;  %v3063_v25 = vadd.f32 %v3062_v33, %v3061_v62 }
 0x480   :  { %v3073_v61 = vmul.f32 %v8523_v0, %v3044_v3  ;;  %v3074_v21 = vmul.f32 %v8523_v0, %v3051_v5 }
 0x481   :  { %v3058_v9 = vadd.f32 %v3057_v37, %v3056_v46  ;;  %v3064_v38 = vrot.slane %v3063_v25, 1 }
 0x482   :  { %v8528_v29 = vsub.f32 %v8493_v40, %v3073_v61  ;;  %v8531_v17 = vsub.f32 %v8495_v18, %v3073_v61  ;;  %v8535_v20 = vsub.f32 %v8498_v31, %v3074_v21  ;;  %v8538_v48 = vsub.f32 %v8500_v58, %v3074_v21 }
 0x483   :  { %v3075_v39 = vmul.f32 %v8523_v0, %v3058_v9  ;;  %v3065_v47 = vadd.f32 %v3064_v38, %v3063_v25 }
 0x484   :  { %v3085_v49 = vmul.f32 %v8528_v29, %v8528_v29  ;;  %v3089_v26 = vmul.f32 %v8531_v17, %v8531_v17  ;;  %v3086_v36 = vmul.f32 %v8535_v20, %v8535_v20  ;;  %v3090_v44 = vmul.f32 %v8538_v48, %v8538_v48 }
 0x485   :  { %v8545_v24 = vsub.f32 %v8503_v16, %v3075_v39  ;;  %v8548_v28 = vsub.f32 %v8507_v50, %v3075_v39  ;;  %v3076_v55 = vmul.f32 %v8523_v0, %v3065_v47 }
 0x486   :  { %v3093_v52 = vadd.f32 %v3089_v26, %v3085_v49  ;;  %v3100_v59 = vadd.f32 %v3090_v44, %v3086_v36 }
 0x487   :  { %v3087_v22 = vmul.f32 %v8545_v24, %v8545_v24  ;;  %v3091_v10 = vmul.f32 %v8548_v28, %v8548_v28  ;;  %v8560_v12 = vsub.f32 %v8511_v56, %v3076_v55  ;;  %v8563_v27 = vsub.f32 %v8515_v41, %v3076_v55 }
 0x488   :  { %v3094_v43 = vrot.slane %v3093_v52, 4  ;;  %v3101_v4 = vrot.slane %v3100_v59, 4 }
 0x489   :  { %v3107_v6 = vadd.f32 %v3091_v10, %v3087_v22  ;;  %v3088_v57 = vmul.f32 %v8560_v12, %v8560_v12  ;;  %v3092_v51 = vmul.f32 %v8563_v27, %v8563_v27 }
 0x48a   :  { %v3095_v15 = vadd.f32 %v3094_v43, %v3093_v52  ;;  %v3102_v19 = vadd.f32 %v3101_v4, %v3100_v59 }
 0x48b   :  { %v3108_v35 = vrot.slane %v3107_v6, 4  ;;  %v3114_v63 = vadd.f32 %v3092_v51, %v3088_v57 }
 0x48c   :  { %v3096_v34 = vrot.slane %v3095_v15, 2  ;;  %v3103_v30 = vrot.slane %v3102_v19, 2 }
 0x48d   :  { %v3109_v32 = vadd.f32 %v3108_v35, %v3107_v6  ;;  %v3115_v42 = vrot.slane %v3114_v63, 4 }
 0x48e   :  { %v3097_v53 = vadd.f32 %v3096_v34, %v3095_v15  ;;  %v3104_v14 = vadd.f32 %v3103_v30, %v3102_v19 }
 0x48f   :  { %v3110_v60 = vrot.slane %v3109_v32, 2  ;;  %v3116_v54 = vadd.f32 %v3115_v42, %v3114_v63 }
 0x490   :  { %v3098_v13 = vrot.slane %v3097_v53, 1  ;;  %v3105_v45 = vrot.slane %v3104_v14, 1 }
 0x491   :  { %v3111_v11 = vadd.f32 %v3110_v60, %v3109_v32  ;;  %v3117_v1 = vrot.slane %v3116_v54, 2 }
 0x492   :  { %v3099_v2 = vadd.f32 %v3098_v13, %v3097_v53  ;;  %v3106_v8 = vadd.f32 %v3105_v45, %v3104_v14 }
 0x493   :  { %v3112_v62 = vrot.slane %v3111_v11, 1  ;;  %v3118_v7 = vadd.f32 %v3117_v1, %v3116_v54 }
 0x494   :  { %v3121_v46 = vmul.f32 %v3099_v2, %v8523_v0  ;;  %v3122_v23 = vmul.f32 %v3106_v8, %v8523_v0  ;;  %v11412_v2 = vld [vmem:[#allocation105_spill] sm:$0xff]  ;;  %v11413_v8 = vld [vmem:[#allocation103_spill] sm:$0xff] }
 0x495   :  { %v3113_v33 = vadd.f32 %v3112_v62, %v3111_v11  ;;  %v3119_v3 = vrot.slane %v3118_v7, 1 }
 0x496   :  { %v3125_v37 = vadd.f32 1e-06, %v3121_v46  ;;  %v3126_v5 = vadd.f32 1e-06, %v3122_v23 }
 0x497   :  { %v3123_v25 = vmul.f32 %v3113_v33, %v8523_v0  ;;  %v3120_v61 = vadd.f32 %v3119_v3, %v3118_v7 }
 0x498   :  { %6859 = vrsqrt.f32 %v3125_v37  ;;  %vm3135_vm14 = vweird.f32 %v3125_v37  ;;  %vm3145_vm3 = vweird.f32 %v3126_v5 }
 0x499   :  { %v3127_v9 = vadd.f32 1e-06, %v3123_v25  ;;  %6861 = vrsqrt.f32 %v3126_v5  ;;  %v3124_v38 = vmul.f32 %v3120_v61, %v8523_v0  ;;  %v11415_v25 = vld [vmem:[#allocation104_spill] sm:$0xff]  ;;  %v3213_v61 = vld [vmem:[%s10905_s8] sm:$0xff] }
 0x49b   :  { %6863 = vrsqrt.f32 %v3127_v9  ;;  %v3128_v21 = vadd.f32 1e-06, %v3124_v38  ;;  %vm3155_vm11 = vweird.f32 %v3127_v9 }
 0x49d   :  { %6865 = vrsqrt.f32 %v3128_v21  ;;  %vm3165_vm7 = vweird.f32 %v3128_v21 }
 0x49e   :  { %v6860_v39 = vpop.eup %6859 }
 0x49f   :  { %v6862_v47 = vpop.eup %6861  ;;  %v3130_v49 = vmul.f32 %v6860_v39, %v3125_v37  ;;  %vm3136_vm12 = vweird.f32 %v6860_v39 }
 0x4a0   :  { %v3140_v36 = vmul.f32 %v6862_v47, %v3126_v5  ;;  %vm3146_vm13 = vweird.f32 %v6862_v47  ;;  %vm3137_vm2 = vmor %vm3135_vm14, %vm3136_vm12 }
 0x4a1   :  { %v6864_v26 = vpop.eup %6863  ;;  %v3131_v44 = vmul.f32 %v6860_v39, %v3130_v49  ;;  %vm3147_vm10 = vmor %vm3145_vm3, %vm3146_vm13  ;;  %v3214_v49 = vld [vmem:[%s10905_s8 + $0x8] sm:$0xff] }
 0x4a2   :  { %v3150_v55 = vmul.f32 %v6864_v26, %v3127_v9  ;;  %v3141_v52 = vmul.f32 %v6862_v47, %v3140_v36  ;;  %vm3156_vm15 = vweird.f32 %v6864_v26  ;;  %v3216_v36 = vld [vmem:[%s10905_s8 + $0x18] sm:$0xff] }
 0x4a3   :  { %v6866_v22 = vpop.eup %6865  ;;  %v3132_v10 = vmul.f32 0.5, %v3131_v44  ;;  %vm3157_vm8 = vmor %vm3155_vm11, %vm3156_vm15  ;;  %v8625_v44 = vpop.permute.xlu2 %3652 }
 0x4a4   :  { %v3151_v59 = vmul.f32 %v6864_v26, %v3150_v55  ;;  %v3142_v43 = vmul.f32 0.5, %v3141_v52  ;;  %v3160_v6 = vmul.f32 %v6866_v22, %v3128_v21  ;;  %vm3166_vm9 = vweird.f32 %v6866_v22  ;;  %11416 = vst [vmem:[#allocation61_spill] sm:$0xff] %v8625_v44 }
 0x4a5   :  { %v3133_v4 = vsub.f32 1.5, %v3132_v10  ;;  %vm3167_vm12 = vmor %vm3165_vm7, %vm3166_vm9  ;;  %vm3241_vm7 = vcmask 130048  }
 0x4a6   :  { %v3152_v57 = vmul.f32 0.5, %v3151_v59  ;;  %v3143_v51 = vsub.f32 1.5, %v3142_v43  ;;  %v3161_v15 = vmul.f32 %v6866_v22, %v3160_v6  ;;  %v11420_v59 = vld [vmem:[#allocation107_spill] sm:$0xff] }
 0x4a7   :  { %v3134_v35 = vmul.f32 %v6860_v39, %v3133_v4 }
 0x4a8   :  { %v3153_v19 = vsub.f32 1.5, %v3152_v57  ;;  %v3144_v63 = vmul.f32 %v6862_v47, %v3143_v51  ;;  %v3162_v34 = vmul.f32 0.5, %v3161_v15  ;;  %v8646_v57 = vpop.permute.xlu1 %3642 }
 0x4a9   :  { %v3138_v32 = vsel %vm3137_vm2, %v6860_v39, %v3134_v35  ;;  %11424 = vst [vmem:[#allocation68_spill] sm:$0xff] %v8646_v57 }
 0x4aa   :  { %v3154_v30 = vmul.f32 %v6864_v26, %v3153_v19  ;;  %v3173_v42 = vmul.f32 %v3138_v32, %v8531_v17  ;;  %v3148_v53 = vsel %vm3147_vm10, %v6862_v47, %v3144_v63  ;;  %v3163_v60 = vsub.f32 1.5, %v3162_v34 }
 0x4ab   :  { %v3169_v14 = vmul.f32 %v3138_v32, %v8528_v29  ;;  %v3174_v54 = vmul.f32 %v3148_v53, %v8538_v48  ;;  %v3170_v11 = vmul.f32 %v3148_v53, %v8535_v20  ;;  %v11414_v48 = vld [vmem:[#allocation108_spill] sm:$0xff]  ;;  %v8627_v55 = vpop.permute.xlu2 %3763 }
 0x4ac   :  { %v3158_v13 = vsel %vm3157_vm8, %v6864_v26, %v3154_v30  ;;  %v3164_v1 = vmul.f32 %v6866_v22, %v3163_v60  ;;  %v3191_v62 = vmul.f32 %v11412_v2, %v3173_v42  ;;  %v3215_v26 = vld [vmem:[%s10905_s8 + $0x10] sm:$0xff]  ;;  %11417 = vst [vmem:[#allocation62_spill] sm:$0xff] %v8627_v55 }
 0x4ad   :  { %v3175_v45 = vmul.f32 %v3158_v13, %v8548_v28  ;;  %v3187_v7 = vmul.f32 %v11413_v8, %v3169_v14  ;;  %v3192_v17 = vmul.f32 %v11412_v2, %v3174_v54  ;;  %v3188_v46 = vmul.f32 %v11413_v8, %v3170_v11  ;;  %v11430_v54 = vld [vmem:[#allocation106_spill] sm:$0xff] }
 0x4ae   :  { %v3171_v29 = vmul.f32 %v3158_v13, %v8545_v24  ;;  %v3168_v33 = vsel %vm3167_vm12, %v6866_v22, %v3164_v1  ;;  %v3209_v23 = vadd.f32 %v11414_v48, %v3191_v62  ;;  %v8631_v22 = vpop.permute.xlu0 %3391 }
 0x4af   :  { %v3193_v3 = vmul.f32 %v11412_v2, %v3175_v45  ;;  %v3176_v20 = vmul.f32 %v3168_v33, %v8563_v27  ;;  %v3210_v28 = vadd.f32 %v11414_v48, %v3192_v17  ;;  %v3205_v5 = vadd.f32 %v11415_v25, %v3187_v7  ;;  %11419 = vst [vmem:[#allocation63_spill] sm:$0xff] %v8631_v22 }
 0x4b0   :  { %v3189_v37 = vmul.f32 %v11413_v8, %v3171_v29  ;;  %3268 = vmatpush.msra.mxu0 %v3209_v23  ;;  %v3172_v9 = vmul.f32 %v3168_v33, %v8560_v12  ;;  %v3206_v38 = vadd.f32 %v11415_v25, %v3188_v46  ;;  %v8665_v63 = vpop.permute.xlu1 %3386  ;;  %v11438_v23 = vld [vmem:[#allocation110_spill] sm:$0xff] }
 0x4b1   :  { %v3211_v24 = vadd.f32 %v11414_v48, %v3193_v3  ;;  %3297 = vmatpush.msra.mxu1 %v3210_v28  ;;  %v3194_v27 = vmul.f32 %v11412_v2, %v3176_v20 }
 0x4b2   :  { %3269 = vmatpush.msra.mxu0 %v3205_v5  ;;  %v3207_v21 = vadd.f32 %v11415_v25, %v3189_v37  ;;  %v3190_v39 = vmul.f32 %v11413_v8, %v3172_v9 }
 0x4b3   :  { %3326 = vmatpush.msra.mxu2 %v3211_v24  ;;  %3298 = vmatpush.msra.mxu1 %v3206_v38  ;;  %v3212_v47 = vadd.f32 %v11414_v48, %v3194_v27  ;;  %v8629_v52 = vpop.permute.xlu2 %3396 }
 0x4b4   :  { %6706 = vmatmul.msk.f32.vlgmr.msra.gmra.mxu0 %vm3241_vm7, %v3213_v61  ;;  %6710 = vmatmul.msk.f32.vlgmr.msra.gmra.mxu1 %vm3241_vm7, %v3213_v61  ;;  %v3208_v12 = vadd.f32 %v11415_v25, %v3190_v39  ;;  %11418 = vst [vmem:[#allocation65_spill] sm:$0xff] %v8629_v52 }
 0x4b5   :  { %3327 = vmatpush.msra.mxu2 %v3207_v21  ;;  %3355 = vmatpush.msra.mxu3 %v3212_v47 }
 0x4b6   :  { %6714 = vmatmul.msk.f32.vlgmr.msra.gmra.mxu2 %vm3241_vm7, %v3213_v61  ;;  %v8644_v4 = vpop.permute.xlu0 %3521 }
 0x4b7   :  { %3356 = vmatpush.msra.mxu3 %v3208_v12  ;;  %11423 = vst [vmem:[#allocation67_spill] sm:$0xff] %v8644_v4 }
 0x4b8   :  { %6718 = vmatmul.msk.f32.vlgmr.msra.gmra.mxu3 %vm3241_vm7, %v3213_v61  ;;  %v8679_v30 = vpop.permute.xlu1 %3894 }
 0x4b9   :  { %11428 = vst [vmem:[#allocation71_spill] sm:$0xff] %v8679_v30 }
 0x4bb   :  { %v8642_v6 = vpop.permute.xlu2 %3432 }
 0x4bc   :  { %6707 = vmatmul.msk.f32.gmra.mxu0 %vm3241_vm7, %v3214_v49  ;;  %6711 = vmatmul.msk.f32.gmra.mxu1 %vm3241_vm7, %v3214_v49  ;;  %11422 = vst [vmem:[#allocation66_spill] sm:$0xff] %v8642_v6 }
 0x4be   :  { %6715 = vmatmul.msk.f32.gmra.mxu2 %vm3241_vm7, %v3214_v49  ;;  %v8659_v19 = vpop.permute.xlu0 %3773 }
 0x4bf   :  { %11426 = vst [vmem:[#allocation70_spill] sm:$0xff] %v8659_v19 }
 0x4c0   :  { %6719 = vmatmul.msk.f32.gmra.mxu3 %vm3241_vm7, %v3214_v49  ;;  %v8691_v14 = vpop.permute.xlu1 %3422 }
 0x4c3   :  { %v8654_v15 = vpop.permute.xlu2 %4005 }
 0x4c4   :  { %6708 = vmatmul.msk.f32.gmra.mxu0 %vm3241_vm7, %v3215_v26  ;;  %6712 = vmatmul.msk.f32.gmra.mxu1 %vm3241_vm7, %v3215_v26  ;;  %11425 = vst [vmem:[#allocation69_spill] sm:$0xff] %v8654_v15 }
 0x4c6   :  { %6716 = vmatmul.msk.f32.gmra.mxu2 %vm3241_vm7, %v3215_v26  ;;  %v8677_v32 = vpop.permute.xlu0 %3884 }
 0x4c7   :  { %11427 = vst [vmem:[#allocation73_spill] sm:$0xff] %v8677_v32 }
 0x4c8   :  { %6720 = vmatmul.msk.f32.gmra.mxu3 %vm3241_vm7, %v3215_v26  ;;  %v8709_v62 = vpop.permute.xlu1 %3536 }
 0x4c9   :  { %11433 = vst [vmem:[#allocation76_spill] sm:$0xff] %v8709_v62 }
 0x4cb   :  { %v8669_v34 = vpop.permute.xlu2 %3647 }
 0x4cc   :  { %6709 = vmatmul.msk.f32.gmra.mxu0 %vm3241_vm7, %v3216_v36  ;;  %6713 = vmatmul.msk.f32.gmra.mxu1 %vm3241_vm7, %v3216_v36 }
 0x4ce   :  { %6717 = vmatmul.msk.f32.gmra.mxu2 %vm3241_vm7, %v3216_v36  ;;  %v8689_v60 = vpop.permute.xlu0 %3526 }
 0x4d0   :  { %6721 = vmatmul.msk.f32.gmra.mxu3 %vm3241_vm7, %v3216_v36  ;;  %v8725_v17 = vpop.permute.xlu1 %4126 }
 0x4d1   :  { %11435 = vst [vmem:[#allocation78_spill] sm:$0xff] %v8725_v17 }
 0x4d3   :  { %v8681_v42 = vpop.permute.xlu2 %4136 }
 0x4d4   :  { %11429 = vst [vmem:[#allocation72_spill] sm:$0xff] %v8681_v42 }
 0x4d6   :  { %v8704_v1 = vpop.permute.xlu0 %4015 }
 0x4d7   :  { %11432 = vst [vmem:[#allocation75_spill] sm:$0xff] %v8704_v1 }
 0x4d8   :  { %v8739_v33 = vpop.permute.xlu1 %3768 }
 0x4db   :  { %v8702_v11 = vpop.permute.xlu2 %3778 }
 0x4dc   :  { %11431 = vst [vmem:[#allocation74_spill] sm:$0xff] %v8702_v11 }
 0x4de   :  { %v8719_v7 = vpop.permute.xlu0 %3657 }
 0x4df   :  { %11434 = vst [vmem:[#allocation77_spill] sm:$0xff] %v8719_v7 }
 0x4e0   :  { %v8754_v37 = vpop.permute.xlu1 %4257 }
 0x4e1   :  { %11442 = vst [vmem:[#allocation84_spill] sm:$0xff] %v8754_v37 }
 0x4e3   :  { %v8717_v8 = vpop.permute.xlu2 %3889 }
 0x4e6   :  { %v8737_v29 = vpop.permute.xlu0 %4247 }
 0x4e7   :  { %11437 = vst [vmem:[#allocation79_spill] sm:$0xff] %v8737_v29 }
 0x4e8   :  { %v8769_v9 = vpop.permute.xlu1 %4368 }
 0x4e9   :  { %11446 = vst [vmem:[#allocation87_spill] sm:$0xff] %v8769_v9 }
 0x4eb   :  { %v8729_v46 = vpop.permute.xlu2 %4378 }
 0x4ec   :  { %11436 = vst [vmem:[#allocation81_spill] sm:$0xff] %v8729_v46 }
 0x4ee   :  { %v8752_v28 = vpop.permute.xlu0 %3899 }
 0x4ef   :  { %11441 = vst [vmem:[#allocation83_spill] sm:$0xff] %v8752_v28  ;;  %v11467_v28 = vld [vmem:[#allocation111_spill] sm:$0xff] }
 0x4f0   :  { %v8785_v21 = vpop.permute.xlu1 %4010 }
 0x4f1   :  { %11449 = vst [vmem:[#allocation91_spill] sm:$0xff] %v8785_v21 }
 0x4f3   :  { %v8744_v20 = vpop.permute.xlu2 %4020 }
 0x4f4   :  { %11440 = vst [vmem:[#allocation82_spill] sm:$0xff] %v8744_v20 }
 0x4f6   :  { %v8764_v61 = vpop.permute.xlu0 %4141 }
 0x4f7   :  { %11444 = vst [vmem:[#allocation86_spill] sm:$0xff] %v8764_v61 }
 0x4f8   :  { %v8801_v49 = vpop.permute.xlu1 %4262 }
 0x4f9   :  { %11452 = vst [vmem:[#allocation94_spill] sm:$0xff] %v8801_v49 }
 0x4fb   :  { %v8762_v25 = vpop.permute.xlu2 %4131 }
 0x4fc   :  { %11443 = vst [vmem:[#allocation85_spill] sm:$0xff] %v8762_v25 }
 0x4fe   :  { %v8779_v27 = vpop.permute.xlu0 %4252 }
 0x4ff   :  { %11448 = vst [vmem:[#allocation90_spill] sm:$0xff] %v8779_v27 }
 0x506   :  { %v8797_v47 = vpop.permute.xlu0 %4373 }
 0x507   :  { %11451 = vst [vmem:[#allocation93_spill] sm:$0xff] %v8797_v47 }
 0x531   :  { %v3300_v10 = vpop.f32.mrf.mxu1  ;;  %v3271_v51 = vpop.f32.mrf.mxu0 }
 0x532   :  { %v8634_v43 = vadd.f32 %v3300_v10, %v11420_v59  ;;  %v8657_v35 = vadd.f32 %v3271_v51, %v11420_v59 }
 0x534   :  { %11421 = vst [vmem:[#allocation64_spill] sm:$0xff] %v8634_v43  ;;  %4068 = vrot.lane.b32.xlu2 %v8634_v43, %s6880_s29  ;;  %3584 = vrot.lane.b32.xlu0 %v8634_v43, %s6876_s0 }
 0x535   :  { %3463 = vrot.lane.b32.xlu1 %v8634_v43, %s6875_s21 }
 0x539   :  { %v3303_v53 = vpop.f32.mrf.mxu1  ;;  %v3274_v45 = vpop.f32.mrf.mxu0 }
 0x53a   :  { %v8694_v13 = vadd.f32 %v3303_v53, %v11430_v54  ;;  %v8707_v2 = vadd.f32 %v3274_v45, %v11430_v54  ;;  %v3329_v5 = vpop.f32.mrf.mxu2 }
 0x53b   :  { %v8767_v24 = vadd.f32 %v3329_v5, %v11420_v59  ;;  %v3358_v26 = vpop.f32.mrf.mxu3 }
 0x53c   :  { %4310 = vrot.lane.b32.xlu2 %v8634_v43, %s6883_s26  ;;  %3705 = vrot.lane.b32.xlu0 %v8634_v43, %s6877_s22  ;;  %v8804_v36 = vadd.f32 %v3358_v26, %v11420_v59 }
 0x53d   :  { %3826 = vrot.lane.b32.xlu1 %v8634_v43, %s6878_s23  ;;  %11445 = vst [vmem:[#allocation89_spill] sm:$0xff] %v8767_v24 }
 0x53e   :  { %11453 = vst [vmem:[#allocation97_spill] sm:$0xff] %v8804_v36 }
 0x541   :  { %v3306_v48 = vpop.f32.mrf.mxu1  ;;  %v3277_v0 = vpop.f32.mrf.mxu0 }
 0x542   :  { %v8742_v3 = vadd.f32 %v3306_v48, %v11438_v23  ;;  %v8843_v16 = vadd.f32 %v3277_v0, %v11438_v23  ;;  %v3332_v37 = vpop.f32.mrf.mxu2 }
 0x543   :  { %v8897_v42 = vadd.f32 %v3332_v37, %v11430_v54  ;;  %v3361_v19 = vpop.f32.mrf.mxu3 }
 0x544   :  { %3455 = vrot.lane.b32.xlu2 %v8657_v35, %s6875_s21  ;;  %3947 = vrot.lane.b32.xlu0 %v8634_v43, %s6879_s24  ;;  %11439 = vst [vmem:[#allocation80_spill] sm:$0xff] %v8742_v3  ;;  %v8912_v44 = vadd.f32 %v3361_v19, %v11430_v54 }
 0x545   :  { %4189 = vrot.lane.b32.xlu1 %v8634_v43, %s6881_s15  ;;  %11461 = vst [vmem:[#allocation115_spill] sm:$0xff] %v8843_v16 }
 0x549   :  { %v3309_v20 = vpop.f32.mrf.mxu1 }
 0x54a   :  { %v8882_v11 = vadd.f32 %v3309_v20, %v11467_v28 }
 0x54c   :  { %3697 = vrot.lane.b32.xlu2 %v8657_v35, %s6877_s22  ;;  %3576 = vrot.lane.b32.xlu0 %v8657_v35, %s6876_s0 }
 0x54d   :  { %3939 = vrot.lane.b32.xlu1 %v8657_v35, %s6879_s24 }
 0x554   :  { %3818 = vrot.lane.b32.xlu2 %v8657_v35, %s6878_s23  ;;  %4302 = vrot.lane.b32.xlu0 %v8657_v35, %s6883_s26 }
 0x555   :  { %4181 = vrot.lane.b32.xlu1 %v8657_v35, %s6881_s15 }
 0x55c   :  { %4060 = vrot.lane.b32.xlu2 %v8657_v35, %s6880_s29  ;;  %3949 = vrot.lane.b32.xlu0 %v8694_v13, %s6879_s24 }
 0x55d   :  { %3465 = vrot.lane.b32.xlu1 %v8694_v13, %s6875_s21 }
 0x564   :  { %3707 = vrot.lane.b32.xlu2 %v8694_v13, %s6877_s22  ;;  %3578 = vrot.lane.b32.xlu0 %v8707_v2, %s6876_s0 }
 0x565   :  { %3586 = vrot.lane.b32.xlu1 %v8694_v13, %s6876_s0 }
 0x56c   :  { %4191 = vrot.lane.b32.xlu2 %v8694_v13, %s6881_s15  ;;  %3820 = vrot.lane.b32.xlu0 %v8707_v2, %s6878_s23 }
 0x56d   :  { %3828 = vrot.lane.b32.xlu1 %v8694_v13, %s6878_s23 }
 0x574   :  { %3699 = vrot.lane.b32.xlu2 %v8707_v2, %s6877_s22  ;;  %4183 = vrot.lane.b32.xlu0 %v8707_v2, %s6881_s15 }
 0x575   :  { %4070 = vrot.lane.b32.xlu1 %v8694_v13, %s6880_s29 }
 0x57c   :  { %3941 = vrot.lane.b32.xlu2 %v8707_v2, %s6879_s24  ;;  %4072 = vrot.lane.b32.xlu0 %v8742_v3, %s6880_s29 }
 0x57d   :  { %3457 = vrot.lane.b32.xlu1 %v8707_v2, %s6875_s21 }
 0x584   :  { %4062 = vrot.lane.b32.xlu2 %v8707_v2, %s6880_s29  ;;  %4314 = vrot.lane.b32.xlu0 %v8742_v3, %s6883_s26 }
 0x585   :  { %4304 = vrot.lane.b32.xlu1 %v8707_v2, %s6883_s26 }
 0x58c   :  { %3467 = vrot.lane.b32.xlu2 %v8742_v3, %s6875_s21  ;;  %3471 = vrot.lane.b32.xlu0 %v8767_v24, %s6875_s21 }
 0x58d   :  { %3588 = vrot.lane.b32.xlu1 %v8742_v3, %s6876_s0 }
 0x58e   :  { %v8777_v38 = vpop.permute.xlu2 %4068 }
 0x58f   :  { %11447 = vst [vmem:[#allocation88_spill] sm:$0xff] %v8777_v38 }
 0x594   :  { %3830 = vrot.lane.b32.xlu2 %v8742_v3, %s6878_s23  ;;  %3834 = vrot.lane.b32.xlu0 %v8767_v24, %s6878_s23 }
 0x595   :  { %3709 = vrot.lane.b32.xlu1 %v8742_v3, %s6877_s22 }
 0x596   :  { %v8789_v39 = vpop.permute.xlu2 %4310 }
 0x597   :  { %11450 = vst [vmem:[#allocation92_spill] sm:$0xff] %v8789_v39 }
 0x59c   :  { %4193 = vrot.lane.b32.xlu2 %v8742_v3, %s6881_s15  ;;  %3955 = vrot.lane.b32.xlu0 %v8767_v24, %s6879_s24 }
 0x59d   :  { %3951 = vrot.lane.b32.xlu1 %v8742_v3, %s6879_s24  ;;  %v11520_v3 = vld [vmem:[#allocation8_spill] sm:$0xff] }
 0x59e   :  { %v8799_v12 = vpop.permute.xlu2 %3455 }
 0x5a4   :  { %3592 = vrot.lane.b32.xlu2 %v8767_v24, %s6876_s0  ;;  %4076 = vrot.lane.b32.xlu0 %v8767_v24, %s6880_s29 }
 0x5a5   :  { %3479 = vrot.lane.b32.xlu1 %v8804_v36, %s6875_s21 }
 0x5a6   :  { %v8812_v10 = vpop.permute.xlu2 %3697  ;;  %v8814_v51 = vpop.permute.xlu0 %3584 }
 0x5a7   :  { %11454 = vst [vmem:[#allocation95_spill] sm:$0xff] %v8812_v10  ;;  %v8816_v53 = vpop.permute.xlu1 %3463  ;;  %v11519_v10 = vld [vmem:[#allocation5_spill] sm:$0xff] }
 0x5ac   :  { %3713 = vrot.lane.b32.xlu2 %v8767_v24, %s6877_s22  ;;  %4205 = vrot.lane.b32.xlu0 %v8804_v36, %s6881_s15 }
 0x5ad   :  { %3600 = vrot.lane.b32.xlu1 %v8804_v36, %s6876_s0 }
 0x5ae   :  { %v8824_v59 = vpop.permute.xlu2 %3818  ;;  %v8826_v45 = vpop.permute.xlu0 %3705 }
 0x5af   :  { %11455 = vst [vmem:[#allocation96_spill] sm:$0xff] %v8824_v59  ;;  %v8828_v48 = vpop.permute.xlu1 %3826 }
 0x5b0   :  { %11456 = vst [vmem:[#allocation98_spill] sm:$0xff] %v8826_v45 }
 0x5b1   :  { %11457 = vst [vmem:[#allocation99_spill] sm:$0xff] %v8828_v48  ;;  %v3405_v48 = vmul.f32 %v8665_v63, %v8897_v42 }
 0x5b4   :  { %3721 = vrot.lane.b32.xlu2 %v8804_v36, %s6877_s22  ;;  %4318 = vrot.lane.b32.xlu0 %v8767_v24, %s6883_s26 }
 0x5b5   :  { %3842 = vrot.lane.b32.xlu1 %v8804_v36, %s6878_s23 }
 0x5b6   :  { %v8836_v5 = vpop.permute.xlu2 %4060  ;;  %v8838_v26 = vpop.permute.xlu0 %3947 }
 0x5b7   :  { %11458 = vst [vmem:[#allocation100_spill] sm:$0xff] %v8836_v5  ;;  %v8840_v50 = vpop.permute.xlu1 %4189 }
 0x5b8   :  { %11459 = vst [vmem:[#allocation101_spill] sm:$0xff] %v8838_v26 }
 0x5b9   :  { %11460 = vst [vmem:[#allocation102_spill] sm:$0xff] %v8840_v50 }
 0x5bc   :  { %3963 = vrot.lane.b32.xlu2 %v8804_v36, %s6879_s24  ;;  %3459 = vrot.lane.b32.xlu0 %v8843_v16, %s6875_s21 }
 0x5bd   :  { %4197 = vrot.lane.b32.xlu1 %v8767_v24, %s6881_s15 }
 0x5be   :  { %v8851_v58 = vpop.permute.xlu2 %3707  ;;  %v8853_v31 = vpop.permute.xlu0 %3576 }
 0x5bf   :  { %v8855_v41 = vpop.permute.xlu1 %3939 }
 0x5c0   :  { %11462 = vst [vmem:[#allocation117_spill] sm:$0xff] %v8855_v41 }
 0x5c4   :  { %4084 = vrot.lane.b32.xlu2 %v8804_v36, %s6880_s29  ;;  %3701 = vrot.lane.b32.xlu0 %v8843_v16, %s6877_s22 }
 0x5c5   :  { %3580 = vrot.lane.b32.xlu1 %v8843_v16, %s6876_s0 }
 0x5c6   :  { %v8863_v0 = vpop.permute.xlu2 %4191  ;;  %v8865_v56 = vpop.permute.xlu0 %4302 }
 0x5c7   :  { %11463 = vst [vmem:[#allocation121_spill] sm:$0xff] %v8863_v0  ;;  %v8867_v18 = vpop.permute.xlu1 %4181 }
 0x5c8   :  { %11464 = vst [vmem:[#allocation116_spill] sm:$0xff] %v8865_v56 }
 0x5c9   :  { %11465 = vst [vmem:[#allocation118_spill] sm:$0xff] %v8867_v18 }
 0x5cc   :  { %4326 = vrot.lane.b32.xlu2 %v8804_v36, %s6883_s26  ;;  %3822 = vrot.lane.b32.xlu0 %v8843_v16, %s6878_s23 }
 0x5cd   :  { %4306 = vrot.lane.b32.xlu1 %v8843_v16, %s6883_s26 }
 0x5ce   :  { %v8875_v40 = vpop.permute.xlu2 %3699  ;;  %v8877_v49 = vpop.permute.xlu0 %3949 }
 0x5cf   :  { %11466 = vst [vmem:[#allocation119_spill] sm:$0xff] %v8877_v49  ;;  %v8879_v61 = vpop.permute.xlu1 %3465 }
 0x5d4   :  { %3943 = vrot.lane.b32.xlu2 %v8843_v16, %s6879_s24  ;;  %4064 = vrot.lane.b32.xlu0 %v8843_v16, %s6880_s29 }
 0x5d5   :  { %3953 = vrot.lane.b32.xlu1 %v8882_v11, %s6879_s24 }
 0x5d6   :  { %v8890_v7 = vpop.permute.xlu2 %3941  ;;  %v8892_v62 = vpop.permute.xlu0 %3578 }
 0x5d7   :  { %11468 = vst [vmem:[#allocation122_spill] sm:$0xff] %v8890_v7  ;;  %v8894_v46 = vpop.permute.xlu1 %3586 }
 0x5dc   :  { %4185 = vrot.lane.b32.xlu2 %v8843_v16, %s6881_s15  ;;  %3711 = vrot.lane.b32.xlu0 %v8882_v11, %s6877_s22  ;;  %v11524_v16 = vld [vmem:[#allocation11_spill] sm:$0xff] }
 0x5dd   :  { %3715 = vrot.lane.b32.xlu1 %v8897_v42, %s6877_s22 }
 0x5de   :  { %v8905_v20 = vpop.permute.xlu2 %4062  ;;  %v8907_v1 = vpop.permute.xlu0 %3820 }
 0x5df   :  { %11469 = vst [vmem:[#allocation120_spill] sm:$0xff] %v8905_v20  ;;  %v8909_v30 = vpop.permute.xlu1 %3828 }
 0x5e4   :  { %3469 = vrot.lane.b32.xlu2 %v8882_v11, %s6875_s21  ;;  %4195 = vrot.lane.b32.xlu0 %v8882_v11, %s6881_s15 }
 0x5e5   :  { %3844 = vrot.lane.b32.xlu1 %v8912_v44, %s6878_s23 }
 0x5e6   :  { %v8920_v37 = vpop.permute.xlu2 %3467  ;;  %v8922_v29 = vpop.permute.xlu0 %4183 }
 0x5e7   :  { %11470 = vst [vmem:[#allocation123_spill] sm:$0xff] %v8920_v37  ;;  %v8924_v9 = vpop.permute.xlu1 %4070 }
 0x5e8   :  { %11471 = vst [vmem:[#allocation125_spill] sm:$0xff] %v8922_v29 }
 0x5e9   :  { %11472 = vst [vmem:[#allocation29_spill] sm:$0xff] %v8924_v9 }
 0x5ec   :  { %3590 = vrot.lane.b32.xlu2 %v8882_v11, %s6876_s0  ;;  %3473 = vrot.lane.b32.xlu0 %v8897_v42, %s6875_s21 }
 0x5ed   :  { %4078 = vrot.lane.b32.xlu1 %v8897_v42, %s6880_s29 }
 0x5ee   :  { %v8932_v19 = vpop.permute.xlu2 %3830  ;;  %v8934_v54 = vpop.permute.xlu0 %4072 }
 0x5ef   :  { %11473 = vst [vmem:[#allocation124_spill] sm:$0xff] %v8932_v19  ;;  %v8936_v15 = vpop.permute.xlu1 %3457 }
 0x5f0   :  { %11474 = vst [vmem:[#allocation126_spill] sm:$0xff] %v8934_v54 }
 0x5f4   :  { %3832 = vrot.lane.b32.xlu2 %v8882_v11, %s6878_s23  ;;  %3594 = vrot.lane.b32.xlu0 %v8897_v42, %s6876_s0 }
 0x5f5   :  { %4199 = vrot.lane.b32.xlu1 %v8897_v42, %s6881_s15 }
 0x5f6   :  { %v8944_v17 = vpop.permute.xlu2 %4193  ;;  %v8946_v32 = vpop.permute.xlu0 %4314 }
 0x5f7   :  { %11475 = vst [vmem:[#allocation127_spill] sm:$0xff] %v8944_v17  ;;  %v8948_v37 = vpop.permute.xlu1 %4304  ;;  %v3280_v17 = vpop.f32.mrf.mxu0 }
 0x5f8   :  { %11476 = vst [vmem:[#allocation30_spill] sm:$0xff] %v8946_v32  ;;  %v8963_v32 = vadd.f32 %v3280_v17, %v11467_v28 }
 0x5f9   :  { %11477 = vst [vmem:[#allocation128_spill] sm:$0xff] %v8948_v37 }
 0x5fa   :  { %11481 = vst [vmem:[#allocation31_spill] sm:$0xff] %v8963_v32 }
 0x5fc   :  { %4074 = vrot.lane.b32.xlu2 %v8882_v11, %s6880_s29  ;;  %3602 = vrot.lane.b32.xlu0 %v8912_v44, %s6876_s0 }
 0x5fd   :  { %4328 = vrot.lane.b32.xlu1 %v8912_v44, %s6883_s26 }
 0x5fe   :  { %v8956_v54 = vpop.permute.xlu2 %3592  ;;  %v8958_v19 = vpop.permute.xlu0 %3471 }
 0x5ff   :  { %11478 = vst [vmem:[#allocation36_spill] sm:$0xff] %v8956_v54  ;;  %v8960_v18 = vpop.permute.xlu1 %3588 }
 0x600   :  { %11479 = vst [vmem:[#allocation32_spill] sm:$0xff] %v8958_v19  ;;  %v11526_v19 = vld [vmem:[#allocation19_spill] sm:$0xff] }
 0x601   :  { %11480 = vst [vmem:[#allocation41_spill] sm:$0xff] %v8960_v18 }
 0x604   :  { %3481 = vrot.lane.b32.xlu2 %v8912_v44, %s6875_s21  ;;  %3836 = vrot.lane.b32.xlu0 %v8897_v42, %s6878_s23 }
 0x605   :  { %3582 = vrot.lane.b32.xlu1 %v8963_v32, %s6876_s0 }
 0x606   :  { %v8971_v50 = vpop.permute.xlu2 %3713  ;;  %v8973_v56 = vpop.permute.xlu0 %3834 }
 0x607   :  { %11482 = vst [vmem:[#allocation37_spill] sm:$0xff] %v8971_v50  ;;  %v8975_v39 = vpop.permute.xlu1 %3709 }
 0x608   :  { %11483 = vst [vmem:[#allocation42_spill] sm:$0xff] %v8973_v56 }
 0x609   :  { %11484 = vst [vmem:[#allocation39_spill] sm:$0xff] %v8975_v39 }
 0x60c   :  { %3723 = vrot.lane.b32.xlu2 %v8912_v44, %s6877_s22  ;;  %3957 = vrot.lane.b32.xlu0 %v8897_v42, %s6879_s24 }
 0x60d   :  { %3824 = vrot.lane.b32.xlu1 %v8963_v32, %s6878_s23 }
 0x60e   :  { %v8983_v17 = vpop.permute.xlu2 %3721  ;;  %v8985_v18 = vpop.permute.xlu0 %3955 }
 0x60f   :  { %11485 = vst [vmem:[#allocation49_spill] sm:$0xff] %v8983_v17  ;;  %v8987_v55 = vpop.permute.xlu1 %3951  ;;  %v3335_v17 = vpop.f32.mrf.mxu2 }
 0x610   :  { %11486 = vst [vmem:[#allocation45_spill] sm:$0xff] %v8985_v18  ;;  %v9002_v18 = vadd.f32 %v3335_v17, %v11438_v23 }
 0x611   :  { %11487 = vst [vmem:[#allocation40_spill] sm:$0xff] %v8987_v55 }
 0x612   :  { %11491 = vst [vmem:[#allocation105_spill] sm:$0xff] %v9002_v18 }
 0x614   :  { %3965 = vrot.lane.b32.xlu2 %v8912_v44, %s6879_s24  ;;  %4086 = vrot.lane.b32.xlu0 %v8912_v44, %s6880_s29 }
 0x615   :  { %4187 = vrot.lane.b32.xlu1 %v8963_v32, %s6881_s15 }
 0x616   :  { %v8995_v39 = vpop.permute.xlu2 %3963  ;;  %v8997_v56 = vpop.permute.xlu0 %4076 }
 0x617   :  { %11488 = vst [vmem:[#allocation44_spill] sm:$0xff] %v8995_v39  ;;  %v8999_v41 = vpop.permute.xlu1 %3479 }
 0x618   :  { %11489 = vst [vmem:[#allocation50_spill] sm:$0xff] %v8997_v56 }
 0x619   :  { %11490 = vst [vmem:[#allocation51_spill] sm:$0xff] %v8999_v41 }
 0x61c   :  { %4320 = vrot.lane.b32.xlu2 %v8897_v42, %s6883_s26  ;;  %4207 = vrot.lane.b32.xlu0 %v8912_v44, %s6881_s15 }
 0x61d   :  { %3475 = vrot.lane.b32.xlu1 %v9002_v18, %s6875_s21 }
 0x61e   :  { %v9010_v55 = vpop.permute.xlu2 %4084  ;;  %v9012_v39 = vpop.permute.xlu0 %4205 }
 0x61f   :  { %11492 = vst [vmem:[#allocation103_spill] sm:$0xff] %v9010_v55  ;;  %v9014_v56 = vpop.permute.xlu1 %3600 }
 0x620   :  { %11493 = vst [vmem:[#allocation108_spill] sm:$0xff] %v9012_v39 }
 0x621   :  { %11494 = vst [vmem:[#allocation104_spill] sm:$0xff] %v9014_v56  ;;  %v3364_v56 = vpop.f32.mrf.mxu3 }
 0x624   :  { %3461 = vrot.lane.b32.xlu2 %v8963_v32, %s6875_s21  ;;  %3703 = vrot.lane.b32.xlu0 %v8963_v32, %s6877_s22 }
 0x625   :  { %3838 = vrot.lane.b32.xlu1 %v9002_v18, %s6878_s23 }
 0x626   :  { %v9022_v17 = vpop.permute.xlu2 %4326  ;;  %v9024_v41 = vpop.permute.xlu0 %4318 }
 0x627   :  { %11495 = vst [vmem:[#allocation107_spill] sm:$0xff] %v9022_v17  ;;  %v9026_v26 = vpop.permute.xlu1 %3842  ;;  %v9041_v17 = vadd.f32 %v3364_v56, %v11438_v23 }
 0x628   :  { %11496 = vst [vmem:[#allocation106_spill] sm:$0xff] %v9024_v41 }
 0x629   :  { %11497 = vst [vmem:[#allocation110_spill] sm:$0xff] %v9026_v26 }
 0x62a   :  { %11501 = vst [vmem:[#allocation131_spill] sm:$0xff] %v9041_v17 }
 0x62c   :  { %4308 = vrot.lane.b32.xlu2 %v8963_v32, %s6883_s26  ;;  %3945 = vrot.lane.b32.xlu0 %v8963_v32, %s6879_s24 }
 0x62d   :  { %3959 = vrot.lane.b32.xlu1 %v9002_v18, %s6879_s24 }
 0x62e   :  { %v9034_v39 = vpop.permute.xlu2 %3943  ;;  %v9036_v55 = vpop.permute.xlu0 %3459 }
 0x62f   :  { %11498 = vst [vmem:[#allocation111_spill] sm:$0xff] %v9034_v39  ;;  %v9038_v5 = vpop.permute.xlu1 %4197 }
 0x630   :  { %11499 = vst [vmem:[#allocation129_spill] sm:$0xff] %v9036_v55  ;;  %v3367_v55 = vpop.f32.mrf.mxu3 }
 0x631   :  { %11500 = vst [vmem:[#allocation130_spill] sm:$0xff] %v9038_v5 }
 0x634   :  { %3483 = vrot.lane.b32.xlu2 %v9041_v17, %s6875_s21  ;;  %4066 = vrot.lane.b32.xlu0 %v8963_v32, %s6880_s29 }
 0x635   :  { %4080 = vrot.lane.b32.xlu1 %v9002_v18, %s6880_s29 }
 0x636   :  { %v9049_v41 = vpop.permute.xlu2 %4185  ;;  %v9051_v39 = vpop.permute.xlu0 %3701 }
 0x637   :  { %11502 = vst [vmem:[#allocation132_spill] sm:$0xff] %v9049_v41  ;;  %v9053_v26 = vpop.permute.xlu1 %3580 }
 0x638   :  { %11503 = vst [vmem:[#allocation133_spill] sm:$0xff] %v9051_v39 }
 0x639   :  { %11504 = vst [vmem:[#allocation134_spill] sm:$0xff] %v9053_v26 }
 0x63c   :  { %3604 = vrot.lane.b32.xlu2 %v9041_v17, %s6876_s0  ;;  %3596 = vrot.lane.b32.xlu0 %v9002_v18, %s6876_s0 }
 0x63d   :  { %4209 = vrot.lane.b32.xlu1 %v9041_v17, %s6881_s15 }
 0x63e   :  { %v9061_v56 = vpop.permute.xlu2 %3469  ;;  %v9063_v23 = vpop.permute.xlu0 %3822 }
 0x63f   :  { %11505 = vst [vmem:[#allocation135_spill] sm:$0xff] %v9061_v56  ;;  %v9065_v5 = vpop.permute.xlu1 %4306  ;;  %v3338_v56 = vpop.f32.mrf.mxu2 }
 0x640   :  { %11506 = vst [vmem:[#allocation136_spill] sm:$0xff] %v9063_v23  ;;  %v9080_v23 = vadd.f32 %v3338_v56, %v11467_v28 }
 0x641   :  { %11507 = vst [vmem:[#allocation137_spill] sm:$0xff] %v9065_v5 }
 0x644   :  { %3846 = vrot.lane.b32.xlu2 %v9041_v17, %s6878_s23  ;;  %3717 = vrot.lane.b32.xlu0 %v9002_v18, %s6877_s22 }
 0x645   :  { %4322 = vrot.lane.b32.xlu1 %v9002_v18, %s6883_s26 }
 0x646   :  { %v9073_v41 = vpop.permute.xlu2 %3590  ;;  %v9075_v39 = vpop.permute.xlu0 %4064 }
 0x647   :  { %11508 = vst [vmem:[#allocation138_spill] sm:$0xff] %v9073_v41  ;;  %v9077_v26 = vpop.permute.xlu1 %3953 }
 0x648   :  { %11509 = vst [vmem:[#allocation139_spill] sm:$0xff] %v9075_v39 }
 0x649   :  { %11510 = vst [vmem:[#allocation140_spill] sm:$0xff] %v9077_v26 }
 0x64c   :  { %4201 = vrot.lane.b32.xlu2 %v9002_v18, %s6881_s15  ;;  %3725 = vrot.lane.b32.xlu0 %v9041_v17, %s6877_s22  ;;  %v3441_v18 = vadd.f32 %v8691_v14, %v3405_v48 }
 0x64d   :  { %3477 = vrot.lane.b32.xlu1 %v9080_v23, %s6875_s21 }
 0x64e   :  { %v9088_v5 = vpop.permute.xlu2 %3832  ;;  %v9090_v41 = vpop.permute.xlu0 %3711 }
 0x64f   :  { %11511 = vst [vmem:[#allocation141_spill] sm:$0xff] %v9088_v5  ;;  %v3716_v39 = vpop.permute.xlu1 %3715  ;;  %v9105_v5 = vadd.f32 %v3367_v55, %v11467_v28  ;;  %v11517_v28 = vld [vmem:[#allocation7_spill] sm:$0xff] }
 0x650   :  { %11512 = vst [vmem:[#allocation142_spill] sm:$0xff] %v9090_v41 }
 0x651   :  { %11515 = vst [vmem:[#allocation145_spill] sm:$0xff] %v9105_v5 }
 0x654   :  { %3719 = vrot.lane.b32.xlu2 %v9080_v23, %s6877_s22  ;;  %3967 = vrot.lane.b32.xlu0 %v9041_v17, %s6879_s24 }
 0x655   :  { %3598 = vrot.lane.b32.xlu1 %v9080_v23, %s6876_s0 }
 0x656   :  { %v9098_v56 = vpop.permute.xlu2 %4074  ;;  %v9100_v26 = vpop.permute.xlu0 %4195 }
 0x657   :  { %11513 = vst [vmem:[#allocation143_spill] sm:$0xff] %v9098_v56  ;;  %v9102_v38 = vpop.permute.xlu1 %3844 }
 0x658   :  { %11514 = vst [vmem:[#allocation144_spill] sm:$0xff] %v9100_v26  ;;  %v11516_v26 = vld [vmem:[#allocation4_spill] sm:$0xff] }
 0x659   :  { %vm11537_vm8 = vcmp.lt.s32.totalorder %v11516_v26, 113  ;;  %vm11539_vm9 = vcmp.lt.s32.totalorder %v11516_v26, 112  ;;  %vm11552_vm15 = vcmp.lt.s32.totalorder %v11516_v26, 111 }
 0x65a   :  { %vm11547_vm13 = vmmov %vm11537_vm8 }
 0x65b   :  { %vm11548_vm14 = vmmov %vm11537_vm8 }
 0x65c   :  { %3848 = vrot.lane.b32.xlu2 %v9105_v5, %s6878_s23  ;;  %4088 = vrot.lane.b32.xlu0 %v9041_v17, %s6880_s29  ;;  %vm11553_vm2 = vmmov %vm11552_vm15 }
 0x65d   :  { %3606 = vrot.lane.b32.xlu1 %v9105_v5, %s6876_s0  ;;  %vm11555_vm3 = vmmov %vm11539_vm9 }
 0x65e   :  { %v3482_v41 = vpop.permute.xlu2 %3481  ;;  %v3474_v6 = vpop.permute.xlu0 %3473  ;;  %vm11556_vm10 = vmmov %vm11555_vm3 }
 0x65f   :  { %v9113_v56 = vpop.permute.xlu1 %4078  ;;  %v3488_v50 = vsel %vm66_vm0, %v3474_v6, %v3482_v41  ;;  %v3492_v55 = vsel %vm66_vm0, %v8879_v61, %v3474_v6  ;;  %v3500_v6 = vsel %vm66_vm0, %v3482_v41, %v8936_v15  ;;  %v3406_v41 = vmul.f32 %v8665_v63, %v8912_v44  ;;  %vm11598_vm11 = vmmov %vm11537_vm8 }
 0x660   :  { %v3509_v59 = vmul.f32 %v3492_v55, %v11517_v28  ;;  %v3403_v28 = vmul.f32 %v8665_v63, %v8707_v2  ;;  %v3507_v45 = vmul.f32 %v3500_v6, %v11519_v10  ;;  %v3510_v4 = vmul.f32 %v3488_v50, %v11520_v3  ;;  %v11522_v6 = vld [vmem:[#allocation15_spill] sm:$0xff]  ;;  %vm11607_vm12 = vmmov %vm11553_vm2 }
 0x661   :  { %v3404_v44 = vmul.f32 %v8665_v63, %v8694_v13 }
 0x662   :  { %v3545_v54 = vmul.f32 %v8689_v60, %v3509_v59  ;;  %v3496_v59 = vsel %vm66_vm0, %v8936_v15, %v8879_v61  ;;  %v11521_v15 = vld [vmem:[#allocation6_spill] sm:$0xff]  ;;  %v3442_v61 = vadd.f32 %v8691_v14, %v3406_v41  ;;  %v3546_v63 = vmul.f32 %v8689_v60, %v3510_v4 }
 0x663   :  { %v3508_v2 = vmul.f32 %v3496_v59, %v11521_v15  ;;  %v3734_v4 = vsel %vm441_vm4, %v8851_v58, %v3716_v39  ;;  %v11523_v41 = vld [vmem:[#allocation14_spill] sm:$0xff] }
 0x664   :  { %4082 = vrot.lane.b32.xlu2 %v9080_v23, %s6880_s29  ;;  %4330 = vrot.lane.b32.xlu0 %v9041_v17, %s6883_s26  ;;  %v11518_v17 = vld [vmem:[#allocation9_spill] sm:$0xff]  ;;  %v3561_v22 = vadd.f32 %v3545_v54, %v3441_v18  ;;  %v3439_v18 = vadd.f32 %v8691_v14, %v3403_v28  ;;  %v3562_v43 = vadd.f32 %v3546_v63, %v3442_v61 }
 0x665   :  { %3840 = vrot.lane.b32.xlu1 %v9080_v23, %s6878_s23 }
 0x666   :  { %v3724_v52 = vpop.permute.xlu2 %3723  ;;  %v3595_v32 = vpop.permute.xlu0 %3594 }
 0x667   :  { %v9133_v55 = vpop.permute.xlu1 %4199  ;;  %v3613_v42 = vsel %vm261_vm1, %v8894_v46, %v3595_v32  ;;  %v3730_v50 = vsel %vm441_vm4, %v3716_v39, %v3724_v52  ;;  %v3738_v39 = vsel %vm441_vm4, %v8875_v40, %v8851_v58 }
 0x668   :  { %v3630_v57 = vmul.f32 %v3613_v42, %v11518_v17  ;;  %v3742_v42 = vsel %vm441_vm4, %v3724_v52, %v8875_v40  ;;  %v3617_v52 = vsel %vm261_vm1, %v8892_v62, %v8894_v46  ;;  %v3752_v10 = vmul.f32 %v3730_v50, %v11523_v41  ;;  %v11525_v46 = vld [vmem:[#allocation12_spill] sm:$0xff]  ;;  %v11527_v50 = vld [vmem:[#allocation10_spill] sm:$0xff] }
 0x669   :  { %v3749_v59 = vmul.f32 %v3742_v42, %v11522_v6  ;;  %v3440_v42 = vadd.f32 %v8691_v14, %v3404_v44  ;;  %v3544_v6 = vmul.f32 %v8689_v60, %v3508_v2 }
 0x66a   :  { %v3666_v48 = vmul.f32 %v8669_v34, %v3630_v57  ;;  %v3543_v57 = vmul.f32 %v8689_v60, %v3507_v45  ;;  %v3788_v60 = vmul.f32 %v8739_v33, %v3752_v10 }
 0x66b   :  { %v3785_v14 = vmul.f32 %v8739_v33, %v3749_v59 }
 0x66c   :  { %v3682_v17 = vadd.f32 %v3666_v48, %v3561_v22  ;;  %4203 = vrot.lane.b32.xlu2 %v9080_v23, %s6881_s15  ;;  %3485 = vrot.lane.b32.xlu0 %v9105_v5, %s6875_s21  ;;  %v3863_v22 = vsel %vm621_vm5, %v9102_v38, %v8907_v1  ;;  %v3559_v47 = vadd.f32 %v3543_v57, %v3439_v18  ;;  %v11530_v18 = vld [vmem:[#allocation16_spill] sm:$0xff] }
 0x66d   :  { %3961 = vrot.lane.b32.xlu1 %v9080_v23, %s6879_s24 }
 0x66e   :  { %v9173_v54 = vpop.permute.xlu2 %3965  ;;  %v3603_v28 = vpop.permute.xlu0 %3602 }
 0x66f   :  { %v9180_v48 = vpop.permute.xlu1 %4328  ;;  %v3609_v3 = vsel %vm261_vm1, %v3595_v32, %v3603_v28  ;;  %v3621_v45 = vsel %vm261_vm1, %v3603_v28, %v8892_v62  ;;  %v3870_v32 = vmul.f32 %v3863_v22, %v11526_v19  ;;  %v3984_v58 = vsel %vm945_vm6, %v9173_v54, %v8890_v7 }
 0x670   :  { %v3628_v36 = vmul.f32 %v3621_v45, %v11524_v16  ;;  %v3631_v24 = vmul.f32 %v3609_v3, %v11525_v46  ;;  %v3629_v45 = vmul.f32 %v3617_v52, %v11527_v50  ;;  %v11528_v3 = vld [vmem:[#allocation13_spill] sm:$0xff]  ;;  %v3750_v22 = vmul.f32 %v3738_v39, %v11530_v18 }
 0x671   :  { %v3751_v46 = vmul.f32 %v3734_v4, %v11528_v3  ;;  %v3906_v40 = vmul.f32 %v8717_v8, %v3870_v32  ;;  %v11533_v4 = vld [vmem:[#allocation17_spill] sm:$0xff]  ;;  %v3859_v32 = vsel %vm621_vm5, %v8907_v1, %v8909_v30 }
 0x672   :  { %v3664_v62 = vmul.f32 %v8669_v34, %v3628_v36  ;;  %v3667_v28 = vmul.f32 %v8669_v34, %v3631_v24  ;;  %v3560_v24 = vadd.f32 %v3544_v6, %v3440_v42  ;;  %v3665_v52 = vmul.f32 %v8669_v34, %v3629_v45  ;;  %v11536_v45 = vld [vmem:[#allocation20_spill] sm:$0xff] }
 0x673   :  { %v3787_v6 = vmul.f32 %v8739_v33, %v3751_v46  ;;  %v3786_v46 = vmul.f32 %v8739_v33, %v3750_v22 }
 0x674   :  { %v3680_v44 = vadd.f32 %v3664_v62, %v3559_v47  ;;  %v3683_v2 = vadd.f32 %v3667_v28, %v3562_v43  ;;  %4332 = vrot.lane.b32.xlu2 %v9105_v5, %s6883_s26  ;;  %3727 = vrot.lane.b32.xlu0 %v9105_v5, %s6877_s22  ;;  %v11534_v62 = vld [vmem:[#allocation24_spill] sm:$0xff] }
 0x675   :  { %4090 = vrot.lane.b32.xlu1 %v9105_v5, %s6880_s29  ;;  %v3994_v28 = vmul.f32 %v3984_v58, %v11534_v62 }
 0x676   :  { %v3801_v36 = vadd.f32 %v3785_v14, %v3680_v44  ;;  %v9217_v47 = vpop.permute.xlu2 %4320  ;;  %v3804_v43 = vadd.f32 %v3788_v60, %v3683_v2  ;;  %v3837_v10 = vpop.permute.xlu0 %3836  ;;  %v3681_v14 = vadd.f32 %v3665_v52, %v3560_v24  ;;  %v3803_v60 = vadd.f32 %v3787_v6, %v3682_v17  ;;  %v11542_v6 = vld [vmem:[#allocation22_spill] sm:$0xff] }
 0x677   :  { %11529 = vst [vmem:[#allocation4_spill] sm:$0xff] %v9217_v47  ;;  %v9220_v57 = vpop.permute.xlu1 %3582  ;;  %v3851_v61 = vsel %vm621_vm5, %v3837_v10, %v9102_v38  ;;  %v3855_v63 = vsel %vm621_vm5, %v8909_v30, %v3837_v10  ;;  %v11535_v38 = vld [vmem:[#allocation18_spill] sm:$0xff]  ;;  %v3871_v2 = vmul.f32 %v3859_v32, %v11536_v45  ;;  %v4097_v30 = vsel %vm11537_vm8, %v8924_v9, %v9113_v56  ;;  %v11543_v32 = vld [vmem:[#allocation21_spill] sm:$0xff]  ;;  %vm11611_vm8 = vmmov %vm11555_vm3 }
 0x678   :  { %11531 = vst [vmem:[#allocation146_spill] sm:$0xff] %v9220_v57  ;;  %v9230_v59 = vadd.f32 %v3906_v40, %v3801_v36  ;;  %v3872_v42 = vmul.f32 %v3855_v63, %v11533_v4  ;;  %v3873_v39 = vmul.f32 %v3851_v61, %v11535_v38  ;;  %v4030_v1 = vmul.f32 %v8785_v21, %v3994_v28  ;;  %v11541_v63 = vld [vmem:[#allocation25_spill] sm:$0xff] }
 0x679   :  { %v3802_v24 = vadd.f32 %v3786_v46, %v3681_v14  ;;  %v3907_v61 = vmul.f32 %v8717_v8, %v3871_v2  ;;  %v4113_v52 = vmul.f32 %v4097_v30, %v11541_v63  ;;  %v11544_v14 = vld [vmem:[#allocation38_spill] sm:$0xff]  ;;  %v4834_v57 = vld [vmem:[%s10900_s10 + $0xa0] sm:$0xff] }
 0x67a   :  { %11532 = vst [vmem:[#allocation147_spill] sm:$0xff] %v9230_v59  ;;  %v3908_v44 = vmul.f32 %v8717_v8, %v3872_v42  ;;  %v3909_v34 = vmul.f32 %v8717_v8, %v3873_v39  ;;  %v4532_v39 = vld [vmem:[%s10900_s10 + $0x80] sm:$0xff]  ;;  %v6753_v8 = vld [vmem:[%s10903_s7 + $0x118] sm:$0xff] }
 0x67b   :  { %v4149_v46 = vmul.f32 %v8762_v25, %v4113_v52  ;;  %v11550_v52 = vld [vmem:[#allocation28_spill] sm:$0xff] }
 0x67c   :  { %v3924_v40 = vadd.f32 %v3908_v44, %v3803_v60  ;;  %4312 = vrot.lane.b32.xlu2 %v8694_v13, %s6883_s26  ;;  %3969 = vrot.lane.b32.xlu0 %v9105_v5, %s6879_s24  ;;  %v3925_v17 = vadd.f32 %v3909_v34, %v3804_v43  ;;  %v4218_v13 = vsel %vm11539_vm9, %v8863_v0, %v9133_v55  ;;  %vm11645_vm9 = vmmov %vm11598_vm11 }
 0x67d   :  { %4211 = vrot.lane.b32.xlu1 %v9105_v5, %s6881_s15  ;;  %v4234_v60 = vmul.f32 %v4218_v13, %v11544_v14  ;;  %v11579_v5 = vld [vmem:[#allocation113_spill] sm:$0xff] }
 0x67e   :  { %v9254_v33 = vpop.permute.xlu2 %3461  ;;  %v3958_v58 = vpop.permute.xlu0 %3957  ;;  %v4046_v22 = vadd.f32 %v4030_v1, %v3925_v17 }
 0x67f   :  { %11538 = vst [vmem:[#allocation24_spill] sm:$0xff] %v9254_v33  ;;  %v9260_v36 = vpop.permute.xlu1 %3824  ;;  %v3972_v10 = vsel %vm945_vm6, %v3958_v58, %v9173_v54  ;;  %v3976_v43 = vsel %vm945_vm6, %v8877_v49, %v3958_v58  ;;  %v3923_v54 = vadd.f32 %v3907_v61, %v3802_v24  ;;  %v4270_v1 = vmul.f32 %v8779_v27, %v4234_v60 }
 0x680   :  { %11540 = vst [vmem:[#allocation148_spill] sm:$0xff] %v9260_v36  ;;  %v3992_v42 = vmul.f32 %v3976_v43, %v11542_v6  ;;  %v3993_v28 = vmul.f32 %v3972_v10, %v11543_v32  ;;  %v11549_v43 = vld [vmem:[#allocation26_spill] sm:$0xff] }
 0x682   :  { %v4028_v44 = vmul.f32 %v8785_v21, %v3992_v42  ;;  %v4029_v34 = vmul.f32 %v8785_v21, %v3993_v28  ;;  %v11564_v21 = vld [vmem:[#allocation32_spill] sm:$0xff] }
 0x684   :  { %v4044_v2 = vadd.f32 %v4028_v44, %v3923_v54  ;;  %v4045_v30 = vadd.f32 %v4029_v34, %v3924_v40  ;;  %4540 = vperm.xlu2 %6854, %v4532_v39   ;;  %4324 = vrot.lane.b32.xlu0 %v9080_v23, %s6883_s26  ;;  %v4805_v39 = vld [vmem:[%s10900_s10 + $0xe8] sm:$0xff] }
 0x685   :  { %4383 = vperm.xlu1 %6856, %v6753_v8   ;;  %v4335_v8 = vsel %vm11552_vm15, %v9217_v47, %v9180_v48  ;;  %vm11661_vm15 = vmmov %vm11555_vm3 }
 0x686   :  { %v4165_v17 = vadd.f32 %v4149_v46, %v4044_v2  ;;  %v4087_v24 = vpop.permute.xlu0 %4086  ;;  %v9287_v13 = vpop.permute.xlu2 %4308  ;;  %v4347_v46 = vsel %vm11553_vm2, %v9180_v48, %v8948_v37  ;;  %v11562_v37 = vld [vmem:[#allocation64_spill] sm:$0xff] }
 0x687   :  { %v9285_v58 = vpop.permute.xlu1 %4187  ;;  %11546 = vst [vmem:[#allocation150_spill] sm:$0xff] %v9287_v13  ;;  %v4093_v10 = vsel %vm11547_vm13, %v9113_v56, %v4087_v24  ;;  %v4105_v40 = vsel %vm11548_vm14, %v4087_v24, %v8905_v20  ;;  %v4531_v56 = vld [vmem:[%s10900_s10 + $0x78] sm:$0xff]  ;;  %v11557_v24 = vld [vmem:[#allocation43_spill] sm:$0xff]  ;;  %v11563_v13 = vld [vmem:[#allocation93_spill] sm:$0xff] }
 0x688   :  { %11545 = vst [vmem:[#allocation149_spill] sm:$0xff] %v9285_v58  ;;  %v4114_v61 = vmul.f32 %v4093_v10, %v11549_v43  ;;  %v4115_v42 = vmul.f32 %v4105_v40, %v11550_v52  ;;  %v9297_v28 = vadd.f32 %v4270_v1, %v4165_v17  ;;  %v3495_v17 = vsel %vm66_vm0, %v8799_v12, %v8816_v53  ;;  %v11558_v40 = vld [vmem:[#allocation33_spill] sm:$0xff]  ;;  %vm11650_vm13 = vmmov %vm11645_vm9 }
 0x689   :  { %v4356_v10 = vmul.f32 %v4335_v8, %v11557_v24  ;;  %v3616_v8 = vsel %vm261_vm1, %v8853_v31, %v8814_v51  ;;  %v11587_v24 = vld [vmem:[#allocation36_spill] sm:$0xff]  ;;  %vm11652_vm14 = vmmov %vm11555_vm3 }
 0x68a   :  { %11551 = vst [vmem:[#allocation151_spill] sm:$0xff] %v9297_v28  ;;  %v4150_v60 = vmul.f32 %v8762_v25, %v4114_v61  ;;  %v4151_v54 = vmul.f32 %v8762_v25, %v4115_v42  ;;  %v11559_v61 = vld [vmem:[#allocation48_spill] sm:$0xff] }
 0x68b   :  { %v4357_v42 = vmul.f32 %v4347_v46, %v11559_v61  ;;  %v4696_v46 = vld [vmem:[%s10900_s10 + $0x90] sm:$0xff]  ;;  %v4392_v58 = vmul.f32 %v11563_v13, %v4356_v10  ;;  %v11566_v10 = vld [vmem:[#allocation89_spill] sm:$0xff] }
 0x68c   :  { %v4166_v44 = vadd.f32 %v4150_v60, %v4045_v30  ;;  %v4167_v34 = vadd.f32 %v4151_v54, %v4046_v22  ;;  %4809 = vperm.xlu2 %6854, %v4805_v39   ;;  %4316 = vrot.lane.b32.xlu0 %v8882_v11, %s6883_s26  ;;  %v11560_v60 = vld [vmem:[#allocation34_spill] sm:$0xff] }
 0x68d   :  { %4535 = vperm.xlu1 %6856, %v4531_v56   ;;  %v4695_v56 = vld [vmem:[%s10900_s10 + $0x88] sm:$0xff]  ;;  %v4393_v36 = vmul.f32 %v11563_v13, %v4357_v42  ;;  %v11573_v42 = vld [vmem:[#allocation80_spill] sm:$0xff] }
 0x68e   :  { %v4208_v2 = vpop.permute.xlu0 %4207  ;;  %v9332_v39 = vpop.permute.xlu2 %3483 }
 0x68f   :  { %v9317_v1 = vpop.permute.xlu1 %3475  ;;  %v4214_v22 = vsel %vm11555_vm3, %v9133_v55, %v4208_v2  ;;  %v4226_v30 = vsel %vm11556_vm10, %v4208_v2, %v8922_v29  ;;  %v4833_v55 = vld [vmem:[%s10900_s10 + $0x98] sm:$0xff]  ;;  %v11576_v29 = vld [vmem:[#allocation98_spill] sm:$0xff]  ;;  %vm11667_vm3 = vmmov %vm11645_vm9 }
 0x690   :  { %11554 = vst [vmem:[#allocation152_spill] sm:$0xff] %v9317_v1  ;;  %v4235_v48 = vmul.f32 %v4214_v22, %v11558_v40  ;;  %v4236_v54 = vmul.f32 %v4226_v30, %v11560_v60  ;;  %v3504_v22 = vmul.f32 %v3495_v17, %v11521_v15  ;;  %v11561_v30 = vld [vmem:[#allocation109_spill] sm:$0xff]  ;;  %v3491_v17 = vsel %vm66_vm0, %v8816_v53, %v11564_v21  ;;  %vm11668_vm10 = vmmov %vm11667_vm3 }
 0x691   :  { %v3399_v28 = vmul.f32 %v11561_v30, %v8657_v35  ;;  %v3400_v47 = vmul.f32 %v11561_v30, %v11562_v37  ;;  %v9365_v37 = vld [vmem:[%s10906_s4] sm:$0xff] }
 0x692   :  { %v4271_v2 = vmul.f32 %v8779_v27, %v4235_v48  ;;  %v4272_v59 = vmul.f32 %v8779_v27, %v4236_v54  ;;  %v3625_v48 = vmul.f32 %v3616_v8, %v11527_v50  ;;  %11565 = vst [vmem:[#allocation109_spill] sm:$0xff] %v9365_v37  ;;  %v11567_v54 = vld [vmem:[#allocation97_spill] sm:$0xff]  ;;  %v11569_v8 = vld [vmem:[#allocation63_spill] sm:$0xff] }
 0x693   :  { %4428 = vst [vmem:[#allocation1] ss:$4 sm:$0xff] %v9365_v37  ;;  %v9391_v20 = vadd.f32 %v11579_v5, %v3399_v28  ;;  %v11597_v37 = vld [vmem:[#allocation100_spill] sm:$0xff] }
 0x694   :  { %v4287_v25 = vadd.f32 %v4271_v2, %v4166_v44  ;;  %4971 = vperm.xlu2 %6854, %v4833_v55   ;;  %4699 = vperm.xlu0 %6855, %v4695_v56   ;;  %v4288_v35 = vadd.f32 %v4272_v59, %v4167_v34  ;;  %v3401_v44 = vmul.f32 %v11561_v30, %v11566_v10  ;;  %v11568_v56 = vld [vmem:[#allocation115_spill] sm:$0xff] }
 0x695   :  { %4704 = vperm.xlu1 %6856, %v4696_v46   ;;  %v3402_v55 = vmul.f32 %v11561_v30, %v11567_v54  ;;  %v3407_v2 = vmul.f32 %v11569_v8, %v11568_v56  ;;  %v11572_v59 = vld [vmem:[#allocation67_spill] sm:$0xff]  ;;  %v3408_v46 = vmul.f32 %v11569_v8, %v11573_v42 }
 0x696   :  { %v9373_v27 = vpop.permute.xlu0 %3703  ;;  %v9376_v53 = vadd.f32 %v4392_v58, %v4287_v25  ;;  %v3540_v34 = vmul.f32 %v11572_v59, %v3504_v22  ;;  %v9383_v10 = vadd.f32 %v4393_v36, %v4288_v35  ;;  %v11577_v30 = vld [vmem:[#allocation95_spill] sm:$0xff]  ;;  %v3436_v25 = vadd.f32 %v11579_v5, %v3400_v47  ;;  %v11580_v58 = vld [vmem:[#allocation68_spill] sm:$0xff]  ;;  %v5010_v36 = vld [vmem:[%s10900_s10 + $0xc0] sm:$0xff] }
 0x697   :  { %11570 = vst [vmem:[#allocation64_spill] sm:$0xff] %v9373_v27  ;;  %v9381_v13 = vpop.permute.xlu1 %3838  ;;  %v3737_v54 = vsel %vm441_vm4, %v11577_v30, %v11576_v29  ;;  %v11578_v56 = vld [vmem:[#allocation7_spill] sm:$0xff]  ;;  %v3661_v22 = vmul.f32 %v11580_v58, %v3625_v48  ;;  %v3437_v28 = vadd.f32 %v11579_v5, %v3401_v44  ;;  %v9407_v47 = vadd.f32 %v11579_v5, %v3402_v55  ;;  %v9425_v55 = vpop.permute.xlu2 %3604 }
 0x698   :  { %11571 = vst [vmem:[#allocation32_spill] sm:$0xff] %v9376_v53  ;;  %v3505_v0 = vmul.f32 %v3491_v17, %v11578_v56  ;;  %v11581_v53 = vld [vmem:[#allocation105_spill] sm:$0xff]  ;;  %v4806_v35 = vld [vmem:[%s10900_s10 + $0xf0] sm:$0xff]  ;;  %v3556_v7 = vadd.f32 %v3540_v34, %v3436_v25  ;;  %v3746_v49 = vmul.f32 %v3737_v54, %v11530_v18  ;;  %v3612_v44 = vsel %vm261_vm1, %v8814_v51, %v11587_v24 }
 0x699   :  { %11574 = vst [vmem:[#allocation89_spill] sm:$0xff] %v9381_v13  ;;  %v3409_v42 = vmul.f32 %v11569_v8, %v11581_v53  ;;  %v11583_v17 = vld [vmem:[#allocation65_spill] sm:$0xff]  ;;  %v11585_v53 = vld [vmem:[#allocation112_spill] sm:$0xff]  ;;  %v11593_v25 = vld [vmem:[#allocation131_spill] sm:$0xff] }
 0x69a   :  { %11575 = vst [vmem:[#allocation97_spill] sm:$0xff] %v9383_v10  ;;  %v11582_v10 = vld [vmem:[#allocation31_spill] sm:$0xff]  ;;  %v3412_v48 = vmul.f32 %v11583_v17, %v8882_v11  ;;  %v9412_v27 = vadd.f32 %v11585_v53, %v3407_v2  ;;  %v9423_v5 = vadd.f32 %v11585_v53, %v3408_v46  ;;  %v11590_v2 = vld [vmem:[#allocation96_spill] sm:$0xff]  ;;  %v3541_v33 = vmul.f32 %v11572_v59, %v3505_v0  ;;  %v11591_v34 = vld [vmem:[#allocation37_spill] sm:$0xff] }
 0x69b   :  { %v3411_v9 = vmul.f32 %v11583_v17, %v11582_v10  ;;  %11584 = vst [vmem:[#allocation115_spill] sm:$0xff] %v9407_v47  ;;  %v11589_v11 = vld [vmem:[#allocation99_spill] sm:$0xff]  ;;  %v3733_v54 = vsel %vm441_vm4, %v11576_v29, %v11591_v34  ;;  %v3677_v51 = vadd.f32 %v3661_v22, %v3556_v7  ;;  %v9437_v46 = vadd.f32 %v11585_v53, %v3409_v42  ;;  %v4430_v40 = vld.sshfl [vmem:[#allocation1 + $0x8] sm:$0xff pattern:$0x73625140]  ;;  %v11596_v0 = vld [vmem:[#allocation88_spill] sm:$0xff] }
 0x69c   :  { %11586 = vst [vmem:[#allocation63_spill] sm:$0xff] %v9412_v27  ;;  %v3858_v10 = vsel %vm621_vm5, %v11590_v2, %v11589_v11  ;;  %5020 = vperm.xlu2 %6854, %v5010_v36   ;;  %4814 = vperm.xlu0 %6855, %v4806_v35   ;;  %v3410_v61 = vmul.f32 %v11569_v8, %v11593_v25  ;;  %v11594_v13 = vld [vmem:[#allocation66_spill] sm:$0xff]  ;;  %v11599_v29 = vld [vmem:[#allocation101_spill] sm:$0xff] }
 0x69d   :  { %11588 = vst [vmem:[#allocation67_spill] sm:$0xff] %v9425_v55  ;;  %4976 = vperm.xlu1 %6856, %v4834_v57   ;;  %v9442_v56 = vadd.f32 %v11594_v13, %v3411_v9  ;;  %v4100_v27 = vsel %vm11598_vm11, %v11597_v37, %v11596_v0  ;;  %v11600_v36 = vld [vmem:[#allocation117_spill] sm:$0xff]  ;;  %v9454_v35 = vadd.f32 %v11594_v13, %v3412_v48  ;;  %v11604_v8 = vld [vmem:[#allocation62_spill] sm:$0xff]  ;;  %vm11674_vm11 = vmmov %vm11611_vm8 }
 0x69e   :  { %11592 = vst [vmem:[#allocation80_spill] sm:$0xff] %v9437_v46  ;;  %v3979_v7 = vsel %vm945_vm6, %v11600_v36, %v11599_v29  ;;  %v11601_v22 = vld [vmem:[#allocation9_spill] sm:$0xff]  ;;  %v9456_v57 = vpop.permute.xlu0 %3945  ;;  %4475 = vmatpush.xpose.msrb.mxu1 %v4430_v40  ;;  %v3867_v9 = vmul.f32 %v3858_v10, %v11536_v45  ;;  %v3782_v25 = vmul.f32 %v11604_v8, %v3746_v49  ;;  %v11606_v46 = vld [vmem:[#allocation116_spill] sm:$0xff]  ;;  %v11612_v40 = vld [vmem:[#allocation42_spill] sm:$0xff] }
 0x69f   :  { %11595 = vst [vmem:[#allocation98_spill] sm:$0xff] %v9442_v56  ;;  %v3626_v42 = vmul.f32 %v3612_v44, %v11601_v22  ;;  %v11605_v56 = vld [vmem:[#allocation92_spill] sm:$0xff]  ;;  %v3747_v60 = vmul.f32 %v3733_v54, %v11528_v3  ;;  %v9465_v52 = vpop.permute.xlu1 %3959  ;;  %v11609_v44 = vld [vmem:[#allocation102_spill] sm:$0xff]  ;;  %v3854_v49 = vsel %vm621_vm5, %v11589_v11, %v11612_v40  ;;  %v11613_v10 = vld [vmem:[#allocation123_spill] sm:$0xff]  ;;  %v9482_v43 = vadd.f32 %v11585_v53, %v3410_v61 }
 0x6a0   :  { %11602 = vst [vmem:[#allocation95_spill] sm:$0xff] %v9454_v35  ;;  %v4342_v1 = vsel %vm11607_vm12, %v11606_v46, %v11605_v56  ;;  %v11610_v22 = vld [vmem:[#allocation118_spill] sm:$0xff]  ;;  %v11614_v13 = vld [vmem:[#allocation129_spill] sm:$0xff]  ;;  %v11615_v46 = vld [vmem:[#allocation27_spill] sm:$0xff]  ;;  %v3798_v38 = vadd.f32 %v3782_v25, %v3677_v51 }
 0x6a1   :  { %11603 = vst [vmem:[#allocation113_spill] sm:$0xff] %v9456_v57  ;;  %v4221_v48 = vsel %vm11611_vm8, %v11610_v22, %v11609_v44  ;;  %v3557_v57 = vadd.f32 %v3541_v33, %v3437_v28  ;;  %v3497_v35 = vsel %vm66_vm0, %v11614_v13, %v11613_v10  ;;  %v4108_v54 = vmul.f32 %v4100_v27, %v11615_v46  ;;  %v11616_v3 = vld [vmem:[#allocation23_spill] sm:$0xff]  ;;  %v5011_v33 = vld [vmem:[%s10900_s10 + $0xc8] sm:$0xff]  ;;  %v11619_v22 = vld [vmem:[#allocation45_spill] sm:$0xff] }
 0x6a2   :  { %11608 = vst [vmem:[#allocation68_spill] sm:$0xff] %v9465_v52  ;;  %v3987_v47 = vmul.f32 %v3979_v7, %v11616_v3  ;;  %v4836_v28 = vld [vmem:[%s10900_s10 + $0xb0] sm:$0xff]  ;;  %v3662_v10 = vmul.f32 %v11580_v58, %v3626_v42  ;;  %v3975_v27 = vsel %vm945_vm6, %v11599_v29, %v11619_v22  ;;  %v11620_v51 = vld [vmem:[#allocation41_spill] sm:$0xff]  ;;  %v11621_v61 = vld [vmem:[#allocation134_spill] sm:$0xff]  ;;  %v3868_v42 = vmul.f32 %v3854_v49, %v11533_v4 }
 0x6a3   :  { %11617 = vst [vmem:[#allocation105_spill] sm:$0xff] %v9482_v43  ;;  %v11618_v11 = vld [vmem:[#allocation47_spill] sm:$0xff]  ;;  %v3618_v53 = vsel %vm261_vm1, %v11621_v61, %v11620_v51  ;;  %v4835_v7 = vld [vmem:[%s10900_s10 + $0xa8] sm:$0xff]  ;;  %v11623_v46 = vld [vmem:[#allocation73_spill] sm:$0xff]  ;;  %v9510_v51 = vmul.f32 %v11583_v17, %v9080_v23 }
 0x6a4   :  { %v4350_v40 = vmul.f32 %v4342_v1, %v11618_v11  ;;  %v11622_v25 = vld [vmem:[#allocation35_spill] sm:$0xff]  ;;  %v3783_v1 = vmul.f32 %v11604_v8, %v3747_v60  ;;  %v3512_v11 = vmul.f32 %v3497_v35, %v11521_v15  ;;  %v3903_v3 = vmul.f32 %v11623_v46, %v3867_v9  ;;  %5025 = vperm.xlu2 %6854, %v5011_v33   ;;  %v11625_v55 = vld [vmem:[#allocation49_spill] sm:$0xff]  ;;  %v9522_v9 = vpop.permute.xlu2 %3846  ;;  %v11626_v49 = vld [vmem:[#allocation78_spill] sm:$0xff] }
 0x6a5   :  { %v4229_v43 = vmul.f32 %v4221_v48, %v11622_v25  ;;  %v3678_v29 = vadd.f32 %v3662_v10, %v3557_v57  ;;  %4994 = vperm.xlu0 %6855, %v4836_v28   ;;  %11624 = vst [vmem:[#allocation31_spill] sm:$0xff] %v9510_v51  ;;  %v3729_v48 = vsel %vm441_vm4, %v11591_v34, %v11625_v55  ;;  %v11628_v10 = vld [vmem:[#allocation69_spill] sm:$0xff]  ;;  %v11630_v28 = vld [vmem:[#allocation87_spill] sm:$0xff]  ;;  %vm11677_vm12 = vmmov %vm11553_vm2 }
 0x6a6   :  { %v3741_v60 = vsel %vm441_vm4, %v11625_v55, %v11577_v30  ;;  %v3988_v35 = vmul.f32 %v3975_v27, %v11542_v6  ;;  %v3633_v57 = vmul.f32 %v3618_v53, %v11527_v50  ;;  %4989 = vperm.xlu1 %6856, %v4835_v7   ;;  %v9525_v23 = vmul.f32 %v11626_v49, %v4108_v54  ;;  %v9533_v17 = vpop.permute.xlu0 %4066  ;;  %v11633_v30 = vld [vmem:[#allocation79_spill] sm:$0xff]  ;;  %v11635_v50 = vld [vmem:[#allocation114_spill] sm:$0xff]  ;;  %vm11689_vm8 = vmmov %vm11667_vm3 }
 0x6a7   :  { %v9528_v33 = vmul.f32 %v11628_v10, %v3987_v47  ;;  %v9531_v34 = vmul.f32 %v11630_v28, %v4350_v40  ;;  %v3919_v51 = vadd.f32 %v3903_v3, %v3798_v38  ;;  %11632 = vst [vmem:[#allocation96_spill] sm:$0xff] %v9533_v17  ;;  %v9536_v55 = vmul.f32 %v11633_v30, %v4229_v43  ;;  %v9540_v15 = vpop.permute.xlu1 %4080  ;;  %v11636_v54 = vld [vmem:[#allocation15_spill] sm:$0xff]  ;;  %v11638_v40 = vld [vmem:[#allocation133_spill] sm:$0xff]  ;;  %v11639_v38 = vld [vmem:[#allocation124_spill] sm:$0xff] }
 0x6a8   :  { %11627 = vst [vmem:[#allocation112_spill] sm:$0xff] %v9525_v23  ;;  %v3799_v27 = vadd.f32 %v3783_v1, %v3678_v29  ;;  %v3904_v53 = vmul.f32 %v11623_v46, %v3868_v42  ;;  %v3548_v7 = vmul.f32 %v11635_v50, %v3512_v11  ;;  %v3745_v4 = vmul.f32 %v3741_v60, %v11636_v54  ;;  %v11637_v25 = vld [vmem:[#allocation39_spill] sm:$0xff]  ;;  %v11640_v17 = vld [vmem:[#allocation136_spill] sm:$0xff]  ;;  %v11643_v60 = vld [vmem:[#allocation61_spill] sm:$0xff] }
 0x6a9   :  { %11629 = vst [vmem:[#allocation36_spill] sm:$0xff] %v9528_v33  ;;  %v3748_v47 = vmul.f32 %v3729_v48, %v11523_v41  ;;  %v3739_v3 = vsel %vm441_vm4, %v11638_v40, %v11637_v25  ;;  %v3860_v43 = vsel %vm621_vm5, %v11640_v17, %v11639_v38  ;;  %v4024_v1 = vmul.f32 %v11628_v10, %v3988_v35  ;;  %v11641_v11 = vld [vmem:[#allocation51_spill] sm:$0xff]  ;;  %v11642_v29 = vld [vmem:[#allocation44_spill] sm:$0xff]  ;;  %v11644_v38 = vld [vmem:[#allocation50_spill] sm:$0xff] }
 0x6aa   :  { %11631 = vst [vmem:[#allocation99_spill] sm:$0xff] %v9531_v34  ;;  %v3499_v42 = vsel %vm66_vm0, %v11641_v11, %v8799_v12  ;;  %v3971_v48 = vsel %vm945_vm6, %v11619_v22, %v11642_v29  ;;  %v3669_v34 = vmul.f32 %v11643_v60, %v3633_v57  ;;  %v5012_v35 = vld [vmem:[%s10900_s10 + $0xd0] sm:$0xff]  ;;  %v3487_v12 = vsel %vm66_vm0, %v11564_v21, %v11641_v11  ;;  %v11646_v41 = vld [vmem:[#allocation40_spill] sm:$0xff]  ;;  %v11648_v33 = vld [vmem:[#allocation5_spill] sm:$0xff] }
 0x6ab   :  { %11634 = vst [vmem:[#allocation37_spill] sm:$0xff] %v9536_v55  ;;  %v5282_v55 = vld [vmem:[%s10900_s10 + $0x100] sm:$0xff]  ;;  %v3983_v22 = vsel %vm945_vm6, %v11642_v29, %v11600_v36  ;;  %v4096_v57 = vsel %vm11645_vm9, %v11596_v0, %v11644_v38  ;;  %v3977_v23 = vsel %vm945_vm6, %v11646_v41, %v9465_v52  ;;  %v5009_v25 = vld [vmem:[%s10900_s10 + $0xb8] sm:$0xff]  ;;  %v3564_v36 = vadd.f32 %v3548_v7, %v9423_v5  ;;  %v11649_v52 = vld [vmem:[#allocation126_spill] sm:$0xff] }
 0x6ac   :  { %v11647_v21 = vld [vmem:[#allocation104_spill] sm:$0xff]  ;;  %v3754_v29 = vmul.f32 %v3739_v3, %v11530_v18  ;;  %v3875_v0 = vmul.f32 %v3860_v43, %v11536_v45  ;;  %v3503_v54 = vmul.f32 %v3499_v42, %v11648_v33  ;;  %v3989_v40 = vmul.f32 %v3971_v48, %v11543_v32  ;;  %5290 = vperm.xlu2 %6854, %v5282_v55   ;;  %v11651_v48 = vld [vmem:[#allocation130_spill] sm:$0xff]  ;;  %vm11700_vm9 = vmmov %vm11674_vm11 }
 0x6ad   :  { %v3620_v11 = vsel %vm261_vm1, %v11647_v21, %v8853_v31  ;;  %v4098_v60 = vsel %vm11650_vm13, %v11649_v52, %v9540_v15  ;;  %5030 = vperm.xlu0 %6855, %v5012_v35   ;;  %v3920_v41 = vadd.f32 %v3904_v53, %v3799_v27  ;;  %v9601_v31 = vmul.f32 %v11604_v8, %v3745_v4  ;;  %v11653_v27 = vld [vmem:[#allocation8_spill] sm:$0xff]  ;;  %v11654_v53 = vld [vmem:[#allocation70_spill] sm:$0xff]  ;;  %vm11703_vm13 = vmmov %vm11553_vm2 }
 0x6ae   :  { %v3685_v5 = vadd.f32 %v3669_v34, %v3564_v36  ;;  %v3996_v7 = vmul.f32 %v3977_v23, %v11542_v6  ;;  %5015 = vperm.xlu1 %6856, %v5009_v25   ;;  %v3990_v3 = vmul.f32 %v3983_v22, %v11534_v62  ;;  %v4109_v43 = vmul.f32 %v4096_v57, %v11541_v63  ;;  %v9611_v35 = vpop.permute.xlu0 %3596  ;;  %v11655_v36 = vld [vmem:[#allocation71_spill] sm:$0xff]  ;;  %v9617_v22 = vpop.permute.xlu2 %4201 }
 0x6af   :  { %v3624_v42 = vmul.f32 %v3620_v11, %v11524_v16  ;;  %v4217_v55 = vsel %vm11652_vm14, %v11609_v44, %v11651_v48  ;;  %v3506_v4 = vmul.f32 %v3487_v12, %v11653_v27  ;;  %v3790_v34 = vmul.f32 %v11654_v53, %v3754_v29  ;;  %11656 = vst [vmem:[#allocation131_spill] sm:$0xff] %v9617_v22  ;;  %v9619_v57 = vpop.permute.xlu1 %4209  ;;  %v4429_v11 = vld.sshfl [vmem:[#allocation1] sm:$0xff pattern:$0x73625140]  ;;  %v11658_v12 = vld [vmem:[#allocation110_spill] sm:$0xff]  ;;  %vm11713_vm14 = vmmov %vm11553_vm2 }
 0x6b0   :  { %v3911_v23 = vmul.f32 %v11655_v36, %v3875_v0  ;;  %v4117_v25 = vmul.f32 %v4098_v60, %v11541_v63  ;;  %11657 = vst [vmem:[#allocation88_spill] sm:$0xff] %v9619_v57  ;;  %v9622_v6 = vmul.f32 %v11604_v8, %v3748_v47  ;;  %v4040_v45 = vadd.f32 %v4024_v1, %v3919_v51  ;;  %v11659_v63 = vld [vmem:[#allocation75_spill] sm:$0xff]  ;;  %v5172_v8 = vld [vmem:[%s10900_s10 + $0xe0] sm:$0xff]  ;;  %v5171_v1 = vld [vmem:[%s10900_s10 + $0xd8] sm:$0xff] }
 0x6b1   :  { %v3539_v44 = vmul.f32 %v11572_v59, %v3503_v54  ;;  %v4025_v18 = vmul.f32 %v11628_v10, %v3989_v40  ;;  %4452 = vmatpush.xpose.msrb.mxu0 %v4429_v11  ;;  %v3862_v29 = vsel %vm621_vm5, %v11658_v12, %v11590_v2  ;;  %v4230_v60 = vmul.f32 %v4217_v55, %v11544_v14  ;;  %v11660_v40 = vld [vmem:[#allocation127_spill] sm:$0xff]  ;;  %v11664_v11 = vld [vmem:[#allocation106_spill] sm:$0xff] }
 0x6b2   :  { %v3806_v0 = vadd.f32 %v3790_v34, %v3685_v5  ;;  %v4032_v57 = vmul.f32 %v11659_v63, %v3996_v7  ;;  %v9636_v51 = vmul.f32 %v11628_v10, %v3990_v3  ;;  %v4145_v54 = vmul.f32 %v11626_v49, %v4109_v43  ;;  %v11662_v3 = vld [vmem:[#allocation72_spill] sm:$0xff] }
 0x6b3   :  { %v3660_v47 = vmul.f32 %v11580_v58, %v3624_v42  ;;  %v4219_v2 = vsel %vm11661_vm15, %v11660_v40, %v9617_v22  ;;  %v3542_v5 = vmul.f32 %v11572_v59, %v3506_v4  ;;  %v3608_v10 = vsel %vm261_vm1, %v11587_v24, %v11647_v21  ;;  %vm11723_vm15 = vmmov %vm11700_vm9 }
 0x6b4   :  { %v3927_v7 = vadd.f32 %v3911_v23, %v3806_v0  ;;  %v4153_v43 = vmul.f32 %v11662_v3, %v4117_v25  ;;  %v3555_v42 = vadd.f32 %v3539_v44, %v9391_v20  ;;  %v9654_v55 = vadd.f32 %v4025_v18, %v3920_v41  ;;  %v11665_v18 = vld [vmem:[#allocation12_spill] sm:$0xff]  ;;  %v11666_v25 = vld [vmem:[#allocation103_spill] sm:$0xff] }
 0x6b5   :  { %v3866_v34 = vmul.f32 %v3862_v29, %v11526_v19  ;;  %v4338_v22 = vsel %vm11553_vm2, %v11605_v56, %v11664_v11  ;;  %5180 = vperm.xlu0 %6855, %v5172_v8   ;;  %v4266_v59 = vmul.f32 %v11633_v30, %v4230_v60  ;;  %v3501_v24 = vsel %vm66_vm0, %v9332_v39, %v11614_v13  ;;  %v11670_v60 = vld [vmem:[#allocation67_spill] sm:$0xff]  ;;  %v11684_v11 = vld [vmem:[#allocation34_spill] sm:$0xff]  ;;  %vm11725_vm2 = vmmov %vm11667_vm3 }
 0x6b6   :  { %11663 = vst [vmem:[#allocation100_spill] sm:$0xff] %v9654_v55  ;;  %v4048_v21 = vadd.f32 %v4032_v57, %v3927_v7  ;;  %v4238_v20 = vmul.f32 %v4219_v2, %v11544_v14  ;;  %5175 = vperm.xlu1 %6856, %v5171_v1   ;;  %v4161_v41 = vadd.f32 %v4145_v54, %v4040_v45  ;;  %v9672_v44 = vpop.permute.xlu0 %3717  ;;  %v11669_v57 = vld [vmem:[#allocation46_spill] sm:$0xff]  ;;  %v11683_v55 = vld [vmem:[#allocation28_spill] sm:$0xff] }
 0x6b7   :  { %v3627_v4 = vmul.f32 %v3608_v10, %v11665_v18  ;;  %v3676_v23 = vadd.f32 %v3660_v47, %v3555_v42  ;;  %v4092_v56 = vsel %vm11667_vm3, %v11644_v38, %v11666_v25  ;;  %v4104_v13 = vsel %vm11668_vm10, %v11666_v25, %v11597_v37  ;;  %v9683_v8 = vpop.permute.xlu1 %4322  ;;  %v11672_v54 = vld [vmem:[#allocation118_spill] sm:$0xff]  ;;  %v11673_v47 = vld [vmem:[#allocation108_spill] sm:$0xff]  ;;  %vm11726_vm3 = vmmov %vm11725_vm2 }
 0x6b8   :  { %v4351_v29 = vmul.f32 %v4338_v22, %v11669_v57  ;;  %v3622_v45 = vsel %vm261_vm1, %v11670_v60, %v11621_v61  ;;  %v4169_v0 = vadd.f32 %v4153_v43, %v4048_v21  ;;  %11671 = vst [vmem:[#allocation101_spill] sm:$0xff] %v9683_v8  ;;  %v4225_v38 = vsel %vm11674_vm11, %v11673_v47, %v11672_v54  ;;  %v11675_v2 = vld [vmem:[#allocation42_spill] sm:$0xff]  ;;  %v11678_v43 = vld [vmem:[#allocation84_spill] sm:$0xff]  ;;  %vm11731_vm10 = vmmov %vm11700_vm9 }
 0x6b9   :  { %v3850_v37 = vsel %vm621_vm5, %v11675_v2, %v11658_v12  ;;  %v3511_v22 = vmul.f32 %v3501_v24, %v11648_v33  ;;  %v11676_v1 = vld [vmem:[#allocation30_spill] sm:$0xff]  ;;  %v3902_v10 = vmul.f32 %v11623_v46, %v3866_v34  ;;  %v4282_v7 = vadd.f32 %v4266_v59, %v4161_v41  ;;  %v5281_v25 = vld [vmem:[%s10900_s10 + $0xf8] sm:$0xff]  ;;  %vm11733_vm11 = vmmov %vm11677_vm12 }
 0x6ba   :  { %v4340_v61 = vsel %vm11677_vm12, %v11676_v1, %v9683_v8  ;;  %v4274_v42 = vmul.f32 %v11678_v43, %v4238_v20  ;;  %v3663_v12 = vmul.f32 %v11580_v58, %v3627_v4  ;;  %v11679_v54 = vld [vmem:[#allocation26_spill] sm:$0xff]  ;;  %v3797_v2 = vadd.f32 %v9601_v31, %v3676_v23  ;;  %v11681_v20 = vld [vmem:[#allocation81_spill] sm:$0xff]  ;;  %vm11734_vm12 = vmmov %vm11700_vm9 }
 0x6bb   :  { %v4359_v21 = vmul.f32 %v4340_v61, %v11669_v57  ;;  %v4110_v24 = vmul.f32 %v4092_v56, %v11679_v54  ;;  %v3632_v14 = vmul.f32 %v3622_v45, %v11524_v16  ;;  %v11680_v33 = vld [vmem:[#allocation18_spill] sm:$0xff]  ;;  %v4387_v34 = vmul.f32 %v11630_v28, %v4351_v29  ;;  %v11682_v61 = vld [vmem:[#allocation115_spill] sm:$0xff] }
 0x6bc   :  { %v3869_v8 = vmul.f32 %v3850_v37, %v11680_v33  ;;  %v4290_v59 = vadd.f32 %v4274_v42, %v4169_v0  ;;  %v3558_v57 = vadd.f32 %v3542_v5, %v11682_v61  ;;  %v9713_v30 = vmul.f32 %v4104_v13, %v11683_v55  ;;  %v11685_v13 = vld [vmem:[#allocation40_spill] sm:$0xff]  ;;  %v11686_v0 = vld [vmem:[#allocation111_spill] sm:$0xff]  ;;  %v11687_v37 = vld [vmem:[#allocation61_spill] sm:$0xff] }
 0x6bd   :  { %v4395_v41 = vmul.f32 %v11681_v20, %v4359_v21  ;;  %v9716_v58 = vmul.f32 %v4225_v38, %v11684_v11  ;;  %v3547_v4 = vmul.f32 %v11635_v50, %v3511_v22  ;;  %5285 = vperm.xlu0 %6855, %v5281_v25   ;;  %v3918_v31 = vadd.f32 %v3902_v10, %v3797_v2  ;;  %v4431_v10 = vld.sshfl [vmem:[#allocation1 + $0x10] sm:$0xff pattern:$0x73625140] }
 0x6be   :  { %v4403_v23 = vadd.f32 %v4387_v34, %v4282_v7  ;;  %v3864_v56 = vsel %vm621_vm5, %v9522_v9, %v11640_v17  ;;  %v3679_v45 = vadd.f32 %v3663_v12, %v3558_v57  ;;  %v9724_v5 = vmul.f32 %v11626_v49, %v4110_v24  ;;  %v3726_v42 = vpop.permute.xlu0 %3725  ;;  %v4432_v7 = vld.sshfl [vmem:[#allocation1 + $0x18] sm:$0xff pattern:$0x73625140]  ;;  %v11688_v25 = vld [vmem:[#allocation139_spill] sm:$0xff]  ;;  %v11691_v24 = vld [vmem:[#allocation133_spill] sm:$0xff]  ;;  %4498 = vmatpush.xpose.msrb.mxu2 %v4431_v10 }
 0x6bf   :  { %v4411_v29 = vadd.f32 %v4395_v41, %v4290_v59  ;;  %v3981_v38 = vsel %vm945_vm6, %v11686_v0, %v11685_v13  ;;  %v3668_v22 = vmul.f32 %v11687_v37, %v3632_v14  ;;  %v3905_v21 = vmul.f32 %v11623_v46, %v3869_v8  ;;  %v9738_v12 = vpop.permute.xlu1 %3477  ;;  %v11692_v14 = vld [vmem:[#allocation152_spill] sm:$0xff]  ;;  %v11693_v34 = vld [vmem:[#allocation123_spill] sm:$0xff]  ;;  %4521 = vmatpush.xpose.msrb.mxu3 %v4432_v7  ;;  %v11701_v7 = vld [vmem:[#allocation41_spill] sm:$0xff] }
 0x6c0   :  { %v4102_v17 = vsel %vm11689_vm8, %v11688_v25, %v11649_v52  ;;  %v3743_v2 = vsel %vm441_vm4, %v3726_v42, %v11691_v24  ;;  %v3493_v59 = vsel %vm66_vm0, %v11693_v34, %v11692_v14  ;;  %v11694_v46 = vld [vmem:[#allocation63_spill] sm:$0xff]  ;;  %v3874_v41 = vmul.f32 %v3864_v56, %v11526_v19  ;;  %v11698_v24 = vld [vmem:[#allocation109_spill] sm:$0xff]  ;;  %vm11744_vm8 = vmmov %vm11733_vm11 }
 0x6c1   :  { %v9736_v57 = vmul.f32 %v4411_v29, %v4403_v23  ;;  %v3563_v8 = vadd.f32 %v3547_v4, %v11694_v46  ;;  %v11695_v61 = vld [vmem:[#allocation15_spill] sm:$0xff]  ;;  %v11696_v23 = vld [vmem:[#allocation36_spill] sm:$0xff]  ;;  %v3489_v10 = vsel %vm66_vm0, %v11692_v14, %v9332_v39  ;;  %4572 = vst [vmem:[#allocation1] ss:$4 sm:$0xff] %v11698_v24  ;;  %v11702_v34 = vld [vmem:[#allocation137_spill] sm:$0xff] }
 0x6c2   :  { %v3753_v52 = vmul.f32 %v3743_v2, %v11695_v61  ;;  %v4039_v29 = vadd.f32 %v11696_v23, %v3918_v31  ;;  %v11697_v13 = vld [vmem:[#allocation23_spill] sm:$0xff]  ;;  %v11699_v4 = vld [vmem:[#allocation132_spill] sm:$0xff]  ;;  %v3614_v31 = vsel %vm261_vm1, %v11701_v7, %v9611_v35  ;;  %v4344_v39 = vsel %vm11703_vm13, %v11702_v34, %v11676_v1  ;;  %v9779_v7 = vpop.permute.xlu2 %3719  ;;  %vm11753_vm13 = vmmov %vm11725_vm2 }
 0x6c3   :  { %11690 = vst [vmem:[#allocation117_spill] sm:$0xff] %v9736_v57  ;;  %v3995_v16 = vmul.f32 %v3981_v38, %v11697_v13  ;;  %4476 = vmatmul.f32.vlgmr.msrb.gmra.mxu1 %v9736_v57  ;;  %v4223_v56 = vsel %vm11700_vm9, %v11699_v4, %v11660_v40  ;;  %v3684_v2 = vadd.f32 %v3668_v22, %v3563_v8  ;;  %v11704_v14 = vld [vmem:[#allocation27_spill] sm:$0xff]  ;;  %vm11746_vm9 = vmmov %vm11744_vm8 }
 0x6c4   :  { %v3789_v38 = vmul.f32 %v11654_v53, %v3753_v52  ;;  %v4116_v46 = vmul.f32 %v4102_v17, %v11704_v14  ;;  %v11705_v23 = vld [vmem:[#allocation7_spill] sm:$0xff]  ;;  %v3610_v40 = vsel %vm261_vm1, %v9611_v35, %v11670_v60  ;;  %v3514_v22 = vmul.f32 %v3489_v10, %v11653_v27  ;;  %11706 = vst [vmem:[#allocation62_spill] sm:$0xff] %v9779_v7  ;;  %v11708_v17 = vld [vmem:[#allocation112_spill] sm:$0xff]  ;;  %v11710_v14 = vld [vmem:[#allocation9_spill] sm:$0xff] }
 0x6c5   :  { %v3513_v24 = vmul.f32 %v3493_v59, %v11705_v23  ;;  %v3910_v8 = vmul.f32 %v11655_v36, %v3874_v41  ;;  %v11707_v52 = vld [vmem:[#allocation39_spill] sm:$0xff]  ;;  %v4160_v61 = vadd.f32 %v11708_v17, %v4039_v29  ;;  %v3634_v13 = vmul.f32 %v3614_v31, %v11710_v14  ;;  %v11715_v17 = vld [vmem:[#allocation13_spill] sm:$0xff]  ;;  %v11720_v14 = vld [vmem:[#allocation68_spill] sm:$0xff] }
 0x6c6   :  { %v3735_v1 = vsel %vm441_vm4, %v11707_v52, %v9672_v44  ;;  %v3805_v57 = vadd.f32 %v3789_v38, %v3684_v2  ;;  %v11709_v59 = vld [vmem:[#allocation35_spill] sm:$0xff]  ;;  %v3731_v35 = vsel %vm441_vm4, %v9672_v44, %v3726_v42  ;;  %v3800_v60 = vadd.f32 %v9622_v6, %v3679_v45  ;;  %v3968_v27 = vpop.permute.xlu0 %3967  ;;  %v11711_v52 = vld [vmem:[#allocation116_spill] sm:$0xff]  ;;  %v11716_v45 = vld [vmem:[#allocation14_spill] sm:$0xff] }
 0x6c7   :  { %v4237_v19 = vmul.f32 %v4223_v56, %v11709_v59  ;;  %v4031_v41 = vmul.f32 %v11659_v63, %v3995_v16  ;;  %v3635_v10 = vmul.f32 %v3610_v40, %v11665_v18  ;;  %v11712_v2 = vld [vmem:[#allocation107_spill] sm:$0xff]  ;;  %v3549_v31 = vmul.f32 %v11635_v50, %v3513_v24  ;;  %v9801_v44 = vpop.permute.xlu1 %3598  ;;  %v11719_v24 = vld [vmem:[#allocation124_spill] sm:$0xff] }
 0x6c8   :  { %v3926_v7 = vadd.f32 %v3910_v8, %v3805_v57  ;;  %v4346_v29 = vsel %vm11713_vm14, %v11712_v2, %v11711_v52  ;;  %v11714_v56 = vld [vmem:[#allocation47_spill] sm:$0xff]  ;;  %v3755_v59 = vmul.f32 %v3735_v1, %v11715_v17  ;;  %v4152_v6 = vmul.f32 %v11662_v3, %v4116_v46  ;;  %v11717_v8 = vld [vmem:[#allocation37_spill] sm:$0xff]  ;;  %vm11763_vm14 = vmmov %vm11731_vm10 }
 0x6c9   :  { %v4358_v38 = vmul.f32 %v4344_v39, %v11714_v56  ;;  %v3550_v16 = vmul.f32 %v11635_v50, %v3514_v22  ;;  %v3756_v42 = vmul.f32 %v3731_v35, %v11716_v45  ;;  %v3921_v40 = vadd.f32 %v3905_v21, %v3800_v60  ;;  %v11718_v56 = vld [vmem:[#allocation89_spill] sm:$0xff]  ;;  %v11721_v22 = vld [vmem:[#allocation80_spill] sm:$0xff] }
 0x6ca   :  { %v4047_v57 = vadd.f32 %v4031_v41, %v3926_v7  ;;  %v4281_v18 = vadd.f32 %v11717_v8, %v4160_v61  ;;  %v4273_v52 = vmul.f32 %v11678_v43, %v4237_v19  ;;  %v3670_v39 = vmul.f32 %v11687_v37, %v3634_v13  ;;  %v11722_v7 = vld [vmem:[#allocation105_spill] sm:$0xff] }
 0x6cb   :  { %v3856_v1 = vsel %vm621_vm5, %v11719_v24, %v11718_v56  ;;  %v3671_v17 = vmul.f32 %v11687_v37, %v3635_v10  ;;  %v3973_v50 = vsel %vm945_vm6, %v11720_v14, %v3968_v27  ;;  %v3565_v21 = vadd.f32 %v3549_v31, %v11721_v22  ;;  %v11724_v10 = vld [vmem:[#allocation17_spill] sm:$0xff] }
 0x6cc   :  { %v4168_v46 = vadd.f32 %v4152_v6, %v4047_v57  ;;  %v3852_v19 = vsel %vm621_vm5, %v11718_v56, %v9522_v9  ;;  %v3791_v61 = vmul.f32 %v11654_v53, %v3755_v59  ;;  %v3985_v13 = vsel %vm945_vm6, %v3968_v27, %v11686_v0  ;;  %v9836_v0 = vpop.permute.xlu2 %3848  ;;  %v11727_v57 = vld [vmem:[#allocation99_spill] sm:$0xff] }
 0x6cd   :  { %v4394_v37 = vmul.f32 %v11681_v20, %v4358_v38  ;;  %v3566_v35 = vadd.f32 %v3550_v16, %v11722_v7  ;;  %v3792_v60 = vmul.f32 %v11654_v53, %v3756_v42  ;;  %v4213_v41 = vsel %vm11723_vm15, %v11651_v48, %v11673_v47  ;;  %v11735_v7 = vld [vmem:[#allocation48_spill] sm:$0xff]  ;;  %vm11785_vm15 = vmmov %vm11731_vm10 }
 0x6ce   :  { %v4289_v14 = vadd.f32 %v4273_v52, %v4168_v46  ;;  %v3876_v9 = vmul.f32 %v3856_v1, %v11724_v10  ;;  %v3686_v56 = vadd.f32 %v3670_v39, %v3565_v21  ;;  %v3997_v59 = vmul.f32 %v3973_v50, %v11543_v32  ;;  %v4089_v6 = vpop.permute.xlu0 %4088  ;;  %v11728_v52 = vld [vmem:[#allocation33_spill] sm:$0xff]  ;;  %v11729_v21 = vld [vmem:[#allocation88_spill] sm:$0xff] }
 0x6cf   :  { %v3877_v31 = vmul.f32 %v3852_v19, %v11680_v33  ;;  %v3687_v27 = vadd.f32 %v3671_v17, %v3566_v35  ;;  %v3998_v38 = vmul.f32 %v3985_v13, %v11534_v62  ;;  %v9839_v42 = vpop.permute.xlu1 %3606  ;;  %v4094_v48 = vsel %vm11725_vm2, %v9540_v15, %v4089_v6 }
 0x6d0   :  { %v4410_v53 = vadd.f32 %v4394_v37, %v4289_v14  ;;  %v3807_v16 = vadd.f32 %v3791_v61, %v3686_v56  ;;  %v4106_v47 = vsel %vm11726_vm3, %v4089_v6, %v11688_v25  ;;  %v4402_v8 = vadd.f32 %v11727_v57, %v4281_v18  ;;  %v11732_v61 = vld [vmem:[#allocation106_spill] sm:$0xff]  ;;  %v11736_v14 = vld [vmem:[#allocation79_spill] sm:$0xff]  ;;  %vm11793_vm3 = vmmov %vm11725_vm2 }
 0x6d1   :  { %v4042_v17 = vadd.f32 %v9636_v51, %v3921_v40  ;;  %v4231_v39 = vmul.f32 %v4213_v41, %v11728_v52  ;;  %v3808_v24 = vadd.f32 %v3792_v60, %v3687_v27  ;;  %v4118_v1 = vmul.f32 %v4094_v48, %v11679_v54  ;;  %v11730_v51 = vld [vmem:[#allocation131_spill] sm:$0xff] }
 0x6d2   :  { %v3912_v46 = vmul.f32 %v11655_v36, %v3876_v9  ;;  %v4033_v50 = vmul.f32 %v11659_v63, %v3997_v59  ;;  %v4119_v22 = vmul.f32 %v4106_v47, %v11683_v55  ;;  %v9854_v15 = vmul.f32 %v4410_v53, %v4402_v8  ;;  %v11737_v9 = vld [vmem:[#allocation135_spill] sm:$0xff]  ;;  %v11742_v47 = vld [vmem:[#allocation100_spill] sm:$0xff] }
 0x6d3   :  { %v4147_v25 = vmul.f32 %v11626_v49, %v9713_v30  ;;  %v3913_v18 = vmul.f32 %v11655_v36, %v3877_v31  ;;  %v4215_v40 = vsel %vm11731_vm10, %v11730_v51, %v11729_v21  ;;  %v4034_v19 = vmul.f32 %v11659_v63, %v3998_v38  ;;  %v11739_v27 = vld [vmem:[#allocation43_spill] sm:$0xff]  ;;  %vm11794_vm10 = vmmov %vm11725_vm2 }
 0x6d4   :  { %v4334_v13 = vsel %vm11733_vm11, %v11732_v61, %v11712_v2  ;;  %v4227_v37 = vsel %vm11734_vm12, %v11729_v21, %v11699_v4  ;;  %v3928_v49 = vadd.f32 %v3912_v46, %v3807_v16  ;;  %v4154_v30 = vmul.f32 %v11662_v3, %v4118_v1  ;;  %4453 = vmatmul.f32.vlgmr.msrb.gmra.mxu0 %v9854_v15  ;;  %v11738_v2 = vld [vmem:[#allocation24_spill] sm:$0xff]  ;;  %v11741_v16 = vld [vmem:[#allocation122_spill] sm:$0xff]  ;;  %vm11795_vm11 = vmmov %vm11734_vm12 }
 0x6d5   :  { %v4163_v36 = vadd.f32 %v4147_v25, %v4042_v17  ;;  %v4353_v35 = vmul.f32 %v4346_v29, %v11735_v7  ;;  %v3929_v60 = vadd.f32 %v3913_v18, %v3808_v24  ;;  %v4155_v63 = vmul.f32 %v11662_v3, %v4119_v22  ;;  %v11740_v3 = vld [vmem:[#allocation119_spill] sm:$0xff]  ;;  %v11745_v46 = vld [vmem:[#allocation6_spill] sm:$0xff]  ;;  %v9899_v22 = vpop.permute.xlu2 %4082  ;;  %vm11796_vm12 = vmmov %vm11795_vm11 }
 0x6d6   :  { %v4267_v41 = vmul.f32 %v11736_v14, %v4231_v39  ;;  %v3498_v56 = vsel %vm66_vm0, %v11738_v2, %v11737_v9  ;;  %v4239_v4 = vmul.f32 %v4215_v40, %v11728_v52  ;;  %v4049_v59 = vadd.f32 %v4033_v50, %v3928_v49  ;;  %v4331_v53 = vpop.permute.xlu0 %4330  ;;  %v11743_v39 = vld [vmem:[#allocation101_spill] sm:$0xff]  ;;  %v11748_v61 = vld [vmem:[#allocation146_spill] sm:$0xff] }
 0x6d7   :  { %v4268_v31 = vmul.f32 %v11736_v14, %v9716_v58  ;;  %v4352_v38 = vmul.f32 %v4334_v13, %v11739_v27  ;;  %v4240_v29 = vmul.f32 %v4227_v37, %v11684_v11  ;;  %v4050_v6 = vadd.f32 %v4034_v19, %v3929_v60  ;;  %v9892_v17 = vpop.permute.xlu1 %3840  ;;  %v11747_v19 = vld [vmem:[#allocation138_spill] sm:$0xff]  ;;  %v11752_v14 = vld [vmem:[#allocation120_spill] sm:$0xff] }
 0x6d8   :  { %v3980_v48 = vsel %vm945_vm6, %v11741_v16, %v11740_v3  ;;  %v4162_v57 = vadd.f32 %v9724_v5, %v11742_v47  ;;  %v4170_v8 = vadd.f32 %v4154_v30, %v4049_v59  ;;  %v4336_v58 = vsel %vm11744_vm8, %v11743_v39, %v4331_v53  ;;  %v11749_v30 = vld [vmem:[#allocation142_spill] sm:$0xff]  ;;  %v11756_v3 = vld [vmem:[#allocation16_spill] sm:$0xff]  ;;  %v11757_v39 = vld [vmem:[#allocation23_spill] sm:$0xff] }
 0x6d9   :  { %v4284_v24 = vadd.f32 %v4268_v31, %v4163_v36  ;;  %v4389_v1 = vmul.f32 %v11630_v28, %v4353_v35  ;;  %v3516_v50 = vmul.f32 %v3498_v56, %v11745_v46  ;;  %v4171_v25 = vadd.f32 %v4155_v63, %v4050_v6  ;;  %v11750_v36 = vld [vmem:[#allocation64_spill] sm:$0xff]  ;;  %v11751_v63 = vld [vmem:[#allocation29_spill] sm:$0xff] }
 0x6da   :  { %v4283_v18 = vadd.f32 %v4267_v41, %v4162_v57  ;;  %v4275_v21 = vmul.f32 %v11678_v43, %v4239_v4  ;;  %v4348_v5 = vsel %vm11746_vm9, %v4331_v53, %v11702_v34  ;;  %v4360_v51 = vmul.f32 %v4336_v58, %v11739_v27  ;;  %v11754_v41 = vld [vmem:[#allocation76_spill] sm:$0xff]  ;;  %vm11800_vm9 = vmmov %vm11725_vm2 }
 0x6db   :  { %v4388_v40 = vmul.f32 %v11630_v28, %v4352_v38  ;;  %v3619_v13 = vsel %vm261_vm1, %v11748_v61, %v11747_v19  ;;  %v4276_v37 = vmul.f32 %v11678_v43, %v4240_v29  ;;  %v4361_v49 = vmul.f32 %v4348_v5, %v11735_v7  ;;  %v11755_v29 = vld [vmem:[#allocation10_spill] sm:$0xff] }
 0x6dc   :  { %v3740_v35 = vsel %vm441_vm4, %v11750_v36, %v11749_v30  ;;  %v3494_v34 = vsel %vm66_vm0, %v11737_v9, %v9738_v12  ;;  %v4291_v28 = vadd.f32 %v4275_v21, %v4170_v8  ;;  %v4396_v60 = vmul.f32 %v11681_v20, %v4360_v51  ;;  %v11760_v21 = vld [vmem:[#allocation27_spill] sm:$0xff]  ;;  %v11761_v51 = vld [vmem:[#allocation121_spill] sm:$0xff] }
 0x6dd   :  { %v4101_v43 = vsel %vm11753_vm13, %v11752_v14, %v11751_v63  ;;  %v3552_v56 = vmul.f32 %v11754_v41, %v3516_v50  ;;  %v4292_v4 = vadd.f32 %v4276_v37, %v4171_v25  ;;  %v4397_v59 = vmul.f32 %v11681_v20, %v4361_v49  ;;  %v11765_v49 = vld [vmem:[#allocation141_spill] sm:$0xff]  ;;  %v11768_v63 = vld [vmem:[#allocation8_spill] sm:$0xff]  ;;  %vm11804_vm13 = vmmov %vm11744_vm8 }
 0x6de   :  { %v4405_v31 = vadd.f32 %v4389_v1, %v4284_v24  ;;  %v4404_v38 = vadd.f32 %v4388_v40, %v4283_v18  ;;  %v3637_v6 = vmul.f32 %v3619_v13, %v11755_v29  ;;  %v4412_v53 = vadd.f32 %v4396_v60, %v4291_v28  ;;  %v3486_v8 = vpop.permute.xlu0 %3485  ;;  %v11758_v24 = vld [vmem:[#allocation145_spill] sm:$0xff]  ;;  %v11764_v13 = vld [vmem:[#allocation95_spill] sm:$0xff] }
 0x6df   :  { %v3758_v9 = vmul.f32 %v3740_v35, %v11756_v3  ;;  %v3517_v16 = vmul.f32 %v3494_v34, %v11705_v23  ;;  %v3615_v47 = vsel %vm261_vm1, %v11747_v19, %v9801_v44  ;;  %v4413_v57 = vadd.f32 %v4397_v59, %v4292_v4  ;;  %v9938_v20 = vpop.permute.xlu1 %3961  ;;  %v11759_v1 = vld [vmem:[#allocation65_spill] sm:$0xff]  ;;  %v11766_v35 = vld [vmem:[#allocation148_spill] sm:$0xff] }
 0x6e0   :  { %v3991_v58 = vmul.f32 %v3980_v48, %v11757_v39  ;;  %v9936_v50 = vmul.f32 %v4412_v53, %v4404_v38  ;;  %v3414_v25 = vmul.f32 %v11759_v1, %v11758_v24  ;;  %v3490_v18 = vsel %vm66_vm0, %v9738_v12, %v3486_v8  ;;  %v11762_v40 = vld [vmem:[#allocation125_spill] sm:$0xff]  ;;  %v11772_v38 = vld [vmem:[#allocation66_spill] sm:$0xff]  ;;  %v9968_v24 = vpop.permute.xlu2 %4203  ;;  %v11786_v3 = vld [vmem:[#allocation140_spill] sm:$0xff] }
 0x6e1   :  { %v4112_v5 = vmul.f32 %v4101_v43, %v11760_v21  ;;  %v4222_v19 = vsel %vm11763_vm14, %v11762_v40, %v11761_v51  ;;  %v3568_v48 = vadd.f32 %v3552_v56, %v11764_v13  ;;  %v9951_v37 = vmul.f32 %v4413_v57, %v4405_v31  ;;  %v11767_v28 = vld [vmem:[#allocation9_spill] sm:$0xff]  ;;  %v11770_v56 = vld [vmem:[#allocation74_spill] sm:$0xff]  ;;  %v11771_v31 = vld [vmem:[#allocation31_spill] sm:$0xff] }
 0x6e2   :  { %v3861_v34 = vsel %vm621_vm5, %v11766_v35, %v11765_v49  ;;  %v3638_v60 = vmul.f32 %v3615_v47, %v11767_v28  ;;  %v3502_v12 = vsel %vm66_vm0, %v3486_v8, %v11738_v2  ;;  %v3518_v14 = vmul.f32 %v3490_v18, %v11768_v63  ;;  %4499 = vmatmul.f32.vlgmr.msrb.gmra.mxu2 %v9936_v50  ;;  %v11769_v43 = vld [vmem:[#allocation77_spill] sm:$0xff]  ;;  %v11773_v47 = vld [vmem:[#allocation91_spill] sm:$0xff]  ;;  %v11775_v18 = vld [vmem:[#allocation62_spill] sm:$0xff] }
 0x6e3   :  { %v3673_v4 = vmul.f32 %v11769_v43, %v3637_v6  ;;  %v3794_v59 = vmul.f32 %v11770_v56, %v3758_v9  ;;  %v3449_v53 = vadd.f32 %v11772_v38, %v11771_v31  ;;  %v3553_v57 = vmul.f32 %v11754_v41, %v3517_v16  ;;  %4522 = vmatmul.f32.vlgmr.msrb.gmra.mxu3 %v9951_v37  ;;  %v11774_v2 = vld [vmem:[#allocation35_spill] sm:$0xff]  ;;  %v11776_v51 = vld [vmem:[#allocation20_spill] sm:$0xff]  ;;  %vm11805_vm14 = vmmov %vm11795_vm11 }
 0x6e4   :  { %v9972_v1 = vmul.f32 %v11773_v47, %v3991_v58  ;;  %v9975_v8 = vmul.f32 %v4222_v19, %v11774_v2  ;;  %v3736_v6 = vsel %vm441_vm4, %v11749_v30, %v11775_v18  ;;  %v3450_v9 = vadd.f32 %v11772_v38, %v3414_v25  ;;  %v11777_v58 = vld [vmem:[#allocation5_spill] sm:$0xff] }
 0x6e5   :  { %v3879_v40 = vmul.f32 %v3861_v34, %v11776_v51  ;;  %v3689_v16 = vadd.f32 %v3673_v4, %v3568_v48  ;;  %v3611_v13 = vsel %vm261_vm1, %v9801_v44, %v9839_v42  ;;  %v3515_v31 = vmul.f32 %v3502_v12, %v11777_v58  ;;  %v11778_v47 = vld [vmem:[#allocation85_spill] sm:$0xff]  ;;  %v11780_v12 = vld [vmem:[#allocation12_spill] sm:$0xff] }
 0x6e6   :  { %v9989_v19 = vmul.f32 %v11778_v47, %v4112_v5  ;;  %v3865_v30 = vsel %vm621_vm5, %v9836_v0, %v11766_v35  ;;  %v3674_v25 = vmul.f32 %v11769_v43, %v3638_v60  ;;  %v3554_v34 = vmul.f32 %v11754_v41, %v3518_v14  ;;  %v11779_v4 = vld [vmem:[#allocation13_spill] sm:$0xff]  ;;  %v3728_v5 = vpop.permute.xlu0 %3727 }
 0x6e7   :  { %v3810_v48 = vadd.f32 %v3794_v59, %v3689_v16  ;;  %v3759_v38 = vmul.f32 %v3736_v6, %v11779_v4  ;;  %v3569_v51 = vadd.f32 %v3553_v57, %v3449_v53  ;;  %v3623_v44 = vsel %vm261_vm1, %v9839_v42, %v11748_v61  ;;  %v4091_v60 = vpop.permute.xlu1 %4090  ;;  %v11781_v53 = vld [vmem:[#allocation83_spill] sm:$0xff]  ;;  %v11784_v4 = vld [vmem:[#allocation149_spill] sm:$0xff] }
 0x6e8   :  { %v3639_v47 = vmul.f32 %v3611_v13, %v11780_v12  ;;  %v3857_v35 = vsel %vm621_vm5, %v11765_v49, %v9892_v17  ;;  %v3732_v14 = vsel %vm441_vm4, %v11775_v18, %v3728_v5  ;;  %v3744_v59 = vsel %vm441_vm4, %v3728_v5, %v11750_v36  ;;  %v11782_v42 = vld [vmem:[#allocation19_spill] sm:$0xff]  ;;  %v11783_v13 = vld [vmem:[#allocation144_spill] sm:$0xff]  ;;  %v11787_v18 = vld [vmem:[#allocation113_spill] sm:$0xff] }
 0x6e9   :  { %v3915_v57 = vmul.f32 %v11781_v53, %v3879_v40  ;;  %v3878_v61 = vmul.f32 %v3865_v30, %v11782_v42  ;;  %v3551_v6 = vmul.f32 %v11754_v41, %v3515_v31  ;;  %v3760_v16 = vmul.f32 %v3732_v14, %v11716_v45  ;;  %v11788_v40 = vld [vmem:[#allocation11_spill] sm:$0xff] }
 0x6ea   :  { %v10021_v49 = vsel %vm11785_vm15, %v11784_v4, %v11783_v13  ;;  %v3982_v28 = vsel %vm945_vm6, %v11787_v18, %v11786_v3  ;;  %v3690_v36 = vadd.f32 %v3674_v25, %v3569_v51  ;;  %v3570_v5 = vadd.f32 %v3554_v34, %v3450_v9  ;;  %v11789_v30 = vld [vmem:[#allocation15_spill] sm:$0xff]  ;;  %v11791_v34 = vld [vmem:[#allocation96_spill] sm:$0xff]  ;;  %vm11807_vm15 = vmmov %vm11744_vm8 }
 0x6eb   :  { %v3636_v29 = vmul.f32 %v3623_v44, %v11788_v40  ;;  %v3853_v41 = vsel %vm621_vm5, %v9892_v17, %v9836_v0  ;;  %v3880_v31 = vmul.f32 %v3857_v35, %v11724_v10  ;;  %v3757_v14 = vmul.f32 %v3744_v59, %v11789_v30  ;;  %v11790_v25 = vld [vmem:[#allocation143_spill] sm:$0xff]  ;;  %v4333_v17 = vpop.permute.xlu2 %4332  ;;  %v11792_v35 = vld [vmem:[#allocation98_spill] sm:$0xff] }
 0x6ec   :  { %v3795_v42 = vmul.f32 %v11770_v56, %v3759_v38  ;;  %v3675_v45 = vmul.f32 %v11769_v43, %v3639_v47  ;;  %v10036_v12 = vadd.f32 %v3915_v57, %v3810_v48  ;;  %v3796_v51 = vmul.f32 %v11770_v56, %v3760_v16 }
 0x6ed   :  { %v3999_v9 = vmul.f32 %v3982_v28, %v11757_v39  ;;  %v4103_v44 = vsel %vm11725_vm2, %v11791_v34, %v11790_v25  ;;  %v3914_v0 = vmul.f32 %v11781_v53, %v3878_v61  ;;  %v3567_v59 = vadd.f32 %v3551_v6, %v11792_v35  ;;  %vm11809_vm2 = vmmov %vm11744_vm8 }
 0x6ee   :  { %v3811_v10 = vadd.f32 %v3795_v42, %v3690_v36  ;;  %v3881_v38 = vmul.f32 %v3853_v41, %v11680_v33  ;;  %v4095_v48 = vsel %vm11793_vm3, %v9899_v22, %v4091_v60  ;;  %v3691_v47 = vadd.f32 %v3675_v45, %v3570_v5  ;;  %v3970_v39 = vpop.permute.xlu0 %3969  ;;  %vm11817_vm3 = vmmov %vm11809_vm2 }
 0x6ef   :  { %v3672_v28 = vmul.f32 %v11769_v43, %v3636_v29  ;;  %v3916_v57 = vmul.f32 %v11781_v53, %v3880_v31  ;;  %v4107_v16 = vsel %vm11794_vm10, %v4091_v60, %v11791_v34  ;;  %v3793_v61 = vmul.f32 %v11770_v56, %v3757_v14  ;;  %v4212_v36 = vpop.permute.xlu1 %4211  ;;  %v11798_v34 = vld [vmem:[#allocation82_spill] sm:$0xff]  ;;  %vm11818_vm10 = vmmov %vm11809_vm2 }
 0x6f0   :  { %v3978_v42 = vsel %vm945_vm6, %v11786_v3, %v9938_v20  ;;  %v3812_v6 = vadd.f32 %v3796_v51, %v3691_v47  ;;  %v3974_v45 = vsel %vm945_vm6, %v9938_v20, %v3970_v39  ;;  %v3986_v29 = vsel %vm945_vm6, %v3970_v39, %v11787_v18  ;;  %v11797_v18 = vld [vmem:[#allocation22_spill] sm:$0xff] }
 0x6f1   :  { %v4122_v43 = vmul.f32 %v4095_v48, %v11679_v54  ;;  %v3688_v60 = vadd.f32 %v3672_v28, %v3567_v59  ;;  %v4228_v56 = vsel %vm11795_vm11, %v4212_v36, %v11784_v4  ;;  %v4001_v5 = vmul.f32 %v3974_v45, %v11543_v32  ;;  %v11799_v59 = vld [vmem:[#allocation150_spill] sm:$0xff] }
 0x6f2   :  { %v3917_v3 = vmul.f32 %v11781_v53, %v3881_v38  ;;  %v4123_v41 = vmul.f32 %v4107_v16, %v11683_v55  ;;  %v4216_v20 = vsel %vm11796_vm12, %v9968_v24, %v4212_v36  ;;  %v4002_v31 = vmul.f32 %v3986_v29, %v11534_v62 }
 0x6f3   :  { %v3932_v39 = vadd.f32 %v3916_v57, %v3811_v10  ;;  %v4000_v14 = vmul.f32 %v3978_v42, %v11797_v18  ;;  %v3809_v51 = vadd.f32 %v3793_v61, %v3688_v60  ;;  %v4037_v35 = vmul.f32 %v11798_v34, %v4001_v5  ;;  %v11801_v10 = vld [vmem:[#allocation86_spill] sm:$0xff]  ;;  %v4313_v29 = vpop.permute.xlu2 %4312 }
 0x6f4   :  { %v4349_v4 = vsel %vm11744_vm8, %v4333_v17, %v11799_v59  ;;  %v4244_v53 = vmul.f32 %v4228_v56, %v11684_v11  ;;  %v3933_v38 = vadd.f32 %v3917_v3, %v3812_v6  ;;  %v4038_v48 = vmul.f32 %v11798_v34, %v4002_v31  ;;  %v11803_v3 = vld [vmem:[#allocation94_spill] sm:$0xff] }
 0x6f5   :  { %v4099_v47 = vsel %vm11800_vm9, %v11790_v25, %v9899_v22  ;;  %v4158_v28 = vmul.f32 %v11801_v10, %v4122_v43  ;;  %v4243_v57 = vmul.f32 %v4216_v20, %v11728_v52  ;;  %v4053_v16 = vadd.f32 %v4037_v35, %v3932_v39  ;;  %v11802_v25 = vld [vmem:[#allocation25_spill] sm:$0xff]  ;;  %v11808_v35 = vld [vmem:[#allocation128_spill] sm:$0xff] }
 0x6f6   :  { %v4035_v61 = vmul.f32 %v11798_v34, %v3999_v9  ;;  %v4120_v42 = vmul.f32 %v4103_v44, %v11760_v21  ;;  %v4159_v36 = vmul.f32 %v11801_v10, %v4123_v41  ;;  %v4054_v45 = vadd.f32 %v4038_v48, %v3933_v38  ;;  %v4325_v22 = vpop.permute.xlu0 %4324 }
 0x6f7   :  { %v4365_v6 = vmul.f32 %v4349_v4, %v11735_v7  ;;  %v4036_v60 = vmul.f32 %v11798_v34, %v4000_v14  ;;  %v3930_v56 = vadd.f32 %v3914_v0, %v3809_v51  ;;  %v4174_v5 = vadd.f32 %v4158_v28, %v4053_v16  ;;  %v4384_v39 = vpop.permute.xlu1 %4383  ;;  %v11806_v51 = vld [vmem:[#allocation4_spill] sm:$0xff]  ;;  %v11811_v16 = vld [vmem:[#allocation38_spill] sm:$0xff] }
 0x6f8   :  { %v4121_v43 = vmul.f32 %v4099_v47, %v11802_v25  ;;  %v4280_v20 = vmul.f32 %v11803_v3, %v4244_v53  ;;  %v4175_v31 = vadd.f32 %v4159_v36, %v4054_v45  ;;  %v4337_v9 = vsel %vm11804_vm13, %v4325_v22, %v4333_v17  ;;  %v11810_v17 = vld [vmem:[#allocation147_spill] sm:$0xff] }
 0x6f9   :  { %v4220_v44 = vsel %vm11805_vm14, %v11783_v13, %v9968_v24  ;;  %v4279_v41 = vmul.f32 %v11803_v3, %v4243_v57  ;;  %v4401_v14 = vmul.f32 %v4384_v39, %v4365_v6  ;;  %v4364_v0 = vmul.f32 %v4337_v9, %v11739_v27 }
 0x6fa   :  { %v4339_v34 = vsel %vm11807_vm15, %v4313_v29, %v11806_v51  ;;  %v4343_v4 = vsel %vm11809_vm2, %v11808_v35, %v4313_v29  ;;  %v4296_v53 = vadd.f32 %v4280_v20, %v4175_v31  ;;  %v4043_v38 = vadd.f32 %v9972_v1, %v11810_v17  ;;  %v11812_v29 = vld [vmem:[#allocation47_spill] sm:$0xff]  ;;  %v11813_v31 = vld [vmem:[#allocation46_spill] sm:$0xff]  ;;  %v11814_v51 = vld [vmem:[#allocation97_spill] sm:$0xff] }
 0x6fb   :  { %v4052_v48 = vadd.f32 %v4036_v60, %v10036_v12  ;;  %v4051_v24 = vadd.f32 %v4035_v61, %v3930_v56  ;;  %v4400_v13 = vmul.f32 %v4384_v39, %v4364_v0  ;;  %v4295_v47 = vadd.f32 %v4279_v41, %v4174_v5  ;;  %v11815_v60 = vld [vmem:[#allocation90_spill] sm:$0xff]  ;;  %v11816_v5 = vld [vmem:[#allocation32_spill] sm:$0xff] }
 0x6fc   :  { %v4241_v28 = vmul.f32 %v10021_v49, %v11774_v2  ;;  %v4156_v57 = vmul.f32 %v11801_v10, %v4120_v42  ;;  %v4242_v36 = vmul.f32 %v4220_v44, %v11811_v16  ;;  %v4417_v45 = vadd.f32 %v4401_v14, %v4296_v53 }
 0x6fd   :  { %v4157_v6 = vmul.f32 %v11801_v10, %v4121_v43  ;;  %v4354_v20 = vmul.f32 %v4343_v4, %v11812_v29  ;;  %v4355_v9 = vmul.f32 %v4339_v34, %v11813_v31  ;;  %v4416_v1 = vadd.f32 %v4400_v13, %v4295_v47  ;;  %v11820_v13 = vld [vmem:[#allocation151_spill] sm:$0xff] }
 0x6fe   :  { %v10122_v12 = vmul.f32 %v4417_v45, %v11814_v51  ;;  %v4164_v61 = vadd.f32 %v9989_v19, %v4043_v38  ;;  %v4269_v49 = vmul.f32 %v11815_v60, %v9975_v8  ;;  %v4317_v42 = vpop.permute.xlu0 %4316  ;;  %v4172_v41 = vadd.f32 %v4156_v57, %v4051_v24  ;;  %v11819_v8 = vld [vmem:[#allocation93_spill] sm:$0xff] }
 0x6ff   :  { %v4173_v56 = vadd.f32 %v4157_v6, %v4052_v48  ;;  %v10128_v44 = vmul.f32 %v4416_v1, %v11816_v5  ;;  %v4277_v10 = vmul.f32 %v11803_v3, %v4241_v28  ;;  %v4278_v43 = vmul.f32 %v11803_v3, %v4242_v36 }
 0x700   :  { %4525 = vmatmul.f32.gmra.mxu3 %v10122_v12  ;;  %v4341_v14 = vsel %vm11817_vm3, %v4317_v42, %v4325_v22  ;;  %v4345_v19 = vsel %vm11818_vm10, %v11799_v59, %v4317_v42  ;;  %v4390_v0 = vmul.f32 %v11819_v8, %v4354_v20  ;;  %v4391_v34 = vmul.f32 %v11819_v8, %v4355_v9  ;;  %v11821_v8 = vld [vmem:[#allocation3_spill] sm:$0xff] }
 0x701   :  { %v4362_v35 = vmul.f32 %v4345_v19, %v11812_v29  ;;  %v4363_v4 = vmul.f32 %v4341_v14, %v11813_v31  ;;  %4502 = vmatmul.f32.gmra.mxu2 %v10128_v44  ;;  %v4285_v3 = vadd.f32 %v4269_v49, %v4164_v61  ;;  %v4293_v38 = vadd.f32 %v4277_v10, %v4172_v41  ;;  %v4529_v41 = vld [vmem:[%s10905_s8 + $0x20] sm:$0xff]  ;;  %v4530_v10 = vld [vmem:[%s10905_s8 + $0x28] sm:$0xff]  ;;  %v4575_v19 = vld.sshfl [vmem:[#allocation1 + $0x10] sm:$0xff pattern:$0x73625140] }
 0x702   :  { %v4294_v48 = vadd.f32 %v4278_v43, %v4173_v56  ;;  %v4407_v47 = vadd.f32 %v4391_v34, %v11820_v13  ;;  %v4573_v43 = vld.sshfl [vmem:[#allocation1] sm:$0xff pattern:$0x73625140]  ;;  %vm4584_vm11 = vcmask 1041408   ;;  %v11822_v34 = vld [vmem:[#allocation2_spill] sm:$0xff]  ;;  %vm4577_vm12 = vcmask 15360  }
 0x703   :  { %v4398_v53 = vmul.f32 %v4384_v39, %v4362_v35  ;;  %v4399_v17 = vmul.f32 %v4384_v39, %v4363_v4  ;;  %v4406_v22 = vadd.f32 %v4390_v0, %v4285_v3  ;;  %6756 = vmatpush.msk.msra.mxu1 %vm4584_vm11, %v4573_v43  ;;  %v4574_v14 = vld.sshfl [vmem:[#allocation1 + $0x8] sm:$0xff pattern:$0x73625140]  ;;  %6762 = vmatpush.msk.msra.mxu3 %vm4584_vm11, %v4575_v19  ;;  %v4576_v0 = vld.sshfl [vmem:[#allocation1 + $0x18] sm:$0xff pattern:$0x73625140]  ;;  %v4536_v35 = vpop.permute.xlu1 %4535 }
 0x704   :  { %6759 = vmatpush.msk.msra.mxu2 %vm4584_vm11, %v4574_v14  ;;  %5315 = vst [vmem:[#allocation1] ss:$2 sm:$0xff] %v11821_v8 }
 0x705   :  { %v4414_v24 = vadd.f32 %v4398_v53, %v4293_v38  ;;  %v4415_v59 = vadd.f32 %v4399_v17, %v4294_v48  ;;  %5317 = vst [vmem:[#allocation1 + $0x10] ss:$2 sm:$0xff] %v11822_v34  ;;  %v4541_v53 = vpop.permute.xlu2 %4540 }
 0x707   :  { %v4422_v28 = vmul.f32 %v4414_v24, %v4406_v22  ;;  %v10144_v57 = vmul.f32 %v4415_v59, %v4407_v47 }
 0x709   :  { %4456 = vmatmul.f32.gmra.mxu0 %v4422_v28  ;;  %4479 = vmatmul.f32.gmra.mxu1 %v10144_v57 }
 0x740   :  { %v4477_v36 = vpop.f32.mrf.mxu1 }
 0x751   :  { %v4454_v45 = vpop.f32.mrf.mxu0 }
 0x752   :  { %v4478_v39 = vadd.f32 %v4477_v36, %v4454_v45 }
 0x765   :  { %v4500_v6 = vpop.f32.mrf.mxu2 }
 0x766   :  { %v4523_v20 = vpop.f32.mrf.mxu3  ;;  %v4501_v60 = vadd.f32 %v4500_v6, %v4478_v39 }
 0x768   :  { %v4524_v5 = vadd.f32 %v4523_v20, %v4501_v60  ;;  %v4693_v20 = vld [vmem:[%s10905_s8 + $0x30] sm:$0xff] }
 0x783   :  { %v4526_v56 = vpop.f32.mrf.mxu3 }
 0x784   :  { %v4503_v61 = vpop.f32.mrf.mxu2 }
 0x786   :  { %v4457_v9 = vpop.f32.mrf.mxu0  ;;  %v4480_v1 = vpop.f32.mrf.mxu1 }
 0x787   :  { %v4481_v51 = vadd.f32 %v4480_v1, %v4457_v9 }
 0x789   :  { %v4504_v49 = vadd.f32 %v4503_v61, %v4481_v51 }
 0x78b   :  { %v4527_v42 = vadd.f32 %v4526_v56, %v4504_v49  ;;  %v4810_v56 = vpop.permute.xlu2 %4809 }
 0x78d   :  { %4563 = vmatpush.msra.mxu0 %v4527_v42  ;;  %v4705_v42 = vpop.permute.xlu1 %4704 }
 0x78f   :  { %4564 = vmatpush.msra.mxu0 %v4524_v5 }
 0x790   :  { %6754 = vmatmul.msk.f32.vlgmr.msra.gmra.mxu0 %vm3241_vm7, %v4529_v41 }
 0x791   :  { %6765 = vmatpush.msk.msrb.mxu0 %vm4584_vm11, %v4576_v0 }
 0x798   :  { %6755 = vmatmul.msk.f32.gmra.mxu0 %vm3241_vm7, %v4530_v10 }
 0x80d   :  { %v4566_v4 = vpop.f32.mrf.mxu0 }
 0x80e   :  { %v4567_v3 = vadd.f32 %v4566_v4, %v4536_v35  ;;  %v11824_v4 = vld [vmem:[#allocation52_spill] sm:$0xff] }
 0x810   :  { %6757 = vmatmul.msk.f32.vlgmr.msra.gmra.mxu1 %vm4577_vm12, %v4567_v3  ;;  %6760 = vmatmul.msk.f32.vlgmr.msra.gmra.mxu2 %vm4577_vm12, %v4567_v3 }
 0x811   :  { %6763 = vmatmul.msk.f32.vlgmr.msra.gmra.mxu3 %vm4577_vm12, %v4567_v3  ;;  %6766 = vmatmul.msk.f32.vlgmr.msrb.gmra.mxu0 %vm4577_vm12, %v4567_v3 }
 0x815   :  { %v4569_v17 = vpop.f32.mrf.mxu0 }
 0x816   :  { %v4570_v38 = vadd.f32 %v4569_v17, %v4541_v53  ;;  %v11825_v53 = vld [vmem:[#allocation53_spill] sm:$0xff] }
 0x818   :  { %6758 = vmatmul.msk.f32.gmra.mxu1 %vm4577_vm12, %v4570_v38  ;;  %6761 = vmatmul.msk.f32.gmra.mxu2 %vm4577_vm12, %v4570_v38 }
 0x819   :  { %6764 = vmatmul.msk.f32.gmra.mxu3 %vm4577_vm12, %v4570_v38  ;;  %6767 = vmatmul.msk.f32.gmra.mxu0 %vm4577_vm12, %v4570_v38 }
 0x88d   :  { %v4610_v48 = vpop.f32.mrf.mxu1 }
 0x88e   :  { %v4679_v22 = vpop.f32.mrf.mxu0  ;;  %v4685_v6 = vmul.f32 %v4610_v48, %v9854_v15  ;;  %v11826_v48 = vld [vmem:[#allocation58_spill] sm:$0xff] }
 0x88f   :  { %v4688_v9 = vmul.f32 %v4679_v22, %v9951_v37  ;;  %v4694_v37 = vld [vmem:[%s10905_s8 + $0x38] sm:$0xff] }
 0x893   :  { %v4633_v24 = vpop.f32.mrf.mxu2 }
 0x894   :  { %v4656_v13 = vpop.f32.mrf.mxu3 }
 0x895   :  { %v4613_v47 = vpop.f32.mrf.mxu1  ;;  %v4687_v61 = vmul.f32 %v4656_v13, %v9936_v50  ;;  %v4700_v50 = vpop.permute.xlu0 %4699 }
 0x896   :  { %v4689_v59 = vmul.f32 %v4613_v47, %v4422_v28  ;;  %v4682_v36 = vpop.f32.mrf.mxu0 }
 0x897   :  { %v4692_v45 = vmul.f32 %v4682_v36, %v10122_v12  ;;  %v11823_v12 = vld [vmem:[#allocation117_spill] sm:$0xff] }
 0x898   :  { %4727 = vmatpush.msrb.mxu1 %v4689_v59  ;;  %v4686_v51 = vmul.f32 %v4633_v24, %v11823_v12  ;;  %v11827_v24 = vld [vmem:[#allocation59_spill] sm:$0xff] }
 0x899   :  { %4796 = vmatpush.msra.mxu0 %v4692_v45 }
 0x89a   :  { %4728 = vmatpush.msrb.mxu1 %v4685_v6 }
 0x89b   :  { %4797 = vmatpush.msra.mxu0 %v4688_v9  ;;  %v4636_v1 = vpop.f32.mrf.mxu2  ;;  %6768 = vmatmul.msk.f32.vlgmr.msrb.gmra.mxu1 %vm3241_vm7, %v4693_v20 }
 0x89c   :  { %v4690_v28 = vmul.f32 %v4636_v1, %v10144_v57  ;;  %v4659_v39 = vpop.f32.mrf.mxu3  ;;  %6774 = vmatmul.msk.f32.vlgmr.msra.gmra.mxu0 %vm3241_vm7, %v4693_v20 }
 0x89d   :  { %v4691_v15 = vmul.f32 %v4659_v39, %v10128_v44  ;;  %v4815_v14 = vpop.permute.xlu0 %4814 }
 0x89e   :  { %4750 = vmatpush.msrb.mxu2 %v4690_v28 }
 0x89f   :  { %4773 = vmatpush.msrb.mxu3 %v4691_v15 }
 0x8a0   :  { %4751 = vmatpush.msrb.mxu2 %v4686_v51 }
 0x8a1   :  { %4774 = vmatpush.msrb.mxu3 %v4687_v61  ;;  %6770 = vmatmul.msk.f32.vlgmr.msrb.gmra.mxu2 %vm3241_vm7, %v4693_v20 }
 0x8a2   :  { %6772 = vmatmul.msk.f32.vlgmr.msrb.gmra.mxu3 %vm3241_vm7, %v4693_v20 }
 0x8a3   :  { %6769 = vmatmul.msk.f32.gmra.mxu1 %vm3241_vm7, %v4694_v37 }
 0x8a4   :  { %6775 = vmatmul.msk.f32.gmra.mxu0 %vm3241_vm7, %v4694_v37 }
 0x8a9   :  { %6771 = vmatmul.msk.f32.gmra.mxu2 %vm3241_vm7, %v4694_v37 }
 0x8aa   :  { %6773 = vmatmul.msk.f32.gmra.mxu3 %vm3241_vm7, %v4694_v37 }
 0x918   :  { %v4730_v44 = vpop.f32.mrf.mxu1 }
 0x919   :  { %v4799_v57 = vpop.f32.mrf.mxu0  ;;  %v4731_v60 = vadd.f32 %v4730_v44, %v4700_v50 }
 0x91a   :  { %v4800_v49 = vadd.f32 %v4799_v57, %v4700_v50 }
 0x91b   :  { %v4817_v41 = vmul.f32 %v4810_v56, %v4731_v60 }
 0x91c   :  { %v4820_v19 = vmul.f32 %v4810_v56, %v4800_v49 }
 0x91d   :  { %v10179_v3 = vadd.f32 %v4817_v41, %v11824_v4 }
 0x91e   :  { %v10185_v22 = vadd.f32 %v4820_v19, %v11826_v48  ;;  %v11829_v19 = vld [vmem:[#allocation57_spill] sm:$0xff] }
 0x920   :  { %v4733_v5 = vpop.f32.mrf.mxu1 }
 0x921   :  { %v4734_v10 = vadd.f32 %v4733_v5, %v4705_v42  ;;  %v4802_v43 = vpop.f32.mrf.mxu0 }
 0x922   :  { %v4803_v8 = vadd.f32 %v4802_v43, %v4705_v42 }
 0x923   :  { %v4821_v0 = vmul.f32 %v4815_v14, %v4734_v10  ;;  %v11828_v10 = vld [vmem:[#allocation54_spill] sm:$0xff] }
 0x924   :  { %v4824_v34 = vmul.f32 %v4815_v14, %v4803_v8  ;;  %v4753_v35 = vpop.f32.mrf.mxu2 }
 0x925   :  { %v10182_v17 = vadd.f32 %v4821_v0, %v11825_v53  ;;  %v4776_v38 = vpop.f32.mrf.mxu3  ;;  %v4754_v45 = vadd.f32 %v4753_v35, %v4700_v50  ;;  %v11830_v0 = vld [vmem:[#allocation55_spill] sm:$0xff]  ;;  %v11831_v35 = vld [vmem:[#allocation56_spill] sm:$0xff] }
 0x926   :  { %v10188_v13 = vadd.f32 %v4824_v34, %v11827_v24  ;;  %v4777_v20 = vadd.f32 %v4776_v38, %v4700_v50  ;;  %v11832_v38 = vld [vmem:[#allocation60_spill] sm:$0xff] }
 0x927   :  { %v4837_v47 = vadd.f32 %v10182_v17, %v10179_v3  ;;  %v4818_v15 = vmul.f32 %v4810_v56, %v4754_v45 }
 0x928   :  { %v4858_v59 = vadd.f32 %v10188_v13, %v10185_v22  ;;  %v4819_v37 = vmul.f32 %v4810_v56, %v4777_v20 }
 0x929   :  { %v4838_v36 = vrot.slane %v4837_v47, 4  ;;  %v10195_v43 = vadd.f32 %v4818_v15, %v11828_v10 }
 0x92a   :  { %v4859_v6 = vrot.slane %v4858_v59, 4  ;;  %v10201_v34 = vadd.f32 %v4819_v37, %v11830_v0 }
 0x92b   :  { %v4839_v9 = vadd.f32 %v4838_v36, %v4837_v47 }
 0x92c   :  { %v4860_v1 = vadd.f32 %v4859_v6, %v4858_v59  ;;  %v4756_v28 = vpop.f32.mrf.mxu2 }
 0x92d   :  { %v4840_v39 = vrot.slane %v4839_v9, 2  ;;  %v4757_v12 = vadd.f32 %v4756_v28, %v4705_v42  ;;  %v4779_v51 = vpop.f32.mrf.mxu3 }
 0x92e   :  { %v4861_v61 = vrot.slane %v4860_v1, 2  ;;  %v4780_v44 = vadd.f32 %v4779_v51, %v4705_v42 }
 0x92f   :  { %v4841_v57 = vadd.f32 %v4840_v39, %v4839_v9  ;;  %v4822_v60 = vmul.f32 %v4815_v14, %v4757_v12 }
 0x930   :  { %v4862_v49 = vadd.f32 %v4861_v61, %v4860_v1  ;;  %v4823_v5 = vmul.f32 %v4815_v14, %v4780_v44 }
 0x931   :  { %v4842_v41 = vrot.slane %v4841_v57, 1  ;;  %v10198_v50 = vadd.f32 %v4822_v60, %v11829_v19 }
 0x932   :  { %v4863_v8 = vrot.slane %v4862_v49, 1  ;;  %v10204_v4 = vadd.f32 %v4823_v5, %v11831_v35 }
 0x933   :  { %v4843_v56 = vadd.f32 %v4842_v41, %v4841_v57  ;;  %v4844_v42 = vadd.f32 %v10198_v50, %v10195_v43 }
 0x934   :  { %v4864_v53 = vadd.f32 %v4863_v8, %v4862_v49  ;;  %v4851_v14 = vadd.f32 %v10204_v4, %v10201_v34 }
 0x935   :  { %v4865_v48 = vmul.f32 %v4843_v56, %v11832_v38  ;;  %v4845_v24 = vrot.slane %v4844_v42, 4 }
 0x936   :  { %v4868_v47 = vmul.f32 %v4864_v53, %v11832_v38  ;;  %v4852_v59 = vrot.slane %v4851_v14, 4 }
 0x937   :  { %v10213_v36 = vsub.f32 %v10179_v3, %v4865_v48  ;;  %v10216_v45 = vsub.f32 %v10182_v17, %v4865_v48  ;;  %v4846_v6 = vadd.f32 %v4845_v24, %v4844_v42 }
 0x938   :  { %v10219_v20 = vsub.f32 %v10185_v22, %v4868_v47  ;;  %v10222_v9 = vsub.f32 %v10188_v13, %v4868_v47  ;;  %v4853_v1 = vadd.f32 %v4852_v59, %v4851_v14 }
 0x939   :  { %v4877_v28 = vmul.f32 %v10213_v36, %v10213_v36  ;;  %v4881_v39 = vmul.f32 %v10216_v45, %v10216_v45  ;;  %v4847_v15 = vrot.slane %v4846_v6, 2 }
 0x93a   :  { %v4880_v12 = vmul.f32 %v10219_v20, %v10219_v20  ;;  %v4884_v51 = vmul.f32 %v10222_v9, %v10222_v9  ;;  %v4854_v61 = vrot.slane %v4853_v1, 2 }
 0x93b   :  { %v4885_v37 = vadd.f32 %v4881_v39, %v4877_v28  ;;  %v4848_v44 = vadd.f32 %v4847_v15, %v4846_v6 }
 0x93c   :  { %v4906_v57 = vadd.f32 %v4884_v51, %v4880_v12  ;;  %v4855_v60 = vadd.f32 %v4854_v61, %v4853_v1 }
 0x93d   :  { %v4886_v49 = vrot.slane %v4885_v37, 4  ;;  %v4849_v5 = vrot.slane %v4848_v44, 1 }
 0x93e   :  { %v4907_v41 = vrot.slane %v4906_v57, 4  ;;  %v4856_v10 = vrot.slane %v4855_v60, 1 }
 0x93f   :  { %v4887_v19 = vadd.f32 %v4886_v49, %v4885_v37  ;;  %v4850_v8 = vadd.f32 %v4849_v5, %v4848_v44 }
 0x940   :  { %v4908_v0 = vadd.f32 %v4907_v41, %v4906_v57  ;;  %v4857_v35 = vadd.f32 %v4856_v10, %v4855_v60 }
 0x941   :  { %v4888_v56 = vrot.slane %v4887_v19, 2  ;;  %v4866_v42 = vmul.f32 %v4850_v8, %v11832_v38 }
 0x942   :  { %v4909_v53 = vrot.slane %v4908_v0, 2  ;;  %v4867_v14 = vmul.f32 %v4857_v35, %v11832_v38 }
 0x943   :  { %v4889_v48 = vadd.f32 %v4888_v56, %v4887_v19  ;;  %v10235_v24 = vsub.f32 %v10195_v43, %v4866_v42  ;;  %v10238_v47 = vsub.f32 %v10198_v50, %v4866_v42 }
 0x944   :  { %v4910_v59 = vadd.f32 %v4909_v53, %v4908_v0  ;;  %v10241_v6 = vsub.f32 %v10201_v34, %v4867_v14  ;;  %v10244_v1 = vsub.f32 %v10204_v4, %v4867_v14 }
 0x945   :  { %v4890_v28 = vrot.slane %v4889_v48, 1  ;;  %v4878_v39 = vmul.f32 %v10235_v24, %v10235_v24  ;;  %v4882_v15 = vmul.f32 %v10238_v47, %v10238_v47 }
 0x946   :  { %v4911_v12 = vrot.slane %v4910_v59, 1  ;;  %v4879_v51 = vmul.f32 %v10241_v6, %v10241_v6  ;;  %v4883_v61 = vmul.f32 %v10244_v1, %v10244_v1 }
 0x947   :  { %v4891_v37 = vadd.f32 %v4890_v28, %v4889_v48  ;;  %v4892_v44 = vadd.f32 %v4882_v15, %v4878_v39 }
 0x948   :  { %v4912_v57 = vadd.f32 %v4911_v12, %v4910_v59  ;;  %v4899_v60 = vadd.f32 %v4883_v61, %v4879_v51 }
 0x949   :  { %v4913_v49 = vmul.f32 %v4891_v37, %v11832_v38  ;;  %v4893_v5 = vrot.slane %v4892_v44, 4 }
 0x94a   :  { %v4916_v41 = vmul.f32 %v4912_v57, %v11832_v38  ;;  %v4900_v10 = vrot.slane %v4899_v60, 4 }
 0x94b   :  { %v4917_v19 = vadd.f32 1e-06, %v4913_v49  ;;  %v4894_v8 = vadd.f32 %v4893_v5, %v4892_v44 }
 0x94c   :  { %v4920_v0 = vadd.f32 1e-06, %v4916_v41  ;;  %v4901_v35 = vadd.f32 %v4900_v10, %v4899_v60 }
 0x94d   :  { %6867 = vrsqrt.f32 %v4917_v19  ;;  %v4895_v56 = vrot.slane %v4894_v8, 2  ;;  %vm4927_vm13 = vweird.f32 %v4917_v19 }
 0x94e   :  { %6869 = vrsqrt.f32 %v4920_v0  ;;  %v4902_v42 = vrot.slane %v4901_v35, 2  ;;  %vm4957_vm15 = vweird.f32 %v4920_v0 }
 0x94f   :  { %v4896_v53 = vadd.f32 %v4895_v56, %v4894_v8  ;;  %v10258_v8 = vpop.permute.xlu1 %4976 }
 0x950   :  { %v4903_v14 = vadd.f32 %v4902_v42, %v4901_v35 }
 0x951   :  { %v4897_v48 = vrot.slane %v4896_v53, 1 }
 0x952   :  { %v4904_v28 = vrot.slane %v4903_v14, 1 }
 0x953   :  { %v6868_v59 = vpop.eup %6867  ;;  %v4898_v39 = vadd.f32 %v4897_v48, %v4896_v53 }
 0x954   :  { %v6870_v15 = vpop.eup %6869  ;;  %v4922_v12 = vmul.f32 %v6868_v59, %v4917_v19  ;;  %v4905_v51 = vadd.f32 %v4904_v28, %v4903_v14  ;;  %vm4928_vm8 = vweird.f32 %v6868_v59 }
 0x955   :  { %v4952_v61 = vmul.f32 %v6870_v15, %v4920_v0  ;;  %v4914_v37 = vmul.f32 %v4898_v39, %v11832_v38  ;;  %vm4958_vm9 = vweird.f32 %v6870_v15  ;;  %vm4929_vm14 = vmor %vm4927_vm13, %vm4928_vm8  ;;  %v4995_v0 = vpop.permute.xlu0 %4994  ;;  %vm11834_vm13 = vcmp.lt.s32.totalorder %v11516_v26, 113 }
 0x956   :  { %v4923_v57 = vmul.f32 %v6868_v59, %v4922_v12  ;;  %v4915_v44 = vmul.f32 %v4905_v51, %v11832_v38  ;;  %vm4959_vm2 = vmor %vm4957_vm15, %vm4958_vm9  ;;  %v4972_v51 = vpop.permute.xlu2 %4971 }
 0x957   :  { %v4953_v60 = vmul.f32 %v6870_v15, %v4952_v61  ;;  %v4918_v49 = vadd.f32 1e-06, %v4914_v37 }
 0x958   :  { %v4924_v5 = vmul.f32 0.5, %v4923_v57  ;;  %v4919_v41 = vadd.f32 1e-06, %v4915_v44 }
 0x959   :  { %v4954_v10 = vmul.f32 0.5, %v4953_v60  ;;  %6871 = vrsqrt.f32 %v4918_v49  ;;  %vm4937_vm11 = vweird.f32 %v4918_v49 }
 0x95a   :  { %v4925_v35 = vsub.f32 1.5, %v4924_v5  ;;  %6873 = vrsqrt.f32 %v4919_v41  ;;  %vm4947_vm8 = vweird.f32 %v4919_v41 }
 0x95b   :  { %v4955_v56 = vsub.f32 1.5, %v4954_v10 }
 0x95c   :  { %v4926_v42 = vmul.f32 %v6868_v59, %v4925_v35  ;;  %v4990_v35 = vpop.permute.xlu1 %4989 }
 0x95d   :  { %v4956_v53 = vmul.f32 %v6870_v15, %v4955_v56 }
 0x95e   :  { %v4930_v14 = vsel %vm4929_vm14, %v6868_v59, %v4926_v42 }
 0x95f   :  { %v6872_v38 = vpop.eup %6871  ;;  %v4965_v48 = vmul.f32 %v4930_v14, %v10216_v45  ;;  %v4960_v28 = vsel %vm4959_vm2, %v6870_v15, %v4956_v53  ;;  %v4961_v39 = vmul.f32 %v4930_v14, %v10213_v36  ;;  %vm11860_vm2 = vcmp.lt.s32.totalorder %v11516_v26, 112 }
 0x960   :  { %v6874_v12 = vpop.eup %6873  ;;  %v4968_v61 = vmul.f32 %v4960_v28, %v10222_v9  ;;  %v4932_v37 = vmul.f32 %v6872_v38, %v4918_v49  ;;  %v4964_v57 = vmul.f32 %v4960_v28, %v10219_v20  ;;  %v5005_v20 = vld [vmem:[%s10905_s8 + $0x40] sm:$0xff]  ;;  %vm4938_vm3 = vweird.f32 %v6872_v38  ;;  %v5006_v49 = vld [vmem:[%s10905_s8 + $0x48] sm:$0xff] }
 0x961   :  { %v4942_v44 = vmul.f32 %v6874_v12, %v4919_v41  ;;  %v4983_v19 = vmul.f32 %v10258_v8, %v4965_v48  ;;  %v4979_v60 = vmul.f32 %v4972_v51, %v4961_v39  ;;  %vm4948_vm10 = vweird.f32 %v6874_v12  ;;  %vm4939_vm12 = vmor %vm4937_vm11, %vm4938_vm3 }
 0x962   :  { %v4933_v59 = vmul.f32 %v6872_v38, %v4932_v37  ;;  %v4986_v5 = vmul.f32 %v10258_v8, %v4968_v61  ;;  %v4982_v10 = vmul.f32 %v4972_v51, %v4964_v57  ;;  %vm4949_vm9 = vmor %vm4947_vm8, %vm4948_vm10 }
 0x963   :  { %v4943_v45 = vmul.f32 %v6874_v12, %v4942_v44  ;;  %v5001_v15 = vadd.f32 %v4995_v0, %v4983_v19  ;;  %v4997_v9 = vadd.f32 %v4990_v35, %v4979_v60  ;;  %vm11863_vm3 = vmmov %vm11860_vm2 }
 0x964   :  { %v4934_v36 = vmul.f32 0.5, %v4933_v59  ;;  %v5004_v56 = vadd.f32 %v4995_v0, %v4986_v5  ;;  %v5000_v14 = vadd.f32 %v4990_v35, %v4982_v10  ;;  %vm11864_vm10 = vmmov %vm11860_vm2 }
 0x965   :  { %v4944_v42 = vmul.f32 0.5, %v4943_v45  ;;  %5059 = vmatpush.msra.mxu1 %v5001_v15  ;;  %v5021_v15 = vpop.permute.xlu2 %5020  ;;  %vm11866_vm11 = vmmov %vm11860_vm2 }
 0x966   :  { %v4935_v53 = vsub.f32 1.5, %v4934_v36  ;;  %5146 = vmatpush.msrb.mxu0 %v5004_v56  ;;  %vm11868_vm8 = vmmov %vm11860_vm2 }
 0x967   :  { %v4945_v48 = vsub.f32 1.5, %v4944_v42  ;;  %5060 = vmatpush.msra.mxu1 %v4997_v9 }
 0x968   :  { %v4936_v28 = vmul.f32 %v6872_v38, %v4935_v53  ;;  %5147 = vmatpush.msrb.mxu0 %v5000_v14  ;;  %6776 = vmatmul.msk.f32.vlgmr.msra.gmra.mxu1 %vm3241_vm7, %v5005_v20 }
 0x969   :  { %v4946_v39 = vmul.f32 %v6874_v12, %v4945_v48  ;;  %6788 = vmatmul.msk.f32.vlgmr.msrb.gmra.mxu0 %vm3241_vm7, %v5005_v20 }
 0x96a   :  { %v4940_v61 = vsel %vm4939_vm12, %v6872_v38, %v4936_v28  ;;  %vm11867_vm12 = vmmov %vm11860_vm2 }
 0x96b   :  { %v4966_v37 = vmul.f32 %v4940_v61, %v10238_v47  ;;  %v4950_v57 = vsel %vm4949_vm9, %v6874_v12, %v4946_v39  ;;  %v4962_v44 = vmul.f32 %v4940_v61, %v10235_v24  ;;  %v5016_v61 = vpop.permute.xlu1 %5015  ;;  %vm11871_vm9 = vmmov %vm11860_vm2 }
 0x96c   :  { %v4967_v19 = vmul.f32 %v4950_v57, %v10244_v1  ;;  %v4963_v60 = vmul.f32 %v4950_v57, %v10241_v6  ;;  %v5007_v1 = vld [vmem:[%s10905_s8 + $0x50] sm:$0xff] }
 0x96d   :  { %v4984_v59 = vmul.f32 %v10258_v8, %v4966_v37  ;;  %v4980_v41 = vmul.f32 %v4972_v51, %v4962_v44  ;;  %v5026_v9 = vpop.permute.xlu2 %5025 }
 0x96e   :  { %v4985_v5 = vmul.f32 %v10258_v8, %v4967_v19  ;;  %v4981_v38 = vmul.f32 %v4972_v51, %v4963_v60  ;;  %v5008_v8 = vld [vmem:[%s10905_s8 + $0x58] sm:$0xff] }
 0x96f   :  { %v5002_v10 = vadd.f32 %v4995_v0, %v4984_v59  ;;  %v4998_v24 = vadd.f32 %v4990_v35, %v4980_v41 }
 0x970   :  { %6777 = vmatmul.msk.f32.gmra.mxu1 %vm3241_vm7, %v5006_v49  ;;  %v5003_v47 = vadd.f32 %v4995_v0, %v4985_v5  ;;  %v4999_v6 = vadd.f32 %v4990_v35, %v4981_v38 }
 0x971   :  { %6789 = vmatmul.msk.f32.gmra.mxu0 %vm3241_vm7, %v5006_v49  ;;  %5088 = vmatpush.msra.mxu2 %v5002_v10  ;;  %v5169_v10 = vld [vmem:[%s10905_s8 + $0x60] sm:$0xff] }
 0x972   :  { %5117 = vmatpush.msra.mxu3 %v5003_v47 }
 0x973   :  { %5089 = vmatpush.msra.mxu2 %v4998_v24 }
 0x974   :  { %5118 = vmatpush.msra.mxu3 %v4999_v6  ;;  %6780 = vmatmul.msk.f32.vlgmr.msra.gmra.mxu2 %vm3241_vm7, %v5005_v20 }
 0x975   :  { %6784 = vmatmul.msk.f32.vlgmr.msra.gmra.mxu3 %vm3241_vm7, %v5005_v20  ;;  %v5031_v20 = vpop.permute.xlu0 %5030 }
 0x978   :  { %6778 = vmatmul.msk.f32.gmra.mxu1 %vm3241_vm7, %v5007_v1 }
 0x979   :  { %6790 = vmatmul.msk.f32.gmra.mxu0 %vm3241_vm7, %v5007_v1 }
 0x97c   :  { %6781 = vmatmul.msk.f32.gmra.mxu2 %vm3241_vm7, %v5006_v49 }
 0x97d   :  { %6785 = vmatmul.msk.f32.gmra.mxu3 %vm3241_vm7, %v5006_v49 }
 0x980   :  { %6779 = vmatmul.msk.f32.gmra.mxu1 %vm3241_vm7, %v5008_v8 }
 0x981   :  { %6791 = vmatmul.msk.f32.gmra.mxu0 %vm3241_vm7, %v5008_v8 }
 0x984   :  { %6782 = vmatmul.msk.f32.gmra.mxu2 %vm3241_vm7, %v5007_v1 }
 0x985   :  { %6786 = vmatmul.msk.f32.gmra.mxu3 %vm3241_vm7, %v5007_v1  ;;  %v5170_v1 = vld [vmem:[%s10905_s8 + $0x68] sm:$0xff] }
 0x98c   :  { %6783 = vmatmul.msk.f32.gmra.mxu2 %vm3241_vm7, %v5008_v8 }
 0x98d   :  { %6787 = vmatmul.msk.f32.gmra.mxu3 %vm3241_vm7, %v5008_v8 }
 0x9e5   :  { %v5062_v12 = vpop.f32.mrf.mxu1 }
 0x9e6   :  { %v5149_v51 = vpop.f32.mrf.mxu0  ;;  %v5063_v60 = vadd.f32 %v5062_v12, %v5016_v61 }
 0x9e7   :  { %v5150_v41 = vadd.f32 %v5149_v51, %v5016_v61 }
 0x9ed   :  { %v5065_v0 = vpop.f32.mrf.mxu1 }
 0x9ee   :  { %v5152_v45 = vpop.f32.mrf.mxu0  ;;  %v5066_v14 = vadd.f32 %v5065_v0, %v5021_v15 }
 0x9ef   :  { %v5153_v37 = vadd.f32 %v5152_v45, %v5021_v15 }
 0x9f5   :  { %v5068_v35 = vpop.f32.mrf.mxu1 }
 0x9f6   :  { %v5155_v36 = vpop.f32.mrf.mxu0  ;;  %v5069_v48 = vadd.f32 %v5068_v35, %v5026_v9 }
 0x9f7   :  { %v5091_v56 = vpop.f32.mrf.mxu2  ;;  %v5156_v57 = vadd.f32 %v5155_v36, %v5026_v9 }
 0x9f8   :  { %v5120_v42 = vpop.f32.mrf.mxu3  ;;  %v5161_v38 = vmul.f32 %v5069_v48, %v5063_v60 }
 0x9f9   :  { %v5164_v47 = vmul.f32 %v5156_v57, %v5150_v41 }
 0x9fd   :  { %v5071_v53 = vpop.f32.mrf.mxu1 }
 0x9fe   :  { %v5072_v28 = vadd.f32 %v5071_v53, %v5031_v20  ;;  %v5158_v39 = vpop.f32.mrf.mxu0 }
 0x9ff   :  { %v5159_v44 = vadd.f32 %v5158_v39, %v5031_v20  ;;  %v5094_v19 = vpop.f32.mrf.mxu2 }
 0xa00   :  { %v5165_v49 = vmul.f32 %v5072_v28, %v5066_v14  ;;  %v5123_v59 = vpop.f32.mrf.mxu3  ;;  %v5095_v12 = vadd.f32 %v5094_v19, %v5021_v15  ;;  %v5092_v14 = vadd.f32 %v5091_v56, %v5016_v61  ;;  %v5121_v28 = vadd.f32 %v5120_v42, %v5016_v61  ;;  %v5176_v56 = vpop.permute.xlu1 %5175 }
 0xa01   :  { %v5168_v5 = vmul.f32 %v5159_v44, %v5153_v37  ;;  %v5124_v35 = vadd.f32 %v5123_v59, %v5021_v15  ;;  %v10314_v15 = vpop.permute.xlu0 %5180 }
 0xa02   :  { %5203 = vmatpush.msrb.mxu1 %v5165_v49 }
 0xa03   :  { %5272 = vmatpush.msra.mxu0 %v5168_v5 }
 0xa04   :  { %5204 = vmatpush.msrb.mxu1 %v5161_v38 }
 0xa05   :  { %5273 = vmatpush.msra.mxu0 %v5164_v47  ;;  %6792 = vmatmul.msk.f32.vlgmr.msrb.gmra.mxu1 %vm3241_vm7, %v5169_v10 }
 0xa06   :  { %6798 = vmatmul.msk.f32.vlgmr.msra.gmra.mxu0 %vm3241_vm7, %v5169_v10 }
 0xa07   :  { %v5097_v24 = vpop.f32.mrf.mxu2 }
 0xa08   :  { %v5126_v6 = vpop.f32.mrf.mxu3  ;;  %v5098_v51 = vadd.f32 %v5097_v24, %v5026_v9 }
 0xa09   :  { %v5127_v36 = vadd.f32 %v5126_v6, %v5026_v9 }
 0xa0a   :  { %v5162_v37 = vmul.f32 %v5098_v51, %v5092_v14 }
 0xa0b   :  { %v5163_v57 = vmul.f32 %v5127_v36, %v5121_v28 }
 0xa0d   :  { %6793 = vmatmul.msk.f32.gmra.mxu1 %vm3241_vm7, %v5170_v1 }
 0xa0e   :  { %6799 = vmatmul.msk.f32.gmra.mxu0 %vm3241_vm7, %v5170_v1 }
 0xa0f   :  { %v5100_v8 = vpop.f32.mrf.mxu2 }
 0xa10   :  { %v5101_v0 = vadd.f32 %v5100_v8, %v5031_v20  ;;  %v5129_v45 = vpop.f32.mrf.mxu3 }
 0xa11   :  { %v5130_v53 = vadd.f32 %v5129_v45, %v5031_v20  ;;  %v5286_v20 = vpop.permute.xlu0 %5285 }
 0xa12   :  { %v5166_v48 = vmul.f32 %v5101_v0, %v5095_v12 }
 0xa13   :  { %v5167_v39 = vmul.f32 %v5130_v53, %v5124_v35 }
 0xa14   :  { %5226 = vmatpush.msrb.mxu2 %v5166_v48 }
 0xa15   :  { %5249 = vmatpush.msrb.mxu3 %v5167_v39 }
 0xa16   :  { %5227 = vmatpush.msrb.mxu2 %v5162_v37 }
 0xa17   :  { %5250 = vmatpush.msrb.mxu3 %v5163_v57  ;;  %6794 = vmatmul.msk.f32.vlgmr.msrb.gmra.mxu2 %vm3241_vm7, %v5169_v10 }
 0xa18   :  { %6796 = vmatmul.msk.f32.vlgmr.msrb.gmra.mxu3 %vm3241_vm7, %v5169_v10 }
 0xa1f   :  { %6795 = vmatmul.msk.f32.gmra.mxu2 %vm3241_vm7, %v5170_v1 }
 0xa20   :  { %6797 = vmatmul.msk.f32.gmra.mxu3 %vm3241_vm7, %v5170_v1 }
 0xa82   :  { %v5206_v9 = vpop.f32.mrf.mxu1 }
 0xa83   :  { %v5207_v42 = vadd.f32 %v5206_v9, %v5176_v56  ;;  %v5275_v61 = vpop.f32.mrf.mxu0 }
 0xa84   :  { %v5276_v60 = vadd.f32 %v5275_v61, %v5176_v56 }
 0xa85   :  { %v5293_v44 = vmul.f32 %v5286_v20, %v5207_v42 }
 0xa86   :  { %v5296_v49 = vmul.f32 %v5286_v20, %v5276_v60 }
 0xa87   :  { %v10317_v19 = vadd.f32 %v5293_v44, %v10179_v3 }
 0xa88   :  { %v10326_v59 = vadd.f32 %v5296_v49, %v10185_v22  ;;  %v5291_v22 = vpop.permute.xlu2 %5290 }
 0xa89   :  { %5571 = vrot.lane.b32.xlu1 %v10317_v19, %s6877_s22  ;;  %5450 = vrot.lane.b32.xlu2 %v10317_v19, %s6876_s0 }
 0xa8a   :  { %5330 = vrot.lane.b32.xlu0 %v10317_v19, %s6875_s21  ;;  %v5209_v38 = vpop.f32.mrf.mxu1 }
 0xa8b   :  { %v5278_v3 = vpop.f32.mrf.mxu0  ;;  %v5210_v10 = vadd.f32 %v5209_v38, %v10314_v15 }
 0xa8c   :  { %v5279_v41 = vadd.f32 %v5278_v3, %v10314_v15 }
 0xa8d   :  { %v5297_v24 = vmul.f32 %v5291_v22, %v5210_v10 }
 0xa8e   :  { %v5300_v5 = vmul.f32 %v5291_v22, %v5279_v41 }
 0xa8f   :  { %v10352_v6 = vadd.f32 %v5297_v24, %v10182_v17 }
 0xa90   :  { %v10343_v47 = vadd.f32 %v5300_v5, %v10188_v13 }
 0xa91   :  { %5583 = vrot.lane.b32.xlu1 %v10326_v59, %s6877_s22  ;;  %5462 = vrot.lane.b32.xlu2 %v10326_v59, %s6876_s0 }
 0xa92   :  { %5342 = vrot.lane.b32.xlu0 %v10326_v59, %s6875_s21 }
 0xa99   :  { %5914 = vrot.lane.b32.xlu1 %v10326_v59, %s6879_s24  ;;  %5902 = vrot.lane.b32.xlu2 %v10317_v19, %s6879_s24 }
 0xa9a   :  { %5692 = vrot.lane.b32.xlu0 %v10317_v19, %s6878_s23  ;;  %v5229_v13 = vpop.f32.mrf.mxu2 }
 0xa9b   :  { %v5252_v17 = vpop.f32.mrf.mxu3  ;;  %v5230_v8 = vadd.f32 %v5229_v13, %v5176_v56 }
 0xa9c   :  { %v5253_v1 = vadd.f32 %v5252_v17, %v5176_v56 }
 0xa9d   :  { %v5294_v51 = vmul.f32 %v5286_v20, %v5230_v8  ;;  %v10502_v8 = vld [vmem:[%s10907_s9] sm:$0x7] }
 0xa9e   :  { %v5295_v12 = vmul.f32 %v5286_v20, %v5253_v1 }
 0xa9f   :  { %v10376_v45 = vadd.f32 %v5294_v51, %v10195_v43 }
 0xaa0   :  { %v10373_v0 = vadd.f32 %v5295_v12, %v10201_v34 }
 0xaa1   :  { %6023 = vrot.lane.b32.xlu1 %v10317_v19, %s6880_s29  ;;  %5344 = vrot.lane.b32.xlu2 %v10343_v47, %s6875_s21 }
 0xaa2   :  { %5704 = vrot.lane.b32.xlu0 %v10326_v59, %s6878_s23  ;;  %v5232_v36 = vpop.f32.mrf.mxu2 }
 0xaa3   :  { %v5255_v43 = vpop.f32.mrf.mxu3  ;;  %v5233_v53 = vadd.f32 %v5232_v36, %v10314_v15 }
 0xaa4   :  { %v5256_v34 = vadd.f32 %v5255_v43, %v10314_v15 }
 0xaa5   :  { %v5298_v48 = vmul.f32 %v5291_v22, %v5233_v53 }
 0xaa6   :  { %v5299_v35 = vmul.f32 %v5291_v22, %v5256_v34 }
 0xaa7   :  { %v10416_v39 = vadd.f32 %v5298_v48, %v10198_v50  ;;  %v5309_v48 = vld [vmem:[%s10900_s10 + $0x108] sm:$0x7] }
 0xaa8   :  { %v10405_v14 = vadd.f32 %v5299_v35, %v10204_v4 }
 0xaa9   :  { %5332 = vrot.lane.b32.xlu1 %v10352_v6, %s6875_s21  ;;  %5573 = vrot.lane.b32.xlu2 %v10352_v6, %s6877_s22 }
 0xaaa   :  { %5452 = vrot.lane.b32.xlu0 %v10352_v6, %s6876_s0 }
 0xab1   :  { %5464 = vrot.lane.b32.xlu1 %v10343_v47, %s6876_s0  ;;  %5706 = vrot.lane.b32.xlu2 %v10343_v47, %s6878_s23 }
 0xab2   :  { %5585 = vrot.lane.b32.xlu0 %v10343_v47, %s6877_s22 }
 0xab9   :  { %5694 = vrot.lane.b32.xlu1 %v10352_v6, %s6878_s23  ;;  %5904 = vrot.lane.b32.xlu2 %v10352_v6, %s6879_s24 }
 0xaba   :  { %5916 = vrot.lane.b32.xlu0 %v10343_v47, %s6879_s24 }
 0xac1   :  { %6025 = vrot.lane.b32.xlu1 %v10352_v6, %s6880_s29  ;;  %5338 = vrot.lane.b32.xlu2 %v10373_v0, %s6875_s21 }
 0xac2   :  { %5454 = vrot.lane.b32.xlu0 %v10376_v45, %s6876_s0 }
 0xac9   :  { %5334 = vrot.lane.b32.xlu1 %v10376_v45, %s6875_s21  ;;  %5575 = vrot.lane.b32.xlu2 %v10376_v45, %s6877_s22 }
 0xaca   :  { %5579 = vrot.lane.b32.xlu0 %v10373_v0, %s6877_s22 }
 0xad1   :  { %5458 = vrot.lane.b32.xlu1 %v10373_v0, %s6876_s0  ;;  %5700 = vrot.lane.b32.xlu2 %v10373_v0, %s6878_s23 }
 0xad2   :  { %5906 = vrot.lane.b32.xlu0 %v10376_v45, %s6879_s24 }
 0xad9   :  { %5696 = vrot.lane.b32.xlu1 %v10376_v45, %s6878_s23  ;;  %6027 = vrot.lane.b32.xlu2 %v10376_v45, %s6880_s29 }
 0xada   :  { %6031 = vrot.lane.b32.xlu0 %v10373_v0, %s6880_s29 }
 0xae1   :  { %5910 = vrot.lane.b32.xlu1 %v10373_v0, %s6879_s24  ;;  %5340 = vrot.lane.b32.xlu2 %v10405_v14, %s6875_s21 }
 0xae2   :  { %6035 = vrot.lane.b32.xlu0 %v10326_v59, %s6880_s29 }
 0xae3   :  { %v10413_v28 = vpop.permute.xlu2 %5450 }
 0xae9   :  { %5336 = vrot.lane.b32.xlu1 %v10416_v39, %s6875_s21  ;;  %6037 = vrot.lane.b32.xlu2 %v10343_v47, %s6880_s29 }
 0xaea   :  { %5460 = vrot.lane.b32.xlu0 %v10405_v14, %s6876_s0 }
 0xaeb   :  { %v10424_v4 = vpop.permute.xlu2 %5462 }
 0xaf1   :  { %5456 = vrot.lane.b32.xlu1 %v10416_v39, %s6876_s0  ;;  %5581 = vrot.lane.b32.xlu2 %v10405_v14, %s6877_s22 }
 0xaf2   :  { %5577 = vrot.lane.b32.xlu0 %v10416_v39, %s6877_s22 }
 0xaf3   :  { %v10432_v50 = vpop.permute.xlu2 %5902 }
 0xaf9   :  { %6148 = vrot.lane.b32.xlu1 %v10376_v45, %s6881_s15  ;;  %5698 = vrot.lane.b32.xlu2 %v10416_v39, %s6878_s23 }
 0xafa   :  { %6146 = vrot.lane.b32.xlu0 %v10352_v6, %s6881_s15 }
 0xafb   :  { %v5572_v37 = vpop.permute.xlu1 %5571  ;;  %v5345_v57 = vpop.permute.xlu2 %5344 }
 0xafc   :  { %v10440_v15 = vpop.permute.xlu0 %5330 }
 0xb01   :  { %5702 = vrot.lane.b32.xlu1 %v10405_v14, %s6878_s23  ;;  %6152 = vrot.lane.b32.xlu2 %v10373_v0, %s6881_s15 }
 0xb02   :  { %6144 = vrot.lane.b32.xlu0 %v10317_v19, %s6881_s15 }
 0xb03   :  { %v10448_v56 = vpop.permute.xlu1 %5583  ;;  %v10450_v9 = vpop.permute.xlu2 %5573 }
 0xb04   :  { %v10455_v42 = vsel %vm441_vm4, %v10448_v56, %v5572_v37  ;;  %v5343_v20 = vpop.permute.xlu0 %5342 }
 0xb05   :  { %v5352_v17 = vsel %vm66_vm0, %v5343_v20, %v10440_v15 }
 0xb06   :  { %v5354_v1 = vmul.f32 %v5352_v17, %v11777_v58 }
 0xb09   :  { %6158 = vrot.lane.b32.xlu1 %v10343_v47, %s6881_s15  ;;  %6156 = vrot.lane.b32.xlu2 %v10326_v59, %s6881_s15 }
 0xb0a   :  { %5908 = vrot.lane.b32.xlu0 %v10416_v39, %s6879_s24 }
 0xb0b   :  { %v10463_v61 = vpop.permute.xlu1 %5914  ;;  %v10465_v44 = vpop.permute.xlu2 %5706 }
 0xb0c   :  { %v10467_v60 = vpop.permute.xlu0 %5692 }
 0xb11   :  { %5912 = vrot.lane.b32.xlu1 %v10405_v14, %s6879_s24  ;;  %6029 = vrot.lane.b32.xlu2 %v10416_v39, %s6880_s29 }
 0xb12   :  { %6033 = vrot.lane.b32.xlu0 %v10405_v14, %s6880_s29 }
 0xb13   :  { %v10475_v49 = vpop.permute.xlu1 %6023  ;;  %v10477_v3 = vpop.permute.xlu2 %5904 }
 0xb14   :  { %v5705_v41 = vpop.permute.xlu0 %5704 }
 0xb15   :  { %v10482_v22 = vsel %vm621_vm5, %v5705_v41, %v10467_v60 }
 0xb19   :  { %6150 = vrot.lane.b32.xlu1 %v10416_v39, %s6881_s15  ;;  %6154 = vrot.lane.b32.xlu2 %v10405_v14, %s6881_s15 }
 0xb1a   :  { %6269 = vrot.lane.b32.xlu0 %v10376_v45, %s6883_s26 }
 0xb1b   :  { %v5333_v5 = vpop.permute.xlu1 %5332  ;;  %v5339_v38 = vpop.permute.xlu2 %5338 }
 0xb1c   :  { %v5353_v10 = vsel %vm66_vm0, %v5345_v57, %v5333_v5  ;;  %v10492_v24 = vpop.permute.xlu0 %5452  ;;  %v5346_v7 = vsel %vm66_vm0, %v5339_v38, %v5343_v20 }
 0xb1d   :  { %v5358_v13 = vmul.f32 %v5353_v10, %v11777_v58  ;;  %v5357_v29 = vmul.f32 %v5346_v7, %v11768_v63 }
 0xb1f   :  { %5380 = vmatpush.msra.mxu1 %v5358_v13 }
 0xb21   :  { %6273 = vrot.lane.b32.xlu1 %v10373_v0, %s6883_s26  ;;  %6267 = vrot.lane.b32.xlu2 %v10352_v6, %s6883_s26 }
 0xb22   :  { %6271 = vrot.lane.b32.xlu0 %v10416_v39, %s6883_s26  ;;  %5381 = vmatpush.msra.mxu1 %v5354_v1 }
 0xb23   :  { %6800 = vmatmul.msk.f32.vlgmr.msra.gmra.mxu1 %vm3241_vm7, %v10502_v8  ;;  %v5465_v12 = vpop.permute.xlu1 %5464  ;;  %v10512_v58 = vpop.permute.xlu2 %5575 }
 0xb24   :  { %v10517_v51 = vsel %vm441_vm4, %v5572_v37, %v10512_v58  ;;  %v5586_v43 = vpop.permute.xlu0 %5585 }
 0xb29   :  { %6275 = vrot.lane.b32.xlu1 %v10405_v14, %s6883_s26  ;;  %6265 = vrot.lane.b32.xlu2 %v10317_v19, %s6883_s26 }
 0xb2a   :  { %6279 = vrot.lane.b32.xlu0 %v10343_v47, %s6883_s26 }
 0xb2b   :  { %v10525_v34 = vpop.permute.xlu1 %5694  ;;  %v10527_v35 = vpop.permute.xlu2 %5700 }
 0xb2c   :  { %v10532_v36 = vsel %vm621_vm5, %v10527_v35, %v5705_v41  ;;  %v10534_v53 = vpop.permute.xlu0 %5916 }
 0xb31   :  { %6277 = vrot.lane.b32.xlu1 %v10326_v59, %s6883_s26  ;;  %5312 = vperm.xlu2 %6854, %v5309_v48  }
 0xb33   :  { %v10541_v37 = vpop.permute.xlu1 %6025  ;;  %v10543_v10 = vpop.permute.xlu2 %6027 }
 0xb34   :  { %11833 = vst [vmem:[#allocation92_spill] sm:$0xff] %v10543_v10  ;;  %v10549_v41 = vsel %vm11834_vm13, %v10475_v49, %v10543_v10  ;;  %v5455_v17 = vpop.permute.xlu0 %5454 }
 0xb3b   :  { %v5335_v13 = vpop.permute.xlu1 %5334  ;;  %v5341_v1 = vpop.permute.xlu2 %5340 }
 0xb3c   :  { %v5347_v27 = vsel %vm66_vm0, %v5341_v1, %v5345_v57  ;;  %v10555_v48 = vpop.permute.xlu0 %5579 }
 0xb3d   :  { %v5361_v31 = vmul.f32 %v5347_v27, %v11768_v63 }
 0xb3f   :  { %5440 = vmatpush.msrb.mxu1 %v5361_v31  ;;  %v5350_v31 = vsel %vm66_vm0, %v10440_v15, %v5335_v13  ;;  %v5473_v15 = vsel %vm261_vm1, %v5465_v12, %v10492_v24 }
 0xb41   :  { %5441 = vmatpush.msrb.mxu1 %v5357_v29  ;;  %v5348_v29 = vsel %vm66_vm0, %v5335_v13, %v5339_v38  ;;  %v11837_v13 = vld [vmem:[#allocation12_spill] sm:$0xff] }
 0xb42   :  { %6803 = vmatmul.msk.f32.vlgmr.msrb.gmra.mxu1 %vm3241_vm7, %v10502_v8 }
 0xb43   :  { %v5459_v52 = vpop.permute.xlu1 %5458  ;;  %v10561_v16 = vpop.permute.xlu2 %6037 }
 0xb44   :  { %v10563_v2 = vpop.permute.xlu0 %5906  ;;  %v5466_v32 = vsel %vm261_vm1, %v5459_v52, %v10424_v4 }
 0xb4b   :  { %v10565_v20 = vpop.permute.xlu1 %5696  ;;  %v5582_v57 = vpop.permute.xlu2 %5581 }
 0xb4c   :  { %v10567_v11 = vpop.permute.xlu0 %6031  ;;  %v5588_v55 = vsel %vm441_vm4, %v5582_v57, %v5586_v43 }
 0xb4d   :  { %11835 = vst [vmem:[#allocation102_spill] sm:$0xff] %v10567_v11 }
 0xb53   :  { %v10569_v54 = vpop.permute.xlu1 %5910  ;;  %v10573_v7 = vpop.permute.xlu2 %5698 }
 0xb54   :  { %11836 = vst [vmem:[#allocation129_spill] sm:$0xff] %v10569_v54  ;;  %v10571_v27 = vpop.permute.xlu0 %6035 }
 0xb5b   :  { %v5337_v63 = vpop.permute.xlu1 %5336 }
 0xb5c   :  { %v5349_v25 = vsel %vm66_vm0, %v5337_v63, %v5341_v1  ;;  %v5351_v10 = vsel %vm66_vm0, %v5333_v5, %v5337_v63  ;;  %v5461_v11 = vpop.permute.xlu0 %5460  ;;  %v5355_v5 = vmul.f32 %v5350_v31, %v11745_v46  ;;  %v5356_v63 = vmul.f32 %v5348_v29, %v11705_v23  ;;  %vm11847_vm0 = vmmov %vm11834_vm13 }
 0xb5d   :  { %v5359_v18 = vmul.f32 %v5351_v10, %v11745_v46  ;;  %v5360_v54 = vmul.f32 %v5349_v25, %v11705_v23  ;;  %v5467_v38 = vsel %vm261_vm1, %v5461_v11, %v5465_v12  ;;  %v5472_v25 = vsel %vm261_vm1, %v10424_v4, %v10413_v28  ;;  %v10615_v23 = vpop.permute.xlu2 %6152  ;;  %v11838_v4 = vld [vmem:[#allocation14_spill] sm:$0xff]  ;;  %vm11858_vm14 = vmmov %vm11847_vm0 }
 0xb5e   :  { %v5481_v1 = vmul.f32 %v5467_v38, %v11837_v13  ;;  %v5477_v10 = vmul.f32 %v5466_v32, %v11837_v13  ;;  %v5478_v12 = vmul.f32 %v5473_v15, %v11788_v40  ;;  %v5594_v46 = vsel %vm441_vm4, %v5586_v43, %v10450_v9  ;;  %v11839_v13 = vld [vmem:[#allocation10_spill] sm:$0xff]  ;;  %vm11859_vm15 = vmmov %vm11847_vm0 }
 0xb5f   :  { %5400 = vmatpush.msra.mxu2 %v5359_v18  ;;  %5420 = vmatpush.msra.mxu3 %v5360_v54  ;;  %v6804_v54 = vld [vmem:[%s10907_s9 + $0x4] sm:$0x7]  ;;  %v5587_v32 = vsel %vm441_vm4, %v10555_v48, %v10448_v56  ;;  %v5474_v18 = vmul.f32 %v5472_v25, %v11788_v40  ;;  %v5602_v43 = vmul.f32 %v5588_v55, %v11838_v4  ;;  %vm11872_vm13 = vmmov %vm11860_vm2 }
 0xb60   :  { %5561 = vmatpush.msra.mxu1 %v5481_v1  ;;  %v5599_v31 = vmul.f32 %v5594_v46, %v11789_v30  ;;  %v5470_v56 = vsel %vm261_vm1, %v10413_v28, %v5455_v17  ;;  %v5468_v15 = vsel %vm261_vm1, %v5455_v17, %v5459_v52  ;;  %v11841_v17 = vld [vmem:[#allocation16_spill] sm:$0xff] }
 0xb61   :  { %5401 = vmatpush.msra.mxu2 %v5355_v5  ;;  %5421 = vmatpush.msra.mxu3 %v5356_v63  ;;  %v11840_v5 = vld [vmem:[#allocation9_spill] sm:$0xff]  ;;  %v5595_v63 = vmul.f32 %v10455_v42, %v11789_v30  ;;  %v5715_v30 = vsel %vm621_vm5, %v10465_v44, %v10525_v34  ;;  %v5713_v42 = vsel %vm621_vm5, %v10525_v34, %v10573_v7  ;;  %v11843_v34 = vld [vmem:[#allocation19_spill] sm:$0xff] }
 0xb62   :  { %5562 = vmatpush.msra.mxu1 %v5477_v10  ;;  %6801 = vmatmul.msk.f32.vlgmr.msra.gmra.mxu2 %vm3241_vm7, %v10502_v8  ;;  %v5476_v25 = vmul.f32 %v5468_v15, %v11840_v5  ;;  %v6809_v10 = vld [vmem:[%s10907_s9 + $0x8] sm:$0x7] }
 0xb63   :  { %6802 = vmatmul.msk.f32.vlgmr.msra.gmra.mxu3 %vm3241_vm7, %v10502_v8  ;;  %5501 = vmatpush.msrb.mxu2 %v5478_v12  ;;  %v5457_v29 = vpop.permute.xlu1 %5456  ;;  %v5598_v8 = vmul.f32 %v5587_v32, %v11838_v4  ;;  %v11842_v12 = vld [vmem:[#allocation13_spill] sm:$0xff]  ;;  %v5720_v32 = vmul.f32 %v5715_v30, %v11843_v34 }
 0xb64   :  { %6808 = vmatmul.msk.f32.vlgmr.msra.gmra.mxu1 %vm3241_vm7, %v6804_v54  ;;  %v5469_v38 = vsel %vm261_vm1, %v5457_v29, %v5461_v11  ;;  %v5471_v55 = vsel %vm261_vm1, %v10492_v24, %v5457_v29  ;;  %v5578_v40 = vpop.permute.xlu0 %5577  ;;  %v5475_v24 = vmul.f32 %v5470_v56, %v11839_v13  ;;  %vm11848_vm1 = vmmov %vm11847_vm0 }
 0xb65   :  { %5682 = vmatpush.msrb.mxu1 %v5602_v43  ;;  %v5479_v1 = vmul.f32 %v5471_v55, %v11839_v13  ;;  %v5480_v28 = vmul.f32 %v5469_v38, %v11840_v5  ;;  %5502 = vmatpush.msrb.mxu2 %v5474_v18  ;;  %v5592_v11 = vsel %vm441_vm4, %v10450_v9, %v5578_v40  ;;  %v10675_v4 = vpop.permute.xlu2 %6156 }
 0xb66   :  { %v5590_v52 = vsel %vm441_vm4, %v5578_v40, %v5582_v57  ;;  %v5589_v9 = vsel %vm441_vm4, %v10512_v58, %v10555_v48  ;;  %v5600_v57 = vmul.f32 %v5592_v11, %v11841_v17  ;;  %v5596_v48 = vmul.f32 %v10517_v51, %v11841_v17  ;;  %vm11849_vm4 = vmmov %vm11847_vm0  ;;  %v11850_v11 = vld [vmem:[#allocation28_spill] sm:$0xff] }
 0xb67   :  { %5683 = vmatpush.msrb.mxu1 %v5598_v8  ;;  %5622 = vmatpush.msra.mxu2 %v5599_v31  ;;  %v5601_v46 = vmul.f32 %v5590_v52, %v11842_v12  ;;  %v5712_v18 = vsel %vm621_vm5, %v10467_v60, %v10565_v20  ;;  %v5597_v29 = vmul.f32 %v5589_v9, %v11842_v12  ;;  %v11844_v31 = vld [vmem:[#allocation20_spill] sm:$0xff]  ;;  %v11845_v8 = vld [vmem:[#allocation17_spill] sm:$0xff] }
 0xb68   :  { %5521 = vmatpush.msrb.mxu3 %v5479_v1  ;;  %5541 = vmatpush.msrb.mxu0 %v5480_v28  ;;  %v5721_v56 = vmul.f32 %v5713_v42, %v11844_v31  ;;  %v5716_v51 = vmul.f32 %v10482_v22, %v11843_v34  ;;  %v5717_v60 = vmul.f32 %v5712_v18, %v11844_v31  ;;  %v11846_v1 = vld [vmem:[#allocation23_spill] sm:$0xff]  ;;  %v11852_v42 = vld [vmem:[#allocation22_spill] sm:$0xff]  ;;  %v11855_v12 = vld [vmem:[#allocation92_spill] sm:$0xff] }
 0xb69   :  { %5623 = vmatpush.msra.mxu2 %v5595_v63  ;;  %v5710_v38 = vsel %vm621_vm5, %v10565_v20, %v10527_v35  ;;  %v6045_v63 = vsel %vm11849_vm4, %v10571_v27, %v10475_v49  ;;  %v11861_v31 = vld [vmem:[#allocation25_spill] sm:$0xff] }
 0xb6a   :  { %5522 = vmatpush.msrb.mxu3 %v5475_v24  ;;  %5542 = vmatpush.msrb.mxu0 %v5476_v25  ;;  %v6050_v9 = vmul.f32 %v6045_v63, %v11850_v11  ;;  %v6834_v63 = vld [vmem:[%s10907_s9 + $0x1c] sm:$0x7] }
 0xb6b   :  { %6805 = vmatmul.msk.f32.vlgmr.msrb.gmra.mxu2 %vm3241_vm7, %v6804_v54  ;;  %6806 = vmatmul.msk.f32.vlgmr.msrb.gmra.mxu3 %vm3241_vm7, %v6804_v54  ;;  %v10666_v58 = vpop.permute.xlu1 %6148 }
 0xb6c   :  { %6807 = vmatmul.msk.f32.vlgmr.msrb.gmra.mxu0 %vm3241_vm7, %v6804_v54  ;;  %5642 = vmatpush.msra.mxu3 %v5600_v57  ;;  %v10678_v43 = vpop.permute.xlu0 %6146  ;;  %v11853_v57 = vld [vmem:[#allocation21_spill] sm:$0xff] }
 0xb6d   :  { %5662 = vmatpush.msra.mxu0 %v5601_v46  ;;  %6813 = vmatmul.msk.f32.vlgmr.msrb.gmra.mxu1 %vm3241_vm7, %v6809_v10  ;;  %v10705_v20 = vpop.permute.xlu2 %6029 }
 0xb6e   :  { %5743 = vmatpush.msrb.mxu2 %v5720_v32  ;;  %5643 = vmatpush.msra.mxu3 %v5596_v48 }
 0xb6f   :  { %5663 = vmatpush.msra.mxu0 %v5597_v29  ;;  %v6824_v29 = vld [vmem:[%s10907_s9 + $0x14] sm:$0x7] }
 0xb70   :  { %5763 = vmatpush.msrb.mxu3 %v5721_v56  ;;  %5744 = vmatpush.msrb.mxu2 %v5716_v51  ;;  %v11862_v51 = vld [vmem:[#allocation26_spill] sm:$0xff] }
 0xb72   :  { %5764 = vmatpush.msrb.mxu3 %v5717_v60 }
 0xb73   :  { %6810 = vmatmul.msk.f32.vlgmr.msra.gmra.mxu2 %vm3241_vm7, %v6809_v10  ;;  %6811 = vmatmul.msk.f32.vlgmr.msra.gmra.mxu3 %vm3241_vm7, %v6809_v10  ;;  %v5703_v54 = vpop.permute.xlu1 %5702 }
 0xb74   :  { %6812 = vmatmul.msk.f32.vlgmr.msra.gmra.mxu0 %vm3241_vm7, %v6809_v10  ;;  %5832 = vmatpush.msra.mxu2 %v10352_v6  ;;  %v5709_v22 = vsel %vm621_vm5, %v5703_v54, %v10465_v44  ;;  %v5711_v55 = vsel %vm621_vm5, %v10573_v7, %v5703_v54  ;;  %v10700_v40 = vpop.permute.xlu0 %6144  ;;  %v5718_v6 = vmul.f32 %v5710_v38, %v11845_v8  ;;  %v11854_v10 = vld [vmem:[#allocation102_spill] sm:$0xff]  ;;  %vm11856_vm5 = vmmov %vm11847_vm0 }
 0xb75   :  { %5852 = vmatpush.msra.mxu3 %v10416_v39  ;;  %v5722_v15 = vmul.f32 %v5711_v55, %v11845_v8  ;;  %v5723_v35 = vmul.f32 %v5709_v22, %v11680_v33  ;;  %v5719_v44 = vmul.f32 %v10532_v36, %v11680_v33  ;;  %v6814_v39 = vld [vmem:[%s10907_s9 + $0xc] sm:$0x7]  ;;  %v5924_v33 = vsel %vm945_vm6, %v10463_v61, %v10432_v50 }
 0xb76   :  { %5833 = vmatpush.msra.mxu2 %v10317_v19  ;;  %v5925_v19 = vsel %vm945_vm6, %v10534_v53, %v10477_v3  ;;  %v5922_v36 = vsel %vm945_vm6, %v10432_v50, %v10563_v2  ;;  %v5929_v28 = vmul.f32 %v5924_v33, %v11534_v62  ;;  %v6046_v50 = vsel %vm11847_vm0, %v10561_v16, %v10541_v37  ;;  %v11870_v33 = vld [vmem:[#allocation38_spill] sm:$0xff] }
 0xb77   :  { %5853 = vmatpush.msra.mxu3 %v10376_v45  ;;  %5783 = vmatpush.msrb.mxu0 %v5722_v15  ;;  %v5933_v13 = vmul.f32 %v5925_v19, %v11534_v62  ;;  %v6819_v62 = vld [vmem:[%s10907_s9 + $0x10] sm:$0x7]  ;;  %v6054_v24 = vmul.f32 %v6046_v50, %v11850_v11  ;;  %v6041_v46 = vsel %vm11856_vm5, %v11855_v12, %v11854_v10  ;;  %v11865_v15 = vld [vmem:[#allocation34_spill] sm:$0xff] }
 0xb78   :  { %5803 = vmatpush.msra.mxu1 %v5723_v35  ;;  %v6048_v56 = vmul.f32 %v6041_v46, %v11861_v31  ;;  %v11869_v19 = vld [vmem:[#allocation35_spill] sm:$0xff] }
 0xb79   :  { %5784 = vmatpush.msrb.mxu0 %v5718_v6 }
 0xb7a   :  { %5804 = vmatpush.msra.mxu1 %v5719_v44 }
 0xb7b   :  { %5872 = vmatpush.msra.mxu0 %v10405_v14  ;;  %6815 = vmatmul.msk.f32.vlgmr.msrb.gmra.mxu2 %vm3241_vm7, %v6814_v39  ;;  %v6159_v45 = vpop.permute.xlu1 %6158 }
 0xb7c   :  { %6816 = vmatmul.msk.f32.vlgmr.msrb.gmra.mxu3 %vm3241_vm7, %v6814_v39  ;;  %6817 = vmatmul.msk.f32.vlgmr.msrb.gmra.mxu0 %vm3241_vm7, %v6814_v39  ;;  %v5909_v14 = vpop.permute.xlu0 %5908 }
 0xb7d   :  { %6818 = vmatmul.msk.f32.vlgmr.msra.gmra.mxu1 %vm3241_vm7, %v6814_v39  ;;  %v5923_v7 = vsel %vm945_vm6, %v10477_v3, %v5909_v14  ;;  %5873 = vmatpush.msra.mxu0 %v10373_v0  ;;  %v6044_v0 = vsel %vm11848_vm1, %v10541_v37, %v10705_v20  ;;  %v6155_v3 = vpop.permute.xlu2 %6154  ;;  %v11851_v37 = vld [vmem:[#allocation129_spill] sm:$0xff]  ;;  %v6160_v39 = vsel %vm11868_vm8, %v10615_v23, %v10675_v4 }
 0xb7e   :  { %5892 = vmatpush.msrb.mxu1 %v10343_v47  ;;  %v5930_v5 = vmul.f32 %v5923_v7, %v11846_v1  ;;  %v5926_v47 = vmul.f32 %v5922_v36, %v11846_v1  ;;  %v5918_v25 = vsel %vm945_vm6, %v11851_v37, %v10463_v61  ;;  %v6051_v52 = vmul.f32 %v6044_v0, %v11760_v21 }
 0xb7f   :  { %v5920_v49 = vsel %vm945_vm6, %v10563_v2, %v11851_v37  ;;  %v5928_v34 = vmul.f32 %v5918_v25, %v11853_v57  ;;  %v6161_v38 = vsel %vm11864_vm10, %v6155_v3, %v6159_v45  ;;  %v6162_v36 = vsel %vm11871_vm9, %v10666_v58, %v10615_v23 }
 0xb80   :  { %5893 = vmatpush.msrb.mxu1 %v10326_v59  ;;  %5953 = vmatpush.msrb.mxu2 %v5930_v5  ;;  %v6047_v59 = vmul.f32 %v10549_v41, %v11760_v21  ;;  %v5927_v48 = vmul.f32 %v5920_v49, %v11852_v42  ;;  %v6169_v5 = vmul.f32 %v6162_v36, %v11870_v33  ;;  %v5319_v36 = vld.sshfl [vmem:[#allocation1 + $0x8] sm:$0xff pattern:$0x75316420] }
 0xb82   :  { %6013 = vmatpush.msra.mxu1 %v5933_v13  ;;  %5954 = vmatpush.msrb.mxu2 %v5926_v47  ;;  %v11873_v13 = vld [vmem:[#allocation33_spill] sm:$0xff] }
 0xb83   :  { %6820 = vmatmul.msk.f32.vlgmr.msra.gmra.mxu2 %vm3241_vm7, %v6819_v62  ;;  %v5913_v41 = vpop.permute.xlu1 %5912  ;;  %v6170_v1 = vmul.f32 %v6160_v39, %v11873_v13 }
 0xb84   :  { %6014 = vmatpush.msra.mxu1 %v5929_v28  ;;  %6821 = vmatmul.msk.f32.vlgmr.msra.gmra.mxu3 %vm3241_vm7, %v6819_v62  ;;  %v5919_v61 = vsel %vm945_vm6, %v5913_v41, %v10534_v53  ;;  %v5921_v21 = vsel %vm945_vm6, %v5909_v14, %v5913_v41  ;;  %v6034_v30 = vpop.permute.xlu0 %6033  ;;  %vm11857_vm6 = vmmov %vm11847_vm0  ;;  %vm11874_vm0 = vcmp.lt.s32.totalorder %v11516_v26, 111 }
 0xb85   :  { %6822 = vmatmul.msk.f32.vlgmr.msra.gmra.mxu0 %vm3241_vm7, %v6819_v62  ;;  %6823 = vmatmul.msk.f32.vlgmr.msrb.gmra.mxu1 %vm3241_vm7, %v6819_v62  ;;  %v5931_v17 = vmul.f32 %v5921_v21, %v11852_v42  ;;  %v5932_v2 = vmul.f32 %v5919_v61, %v11853_v57  ;;  %v6039_v53 = vsel %vm11857_vm6, %v11854_v10, %v10571_v27  ;;  %v10809_v54 = vpop.permute.xlu2 %6267  ;;  %vm11875_vm1 = vmmov %vm11874_vm0  ;;  %v11882_v21 = vld [vmem:[#allocation43_spill] sm:$0xff]  ;;  %v6839_v57 = vld [vmem:[%s10907_s9 + $0x20] sm:$0x7] }
 0xb86   :  { %6074 = vmatpush.msra.mxu2 %v6051_v52  ;;  %6134 = vmatpush.msrb.mxu1 %v6054_v24  ;;  %v6040_v32 = vsel %vm11858_vm14, %v6034_v30, %v10561_v16  ;;  %v6042_v18 = vsel %vm11859_vm15, %v10705_v20, %v6034_v30  ;;  %v6167_v27 = vsel %vm11860_vm2, %v6159_v45, %v10678_v43  ;;  %vm11877_vm4 = vmmov %vm11874_vm0  ;;  %v11879_v52 = vld [vmem:[#allocation46_spill] sm:$0xff] }
 0xb87   :  { %5973 = vmatpush.msrb.mxu3 %v5931_v17  ;;  %5993 = vmatpush.msrb.mxu0 %v5932_v2  ;;  %v6049_v60 = vmul.f32 %v6039_v53, %v11862_v51  ;;  %v6166_v16 = vsel %vm11863_vm3, %v10675_v4, %v10700_v40  ;;  %v6052_v22 = vmul.f32 %v6042_v18, %v11861_v31  ;;  %vm11878_vm5 = vmmov %vm11874_vm0 }
 0xb88   :  { %6075 = vmatpush.msra.mxu2 %v6047_v59  ;;  %6135 = vmatpush.msrb.mxu1 %v6050_v9  ;;  %v6053_v55 = vmul.f32 %v6040_v32, %v11862_v51  ;;  %v6175_v35 = vmul.f32 %v6167_v27, %v11865_v15  ;;  %v6171_v7 = vmul.f32 %v6166_v16, %v11865_v15  ;;  %vm11880_vm6 = vmmov %vm11874_vm0  ;;  %v11883_v9 = vld [vmem:[#allocation48_spill] sm:$0xff] }
 0xb89   :  { %5974 = vmatpush.msrb.mxu3 %v5927_v48  ;;  %5994 = vmatpush.msrb.mxu0 %v5928_v34  ;;  %v6174_v4 = vmul.f32 %v6161_v38, %v11873_v13  ;;  %vm11881_vm14 = vmmov %vm11874_vm0 }
 0xb8a   :  { %vm11884_vm15 = vmmov %vm11874_vm0 }
 0xb8b   :  { %6825 = vmatmul.msk.f32.vlgmr.msrb.gmra.mxu2 %vm3241_vm7, %v6824_v29  ;;  %v6151_v8 = vpop.permute.xlu1 %6150  ;;  %6094 = vmatpush.msra.mxu3 %v6052_v22  ;;  %vm11885_vm2 = vmmov %vm11874_vm0 }
 0xb8c   :  { %6826 = vmatmul.msk.f32.vlgmr.msrb.gmra.mxu3 %vm3241_vm7, %v6824_v29  ;;  %v6163_v20 = vsel %vm11866_vm11, %v6151_v8, %v6155_v3  ;;  %v6165_v6 = vsel %vm11867_vm12, %v10678_v43, %v6151_v8  ;;  %v6270_v44 = vpop.permute.xlu0 %6269  ;;  %6114 = vmatpush.msra.mxu0 %v6053_v55  ;;  %v6164_v43 = vsel %vm11872_vm13, %v10700_v40, %v10666_v58  ;;  %v6829_v58 = vld [vmem:[%s10907_s9 + $0x18] sm:$0x7]  ;;  %v11876_v3 = vld [vmem:[#allocation47_spill] sm:$0xff] }
 0xb8d   :  { %6827 = vmatmul.msk.f32.vlgmr.msrb.gmra.mxu0 %vm3241_vm7, %v6824_v29  ;;  %6828 = vmatmul.msk.f32.vlgmr.msra.gmra.mxu1 %vm3241_vm7, %v6824_v29  ;;  %v6172_v45 = vmul.f32 %v6165_v6, %v11869_v19  ;;  %v6173_v14 = vmul.f32 %v6163_v20, %v11870_v33  ;;  %v6168_v23 = vmul.f32 %v6164_v43, %v11869_v19  ;;  %v6266_v28 = vpop.permute.xlu2 %6265  ;;  %v5321_v33 = vld.sshfl [vmem:[#allocation1 + $0x18] sm:$0xff pattern:$0x75316420] }
 0xb8e   :  { %6255 = vmatpush.msra.mxu1 %v6175_v35  ;;  %6095 = vmatpush.msra.mxu3 %v6048_v56  ;;  %v6285_v47 = vsel %vm11874_vm0, %v6266_v28, %v6270_v44 }
 0xb8f   :  { %6115 = vmatpush.msra.mxu0 %v6049_v60  ;;  %6195 = vmatpush.msrb.mxu2 %v6172_v45  ;;  %v6289_v59 = vmul.f32 %v6285_v47, %v11876_v3 }
 0xb90   :  { %6256 = vmatpush.msra.mxu1 %v6171_v7  ;;  %6215 = vmatpush.msrb.mxu3 %v6173_v14  ;;  %v5320_v14 = vld.sshfl [vmem:[#allocation1 + $0x10] sm:$0xff pattern:$0x75316420] }
 0xb91   :  { %6235 = vmatpush.msrb.mxu0 %v6174_v4  ;;  %6196 = vmatpush.msrb.mxu2 %v6168_v23 }
 0xb92   :  { %6216 = vmatpush.msrb.mxu3 %v6169_v5 }
 0xb93   :  { %6236 = vmatpush.msrb.mxu0 %v6170_v1  ;;  %v6274_v40 = vpop.permute.xlu1 %6273  ;;  %6830 = vmatmul.msk.f32.vlgmr.msra.gmra.mxu2 %vm3241_vm7, %v6829_v58  ;;  %v5318_v1 = vld.sshfl [vmem:[#allocation1] sm:$0xff pattern:$0x75316420] }
 0xb94   :  { %6831 = vmatmul.msk.f32.vlgmr.msra.gmra.mxu3 %vm3241_vm7, %v6829_v58  ;;  %v6272_v50 = vpop.permute.xlu0 %6271  ;;  %v6283_v24 = vsel %vm11877_vm4, %v6270_v44, %v6274_v40 }
 0xb95   :  { %6832 = vmatmul.msk.f32.vlgmr.msra.gmra.mxu0 %vm3241_vm7, %v6829_v58  ;;  %6833 = vmatmul.msk.f32.vlgmr.msrb.gmra.mxu1 %vm3241_vm7, %v6829_v58  ;;  %v6286_v0 = vsel %vm11875_vm1, %v10809_v54, %v6272_v50  ;;  %v6290_v17 = vmul.f32 %v6283_v24, %v11879_v52  ;;  %v5313_v45 = vpop.permute.xlu2 %5312 }
 0xb96   :  { %v6293_v62 = vmul.f32 %v6286_v0, %v11876_v3  ;;  %v5329_v13 = vadd.f32 %v5321_v33, %v5313_v45  ;;  %v5328_v4 = vadd.f32 %v5320_v14, %v5313_v45  ;;  %v5327_v23 = vadd.f32 %v5319_v36, %v5313_v45 }
 0xb98   :  { %6316 = vmatpush.msra.mxu2 %v6293_v62 }
 0xb9a   :  { %6317 = vmatpush.msra.mxu2 %v6289_v59 }
 0xb9b   :  { %v6276_v11 = vpop.permute.xlu1 %6275  ;;  %6835 = vmatmul.msk.f32.vlgmr.msrb.gmra.mxu2 %vm3241_vm7, %v6834_v63 }
 0xb9c   :  { %6836 = vmatmul.msk.f32.vlgmr.msrb.gmra.mxu3 %vm3241_vm7, %v6834_v63  ;;  %v6284_v37 = vsel %vm11878_vm5, %v6272_v50, %v6276_v11  ;;  %v6280_v25 = vpop.permute.xlu0 %6279  ;;  %v5326_v50 = vadd.f32 %v5318_v1, %v5313_v45 }
 0xb9d   :  { %6837 = vmatmul.msk.f32.vlgmr.msrb.gmra.mxu0 %vm3241_vm7, %v6834_v63  ;;  %6838 = vmatmul.msk.f32.vlgmr.msra.gmra.mxu1 %vm3241_vm7, %v6834_v63  ;;  %v6294_v41 = vmul.f32 %v6284_v37, %v11879_v52  ;;  %v6282_v49 = vsel %vm11880_vm6, %v6276_v11, %v6280_v25  ;;  %v6288_v61 = vsel %vm11881_vm14, %v6280_v25, %v10809_v54 }
 0xb9e   :  { %v6295_v30 = vmul.f32 %v6282_v49, %v11882_v21  ;;  %v6296_v42 = vmul.f32 %v6288_v61, %v11883_v9 }
 0xb9f   :  { %6336 = vmatpush.msra.mxu3 %v6294_v41 }
 0xba0   :  { %6356 = vmatpush.msra.mxu0 %v6295_v30  ;;  %6376 = vmatpush.msrb.mxu1 %v6296_v42  ;;  %v5383_v53 = vpop.f32.mrf.mxu1 }
 0xba1   :  { %6337 = vmatpush.msra.mxu3 %v6290_v17  ;;  %v5446_v3 = vadd.f32 %v5383_v53, %v5326_v50 }
 0xba3   :  { %v6278_v2 = vpop.permute.xlu1 %6277  ;;  %6840 = vmatmul.msk.f32.vlgmr.msra.gmra.mxu2 %vm3241_vm7, %v6839_v57 }
 0xba4   :  { %6841 = vmatmul.msk.f32.vlgmr.msra.gmra.mxu3 %vm3241_vm7, %v6839_v57  ;;  %v6281_v10 = vsel %vm11884_vm15, %v6274_v40, %v6278_v2  ;;  %v6287_v12 = vsel %vm11885_vm2, %v6278_v2, %v6266_v28 }
 0xba5   :  { %v6291_v46 = vmul.f32 %v6281_v10, %v11882_v21  ;;  %v6292_v48 = vmul.f32 %v6287_v12, %v11883_v9 }
 0xba7   :  { %6357 = vmatpush.msra.mxu0 %v6291_v46  ;;  %6377 = vmatpush.msrb.mxu1 %v6292_v48 }
 0xba8   :  { %6842 = vmatmul.msk.f32.vlgmr.msra.gmra.mxu0 %vm3241_vm7, %v6839_v57  ;;  %6843 = vmatmul.msk.f32.vlgmr.msrb.gmra.mxu1 %vm3241_vm7, %v6839_v57  ;;  %vm6392_vm7 = vcmask 1043456  }
 0xbbf   :  { %v5443_v34 = vpop.f32.mrf.mxu1 }
 0xbc0   :  { %v5449_v5 = vadd.f32 %v5443_v34, %v5329_v13 }
 0xbe1   :  { %v5564_v29 = vpop.f32.mrf.mxu1 }
 0xbe2   :  { %v5570_v47 = vadd.f32 %v5564_v29, %v5449_v5 }
 0xbe5   :  { %v5403_v32 = vpop.f32.mrf.mxu2 }
 0xbe6   :  { %v5423_v18 = vpop.f32.mrf.mxu3  ;;  %v5447_v0 = vadd.f32 %v5403_v32, %v5327_v23 }
 0xbe7   :  { %v5448_v58 = vadd.f32 %v5423_v18, %v5328_v4 }
 0xbe9   :  { %v5544_v27 = vpop.f32.mrf.mxu0 }
 0xbea   :  { %v5685_v26 = vpop.f32.mrf.mxu1  ;;  %v5569_v62 = vadd.f32 %v5544_v27, %v5448_v58 }
 0xbeb   :  { %v5691_v59 = vadd.f32 %v5685_v26, %v5570_v47 }
 0xbee   :  { %v5504_v31 = vpop.f32.mrf.mxu2  ;;  %v5524_v56 = vpop.f32.mrf.mxu3 }
 0xbef   :  { %v5568_v63 = vadd.f32 %v5524_v56, %v5447_v0  ;;  %v5567_v11 = vadd.f32 %v5504_v31, %v5446_v3 }
 0xbf1   :  { %v5665_v51 = vpop.f32.mrf.mxu0 }
 0xbf2   :  { %v5690_v24 = vadd.f32 %v5665_v51, %v5569_v62 }
 0xbf6   :  { %v5625_v60 = vpop.f32.mrf.mxu2  ;;  %v5645_v16 = vpop.f32.mrf.mxu3 }
 0xbf7   :  { %v5689_v37 = vadd.f32 %v5645_v16, %v5568_v63  ;;  %v5688_v49 = vadd.f32 %v5625_v60, %v5567_v11 }
 0xbf9   :  { %v5786_v54 = vpop.f32.mrf.mxu0 }
 0xbfa   :  { %v5806_v38 = vpop.f32.mrf.mxu1  ;;  %v5811_v61 = vadd.f32 %v5786_v54, %v5690_v24 }
 0xbfb   :  { %v5812_v25 = vadd.f32 %v5806_v38, %v5691_v59 }
 0xbfe   :  { %v5746_v22 = vpop.f32.mrf.mxu2 }
 0xbff   :  { %v5766_v55 = vpop.f32.mrf.mxu3  ;;  %v5809_v17 = vadd.f32 %v5746_v22, %v5688_v49 }
 0xc00   :  { %v5810_v21 = vadd.f32 %v5766_v55, %v5689_v37 }
 0xc02   :  { %v5875_v8 = vpop.f32.mrf.mxu0  ;;  %v5895_v15 = vpop.f32.mrf.mxu1 }
 0xc03   :  { %v5901_v30 = vadd.f32 %v5895_v15, %v5812_v25  ;;  %v5900_v57 = vadd.f32 %v5875_v8, %v5811_v61 }
 0xc06   :  { %v5835_v35 = vpop.f32.mrf.mxu2 }
 0xc07   :  { %v5855_v20 = vpop.f32.mrf.mxu3  ;;  %v5898_v12 = vadd.f32 %v5835_v35, %v5809_v17 }
 0xc08   :  { %v5899_v2 = vadd.f32 %v5855_v20, %v5810_v21 }
 0xc0a   :  { %v5996_v6 = vpop.f32.mrf.mxu0  ;;  %v6016_v44 = vpop.f32.mrf.mxu1 }
 0xc0b   :  { %v6022_v10 = vadd.f32 %v6016_v44, %v5901_v30  ;;  %v6021_v46 = vadd.f32 %v5996_v6, %v5900_v57 }
 0xc0e   :  { %v5956_v39 = vpop.f32.mrf.mxu2 }
 0xc0f   :  { %v5976_v19 = vpop.f32.mrf.mxu3  ;;  %v6019_v34 = vadd.f32 %v5956_v39, %v5898_v12 }
 0xc10   :  { %v6020_v48 = vadd.f32 %v5976_v19, %v5899_v2 }
 0xc12   :  { %v6117_v43 = vpop.f32.mrf.mxu0  ;;  %v6137_v7 = vpop.f32.mrf.mxu1 }
 0xc13   :  { %v6143_v53 = vadd.f32 %v6137_v7, %v6022_v10  ;;  %v6142_v32 = vadd.f32 %v6117_v43, %v6021_v46 }
 0xc16   :  { %v6077_v40 = vpop.f32.mrf.mxu2 }
 0xc17   :  { %v6097_v28 = vpop.f32.mrf.mxu3  ;;  %v6140_v56 = vadd.f32 %v6077_v40, %v6019_v34 }
 0xc18   :  { %v6141_v18 = vadd.f32 %v6097_v28, %v6020_v48 }
 0xc1a   :  { %v6238_v52 = vpop.f32.mrf.mxu0  ;;  %v6258_v41 = vpop.f32.mrf.mxu1 }
 0xc1b   :  { %v6264_v29 = vadd.f32 %v6258_v41, %v6143_v53  ;;  %v6263_v26 = vadd.f32 %v6238_v52, %v6142_v32 }
 0xc1e   :  { %v6198_v9 = vpop.f32.mrf.mxu2 }
 0xc1f   :  { %v6218_v42 = vpop.f32.mrf.mxu3  ;;  %v6261_v38 = vadd.f32 %v6198_v9, %v6140_v56 }
 0xc20   :  { %v6262_v51 = vadd.f32 %v6218_v42, %v6141_v18 }
 0xc25   :  { %v6359_v27 = vpop.f32.mrf.mxu0  ;;  %v6379_v31 = vpop.f32.mrf.mxu1 }
 0xc26   :  { %v6385_v60 = vadd.f32 %v6379_v31, %v6264_v29  ;;  %v6319_v16 = vpop.f32.mrf.mxu2  ;;  %v6384_v55 = vadd.f32 %v6359_v27, %v6263_v26 }
 0xc27   :  { %v6339_v54 = vpop.f32.mrf.mxu3  ;;  %v6382_v15 = vadd.f32 %v6319_v16, %v6261_v38 }
 0xc28   :  { %v6383_v22 = vadd.f32 %v6339_v54, %v6262_v51  ;;  %v6391_v8 = vrot.slane %v6385_v60, 4 }
 0xc2a   :  { %v6390_v35 = vrot.slane %v6383_v22, 4  ;;  %v6394_v20 = vsel %vm6392_vm7, %v6384_v55, %v6391_v8 }
 0xc2b   :  { %6398 = vst [vmem:[%s10908_s11 + $0x8] sm:$0x77] %v6394_v20 }
 0xc2c   :  { %v6393_v6 = vsel %vm6392_vm7, %v6382_v15, %v6390_v35 }
 0xc2d   :  { %6397 = vst [vmem:[%s10908_s11] sm:$0x77] %v6393_v6 }

</bundles_post_ra>
